<compile_context>
chip_gen: v7x
topology: tpu7x:2x2x1
jax: 0.10.0
libtpu: 0.0.40
codegen_flags: <defaults>
</compile_context>

<pallas_src>
import jax
import jax.numpy as jnp
from jax.experimental import pallas as pl
from jax.experimental.pallas import tpu as pltpu


def _round_up(x, m):
    return -(-x // m) * m


def _vmem_bytes_f32(shape):
    """Approximate VMEM footprint of an f32 buffer ((8,128) tile padding on last two dims)."""
    s = list(shape)
    if len(s) == 1:
        s = [1] + s
    s[-1] = _round_up(s[-1], 128)
    s[-2] = _round_up(s[-2], 8)
    n = 1
    for d in s:
        n *= d
    return 4 * n


# --------------------------- fused forward builder -------------------------- #

def make_cnnet2d(conv_arch, fc_arch, kernel_size=(5, 5), stride=3, input_hw=(32, 32)):
    kh, kw = kernel_size
    assert kh == kw, "square kernels only"
    K, S = kh, stride
    n_conv = len(conv_arch) - 1
    n_fc = len(fc_arch) - 1
    assert n_conv >= 2 and n_fc >= 1
    H, W = input_hw
    C = list(conv_arch)

    hs, ws = [H], [W]
    for _ in range(n_conv):
        hs.append((hs[-1] - K) // S + 1)
        ws.append((ws[-1] - K) // S + 1)
        assert hs[-1] >= 1 and ws[-1] >= 1
    flat = C[-1] * hs[-1] * ws[-1]
    assert fc_arch[0] == flat, (fc_arch[0], flat)
    Ap, Bp = -(-H // S), -(-W // S)        # coarse grid after padding H/W to multiples of S
    OW1P = _round_up(ws[1], 8)             # sublane-padded conv-0 output width

    # ----------------------------- kernel body ------------------------------ #
    def make_kernel(Nb):
        def kernel(*refs):
            it = iter(refs)
            xpp_ref = next(it)
            conv_w, conv_b = [], []
            for _ in range(n_conv):
                conv_w.append(next(it)); conv_b.append(next(it))
            fc_w, fc_b = [], []
            for _ in range(n_fc):
                fc_w.append(next(it)); fc_b.append(next(it))
            out_ref = next(it)
            cols0 = next(it)
            hbuf0 = next(it)
            cols_l, hbuf_l = [], []
            for _ in range(1, n_conv):
                cols_l.append(next(it)); hbuf_l.append(next(it))
            act = [next(it) for _ in range(n_conv - 1)]
            feat = next(it)

            # ---------------- conv layer 0 ----------------
            OH, OW, Cin, Cout = hs[1], ws[1], C[0], C[1]
            if OW1P > OW:   # zero the sublane padding once (padded rows are discarded later)
                cols0[:, :, OW:, :] = jnp.zeros((Nb, OH, OW1P - OW, K * K * Cin), jnp.float32)
            # per-tap contiguous gather (phase-decomposed input => no strided loads)
            for i in range(K):
                ph, ay = i % S, i // S
                for j in range(K):
                    pw, bx = j % S, j // S
                    p = ph * S + pw
                    t = i * K + j
                    cols0[:, :, :OW, t * Cin:(t + 1) * Cin] = (
                        xpp_ref[:, ay:ay + OH, bx:bx + OW, p * Cin:(p + 1) * Cin])
            # ONE 2-D MXU matmul over the full K = KH*KW*C_in contraction
            lhs = cols0[...].reshape(Nb * OH * OW1P, K * K * Cin)   # tile-aligned collapse
            h = jnp.dot(lhs, conv_w[0][...], preferred_element_type=jnp.float32)
            h = jnp.tanh(h + conv_b[0][...])
            hbuf0[...] = h.reshape(Nb, OH, OW1P, Cout)              # one dense store
            # lane-densify for the next layer's wide gathers: (Nb, OH, OW*Cout)
            for ox in range(OW):
                act[0][:, :, ox * Cout:(ox + 1) * Cout] = hbuf0[:, :, ox, :]

            # ---------------- conv layers 1 .. n_conv-1 ----------------
            for l in range(1, n_conv):
                OH, OW, Cin, Cout = hs[l + 1], ws[l + 1], C[l], C[l + 1]
                P = OH * OW
                Pp = _round_up(P, 8)
                src = act[l - 1]          # (Nb, hs[l], ws[l]*Cin) -- lane-dense
                cols = cols_l[l - 1]      # (Nb, Pp, K*K*Cin)
                hbuf = hbuf_l[l - 1]      # (Nb, Pp, Cout)
                if Pp > P:
                    cols[:, P:, :] = jnp.zeros((Nb, Pp - P, K * K * Cin), jnp.float32)
                # im2col: one contiguous (Nb, K*Cin) copy per (oy, ox, i)  (j fused)
                for oy in range(OH):
                    for ox in range(OW):
                        pos = oy * OW + ox
                        for i in range(K):
                            cols[:, pos, i * K * Cin:(i + 1) * K * Cin] = (
                                src[:, S * oy + i, S * ox * Cin:(S * ox + K) * Cin])
                lhs = cols[...].reshape(Nb * Pp, K * K * Cin)        # tile-aligned collapse
                h = jnp.dot(lhs, conv_w[l][...], preferred_element_type=jnp.float32)
                h = jnp.tanh(h + conv_b[l][...])
                hbuf[...] = h.reshape(Nb, Pp, Cout)                  # one dense store
                if l < n_conv - 1:
                    dst = act[l]          # (Nb, OH, OW*Cout)
                    for oy in range(OH):
                        for ox in range(OW):
                            dst[:, oy, ox * Cout:(ox + 1) * Cout] = hbuf[:, oy * OW + ox, :]
                else:
                    # flatten in (oy, ox, c) order; fc_w[0] is pre-permuted to match
                    for pos in range(P):
                        feat[:, pos * Cout:(pos + 1) * Cout] = hbuf[:, pos, :]

            # ---------------- FC stack (tanh on all but the last layer) ----------------
            z = feat[...]
            for l in range(n_fc):
                z = jnp.dot(z, fc_w[l][...], preferred_element_type=jnp.float32)
                z = z + fc_b[l][...]
                if l < n_fc - 1:
                    z = jnp.tanh(z)
            out_ref[...] = z.astype(out_ref.dtype)

        return kernel

    # --------------------- one-time parameter layout prep ------------------- #
    def prepare_params(params):
        conv_w, conv_b = [], []
        for (w, b) in params["conv"]:
            cout, cin = w.shape[0], w.shape[1]
            wf = jnp.transpose(w, (2, 3, 1, 0)).reshape(K * K * cin, cout)  # (i,j,c)-major
            conv_w.append(wf)
            conv_b.append(b.reshape(1, cout))
        fc_w, fc_b = [], []
        (w0, b0) = params["fc"][0]
        # permute torch's (C, OH, OW) flatten order to our channels-last (OH, OW, C) order
        w0p = (w0.reshape(w0.shape[0], C[-1], hs[-1], ws[-1])
                 .transpose(0, 2, 3, 1).reshape(w0.shape[0], -1))
        fc_w.append(jnp.transpose(w0p))
        fc_b.append(b0.reshape(1, -1))
        for (w, b) in params["fc"][1:]:
            fc_w.append(jnp.transpose(w))
            fc_b.append(b.reshape(1, -1))
        return {"conv_w": conv_w, "conv_b": conv_b, "fc_w": fc_w, "fc_b": fc_b}

    # ------------------------- VMEM sizing helpers --------------------------- #
    def _scratch_shapes(nb):
        shapes = [(nb, hs[1], OW1P, K * K * C[0]),       # cols0
                  (nb, hs[1], OW1P, C[1])]               # hbuf0
        for l in range(1, n_conv):
            pp = _round_up(hs[l + 1] * ws[l + 1], 8)
            shapes.append((nb, pp, K * K * C[l]))        # cols_l
            shapes.append((nb, pp, C[l + 1]))            # hbuf_l
        for l in range(n_conv - 1):
            shapes.append((nb, hs[l + 1], ws[l + 1] * C[l + 1]))   # act_l (lane-dense)
        shapes.append((nb, flat))                        # feat
        return shapes

    def _pick_nb_blk(Nb):
        per = sum(_vmem_bytes_f32(s) for s in _scratch_shapes(1))
        per += 2 * _vmem_bytes_f32((1, Ap, Bp, S * S * C[0]))      # double-buffered input
        budget = 40 * 1024 * 1024      # conservative: fits v5e/v6e (128 MiB) and v7x (64 MiB)
        cap = max(1, min(32, budget // max(per, 1)))               # cap also bounds vreg/spill
        if Nb <= cap:
            return Nb
        blk = min((cap // 8) * 8, (Nb // 8) * 8)
        while blk >= 8:
            if Nb % blk == 0:
                return blk
            blk -= 8
        return Nb   # fallback: whole batch resident

    # ------------------------------ forward --------------------------------- #
    @jax.jit
    def forward(prep, x):
        Nb = x.shape[0]
        assert x.shape[1] == C[0] and x.shape[2] == H and x.shape[3] == W
        Nb_blk = _pick_nb_blk(Nb)
        n_blocks = Nb // Nb_blk

        # channels-last, pad H/W up to multiples of the stride, split each spatial dim into
        # (coarse, phase) and fold (phase_h, phase_w, C) into one dense minor axis so every
        # in-kernel conv-0 tap gather is a contiguous slice.  Padded zeros are never read.
        xt = jnp.transpose(x, (0, 2, 3, 1))
        xt = jnp.pad(xt, ((0, 0), (0, Ap * S - H), (0, Bp * S - W), (0, 0)))
        xpp = xt.reshape(Nb, Ap, S, Bp, S, C[0])
        xpp = jnp.transpose(xpp, (0, 1, 3, 2, 4, 5)).reshape(Nb, Ap, Bp, S * S * C[0])

        scratch = [pltpu.VMEM(s, jnp.float32) for s in _scratch_shapes(Nb_blk)]

        # advisory cost estimate
        flops = 0
        for l in range(n_conv):
            flops += 2 * Nb * hs[l + 1] * ws[l + 1] * (K * K * C[l]) * C[l + 1]
        for l in range(n_fc):
            flops += 2 * Nb * fc_arch[l] * fc_arch[l + 1]
        trans = Nb * sum(hs[l + 1] * ws[l + 1] * C[l + 1] for l in range(n_conv))
        trans += Nb * sum(fc_arch[1:-1])
        n_param = sum(K * K * C[l] * C[l + 1] + C[l + 1] for l in range(n_conv))
        n_param += sum(fc_arch[l] * fc_arch[l + 1] + fc_arch[l + 1] for l in range(n_fc))
        bytes_acc = 4 * (xpp.size + n_param + Nb * fc_arch[-1])

        est_vmem = sum(_vmem_bytes_f32(s) for s in _scratch_shapes(Nb_blk))
        est_vmem += 2 * _vmem_bytes_f32((Nb_blk, Ap, Bp, S * S * C[0]))
        est_vmem += 4 * n_param + _vmem_bytes_f32((Nb_blk, fc_arch[-1]))
        vmem_limit = int(min(48 * 1024 * 1024, max(32 * 1024 * 1024, 2 * est_vmem)))

        in_specs = [pl.BlockSpec((Nb_blk, Ap, Bp, S * S * C[0]), lambda n: (n, 0, 0, 0))]
        args = [xpp]
        for l in range(n_conv):
            in_specs.append(pl.BlockSpec(prep["conv_w"][l].shape, lambda n: (0, 0)))
            in_specs.append(pl.BlockSpec(prep["conv_b"][l].shape, lambda n: (0, 0)))
            args += [prep["conv_w"][l], prep["conv_b"][l]]
        for l in range(n_fc):
            in_specs.append(pl.BlockSpec(prep["fc_w"][l].shape, lambda n: (0, 0)))
            in_specs.append(pl.BlockSpec(prep["fc_b"][l].shape, lambda n: (0, 0)))
            args += [prep["fc_w"][l], prep["fc_b"][l]]

        return pl.pallas_call(
            make_kernel(Nb_blk),
            out_shape=jax.ShapeDtypeStruct((Nb, fc_arch[-1]), jnp.float32),
            grid_spec=pltpu.PrefetchScalarGridSpec(
                num_scalar_prefetch=0,
                grid=(n_blocks,),
                in_specs=in_specs,
                out_specs=pl.BlockSpec((Nb_blk, fc_arch[-1]), lambda n: (n, 0)),
                scratch_shapes=scratch),
            compiler_params=pltpu.CompilerParams(
                dimension_semantics=("parallel",),
                vmem_limit_bytes=vmem_limit),
            cost_estimate=pl.CostEstimate(
                flops=flops, transcendentals=trans, bytes_accessed=bytes_acc),
        )(*args)

    return prepare_params, forward


# ------------------------------ init & reference ---------------------------- #

def init_params(key, conv_arch, fc_arch, kernel_size):
    """Deterministic PyTorch-style uniform init: U(-1/sqrt(fan_in), 1/sqrt(fan_in))."""
    kh, kw = kernel_size
    params = {"conv": [], "fc": []}
    c_in = conv_arch[0]
    for c_out in conv_arch[1:]:
        key, k1, k2 = jax.random.split(key, 3)
        bound = 1.0 / float(jnp.sqrt(c_in * kh * kw))
        w = jax.random.uniform(k1, (c_out, c_in, kh, kw), jnp.float32, -bound, bound)
        b = jax.random.uniform(k2, (c_out,), jnp.float32, -bound, bound)
        params["conv"].append((w, b))
        c_in = c_out
    f_in = fc_arch[0]
    for f_out in fc_arch[1:]:
        key, k1, k2 = jax.random.split(key, 3)
        bound = 1.0 / float(jnp.sqrt(f_in))
        w = jax.random.uniform(k1, (f_out, f_in), jnp.float32, -bound, bound)
        b = jax.random.uniform(k2, (f_out,), jnp.float32, -bound, bound)
        params["fc"].append((w, b))
        f_in = f_out
    return params


def reference_forward(params, x, stride=3):
    """Pure-JAX reference (lax conv + dense) mirroring the PyTorch forward."""
    hp = jax.lax.Precision.HIGHEST
    for (w, b) in params["conv"]:
        x = jax.lax.conv_general_dilated(
            x, w, (stride, stride), "VALID",
            dimension_numbers=("NCHW", "OIHW", "NCHW"), precision=hp)
        x = jnp.tanh(x + b[None, :, None, None])
    x = x.reshape(x.shape[0], -1)
    fcs = params["fc"]
    for (w, b) in fcs[:-1]:
        x = jnp.tanh(jnp.dot(x, w.T, precision=hp) + b)
    w, b = fcs[-1]
    return jnp.dot(x, w.T, precision=hp) + b


# ----------------------------------- main ------------------------------------ #

if __name__ == "__main__":
    key = jax.random.PRNGKey(0)
    kernel_size = (5, 5)
    stride = 3

    # Input (2, 4, 32, 32); conv arch [4, 6, 8]: 32x32 -> 10x10 -> 2x2
    # => flattened = 8*2*2 = 32 ; fc arch [32, 16, 8].
    conv_arch = [4, 6, 8]
    fc_arch = [32, 16, 8]
    H = W = 32

    key, kx, kp = jax.random.split(key, 3)
    x = jax.random.normal(kx, (2, conv_arch[0], H, W), jnp.float32)
    params = init_params(kp, conv_arch, fc_arch, kernel_size)

    prepare_params, forward = make_cnnet2d(conv_arch, fc_arch, kernel_size, stride, (H, W))
    prep = prepare_params(params)

    out = jax.block_until_ready(forward(prep, x))
    ref = jax.block_until_ready(reference_forward(params, x, stride=stride))

    assert out.shape == (2, fc_arch[-1]), out.shape
    max_err = float(jnp.max(jnp.abs(out - ref)))
    assert jnp.allclose(out, ref, rtol=5e-4, atol=5e-4), f"max abs err = {max_err}"

    print("KERNEL_OK")
</pallas_src>

<mosaic_0001>
module attributes {stable_mosaic.version = 11 : i64} {
  func.func @kernel(%arg0: i32, %arg1: memref<2x11x11x36xf32, #tpu.memory_space<vmem>>, %arg2: memref<100x6xf32, #tpu.memory_space<vmem>>, %arg3: memref<1x6xf32, #tpu.memory_space<vmem>>, %arg4: memref<150x8xf32, #tpu.memory_space<vmem>>, %arg5: memref<1x8xf32, #tpu.memory_space<vmem>>, %arg6: memref<32x16xf32, #tpu.memory_space<vmem>>, %arg7: memref<1x16xf32, #tpu.memory_space<vmem>>, %arg8: memref<16x8xf32, #tpu.memory_space<vmem>>, %arg9: memref<1x8xf32, #tpu.memory_space<vmem>>, %arg10: memref<2x8xf32, #tpu.memory_space<vmem>>, %arg11: memref<2x10x16x100xf32, #tpu.memory_space<vmem>>, %arg12: memref<2x10x16x6xf32, #tpu.memory_space<vmem>>, %arg13: memref<2x8x150xf32, #tpu.memory_space<vmem>>, %arg14: memref<2x8x8xf32, #tpu.memory_space<vmem>>, %arg15: memref<2x10x60xf32, #tpu.memory_space<vmem>>, %arg16: memref<2x32xf32, #tpu.memory_space<vmem>>) attributes {dimension_semantics = [#tpu.dimension_semantics<parallel>], iteration_bounds = array<i64: 1>, scalar_prefetch = 0 : i64, scratch_operands = 6 : i64, tpu.core_type = #tpu.core_type<tc>, window_params = [{transform_indices = @transform_0, window_bounds = array<i64: 2, 11, 11, 36>}, {pipeline_mode = #tpu.pipeline_mode<synchronous>, transform_indices = @transform_1, window_bounds = array<i64: 100, 6>}, {pipeline_mode = #tpu.pipeline_mode<synchronous>, transform_indices = @transform_2, window_bounds = array<i64: 1, 6>}, {pipeline_mode = #tpu.pipeline_mode<synchronous>, transform_indices = @transform_3, window_bounds = array<i64: 150, 8>}, {pipeline_mode = #tpu.pipeline_mode<synchronous>, transform_indices = @transform_4, window_bounds = array<i64: 1, 8>}, {pipeline_mode = #tpu.pipeline_mode<synchronous>, transform_indices = @transform_5, window_bounds = array<i64: 32, 16>}, {pipeline_mode = #tpu.pipeline_mode<synchronous>, transform_indices = @transform_6, window_bounds = array<i64: 1, 16>}, {pipeline_mode = #tpu.pipeline_mode<synchronous>, transform_indices = @transform_7, window_bounds = array<i64: 16, 8>}, {pipeline_mode = #tpu.pipeline_mode<synchronous>, transform_indices = @transform_8, window_bounds = array<i64: 1, 8>}, {transform_indices = @transform_9, window_bounds = array<i64: 2, 8>}]} {
    %cst = arith.constant 0.000000e+00 : f32
    %0 = vector.broadcast %cst : f32 to vector<2x10x6x100xf32>
    %c0 = arith.constant 0 : index
    %c0_0 = arith.constant 0 : index
    %c10 = arith.constant 10 : index
    %c0_1 = arith.constant 0 : index
    %1 = vector.load %arg11[%c0, %c0_0, %c10, %c0_1] : memref<2x10x16x100xf32, #tpu.memory_space<vmem>>, vector<2x10x6x100xf32>
    tpu.vector_store %arg11[%c0, %c0_0, %c10, %c0_1], %0 {strides = array<i32>} : memref<2x10x16x100xf32, #tpu.memory_space<vmem>>, vector<2x10x6x100xf32>,
    %c0_2 = arith.constant 0 : index
    %c0_3 = arith.constant 0 : index
    %c0_4 = arith.constant 0 : index
    %c0_5 = arith.constant 0 : index
    %2 = vector.load %arg1[%c0_2, %c0_3, %c0_4, %c0_5] : memref<2x11x11x36xf32, #tpu.memory_space<vmem>>, vector<2x10x10x4xf32>
    %c0_6 = arith.constant 0 : index
    %c0_7 = arith.constant 0 : index
    %c0_8 = arith.constant 0 : index
    %c0_9 = arith.constant 0 : index
    %3 = vector.load %arg11[%c0_6, %c0_7, %c0_8, %c0_9] : memref<2x10x16x100xf32, #tpu.memory_space<vmem>>, vector<2x10x10x4xf32>
    tpu.vector_store %arg11[%c0_6, %c0_7, %c0_8, %c0_9], %2 {strides = array<i32>} : memref<2x10x16x100xf32, #tpu.memory_space<vmem>>, vector<2x10x10x4xf32>,
    %c0_10 = arith.constant 0 : index
    %c0_11 = arith.constant 0 : index
    %c0_12 = arith.constant 0 : index
    %c4 = arith.constant 4 : index
    %4 = vector.load %arg1[%c0_10, %c0_11, %c0_12, %c4] : memref<2x11x11x36xf32, #tpu.memory_space<vmem>>, vector<2x10x10x4xf32>
    %c0_13 = arith.constant 0 : index
    %c0_14 = arith.constant 0 : index
    %c0_15 = arith.constant 0 : index
    %c4_16 = arith.constant 4 : index
    %5 = vector.load %arg11[%c0_13, %c0_14, %c0_15, %c4_16] : memref<2x10x16x100xf32, #tpu.memory_space<vmem>>, vector<2x10x10x4xf32>
    tpu.vector_store %arg11[%c0_13, %c0_14, %c0_15, %c4_16], %4 {strides = array<i32>} : memref<2x10x16x100xf32, #tpu.memory_space<vmem>>, vector<2x10x10x4xf32>,
    %c0_17 = arith.constant 0 : index
    %c0_18 = arith.constant 0 : index
    %c0_19 = arith.constant 0 : index
    %c8 = arith.constant 8 : index
    %6 = vector.load %arg1[%c0_17, %c0_18, %c0_19, %c8] : memref<2x11x11x36xf32, #tpu.memory_space<vmem>>, vector<2x10x10x4xf32>
    %c0_20 = arith.constant 0 : index
    %c0_21 = arith.constant 0 : index
    %c0_22 = arith.constant 0 : index
    %c8_23 = arith.constant 8 : index
    %7 = vector.load %arg11[%c0_20, %c0_21, %c0_22, %c8_23] : memref<2x10x16x100xf32, #tpu.memory_space<vmem>>, vector<2x10x10x4xf32>
    tpu.vector_store %arg11[%c0_20, %c0_21, %c0_22, %c8_23], %6 {strides = array<i32>} : memref<2x10x16x100xf32, #tpu.memory_space<vmem>>, vector<2x10x10x4xf32>,
    %c0_24 = arith.constant 0 : index
    %c0_25 = arith.constant 0 : index
    %c1 = arith.constant 1 : index
    %c0_26 = arith.constant 0 : index
    %8 = vector.load %arg1[%c0_24, %c0_25, %c1, %c0_26] : memref<2x11x11x36xf32, #tpu.memory_space<vmem>>, vector<2x10x10x4xf32>
    %c0_27 = arith.constant 0 : index
    %c0_28 = arith.constant 0 : index
    %c0_29 = arith.constant 0 : index
    %c12 = arith.constant 12 : index
    %9 = vector.load %arg11[%c0_27, %c0_28, %c0_29, %c12] : memref<2x10x16x100xf32, #tpu.memory_space<vmem>>, vector<2x10x10x4xf32>
    tpu.vector_store %arg11[%c0_27, %c0_28, %c0_29, %c12], %8 {strides = array<i32>} : memref<2x10x16x100xf32, #tpu.memory_space<vmem>>, vector<2x10x10x4xf32>,
    %c0_30 = arith.constant 0 : index
    %c0_31 = arith.constant 0 : index
    %c1_32 = arith.constant 1 : index
    %c4_33 = arith.constant 4 : index
    %10 = vector.load %arg1[%c0_30, %c0_31, %c1_32, %c4_33] : memref<2x11x11x36xf32, #tpu.memory_space<vmem>>, vector<2x10x10x4xf32>
    %c0_34 = arith.constant 0 : index
    %c0_35 = arith.constant 0 : index
    %c0_36 = arith.constant 0 : index
    %c16 = arith.constant 16 : index
    %11 = vector.load %arg11[%c0_34, %c0_35, %c0_36, %c16] : memref<2x10x16x100xf32, #tpu.memory_space<vmem>>, vector<2x10x10x4xf32>
    tpu.vector_store %arg11[%c0_34, %c0_35, %c0_36, %c16], %10 {strides = array<i32>} : memref<2x10x16x100xf32, #tpu.memory_space<vmem>>, vector<2x10x10x4xf32>,
    %c0_37 = arith.constant 0 : index
    %c0_38 = arith.constant 0 : index
    %c0_39 = arith.constant 0 : index
    %c12_40 = arith.constant 12 : index
    %12 = vector.load %arg1[%c0_37, %c0_38, %c0_39, %c12_40] : memref<2x11x11x36xf32, #tpu.memory_space<vmem>>, vector<2x10x10x4xf32>
    %c0_41 = arith.constant 0 : index
    %c0_42 = arith.constant 0 : index
    %c0_43 = arith.constant 0 : index
    %c20 = arith.constant 20 : index
    %13 = vector.load %arg11[%c0_41, %c0_42, %c0_43, %c20] : memref<2x10x16x100xf32, #tpu.memory_space<vmem>>, vector<2x10x10x4xf32>
    tpu.vector_store %arg11[%c0_41, %c0_42, %c0_43, %c20], %12 {strides = array<i32>} : memref<2x10x16x100xf32, #tpu.memory_space<vmem>>, vector<2x10x10x4xf32>,
    %c0_44 = arith.constant 0 : index
    %c0_45 = arith.constant 0 : index
    %c0_46 = arith.constant 0 : index
    %c16_47 = arith.constant 16 : index
    %14 = vector.load %arg1[%c0_44, %c0_45, %c0_46, %c16_47] : memref<2x11x11x36xf32, #tpu.memory_space<vmem>>, vector<2x10x10x4xf32>
    %c0_48 = arith.constant 0 : index
    %c0_49 = arith.constant 0 : index
    %c0_50 = arith.constant 0 : index
    %c24 = arith.constant 24 : index
    %15 = vector.load %arg11[%c0_48, %c0_49, %c0_50, %c24] : memref<2x10x16x100xf32, #tpu.memory_space<vmem>>, vector<2x10x10x4xf32>
    tpu.vector_store %arg11[%c0_48, %c0_49, %c0_50, %c24], %14 {strides = array<i32>} : memref<2x10x16x100xf32, #tpu.memory_space<vmem>>, vector<2x10x10x4xf32>,
    %c0_51 = arith.constant 0 : index
    %c0_52 = arith.constant 0 : index
    %c0_53 = arith.constant 0 : index
    %c20_54 = arith.constant 20 : index
    %16 = vector.load %arg1[%c0_51, %c0_52, %c0_53, %c20_54] : memref<2x11x11x36xf32, #tpu.memory_space<vmem>>, vector<2x10x10x4xf32>
    %c0_55 = arith.constant 0 : index
    %c0_56 = arith.constant 0 : index
    %c0_57 = arith.constant 0 : index
    %c28 = arith.constant 28 : index
    %17 = vector.load %arg11[%c0_55, %c0_56, %c0_57, %c28] : memref<2x10x16x100xf32, #tpu.memory_space<vmem>>, vector<2x10x10x4xf32>
    tpu.vector_store %arg11[%c0_55, %c0_56, %c0_57, %c28], %16 {strides = array<i32>} : memref<2x10x16x100xf32, #tpu.memory_space<vmem>>, vector<2x10x10x4xf32>,
    %c0_58 = arith.constant 0 : index
    %c0_59 = arith.constant 0 : index
    %c1_60 = arith.constant 1 : index
    %c12_61 = arith.constant 12 : index
    %18 = vector.load %arg1[%c0_58, %c0_59, %c1_60, %c12_61] : memref<2x11x11x36xf32, #tpu.memory_space<vmem>>, vector<2x10x10x4xf32>
    %c0_62 = arith.constant 0 : index
    %c0_63 = arith.constant 0 : index
    %c0_64 = arith.constant 0 : index
    %c32 = arith.constant 32 : index
    %19 = vector.load %arg11[%c0_62, %c0_63, %c0_64, %c32] : memref<2x10x16x100xf32, #tpu.memory_space<vmem>>, vector<2x10x10x4xf32>
    tpu.vector_store %arg11[%c0_62, %c0_63, %c0_64, %c32], %18 {strides = array<i32>} : memref<2x10x16x100xf32, #tpu.memory_space<vmem>>, vector<2x10x10x4xf32>,
    %c0_65 = arith.constant 0 : index
    %c0_66 = arith.constant 0 : index
    %c1_67 = arith.constant 1 : index
    %c16_68 = arith.constant 16 : index
    %20 = vector.load %arg1[%c0_65, %c0_66, %c1_67, %c16_68] : memref<2x11x11x36xf32, #tpu.memory_space<vmem>>, vector<2x10x10x4xf32>
    %c0_69 = arith.constant 0 : index
    %c0_70 = arith.constant 0 : index
    %c0_71 = arith.constant 0 : index
    %c36 = arith.constant 36 : index
    %21 = vector.load %arg11[%c0_69, %c0_70, %c0_71, %c36] : memref<2x10x16x100xf32, #tpu.memory_space<vmem>>, vector<2x10x10x4xf32>
    tpu.vector_store %arg11[%c0_69, %c0_70, %c0_71, %c36], %20 {strides = array<i32>} : memref<2x10x16x100xf32, #tpu.memory_space<vmem>>, vector<2x10x10x4xf32>,
    %c0_72 = arith.constant 0 : index
    %c0_73 = arith.constant 0 : index
    %c0_74 = arith.constant 0 : index
    %c24_75 = arith.constant 24 : index
    %22 = vector.load %arg1[%c0_72, %c0_73, %c0_74, %c24_75] : memref<2x11x11x36xf32, #tpu.memory_space<vmem>>, vector<2x10x10x4xf32>
    %c0_76 = arith.constant 0 : index
    %c0_77 = arith.constant 0 : index
    %c0_78 = arith.constant 0 : index
    %c40 = arith.constant 40 : index
    %23 = vector.load %arg11[%c0_76, %c0_77, %c0_78, %c40] : memref<2x10x16x100xf32, #tpu.memory_space<vmem>>, vector<2x10x10x4xf32>
    tpu.vector_store %arg11[%c0_76, %c0_77, %c0_78, %c40], %22 {strides = array<i32>} : memref<2x10x16x100xf32, #tpu.memory_space<vmem>>, vector<2x10x10x4xf32>,
    %c0_79 = arith.constant 0 : index
    %c0_80 = arith.constant 0 : index
    %c0_81 = arith.constant 0 : index
    %c28_82 = arith.constant 28 : index
    %24 = vector.load %arg1[%c0_79, %c0_80, %c0_81, %c28_82] : memref<2x11x11x36xf32, #tpu.memory_space<vmem>>, vector<2x10x10x4xf32>
    %c0_83 = arith.constant 0 : index
    %c0_84 = arith.constant 0 : index
    %c0_85 = arith.constant 0 : index
    %c44 = arith.constant 44 : index
    %25 = vector.load %arg11[%c0_83, %c0_84, %c0_85, %c44] : memref<2x10x16x100xf32, #tpu.memory_space<vmem>>, vector<2x10x10x4xf32>
    tpu.vector_store %arg11[%c0_83, %c0_84, %c0_85, %c44], %24 {strides = array<i32>} : memref<2x10x16x100xf32, #tpu.memory_space<vmem>>, vector<2x10x10x4xf32>,
    %c0_86 = arith.constant 0 : index
    %c0_87 = arith.constant 0 : index
    %c0_88 = arith.constant 0 : index
    %c32_89 = arith.constant 32 : index
    %26 = vector.load %arg1[%c0_86, %c0_87, %c0_88, %c32_89] : memref<2x11x11x36xf32, #tpu.memory_space<vmem>>, vector<2x10x10x4xf32>
    %c0_90 = arith.constant 0 : index
    %c0_91 = arith.constant 0 : index
    %c0_92 = arith.constant 0 : index
    %c48 = arith.constant 48 : index
    %27 = vector.load %arg11[%c0_90, %c0_91, %c0_92, %c48] : memref<2x10x16x100xf32, #tpu.memory_space<vmem>>, vector<2x10x10x4xf32>
    tpu.vector_store %arg11[%c0_90, %c0_91, %c0_92, %c48], %26 {strides = array<i32>} : memref<2x10x16x100xf32, #tpu.memory_space<vmem>>, vector<2x10x10x4xf32>,
    %c0_93 = arith.constant 0 : index
    %c0_94 = arith.constant 0 : index
    %c1_95 = arith.constant 1 : index
    %c24_96 = arith.constant 24 : index
    %28 = vector.load %arg1[%c0_93, %c0_94, %c1_95, %c24_96] : memref<2x11x11x36xf32, #tpu.memory_space<vmem>>, vector<2x10x10x4xf32>
    %c0_97 = arith.constant 0 : index
    %c0_98 = arith.constant 0 : index
    %c0_99 = arith.constant 0 : index
    %c52 = arith.constant 52 : index
    %29 = vector.load %arg11[%c0_97, %c0_98, %c0_99, %c52] : memref<2x10x16x100xf32, #tpu.memory_space<vmem>>, vector<2x10x10x4xf32>
    tpu.vector_store %arg11[%c0_97, %c0_98, %c0_99, %c52], %28 {strides = array<i32>} : memref<2x10x16x100xf32, #tpu.memory_space<vmem>>, vector<2x10x10x4xf32>,
    %c0_100 = arith.constant 0 : index
    %c0_101 = arith.constant 0 : index
    %c1_102 = arith.constant 1 : index
    %c28_103 = arith.constant 28 : index
    %30 = vector.load %arg1[%c0_100, %c0_101, %c1_102, %c28_103] : memref<2x11x11x36xf32, #tpu.memory_space<vmem>>, vector<2x10x10x4xf32>
    %c0_104 = arith.constant 0 : index
    %c0_105 = arith.constant 0 : index
    %c0_106 = arith.constant 0 : index
    %c56 = arith.constant 56 : index
    %31 = vector.load %arg11[%c0_104, %c0_105, %c0_106, %c56] : memref<2x10x16x100xf32, #tpu.memory_space<vmem>>, vector<2x10x10x4xf32>
    tpu.vector_store %arg11[%c0_104, %c0_105, %c0_106, %c56], %30 {strides = array<i32>} : memref<2x10x16x100xf32, #tpu.memory_space<vmem>>, vector<2x10x10x4xf32>,
    %c0_107 = arith.constant 0 : index
    %c1_108 = arith.constant 1 : index
    %c0_109 = arith.constant 0 : index
    %c0_110 = arith.constant 0 : index
    %32 = vector.load %arg1[%c0_107, %c1_108, %c0_109, %c0_110] : memref<2x11x11x36xf32, #tpu.memory_space<vmem>>, vector<2x10x10x4xf32>
    %c0_111 = arith.constant 0 : index
    %c0_112 = arith.constant 0 : index
    %c0_113 = arith.constant 0 : index
    %c60 = arith.constant 60 : index
    %33 = vector.load %arg11[%c0_111, %c0_112, %c0_113, %c60] : memref<2x10x16x100xf32, #tpu.memory_space<vmem>>, vector<2x10x10x4xf32>
    tpu.vector_store %arg11[%c0_111, %c0_112, %c0_113, %c60], %32 {strides = array<i32>} : memref<2x10x16x100xf32, #tpu.memory_space<vmem>>, vector<2x10x10x4xf32>,
    %c0_114 = arith.constant 0 : index
    %c1_115 = arith.constant 1 : index
    %c0_116 = arith.constant 0 : index
    %c4_117 = arith.constant 4 : index
    %34 = vector.load %arg1[%c0_114, %c1_115, %c0_116, %c4_117] : memref<2x11x11x36xf32, #tpu.memory_space<vmem>>, vector<2x10x10x4xf32>
    %c0_118 = arith.constant 0 : index
    %c0_119 = arith.constant 0 : index
    %c0_120 = arith.constant 0 : index
    %c64 = arith.constant 64 : index
    %35 = vector.load %arg11[%c0_118, %c0_119, %c0_120, %c64] : memref<2x10x16x100xf32, #tpu.memory_space<vmem>>, vector<2x10x10x4xf32>
    tpu.vector_store %arg11[%c0_118, %c0_119, %c0_120, %c64], %34 {strides = array<i32>} : memref<2x10x16x100xf32, #tpu.memory_space<vmem>>, vector<2x10x10x4xf32>,
    %c0_121 = arith.constant 0 : index
    %c1_122 = arith.constant 1 : index
    %c0_123 = arith.constant 0 : index
    %c8_124 = arith.constant 8 : index
    %36 = vector.load %arg1[%c0_121, %c1_122, %c0_123, %c8_124] : memref<2x11x11x36xf32, #tpu.memory_space<vmem>>, vector<2x10x10x4xf32>
    %c0_125 = arith.constant 0 : index
    %c0_126 = arith.constant 0 : index
    %c0_127 = arith.constant 0 : index
    %c68 = arith.constant 68 : index
    %37 = vector.load %arg11[%c0_125, %c0_126, %c0_127, %c68] : memref<2x10x16x100xf32, #tpu.memory_space<vmem>>, vector<2x10x10x4xf32>
    tpu.vector_store %arg11[%c0_125, %c0_126, %c0_127, %c68], %36 {strides = array<i32>} : memref<2x10x16x100xf32, #tpu.memory_space<vmem>>, vector<2x10x10x4xf32>,
    %c0_128 = arith.constant 0 : index
    %c1_129 = arith.constant 1 : index
    %c1_130 = arith.constant 1 : index
    %c0_131 = arith.constant 0 : index
    %38 = vector.load %arg1[%c0_128, %c1_129, %c1_130, %c0_131] : memref<2x11x11x36xf32, #tpu.memory_space<vmem>>, vector<2x10x10x4xf32>
    %c0_132 = arith.constant 0 : index
    %c0_133 = arith.constant 0 : index
    %c0_134 = arith.constant 0 : index
    %c72 = arith.constant 72 : index
    %39 = vector.load %arg11[%c0_132, %c0_133, %c0_134, %c72] : memref<2x10x16x100xf32, #tpu.memory_space<vmem>>, vector<2x10x10x4xf32>
    tpu.vector_store %arg11[%c0_132, %c0_133, %c0_134, %c72], %38 {strides = array<i32>} : memref<2x10x16x100xf32, #tpu.memory_space<vmem>>, vector<2x10x10x4xf32>,
    %c0_135 = arith.constant 0 : index
    %c1_136 = arith.constant 1 : index
    %c1_137 = arith.constant 1 : index
    %c4_138 = arith.constant 4 : index
    %40 = vector.load %arg1[%c0_135, %c1_136, %c1_137, %c4_138] : memref<2x11x11x36xf32, #tpu.memory_space<vmem>>, vector<2x10x10x4xf32>
    %c0_139 = arith.constant 0 : index
    %c0_140 = arith.constant 0 : index
    %c0_141 = arith.constant 0 : index
    %c76 = arith.constant 76 : index
    %41 = vector.load %arg11[%c0_139, %c0_140, %c0_141, %c76] : memref<2x10x16x100xf32, #tpu.memory_space<vmem>>, vector<2x10x10x4xf32>
    tpu.vector_store %arg11[%c0_139, %c0_140, %c0_141, %c76], %40 {strides = array<i32>} : memref<2x10x16x100xf32, #tpu.memory_space<vmem>>, vector<2x10x10x4xf32>,
    %c0_142 = arith.constant 0 : index
    %c1_143 = arith.constant 1 : index
    %c0_144 = arith.constant 0 : index
    %c12_145 = arith.constant 12 : index
    %42 = vector.load %arg1[%c0_142, %c1_143, %c0_144, %c12_145] : memref<2x11x11x36xf32, #tpu.memory_space<vmem>>, vector<2x10x10x4xf32>
    %c0_146 = arith.constant 0 : index
    %c0_147 = arith.constant 0 : index
    %c0_148 = arith.constant 0 : index
    %c80 = arith.constant 80 : index
    %43 = vector.load %arg11[%c0_146, %c0_147, %c0_148, %c80] : memref<2x10x16x100xf32, #tpu.memory_space<vmem>>, vector<2x10x10x4xf32>
    tpu.vector_store %arg11[%c0_146, %c0_147, %c0_148, %c80], %42 {strides = array<i32>} : memref<2x10x16x100xf32, #tpu.memory_space<vmem>>, vector<2x10x10x4xf32>,
    %c0_149 = arith.constant 0 : index
    %c1_150 = arith.constant 1 : index
    %c0_151 = arith.constant 0 : index
    %c16_152 = arith.constant 16 : index
    %44 = vector.load %arg1[%c0_149, %c1_150, %c0_151, %c16_152] : memref<2x11x11x36xf32, #tpu.memory_space<vmem>>, vector<2x10x10x4xf32>
    %c0_153 = arith.constant 0 : index
    %c0_154 = arith.constant 0 : index
    %c0_155 = arith.constant 0 : index
    %c84 = arith.constant 84 : index
    %45 = vector.load %arg11[%c0_153, %c0_154, %c0_155, %c84] : memref<2x10x16x100xf32, #tpu.memory_space<vmem>>, vector<2x10x10x4xf32>
    tpu.vector_store %arg11[%c0_153, %c0_154, %c0_155, %c84], %44 {strides = array<i32>} : memref<2x10x16x100xf32, #tpu.memory_space<vmem>>, vector<2x10x10x4xf32>,
    %c0_156 = arith.constant 0 : index
    %c1_157 = arith.constant 1 : index
    %c0_158 = arith.constant 0 : index
    %c20_159 = arith.constant 20 : index
    %46 = vector.load %arg1[%c0_156, %c1_157, %c0_158, %c20_159] : memref<2x11x11x36xf32, #tpu.memory_space<vmem>>, vector<2x10x10x4xf32>
    %c0_160 = arith.constant 0 : index
    %c0_161 = arith.constant 0 : index
    %c0_162 = arith.constant 0 : index
    %c88 = arith.constant 88 : index
    %47 = vector.load %arg11[%c0_160, %c0_161, %c0_162, %c88] : memref<2x10x16x100xf32, #tpu.memory_space<vmem>>, vector<2x10x10x4xf32>
    tpu.vector_store %arg11[%c0_160, %c0_161, %c0_162, %c88], %46 {strides = array<i32>} : memref<2x10x16x100xf32, #tpu.memory_space<vmem>>, vector<2x10x10x4xf32>,
    %c0_163 = arith.constant 0 : index
    %c1_164 = arith.constant 1 : index
    %c1_165 = arith.constant 1 : index
    %c12_166 = arith.constant 12 : index
    %48 = vector.load %arg1[%c0_163, %c1_164, %c1_165, %c12_166] : memref<2x11x11x36xf32, #tpu.memory_space<vmem>>, vector<2x10x10x4xf32>
    %c0_167 = arith.constant 0 : index
    %c0_168 = arith.constant 0 : index
    %c0_169 = arith.constant 0 : index
    %c92 = arith.constant 92 : index
    %49 = vector.load %arg11[%c0_167, %c0_168, %c0_169, %c92] : memref<2x10x16x100xf32, #tpu.memory_space<vmem>>, vector<2x10x10x4xf32>
    tpu.vector_store %arg11[%c0_167, %c0_168, %c0_169, %c92], %48 {strides = array<i32>} : memref<2x10x16x100xf32, #tpu.memory_space<vmem>>, vector<2x10x10x4xf32>,
    %c0_170 = arith.constant 0 : index
    %c1_171 = arith.constant 1 : index
    %c1_172 = arith.constant 1 : index
    %c16_173 = arith.constant 16 : index
    %50 = vector.load %arg1[%c0_170, %c1_171, %c1_172, %c16_173] : memref<2x11x11x36xf32, #tpu.memory_space<vmem>>, vector<2x10x10x4xf32>
    %c0_174 = arith.constant 0 : index
    %c0_175 = arith.constant 0 : index
    %c0_176 = arith.constant 0 : index
    %c96 = arith.constant 96 : index
    %51 = vector.load %arg11[%c0_174, %c0_175, %c0_176, %c96] : memref<2x10x16x100xf32, #tpu.memory_space<vmem>>, vector<2x10x10x4xf32>
    tpu.vector_store %arg11[%c0_174, %c0_175, %c0_176, %c96], %50 {strides = array<i32>} : memref<2x10x16x100xf32, #tpu.memory_space<vmem>>, vector<2x10x10x4xf32>,
    %c0_177 = arith.constant 0 : index
    %c0_178 = arith.constant 0 : index
    %c0_179 = arith.constant 0 : index
    %c0_180 = arith.constant 0 : index
    %52 = vector.load %arg11[%c0_177, %c0_178, %c0_179, %c0_180] : memref<2x10x16x100xf32, #tpu.memory_space<vmem>>, vector<2x10x16x100xf32>
    %53 = vector.shape_cast %52 : vector<2x10x16x100xf32> to vector<320x100xf32>
    %c0_181 = arith.constant 0 : index
    %c0_182 = arith.constant 0 : index
    %54 = vector.load %arg2[%c0_181, %c0_182] : memref<100x6xf32, #tpu.memory_space<vmem>>, vector<100x6xf32>
    %cst_183 = arith.constant dense<0.000000e+00> : vector<320x6xf32>
    %55 = tpu.matmul %53, %54, %cst_183 {dimension_numbers = #tpu.dot_dimension_numbers<[1], [0], [0], [1], [0, 0, 1, 1], [], []>} : vector<320x100xf32>, vector<100x6xf32>, vector<320x6xf32> -> vector<320x6xf32>
    %c0_184 = arith.constant 0 : index
    %c0_185 = arith.constant 0 : index
    %56 = vector.load %arg3[%c0_184, %c0_185] : memref<1x6xf32, #tpu.memory_space<vmem>>, vector<1x6xf32>
    %57 = vector.broadcast %56 : vector<1x6xf32> to vector<320x6xf32>
    %58 = arith.addf %55, %57 : vector<320x6xf32>
    %59 = math.tanh %58 : vector<320x6xf32>
    %60 = vector.shape_cast %59 : vector<320x6xf32> to vector<2x10x16x6xf32>
    %c0_186 = arith.constant 0 : index
    %c0_187 = arith.constant 0 : index
    %c0_188 = arith.constant 0 : index
    %c0_189 = arith.constant 0 : index
    %61 = vector.load %arg12[%c0_186, %c0_187, %c0_188, %c0_189] : memref<2x10x16x6xf32, #tpu.memory_space<vmem>>, vector<2x10x16x6xf32>
    tpu.vector_store %arg12[%c0_186, %c0_187, %c0_188, %c0_189], %60 {strides = array<i32>} : memref<2x10x16x6xf32, #tpu.memory_space<vmem>>, vector<2x10x16x6xf32>,
    %c0_190 = arith.constant 0 : index
    %c0_191 = arith.constant 0 : index
    %c0_192 = arith.constant 0 : index
    %c0_193 = arith.constant 0 : index
    %62 = vector.load %arg12[%c0_190, %c0_191, %c0_192, %c0_193] : memref<2x10x16x6xf32, #tpu.memory_space<vmem>>, vector<2x10x1x6xf32>
    %63 = vector.shape_cast %62 : vector<2x10x1x6xf32> to vector<2x10x6xf32>
    %c0_194 = arith.constant 0 : index
    %c0_195 = arith.constant 0 : index
    %c0_196 = arith.constant 0 : index
    %64 = vector.load %arg15[%c0_194, %c0_195, %c0_196] : memref<2x10x60xf32, #tpu.memory_space<vmem>>, vector<2x10x6xf32>
    tpu.vector_store %arg15[%c0_194, %c0_195, %c0_196], %63 {strides = array<i32>} : memref<2x10x60xf32, #tpu.memory_space<vmem>>, vector<2x10x6xf32>,
    %c0_197 = arith.constant 0 : index
    %c0_198 = arith.constant 0 : index
    %c1_199 = arith.constant 1 : index
    %c0_200 = arith.constant 0 : index
    %65 = vector.load %arg12[%c0_197, %c0_198, %c1_199, %c0_200] : memref<2x10x16x6xf32, #tpu.memory_space<vmem>>, vector<2x10x1x6xf32>
    %66 = vector.shape_cast %65 : vector<2x10x1x6xf32> to vector<2x10x6xf32>
    %c0_201 = arith.constant 0 : index
    %c0_202 = arith.constant 0 : index
    %c6 = arith.constant 6 : index
    %67 = vector.load %arg15[%c0_201, %c0_202, %c6] : memref<2x10x60xf32, #tpu.memory_space<vmem>>, vector<2x10x6xf32>
    tpu.vector_store %arg15[%c0_201, %c0_202, %c6], %66 {strides = array<i32>} : memref<2x10x60xf32, #tpu.memory_space<vmem>>, vector<2x10x6xf32>,
    %c0_203 = arith.constant 0 : index
    %c0_204 = arith.constant 0 : index
    %c2 = arith.constant 2 : index
    %c0_205 = arith.constant 0 : index
    %68 = vector.load %arg12[%c0_203, %c0_204, %c2, %c0_205] : memref<2x10x16x6xf32, #tpu.memory_space<vmem>>, vector<2x10x1x6xf32>
    %69 = vector.shape_cast %68 : vector<2x10x1x6xf32> to vector<2x10x6xf32>
    %c0_206 = arith.constant 0 : index
    %c0_207 = arith.constant 0 : index
    %c12_208 = arith.constant 12 : index
    %70 = vector.load %arg15[%c0_206, %c0_207, %c12_208] : memref<2x10x60xf32, #tpu.memory_space<vmem>>, vector<2x10x6xf32>
    tpu.vector_store %arg15[%c0_206, %c0_207, %c12_208], %69 {strides = array<i32>} : memref<2x10x60xf32, #tpu.memory_space<vmem>>, vector<2x10x6xf32>,
    %c0_209 = arith.constant 0 : index
    %c0_210 = arith.constant 0 : index
    %c3 = arith.constant 3 : index
    %c0_211 = arith.constant 0 : index
    %71 = vector.load %arg12[%c0_209, %c0_210, %c3, %c0_211] : memref<2x10x16x6xf32, #tpu.memory_space<vmem>>, vector<2x10x1x6xf32>
    %72 = vector.shape_cast %71 : vector<2x10x1x6xf32> to vector<2x10x6xf32>
    %c0_212 = arith.constant 0 : index
    %c0_213 = arith.constant 0 : index
    %c18 = arith.constant 18 : index
    %73 = vector.load %arg15[%c0_212, %c0_213, %c18] : memref<2x10x60xf32, #tpu.memory_space<vmem>>, vector<2x10x6xf32>
    tpu.vector_store %arg15[%c0_212, %c0_213, %c18], %72 {strides = array<i32>} : memref<2x10x60xf32, #tpu.memory_space<vmem>>, vector<2x10x6xf32>,
    %c0_214 = arith.constant 0 : index
    %c0_215 = arith.constant 0 : index
    %c4_216 = arith.constant 4 : index
    %c0_217 = arith.constant 0 : index
    %74 = vector.load %arg12[%c0_214, %c0_215, %c4_216, %c0_217] : memref<2x10x16x6xf32, #tpu.memory_space<vmem>>, vector<2x10x1x6xf32>
    %75 = vector.shape_cast %74 : vector<2x10x1x6xf32> to vector<2x10x6xf32>
    %c0_218 = arith.constant 0 : index
    %c0_219 = arith.constant 0 : index
    %c24_220 = arith.constant 24 : index
    %76 = vector.load %arg15[%c0_218, %c0_219, %c24_220] : memref<2x10x60xf32, #tpu.memory_space<vmem>>, vector<2x10x6xf32>
    tpu.vector_store %arg15[%c0_218, %c0_219, %c24_220], %75 {strides = array<i32>} : memref<2x10x60xf32, #tpu.memory_space<vmem>>, vector<2x10x6xf32>,
    %c0_221 = arith.constant 0 : index
    %c0_222 = arith.constant 0 : index
    %c5 = arith.constant 5 : index
    %c0_223 = arith.constant 0 : index
    %77 = vector.load %arg12[%c0_221, %c0_222, %c5, %c0_223] : memref<2x10x16x6xf32, #tpu.memory_space<vmem>>, vector<2x10x1x6xf32>
    %78 = vector.shape_cast %77 : vector<2x10x1x6xf32> to vector<2x10x6xf32>
    %c0_224 = arith.constant 0 : index
    %c0_225 = arith.constant 0 : index
    %c30 = arith.constant 30 : index
    %79 = vector.load %arg15[%c0_224, %c0_225, %c30] : memref<2x10x60xf32, #tpu.memory_space<vmem>>, vector<2x10x6xf32>
    tpu.vector_store %arg15[%c0_224, %c0_225, %c30], %78 {strides = array<i32>} : memref<2x10x60xf32, #tpu.memory_space<vmem>>, vector<2x10x6xf32>,
    %c0_226 = arith.constant 0 : index
    %c0_227 = arith.constant 0 : index
    %c6_228 = arith.constant 6 : index
    %c0_229 = arith.constant 0 : index
    %80 = vector.load %arg12[%c0_226, %c0_227, %c6_228, %c0_229] : memref<2x10x16x6xf32, #tpu.memory_space<vmem>>, vector<2x10x1x6xf32>
    %81 = vector.shape_cast %80 : vector<2x10x1x6xf32> to vector<2x10x6xf32>
    %c0_230 = arith.constant 0 : index
    %c0_231 = arith.constant 0 : index
    %c36_232 = arith.constant 36 : index
    %82 = vector.load %arg15[%c0_230, %c0_231, %c36_232] : memref<2x10x60xf32, #tpu.memory_space<vmem>>, vector<2x10x6xf32>
    tpu.vector_store %arg15[%c0_230, %c0_231, %c36_232], %81 {strides = array<i32>} : memref<2x10x60xf32, #tpu.memory_space<vmem>>, vector<2x10x6xf32>,
    %c0_233 = arith.constant 0 : index
    %c0_234 = arith.constant 0 : index
    %c7 = arith.constant 7 : index
    %c0_235 = arith.constant 0 : index
    %83 = vector.load %arg12[%c0_233, %c0_234, %c7, %c0_235] : memref<2x10x16x6xf32, #tpu.memory_space<vmem>>, vector<2x10x1x6xf32>
    %84 = vector.shape_cast %83 : vector<2x10x1x6xf32> to vector<2x10x6xf32>
    %c0_236 = arith.constant 0 : index
    %c0_237 = arith.constant 0 : index
    %c42 = arith.constant 42 : index
    %85 = vector.load %arg15[%c0_236, %c0_237, %c42] : memref<2x10x60xf32, #tpu.memory_space<vmem>>, vector<2x10x6xf32>
    tpu.vector_store %arg15[%c0_236, %c0_237, %c42], %84 {strides = array<i32>} : memref<2x10x60xf32, #tpu.memory_space<vmem>>, vector<2x10x6xf32>,
    %c0_238 = arith.constant 0 : index
    %c0_239 = arith.constant 0 : index
    %c8_240 = arith.constant 8 : index
    %c0_241 = arith.constant 0 : index
    %86 = vector.load %arg12[%c0_238, %c0_239, %c8_240, %c0_241] : memref<2x10x16x6xf32, #tpu.memory_space<vmem>>, vector<2x10x1x6xf32>
    %87 = vector.shape_cast %86 : vector<2x10x1x6xf32> to vector<2x10x6xf32>
    %c0_242 = arith.constant 0 : index
    %c0_243 = arith.constant 0 : index
    %c48_244 = arith.constant 48 : index
    %88 = vector.load %arg15[%c0_242, %c0_243, %c48_244] : memref<2x10x60xf32, #tpu.memory_space<vmem>>, vector<2x10x6xf32>
    tpu.vector_store %arg15[%c0_242, %c0_243, %c48_244], %87 {strides = array<i32>} : memref<2x10x60xf32, #tpu.memory_space<vmem>>, vector<2x10x6xf32>,
    %c0_245 = arith.constant 0 : index
    %c0_246 = arith.constant 0 : index
    %c9 = arith.constant 9 : index
    %c0_247 = arith.constant 0 : index
    %89 = vector.load %arg12[%c0_245, %c0_246, %c9, %c0_247] : memref<2x10x16x6xf32, #tpu.memory_space<vmem>>, vector<2x10x1x6xf32>
    %90 = vector.shape_cast %89 : vector<2x10x1x6xf32> to vector<2x10x6xf32>
    %c0_248 = arith.constant 0 : index
    %c0_249 = arith.constant 0 : index
    %c54 = arith.constant 54 : index
    %91 = vector.load %arg15[%c0_248, %c0_249, %c54] : memref<2x10x60xf32, #tpu.memory_space<vmem>>, vector<2x10x6xf32>
    tpu.vector_store %arg15[%c0_248, %c0_249, %c54], %90 {strides = array<i32>} : memref<2x10x60xf32, #tpu.memory_space<vmem>>, vector<2x10x6xf32>,
    %cst_250 = arith.constant 0.000000e+00 : f32
    %92 = vector.broadcast %cst_250 : f32 to vector<2x4x150xf32>
    %c0_251 = arith.constant 0 : index
    %c4_252 = arith.constant 4 : index
    %c0_253 = arith.constant 0 : index
    %93 = vector.load %arg13[%c0_251, %c4_252, %c0_253] : memref<2x8x150xf32, #tpu.memory_space<vmem>>, vector<2x4x150xf32>
    tpu.vector_store %arg13[%c0_251, %c4_252, %c0_253], %92 {strides = array<i32>} : memref<2x8x150xf32, #tpu.memory_space<vmem>>, vector<2x4x150xf32>,
    %c0_254 = arith.constant 0 : index
    %c0_255 = arith.constant 0 : index
    %c0_256 = arith.constant 0 : index
    %94 = vector.load %arg15[%c0_254, %c0_255, %c0_256] : memref<2x10x60xf32, #tpu.memory_space<vmem>>, vector<2x1x30xf32>
    %95 = vector.shape_cast %94 : vector<2x1x30xf32> to vector<2x30xf32>
    %c0_257 = arith.constant 0 : index
    %c0_258 = arith.constant 0 : index
    %c0_259 = arith.constant 0 : index
    %96 = vector.load %arg13[%c0_257, %c0_258, %c0_259] : memref<2x8x150xf32, #tpu.memory_space<vmem>>, vector<2x1x30xf32>
    %97 = vector.shape_cast %96 : vector<2x1x30xf32> to vector<2x30xf32>
    %98 = vector.shape_cast %95 : vector<2x30xf32> to vector<2x1x30xf32>
    tpu.vector_store %arg13[%c0_257, %c0_258, %c0_259], %98 {strides = array<i32>} : memref<2x8x150xf32, #tpu.memory_space<vmem>>, vector<2x1x30xf32>,
    %c0_260 = arith.constant 0 : index
    %c1_261 = arith.constant 1 : index
    %c0_262 = arith.constant 0 : index
    %99 = vector.load %arg15[%c0_260, %c1_261, %c0_262] : memref<2x10x60xf32, #tpu.memory_space<vmem>>, vector<2x1x30xf32>
    %100 = vector.shape_cast %99 : vector<2x1x30xf32> to vector<2x30xf32>
    %c0_263 = arith.constant 0 : index
    %c0_264 = arith.constant 0 : index
    %c30_265 = arith.constant 30 : index
    %101 = vector.load %arg13[%c0_263, %c0_264, %c30_265] : memref<2x8x150xf32, #tpu.memory_space<vmem>>, vector<2x1x30xf32>
    %102 = vector.shape_cast %101 : vector<2x1x30xf32> to vector<2x30xf32>
    %103 = vector.shape_cast %100 : vector<2x30xf32> to vector<2x1x30xf32>
    tpu.vector_store %arg13[%c0_263, %c0_264, %c30_265], %103 {strides = array<i32>} : memref<2x8x150xf32, #tpu.memory_space<vmem>>, vector<2x1x30xf32>,
    %c0_266 = arith.constant 0 : index
    %c2_267 = arith.constant 2 : index
    %c0_268 = arith.constant 0 : index
    %104 = vector.load %arg15[%c0_266, %c2_267, %c0_268] : memref<2x10x60xf32, #tpu.memory_space<vmem>>, vector<2x1x30xf32>
    %105 = vector.shape_cast %104 : vector<2x1x30xf32> to vector<2x30xf32>
    %c0_269 = arith.constant 0 : index
    %c0_270 = arith.constant 0 : index
    %c60_271 = arith.constant 60 : index
    %106 = vector.load %arg13[%c0_269, %c0_270, %c60_271] : memref<2x8x150xf32, #tpu.memory_space<vmem>>, vector<2x1x30xf32>
    %107 = vector.shape_cast %106 : vector<2x1x30xf32> to vector<2x30xf32>
    %108 = vector.shape_cast %105 : vector<2x30xf32> to vector<2x1x30xf32>
    tpu.vector_store %arg13[%c0_269, %c0_270, %c60_271], %108 {strides = array<i32>} : memref<2x8x150xf32, #tpu.memory_space<vmem>>, vector<2x1x30xf32>,
    %c0_272 = arith.constant 0 : index
    %c3_273 = arith.constant 3 : index
    %c0_274 = arith.constant 0 : index
    %109 = vector.load %arg15[%c0_272, %c3_273, %c0_274] : memref<2x10x60xf32, #tpu.memory_space<vmem>>, vector<2x1x30xf32>
    %110 = vector.shape_cast %109 : vector<2x1x30xf32> to vector<2x30xf32>
    %c0_275 = arith.constant 0 : index
    %c0_276 = arith.constant 0 : index
    %c90 = arith.constant 90 : index
    %111 = vector.load %arg13[%c0_275, %c0_276, %c90] : memref<2x8x150xf32, #tpu.memory_space<vmem>>, vector<2x1x30xf32>
    %112 = vector.shape_cast %111 : vector<2x1x30xf32> to vector<2x30xf32>
    %113 = vector.shape_cast %110 : vector<2x30xf32> to vector<2x1x30xf32>
    tpu.vector_store %arg13[%c0_275, %c0_276, %c90], %113 {strides = array<i32>} : memref<2x8x150xf32, #tpu.memory_space<vmem>>, vector<2x1x30xf32>,
    %c0_277 = arith.constant 0 : index
    %c4_278 = arith.constant 4 : index
    %c0_279 = arith.constant 0 : index
    %114 = vector.load %arg15[%c0_277, %c4_278, %c0_279] : memref<2x10x60xf32, #tpu.memory_space<vmem>>, vector<2x1x30xf32>
    %115 = vector.shape_cast %114 : vector<2x1x30xf32> to vector<2x30xf32>
    %c0_280 = arith.constant 0 : index
    %c0_281 = arith.constant 0 : index
    %c120 = arith.constant 120 : index
    %116 = vector.load %arg13[%c0_280, %c0_281, %c120] : memref<2x8x150xf32, #tpu.memory_space<vmem>>, vector<2x1x30xf32>
    %117 = vector.shape_cast %116 : vector<2x1x30xf32> to vector<2x30xf32>
    %118 = vector.shape_cast %115 : vector<2x30xf32> to vector<2x1x30xf32>
    tpu.vector_store %arg13[%c0_280, %c0_281, %c120], %118 {strides = array<i32>} : memref<2x8x150xf32, #tpu.memory_space<vmem>>, vector<2x1x30xf32>,
    %c0_282 = arith.constant 0 : index
    %c0_283 = arith.constant 0 : index
    %c18_284 = arith.constant 18 : index
    %119 = vector.load %arg15[%c0_282, %c0_283, %c18_284] : memref<2x10x60xf32, #tpu.memory_space<vmem>>, vector<2x1x30xf32>
    %120 = vector.shape_cast %119 : vector<2x1x30xf32> to vector<2x30xf32>
    %c0_285 = arith.constant 0 : index
    %c1_286 = arith.constant 1 : index
    %c0_287 = arith.constant 0 : index
    %121 = vector.load %arg13[%c0_285, %c1_286, %c0_287] : memref<2x8x150xf32, #tpu.memory_space<vmem>>, vector<2x1x30xf32>
    %122 = vector.shape_cast %121 : vector<2x1x30xf32> to vector<2x30xf32>
    %123 = vector.shape_cast %120 : vector<2x30xf32> to vector<2x1x30xf32>
    tpu.vector_store %arg13[%c0_285, %c1_286, %c0_287], %123 {strides = array<i32>} : memref<2x8x150xf32, #tpu.memory_space<vmem>>, vector<2x1x30xf32>,
    %c0_288 = arith.constant 0 : index
    %c1_289 = arith.constant 1 : index
    %c18_290 = arith.constant 18 : index
    %124 = vector.load %arg15[%c0_288, %c1_289, %c18_290] : memref<2x10x60xf32, #tpu.memory_space<vmem>>, vector<2x1x30xf32>
    %125 = vector.shape_cast %124 : vector<2x1x30xf32> to vector<2x30xf32>
    %c0_291 = arith.constant 0 : index
    %c1_292 = arith.constant 1 : index
    %c30_293 = arith.constant 30 : index
    %126 = vector.load %arg13[%c0_291, %c1_292, %c30_293] : memref<2x8x150xf32, #tpu.memory_space<vmem>>, vector<2x1x30xf32>
    %127 = vector.shape_cast %126 : vector<2x1x30xf32> to vector<2x30xf32>
    %128 = vector.shape_cast %125 : vector<2x30xf32> to vector<2x1x30xf32>
    tpu.vector_store %arg13[%c0_291, %c1_292, %c30_293], %128 {strides = array<i32>} : memref<2x8x150xf32, #tpu.memory_space<vmem>>, vector<2x1x30xf32>,
    %c0_294 = arith.constant 0 : index
    %c2_295 = arith.constant 2 : index
    %c18_296 = arith.constant 18 : index
    %129 = vector.load %arg15[%c0_294, %c2_295, %c18_296] : memref<2x10x60xf32, #tpu.memory_space<vmem>>, vector<2x1x30xf32>
    %130 = vector.shape_cast %129 : vector<2x1x30xf32> to vector<2x30xf32>
    %c0_297 = arith.constant 0 : index
    %c1_298 = arith.constant 1 : index
    %c60_299 = arith.constant 60 : index
    %131 = vector.load %arg13[%c0_297, %c1_298, %c60_299] : memref<2x8x150xf32, #tpu.memory_space<vmem>>, vector<2x1x30xf32>
    %132 = vector.shape_cast %131 : vector<2x1x30xf32> to vector<2x30xf32>
    %133 = vector.shape_cast %130 : vector<2x30xf32> to vector<2x1x30xf32>
    tpu.vector_store %arg13[%c0_297, %c1_298, %c60_299], %133 {strides = array<i32>} : memref<2x8x150xf32, #tpu.memory_space<vmem>>, vector<2x1x30xf32>,
    %c0_300 = arith.constant 0 : index
    %c3_301 = arith.constant 3 : index
    %c18_302 = arith.constant 18 : index
    %134 = vector.load %arg15[%c0_300, %c3_301, %c18_302] : memref<2x10x60xf32, #tpu.memory_space<vmem>>, vector<2x1x30xf32>
    %135 = vector.shape_cast %134 : vector<2x1x30xf32> to vector<2x30xf32>
    %c0_303 = arith.constant 0 : index
    %c1_304 = arith.constant 1 : index
    %c90_305 = arith.constant 90 : index
    %136 = vector.load %arg13[%c0_303, %c1_304, %c90_305] : memref<2x8x150xf32, #tpu.memory_space<vmem>>, vector<2x1x30xf32>
    %137 = vector.shape_cast %136 : vector<2x1x30xf32> to vector<2x30xf32>
    %138 = vector.shape_cast %135 : vector<2x30xf32> to vector<2x1x30xf32>
    tpu.vector_store %arg13[%c0_303, %c1_304, %c90_305], %138 {strides = array<i32>} : memref<2x8x150xf32, #tpu.memory_space<vmem>>, vector<2x1x30xf32>,
    %c0_306 = arith.constant 0 : index
    %c4_307 = arith.constant 4 : index
    %c18_308 = arith.constant 18 : index
    %139 = vector.load %arg15[%c0_306, %c4_307, %c18_308] : memref<2x10x60xf32, #tpu.memory_space<vmem>>, vector<2x1x30xf32>
    %140 = vector.shape_cast %139 : vector<2x1x30xf32> to vector<2x30xf32>
    %c0_309 = arith.constant 0 : index
    %c1_310 = arith.constant 1 : index
    %c120_311 = arith.constant 120 : index
    %141 = vector.load %arg13[%c0_309, %c1_310, %c120_311] : memref<2x8x150xf32, #tpu.memory_space<vmem>>, vector<2x1x30xf32>
    %142 = vector.shape_cast %141 : vector<2x1x30xf32> to vector<2x30xf32>
    %143 = vector.shape_cast %140 : vector<2x30xf32> to vector<2x1x30xf32>
    tpu.vector_store %arg13[%c0_309, %c1_310, %c120_311], %143 {strides = array<i32>} : memref<2x8x150xf32, #tpu.memory_space<vmem>>, vector<2x1x30xf32>,
    %c0_312 = arith.constant 0 : index
    %c3_313 = arith.constant 3 : index
    %c0_314 = arith.constant 0 : index
    %144 = vector.load %arg15[%c0_312, %c3_313, %c0_314] : memref<2x10x60xf32, #tpu.memory_space<vmem>>, vector<2x1x30xf32>
    %145 = vector.shape_cast %144 : vector<2x1x30xf32> to vector<2x30xf32>
    %c0_315 = arith.constant 0 : index
    %c2_316 = arith.constant 2 : index
    %c0_317 = arith.constant 0 : index
    %146 = vector.load %arg13[%c0_315, %c2_316, %c0_317] : memref<2x8x150xf32, #tpu.memory_space<vmem>>, vector<2x1x30xf32>
    %147 = vector.shape_cast %146 : vector<2x1x30xf32> to vector<2x30xf32>
    %148 = vector.shape_cast %145 : vector<2x30xf32> to vector<2x1x30xf32>
    tpu.vector_store %arg13[%c0_315, %c2_316, %c0_317], %148 {strides = array<i32>} : memref<2x8x150xf32, #tpu.memory_space<vmem>>, vector<2x1x30xf32>,
    %c0_318 = arith.constant 0 : index
    %c4_319 = arith.constant 4 : index
    %c0_320 = arith.constant 0 : index
    %149 = vector.load %arg15[%c0_318, %c4_319, %c0_320] : memref<2x10x60xf32, #tpu.memory_space<vmem>>, vector<2x1x30xf32>
    %150 = vector.shape_cast %149 : vector<2x1x30xf32> to vector<2x30xf32>
    %c0_321 = arith.constant 0 : index
    %c2_322 = arith.constant 2 : index
    %c30_323 = arith.constant 30 : index
    %151 = vector.load %arg13[%c0_321, %c2_322, %c30_323] : memref<2x8x150xf32, #tpu.memory_space<vmem>>, vector<2x1x30xf32>
    %152 = vector.shape_cast %151 : vector<2x1x30xf32> to vector<2x30xf32>
    %153 = vector.shape_cast %150 : vector<2x30xf32> to vector<2x1x30xf32>
    tpu.vector_store %arg13[%c0_321, %c2_322, %c30_323], %153 {strides = array<i32>} : memref<2x8x150xf32, #tpu.memory_space<vmem>>, vector<2x1x30xf32>,
    %c0_324 = arith.constant 0 : index
    %c5_325 = arith.constant 5 : index
    %c0_326 = arith.constant 0 : index
    %154 = vector.load %arg15[%c0_324, %c5_325, %c0_326] : memref<2x10x60xf32, #tpu.memory_space<vmem>>, vector<2x1x30xf32>
    %155 = vector.shape_cast %154 : vector<2x1x30xf32> to vector<2x30xf32>
    %c0_327 = arith.constant 0 : index
    %c2_328 = arith.constant 2 : index
    %c60_329 = arith.constant 60 : index
    %156 = vector.load %arg13[%c0_327, %c2_328, %c60_329] : memref<2x8x150xf32, #tpu.memory_space<vmem>>, vector<2x1x30xf32>
    %157 = vector.shape_cast %156 : vector<2x1x30xf32> to vector<2x30xf32>
    %158 = vector.shape_cast %155 : vector<2x30xf32> to vector<2x1x30xf32>
    tpu.vector_store %arg13[%c0_327, %c2_328, %c60_329], %158 {strides = array<i32>} : memref<2x8x150xf32, #tpu.memory_space<vmem>>, vector<2x1x30xf32>,
    %c0_330 = arith.constant 0 : index
    %c6_331 = arith.constant 6 : index
    %c0_332 = arith.constant 0 : index
    %159 = vector.load %arg15[%c0_330, %c6_331, %c0_332] : memref<2x10x60xf32, #tpu.memory_space<vmem>>, vector<2x1x30xf32>
    %160 = vector.shape_cast %159 : vector<2x1x30xf32> to vector<2x30xf32>
    %c0_333 = arith.constant 0 : index
    %c2_334 = arith.constant 2 : index
    %c90_335 = arith.constant 90 : index
    %161 = vector.load %arg13[%c0_333, %c2_334, %c90_335] : memref<2x8x150xf32, #tpu.memory_space<vmem>>, vector<2x1x30xf32>
    %162 = vector.shape_cast %161 : vector<2x1x30xf32> to vector<2x30xf32>
    %163 = vector.shape_cast %160 : vector<2x30xf32> to vector<2x1x30xf32>
    tpu.vector_store %arg13[%c0_333, %c2_334, %c90_335], %163 {strides = array<i32>} : memref<2x8x150xf32, #tpu.memory_space<vmem>>, vector<2x1x30xf32>,
    %c0_336 = arith.constant 0 : index
    %c7_337 = arith.constant 7 : index
    %c0_338 = arith.constant 0 : index
    %164 = vector.load %arg15[%c0_336, %c7_337, %c0_338] : memref<2x10x60xf32, #tpu.memory_space<vmem>>, vector<2x1x30xf32>
    %165 = vector.shape_cast %164 : vector<2x1x30xf32> to vector<2x30xf32>
    %c0_339 = arith.constant 0 : index
    %c2_340 = arith.constant 2 : index
    %c120_341 = arith.constant 120 : index
    %166 = vector.load %arg13[%c0_339, %c2_340, %c120_341] : memref<2x8x150xf32, #tpu.memory_space<vmem>>, vector<2x1x30xf32>
    %167 = vector.shape_cast %166 : vector<2x1x30xf32> to vector<2x30xf32>
    %168 = vector.shape_cast %165 : vector<2x30xf32> to vector<2x1x30xf32>
    tpu.vector_store %arg13[%c0_339, %c2_340, %c120_341], %168 {strides = array<i32>} : memref<2x8x150xf32, #tpu.memory_space<vmem>>, vector<2x1x30xf32>,
    %c0_342 = arith.constant 0 : index
    %c3_343 = arith.constant 3 : index
    %c18_344 = arith.constant 18 : index
    %169 = vector.load %arg15[%c0_342, %c3_343, %c18_344] : memref<2x10x60xf32, #tpu.memory_space<vmem>>, vector<2x1x30xf32>
    %170 = vector.shape_cast %169 : vector<2x1x30xf32> to vector<2x30xf32>
    %c0_345 = arith.constant 0 : index
    %c3_346 = arith.constant 3 : index
    %c0_347 = arith.constant 0 : index
    %171 = vector.load %arg13[%c0_345, %c3_346, %c0_347] : memref<2x8x150xf32, #tpu.memory_space<vmem>>, vector<2x1x30xf32>
    %172 = vector.shape_cast %171 : vector<2x1x30xf32> to vector<2x30xf32>
    %173 = vector.shape_cast %170 : vector<2x30xf32> to vector<2x1x30xf32>
    tpu.vector_store %arg13[%c0_345, %c3_346, %c0_347], %173 {strides = array<i32>} : memref<2x8x150xf32, #tpu.memory_space<vmem>>, vector<2x1x30xf32>,
    %c0_348 = arith.constant 0 : index
    %c4_349 = arith.constant 4 : index
    %c18_350 = arith.constant 18 : index
    %174 = vector.load %arg15[%c0_348, %c4_349, %c18_350] : memref<2x10x60xf32, #tpu.memory_space<vmem>>, vector<2x1x30xf32>
    %175 = vector.shape_cast %174 : vector<2x1x30xf32> to vector<2x30xf32>
    %c0_351 = arith.constant 0 : index
    %c3_352 = arith.constant 3 : index
    %c30_353 = arith.constant 30 : index
    %176 = vector.load %arg13[%c0_351, %c3_352, %c30_353] : memref<2x8x150xf32, #tpu.memory_space<vmem>>, vector<2x1x30xf32>
    %177 = vector.shape_cast %176 : vector<2x1x30xf32> to vector<2x30xf32>
    %178 = vector.shape_cast %175 : vector<2x30xf32> to vector<2x1x30xf32>
    tpu.vector_store %arg13[%c0_351, %c3_352, %c30_353], %178 {strides = array<i32>} : memref<2x8x150xf32, #tpu.memory_space<vmem>>, vector<2x1x30xf32>,
    %c0_354 = arith.constant 0 : index
    %c5_355 = arith.constant 5 : index
    %c18_356 = arith.constant 18 : index
    %179 = vector.load %arg15[%c0_354, %c5_355, %c18_356] : memref<2x10x60xf32, #tpu.memory_space<vmem>>, vector<2x1x30xf32>
    %180 = vector.shape_cast %179 : vector<2x1x30xf32> to vector<2x30xf32>
    %c0_357 = arith.constant 0 : index
    %c3_358 = arith.constant 3 : index
    %c60_359 = arith.constant 60 : index
    %181 = vector.load %arg13[%c0_357, %c3_358, %c60_359] : memref<2x8x150xf32, #tpu.memory_space<vmem>>, vector<2x1x30xf32>
    %182 = vector.shape_cast %181 : vector<2x1x30xf32> to vector<2x30xf32>
    %183 = vector.shape_cast %180 : vector<2x30xf32> to vector<2x1x30xf32>
    tpu.vector_store %arg13[%c0_357, %c3_358, %c60_359], %183 {strides = array<i32>} : memref<2x8x150xf32, #tpu.memory_space<vmem>>, vector<2x1x30xf32>,
    %c0_360 = arith.constant 0 : index
    %c6_361 = arith.constant 6 : index
    %c18_362 = arith.constant 18 : index
    %184 = vector.load %arg15[%c0_360, %c6_361, %c18_362] : memref<2x10x60xf32, #tpu.memory_space<vmem>>, vector<2x1x30xf32>
    %185 = vector.shape_cast %184 : vector<2x1x30xf32> to vector<2x30xf32>
    %c0_363 = arith.constant 0 : index
    %c3_364 = arith.constant 3 : index
    %c90_365 = arith.constant 90 : index
    %186 = vector.load %arg13[%c0_363, %c3_364, %c90_365] : memref<2x8x150xf32, #tpu.memory_space<vmem>>, vector<2x1x30xf32>
    %187 = vector.shape_cast %186 : vector<2x1x30xf32> to vector<2x30xf32>
    %188 = vector.shape_cast %185 : vector<2x30xf32> to vector<2x1x30xf32>
    tpu.vector_store %arg13[%c0_363, %c3_364, %c90_365], %188 {strides = array<i32>} : memref<2x8x150xf32, #tpu.memory_space<vmem>>, vector<2x1x30xf32>,
    %c0_366 = arith.constant 0 : index
    %c7_367 = arith.constant 7 : index
    %c18_368 = arith.constant 18 : index
    %189 = vector.load %arg15[%c0_366, %c7_367, %c18_368] : memref<2x10x60xf32, #tpu.memory_space<vmem>>, vector<2x1x30xf32>
    %190 = vector.shape_cast %189 : vector<2x1x30xf32> to vector<2x30xf32>
    %c0_369 = arith.constant 0 : index
    %c3_370 = arith.constant 3 : index
    %c120_371 = arith.constant 120 : index
    %191 = vector.load %arg13[%c0_369, %c3_370, %c120_371] : memref<2x8x150xf32, #tpu.memory_space<vmem>>, vector<2x1x30xf32>
    %192 = vector.shape_cast %191 : vector<2x1x30xf32> to vector<2x30xf32>
    %193 = vector.shape_cast %190 : vector<2x30xf32> to vector<2x1x30xf32>
    tpu.vector_store %arg13[%c0_369, %c3_370, %c120_371], %193 {strides = array<i32>} : memref<2x8x150xf32, #tpu.memory_space<vmem>>, vector<2x1x30xf32>,
    %c0_372 = arith.constant 0 : index
    %c0_373 = arith.constant 0 : index
    %c0_374 = arith.constant 0 : index
    %194 = vector.load %arg13[%c0_372, %c0_373, %c0_374] : memref<2x8x150xf32, #tpu.memory_space<vmem>>, vector<2x8x150xf32>
    %195 = vector.shape_cast %194 : vector<2x8x150xf32> to vector<16x150xf32>
    %c0_375 = arith.constant 0 : index
    %c0_376 = arith.constant 0 : index
    %196 = vector.load %arg4[%c0_375, %c0_376] : memref<150x8xf32, #tpu.memory_space<vmem>>, vector<150x8xf32>
    %cst_377 = arith.constant dense<0.000000e+00> : vector<16x8xf32>
    %197 = tpu.matmul %195, %196, %cst_377 {dimension_numbers = #tpu.dot_dimension_numbers<[1], [0], [0], [1], [0, 0, 1, 1], [], []>} : vector<16x150xf32>, vector<150x8xf32>, vector<16x8xf32> -> vector<16x8xf32>
    %c0_378 = arith.constant 0 : index
    %c0_379 = arith.constant 0 : index
    %198 = vector.load %arg5[%c0_378, %c0_379] : memref<1x8xf32, #tpu.memory_space<vmem>>, vector<1x8xf32>
    %199 = vector.broadcast %198 : vector<1x8xf32> to vector<16x8xf32>
    %200 = arith.addf %197, %199 : vector<16x8xf32>
    %201 = math.tanh %200 : vector<16x8xf32>
    %202 = vector.shape_cast %201 : vector<16x8xf32> to vector<2x8x8xf32>
    %c0_380 = arith.constant 0 : index
    %c0_381 = arith.constant 0 : index
    %c0_382 = arith.constant 0 : index
    %203 = vector.load %arg14[%c0_380, %c0_381, %c0_382] : memref<2x8x8xf32, #tpu.memory_space<vmem>>, vector<2x8x8xf32>
    tpu.vector_store %arg14[%c0_380, %c0_381, %c0_382], %202 {strides = array<i32>} : memref<2x8x8xf32, #tpu.memory_space<vmem>>, vector<2x8x8xf32>,
    %c0_383 = arith.constant 0 : index
    %c0_384 = arith.constant 0 : index
    %c0_385 = arith.constant 0 : index
    %204 = vector.load %arg14[%c0_383, %c0_384, %c0_385] : memref<2x8x8xf32, #tpu.memory_space<vmem>>, vector<2x1x8xf32>
    %205 = vector.shape_cast %204 : vector<2x1x8xf32> to vector<2x8xf32>
    %c0_386 = arith.constant 0 : index
    %c0_387 = arith.constant 0 : index
    %206 = vector.load %arg16[%c0_386, %c0_387] : memref<2x32xf32, #tpu.memory_space<vmem>>, vector<2x8xf32>
    tpu.vector_store %arg16[%c0_386, %c0_387], %205 {strides = array<i32>} : memref<2x32xf32, #tpu.memory_space<vmem>>, vector<2x8xf32>,
    %c0_388 = arith.constant 0 : index
    %c1_389 = arith.constant 1 : index
    %c0_390 = arith.constant 0 : index
    %207 = vector.load %arg14[%c0_388, %c1_389, %c0_390] : memref<2x8x8xf32, #tpu.memory_space<vmem>>, vector<2x1x8xf32>
    %208 = vector.shape_cast %207 : vector<2x1x8xf32> to vector<2x8xf32>
    %c0_391 = arith.constant 0 : index
    %c8_392 = arith.constant 8 : index
    %209 = vector.load %arg16[%c0_391, %c8_392] : memref<2x32xf32, #tpu.memory_space<vmem>>, vector<2x8xf32>
    tpu.vector_store %arg16[%c0_391, %c8_392], %208 {strides = array<i32>} : memref<2x32xf32, #tpu.memory_space<vmem>>, vector<2x8xf32>,
    %c0_393 = arith.constant 0 : index
    %c2_394 = arith.constant 2 : index
    %c0_395 = arith.constant 0 : index
    %210 = vector.load %arg14[%c0_393, %c2_394, %c0_395] : memref<2x8x8xf32, #tpu.memory_space<vmem>>, vector<2x1x8xf32>
    %211 = vector.shape_cast %210 : vector<2x1x8xf32> to vector<2x8xf32>
    %c0_396 = arith.constant 0 : index
    %c16_397 = arith.constant 16 : index
    %212 = vector.load %arg16[%c0_396, %c16_397] : memref<2x32xf32, #tpu.memory_space<vmem>>, vector<2x8xf32>
    tpu.vector_store %arg16[%c0_396, %c16_397], %211 {strides = array<i32>} : memref<2x32xf32, #tpu.memory_space<vmem>>, vector<2x8xf32>,
    %c0_398 = arith.constant 0 : index
    %c3_399 = arith.constant 3 : index
    %c0_400 = arith.constant 0 : index
    %213 = vector.load %arg14[%c0_398, %c3_399, %c0_400] : memref<2x8x8xf32, #tpu.memory_space<vmem>>, vector<2x1x8xf32>
    %214 = vector.shape_cast %213 : vector<2x1x8xf32> to vector<2x8xf32>
    %c0_401 = arith.constant 0 : index
    %c24_402 = arith.constant 24 : index
    %215 = vector.load %arg16[%c0_401, %c24_402] : memref<2x32xf32, #tpu.memory_space<vmem>>, vector<2x8xf32>
    tpu.vector_store %arg16[%c0_401, %c24_402], %214 {strides = array<i32>} : memref<2x32xf32, #tpu.memory_space<vmem>>, vector<2x8xf32>,
    %c0_403 = arith.constant 0 : index
    %c0_404 = arith.constant 0 : index
    %216 = vector.load %arg16[%c0_403, %c0_404] : memref<2x32xf32, #tpu.memory_space<vmem>>, vector<2x32xf32>
    %c0_405 = arith.constant 0 : index
    %c0_406 = arith.constant 0 : index
    %217 = vector.load %arg6[%c0_405, %c0_406] : memref<32x16xf32, #tpu.memory_space<vmem>>, vector<32x16xf32>
    %cst_407 = arith.constant dense<0.000000e+00> : vector<2x16xf32>
    %218 = tpu.matmul %216, %217, %cst_407 {dimension_numbers = #tpu.dot_dimension_numbers<[1], [0], [0], [1], [0, 0, 1, 1], [], []>} : vector<2x32xf32>, vector<32x16xf32>, vector<2x16xf32> -> vector<2x16xf32>
    %c0_408 = arith.constant 0 : index
    %c0_409 = arith.constant 0 : index
    %219 = vector.load %arg7[%c0_408, %c0_409] : memref<1x16xf32, #tpu.memory_space<vmem>>, vector<1x16xf32>
    %220 = vector.broadcast %219 : vector<1x16xf32> to vector<2x16xf32>
    %221 = arith.addf %218, %220 : vector<2x16xf32>
    %222 = math.tanh %221 : vector<2x16xf32>
    %c0_410 = arith.constant 0 : index
    %c0_411 = arith.constant 0 : index
    %223 = vector.load %arg8[%c0_410, %c0_411] : memref<16x8xf32, #tpu.memory_space<vmem>>, vector<16x8xf32>
    %cst_412 = arith.constant dense<0.000000e+00> : vector<2x8xf32>
    %224 = tpu.matmul %222, %223, %cst_412 {dimension_numbers = #tpu.dot_dimension_numbers<[1], [0], [0], [1], [0, 0, 1, 1], [], []>} : vector<2x16xf32>, vector<16x8xf32>, vector<2x8xf32> -> vector<2x8xf32>
    %c0_413 = arith.constant 0 : index
    %c0_414 = arith.constant 0 : index
    %225 = vector.load %arg9[%c0_413, %c0_414] : memref<1x8xf32, #tpu.memory_space<vmem>>, vector<1x8xf32>
    %226 = vector.broadcast %225 : vector<1x8xf32> to vector<2x8xf32>
    %227 = arith.addf %224, %226 : vector<2x8xf32>
    %c0_415 = arith.constant 0 : index
    %c0_416 = arith.constant 0 : index
    %228 = vector.load %arg10[%c0_415, %c0_416] : memref<2x8xf32, #tpu.memory_space<vmem>>, vector<2x8xf32>
    tpu.vector_store %arg10[%c0_415, %c0_416], %227 {strides = array<i32>} : memref<2x8xf32, #tpu.memory_space<vmem>>, vector<2x8xf32>,
    return
  }
  func.func @transform_0(%arg0: i32) -> (i32, i32, i32, i32) {
    %c0_i32 = arith.constant 0 : i32
    %c0_i32_0 = arith.constant 0 : i32
    %c0_i32_1 = arith.constant 0 : i32
    %c0_i32_2 = arith.constant 0 : i32
    return %arg0, %c0_i32, %c0_i32_0, %c0_i32_1 : i32, i32, i32, i32
  }
  func.func @transform_1(%arg0: i32) -> (i32, i32) {
    %c0_i32 = arith.constant 0 : i32
    %c0_i32_0 = arith.constant 0 : i32
    %c0_i32_1 = arith.constant 0 : i32
    return %c0_i32, %c0_i32_0 : i32, i32
  }
  func.func @transform_2(%arg0: i32) -> (i32, i32) {
    %c0_i32 = arith.constant 0 : i32
    %c0_i32_0 = arith.constant 0 : i32
    %c0_i32_1 = arith.constant 0 : i32
    return %c0_i32, %c0_i32_0 : i32, i32
  }
  func.func @transform_3(%arg0: i32) -> (i32, i32) {
    %c0_i32 = arith.constant 0 : i32
    %c0_i32_0 = arith.constant 0 : i32
    %c0_i32_1 = arith.constant 0 : i32
    return %c0_i32, %c0_i32_0 : i32, i32
  }
  func.func @transform_4(%arg0: i32) -> (i32, i32) {
    %c0_i32 = arith.constant 0 : i32
    %c0_i32_0 = arith.constant 0 : i32
    %c0_i32_1 = arith.constant 0 : i32
    return %c0_i32, %c0_i32_0 : i32, i32
  }
  func.func @transform_5(%arg0: i32) -> (i32, i32) {
    %c0_i32 = arith.constant 0 : i32
    %c0_i32_0 = arith.constant 0 : i32
    %c0_i32_1 = arith.constant 0 : i32
    return %c0_i32, %c0_i32_0 : i32, i32
  }
  func.func @transform_6(%arg0: i32) -> (i32, i32) {
    %c0_i32 = arith.constant 0 : i32
    %c0_i32_0 = arith.constant 0 : i32
    %c0_i32_1 = arith.constant 0 : i32
    return %c0_i32, %c0_i32_0 : i32, i32
  }
  func.func @transform_7(%arg0: i32) -> (i32, i32) {
    %c0_i32 = arith.constant 0 : i32
    %c0_i32_0 = arith.constant 0 : i32
    %c0_i32_1 = arith.constant 0 : i32
    return %c0_i32, %c0_i32_0 : i32, i32
  }
  func.func @transform_8(%arg0: i32) -> (i32, i32) {
    %c0_i32 = arith.constant 0 : i32
    %c0_i32_0 = arith.constant 0 : i32
    %c0_i32_1 = arith.constant 0 : i32
    return %c0_i32, %c0_i32_0 : i32, i32
  }
  func.func @transform_9(%arg0: i32) -> (i32, i32) {
    %c0_i32 = arith.constant 0 : i32
    %c0_i32_0 = arith.constant 0 : i32
    return %arg0, %c0_i32 : i32, i32
  }
}

</mosaic_0001>

<bundles_post_ra>
// kernel: forward.1
= control target key start
LH: loop header
LB: loop body
LE: loop exit
PB: predicated region body
PF: predicated region fallthrough
CT: control target
= control target key end

     0   :  { %s8458_s13 = smov 12   ;;  %vm94_vm0 = vcmask 31744   ;;  %vm176_vm1 = vcmask 64544   ;;  %vm258_vm2 = vcmask 97344   ;;  %vm96_vm3 = vcmask 25600   ;;  %s13670_s0 = inlined_call_operand.vmem [shape: f32[2,11,11,36], index: 0, kind: input, shape index: {}]   ;;  %s13671_s1 = inlined_call_operand.vmem [shape: f32[100,6], index: 1, kind: input, shape index: {}]   ;;  %s13672_s2 = inlined_call_operand.vmem [shape: f32[1,6], index: 2, kind: input, shape index: {}]   ;;  %s13673_s3 = inlined_call_operand.vmem [shape: f32[150,8], index: 3, kind: input, shape index: {}]   ;;  %s13674_s4 = inlined_call_operand.vmem [shape: f32[1,8], index: 4, kind: input, shape index: {}]   ;;  %s13675_s5 = inlined_call_operand.vmem [shape: f32[32,16], index: 5, kind: input, shape index: {}]   ;;  %s13676_s6 = inlined_call_operand.vmem [shape: f32[1,16], index: 6, kind: input, shape index: {}]   ;;  %s13677_s7 = inlined_call_operand.vmem [shape: f32[16,8], index: 7, kind: input, shape index: {}]   ;;  %s13678_s8 = inlined_call_operand.vmem [shape: f32[1,8], index: 8, kind: input, shape index: {}]   ;;  %s13679_s9 = inlined_call_operand.hbm [shape: f32[2,8], index: 9, kind: output, shape index: {}]  }
   0x1   :  { %v8536_v0 = vld [vmem:[%s13670_s0 + $0x11] sm:$0xff]  ;;  %v8541_v1 = vld [vmem:[%s13670_s0 + $0x1] sm:$0xff]  ;;  %v303_v2 = vld [vmem:[%s13670_s0 + $0x19] sm:$0x3]  ;;  %vm178_vm4 = vcmask 58400   ;;  %vm260_vm5 = vcmask 91200  }
   0x2   :  { %384 = vrot.lane.b32.xlu1 %v8536_v0, %s8458_s13  ;;  %380 = vrot.lane.b32.xlu0 %v8541_v1, %s8458_s13  ;;  %v301_v3 = vld [vmem:[%s13670_s0 + $0x9] sm:$0x3]  ;;  %v8561_v5 = vld [vmem:[%s13670_s0 + $0x21] sm:$0xff] }
   0x3   :  { %v305_v4 = vld [vmem:[%s13670_s0 + $0x29] sm:$0x3]  ;;  %v307_v6 = vld [vmem:[%s13670_s0 + $0x39] sm:$0x3]  ;;  %v8572_v7 = vld [vmem:[%s13670_s0 + $0x31] sm:$0xff] }
   0x4   :  { %v309_v8 = vld [vmem:[%s13670_s0 + $0x49] sm:$0x3]  ;;  %v8583_v9 = vld [vmem:[%s13670_s0 + $0x41] sm:$0xff]  ;;  %v311_v10 = vld [vmem:[%s13670_s0 + $0x59] sm:$0x3] }
   0x5   :  { %v8594_v11 = vld [vmem:[%s13670_s0 + $0x51] sm:$0xff]  ;;  %v8604_v13 = vld [vmem:[%s13670_s0] sm:$0xff]  ;;  %v313_v17 = vld [vmem:[%s13670_s0 + $0x69] sm:$0x3] }
   0x6   :  { %386 = vrot.lane.b32.xlu1 %v303_v2, %s8458_s13  ;;  %382 = vrot.lane.b32.xlu0 %v301_v3, %s8458_s13  ;;  %v8599_v12 = vld [vmem:[%s13670_s0 + $0x10] sm:$0xff]  ;;  %95 = vst.msk [vmem:[#allocation2] sm:$0xff] %vm94_vm0, %v8604_v13  ;;  %v57_v14 = vld [vmem:[%s13670_s0 + $0x18] sm:$0x3] }
   0x7   :  { %98 = vst.msk [vmem:[#allocation2 + $0x10] sm:$0xff] %vm94_vm0, %v8599_v12  ;;  %v139_v15 = vld [vmem:[%s13670_s0 + $0x18] sm:$0x3]  ;;  %v55_v18 = vld [vmem:[%s13670_s0 + $0x8] sm:$0x3]  ;;  %v8665_v25 = vld [vmem:[%s13670_s0 + $0x20] sm:$0xff] }
   0x8   :  { %v221_v16 = vld [vmem:[%s13670_s0 + $0x18] sm:$0x3]  ;;  %180 = vst.msk [vmem:[#allocation2 + $0x10] sm:$0xff] %vm176_vm1, %v8599_v12  ;;  %177 = vst.msk [vmem:[#allocation2] sm:$0xff] %vm176_vm1, %v8604_v13  ;;  %v137_v19 = vld [vmem:[%s13670_s0 + $0x8] sm:$0x3] }
   0x9   :  { %99 = vst.msk [vmem:[#allocation2 + $0x18] sm:$0x3] %vm96_vm3, %v57_v14  ;;  %v219_v20 = vld [vmem:[%s13670_s0 + $0x8] sm:$0x3]  ;;  %97 = vst.msk [vmem:[#allocation2 + $0x8] sm:$0x3] %vm96_vm3, %v55_v18 }
   0xa   :  { %390 = vrot.lane.b32.xlu1 %v305_v4, %s8458_s13  ;;  %388 = vrot.lane.b32.xlu0 %v8561_v5, %s8458_s13  ;;  %v8642_v21 = vld [vmem:[%s13670_s0 + $0x61] sm:$0xff]  ;;  %262 = vst.msk [vmem:[#allocation2 + $0x10] sm:$0xff] %vm258_vm2, %v8599_v12  ;;  %259 = vst.msk [vmem:[#allocation2] sm:$0xff] %vm258_vm2, %v8604_v13  ;;  %v61_v26 = vld [vmem:[%s13670_s0 + $0x38] sm:$0x3] }
   0xb   :  { %181 = vst.msk [vmem:[#allocation2 + $0x18] sm:$0x3] %vm178_vm4, %v139_v15  ;;  %v59_v22 = vld [vmem:[%s13670_s0 + $0x28] sm:$0x3]  ;;  %179 = vst.msk [vmem:[#allocation2 + $0x8] sm:$0x3] %vm178_vm4, %v137_v19 }
   0xc   :  { %263 = vst.msk [vmem:[#allocation2 + $0x18] sm:$0x3] %vm260_vm5, %v221_v16  ;;  %v141_v23 = vld [vmem:[%s13670_s0 + $0x28] sm:$0x3]  ;;  %261 = vst.msk [vmem:[#allocation2 + $0x8] sm:$0x3] %vm260_vm5, %v219_v20 }
   0xd   :  { %101 = vst.msk [vmem:[#allocation2 + $0x28] sm:$0x3] %vm96_vm3, %v59_v22  ;;  %v223_v24 = vld [vmem:[%s13670_s0 + $0x28] sm:$0x3]  ;;  %v143_v27 = vld [vmem:[%s13670_s0 + $0x38] sm:$0x3] }
   0xe   :  { %394 = vrot.lane.b32.xlu1 %v307_v6, %s8458_s13  ;;  %392 = vrot.lane.b32.xlu0 %v8572_v7, %s8458_s13  ;;  %183 = vst.msk [vmem:[#allocation2 + $0x28] sm:$0x3] %vm178_vm4, %v141_v23  ;;  %v315_v28 = vld [vmem:[%s13670_s0 + $0x79] sm:$0x3]  ;;  %v8690_v30 = vld [vmem:[%s13670_s0 + $0x30] sm:$0xff] }
   0xf   :  { %100 = vst.msk [vmem:[#allocation2 + $0x20] sm:$0xff] %vm94_vm0, %v8665_v25  ;;  %v225_v29 = vld [vmem:[%s13670_s0 + $0x38] sm:$0x3]  ;;  %102 = vst.msk [vmem:[#allocation2 + $0x30] sm:$0xff] %vm94_vm0, %v8690_v30  ;;  %v63_v31 = vld [vmem:[%s13670_s0 + $0x48] sm:$0x3] }
  0x10   :  { %265 = vst.msk [vmem:[#allocation2 + $0x28] sm:$0x3] %vm260_vm5, %v223_v24  ;;  %v145_v32 = vld [vmem:[%s13670_s0 + $0x48] sm:$0x3]  ;;  %v8709_v33 = vld [vmem:[%s13670_s0 + $0x71] sm:$0xff]  ;;  %v8721_v35 = vld [vmem:[%s13670_s0 + $0x40] sm:$0xff] }
  0x11   :  { %182 = vst.msk [vmem:[#allocation2 + $0x20] sm:$0xff] %vm176_vm1, %v8665_v25  ;;  %184 = vst.msk [vmem:[#allocation2 + $0x30] sm:$0xff] %vm176_vm1, %v8690_v30  ;;  %v227_v34 = vld [vmem:[%s13670_s0 + $0x48] sm:$0x3]  ;;  %v65_v36 = vld [vmem:[%s13670_s0 + $0x58] sm:$0x3] }
  0x12   :  { %398 = vrot.lane.b32.xlu1 %v309_v8, %s8458_s13  ;;  %396 = vrot.lane.b32.xlu0 %v8583_v9, %s8458_s13  ;;  %103 = vst.msk [vmem:[#allocation2 + $0x38] sm:$0x3] %vm96_vm3, %v61_v26  ;;  %105 = vst.msk [vmem:[#allocation2 + $0x48] sm:$0x3] %vm96_vm3, %v63_v31  ;;  %v147_v37 = vld [vmem:[%s13670_s0 + $0x58] sm:$0x3] }
  0x13   :  { %264 = vst.msk [vmem:[#allocation2 + $0x20] sm:$0xff] %vm258_vm2, %v8665_v25  ;;  %266 = vst.msk [vmem:[#allocation2 + $0x30] sm:$0xff] %vm258_vm2, %v8690_v30  ;;  %v229_v38 = vld [vmem:[%s13670_s0 + $0x58] sm:$0x3]  ;;  %v317_v39 = vld [vmem:[%s13670_s0 + $0x89] sm:$0x3] }
  0x14   :  { %185 = vst.msk [vmem:[#allocation2 + $0x38] sm:$0x3] %vm178_vm4, %v143_v27  ;;  %187 = vst.msk [vmem:[#allocation2 + $0x48] sm:$0x3] %vm178_vm4, %v145_v32  ;;  %v8747_v40 = vld [vmem:[%s13670_s0 + $0x50] sm:$0xff]  ;;  %v8770_v44 = vld [vmem:[%s13670_s0 + $0x81] sm:$0xff] }
  0x15   :  { %267 = vst.msk [vmem:[#allocation2 + $0x38] sm:$0x3] %vm260_vm5, %v225_v29  ;;  %269 = vst.msk [vmem:[#allocation2 + $0x48] sm:$0x3] %vm260_vm5, %v227_v34  ;;  %v67_v41 = vld [vmem:[%s13670_s0 + $0x68] sm:$0x3] }
  0x16   :  { %402 = vrot.lane.b32.xlu1 %v311_v10, %s8458_s13  ;;  %400 = vrot.lane.b32.xlu0 %v8594_v11, %s8458_s13  ;;  %104 = vst.msk [vmem:[#allocation2 + $0x40] sm:$0xff] %vm94_vm0, %v8721_v35  ;;  %106 = vst.msk [vmem:[#allocation2 + $0x50] sm:$0xff] %vm94_vm0, %v8747_v40  ;;  %v149_v42 = vld [vmem:[%s13670_s0 + $0x68] sm:$0x3]  ;;  %v8779_v45 = vld [vmem:[%s13670_s0 + $0x60] sm:$0xff] }
  0x17   :  { %186 = vst.msk [vmem:[#allocation2 + $0x40] sm:$0xff] %vm176_vm1, %v8721_v35  ;;  %v231_v43 = vld [vmem:[%s13670_s0 + $0x68] sm:$0x3]  ;;  %188 = vst.msk [vmem:[#allocation2 + $0x50] sm:$0xff] %vm176_vm1, %v8747_v40  ;;  %v69_v46 = vld [vmem:[%s13670_s0 + $0x78] sm:$0x3] }
  0x18   :  { %107 = vst.msk [vmem:[#allocation2 + $0x58] sm:$0x3] %vm96_vm3, %v65_v36  ;;  %109 = vst.msk [vmem:[#allocation2 + $0x68] sm:$0x3] %vm96_vm3, %v67_v41  ;;  %v151_v47 = vld [vmem:[%s13670_s0 + $0x78] sm:$0x3] }
  0x19   :  { %268 = vst.msk [vmem:[#allocation2 + $0x40] sm:$0xff] %vm258_vm2, %v8721_v35  ;;  %270 = vst.msk [vmem:[#allocation2 + $0x50] sm:$0xff] %vm258_vm2, %v8747_v40  ;;  %v233_v48 = vld [vmem:[%s13670_s0 + $0x78] sm:$0x3]  ;;  %v8799_v49 = vld [vmem:[%s13670_s0 + $0x70] sm:$0xff] }
  0x1a   :  { %406 = vrot.lane.b32.xlu1 %v313_v17, %s8458_s13  ;;  %404 = vrot.lane.b32.xlu0 %v8642_v21, %s8458_s13  ;;  %189 = vst.msk [vmem:[#allocation2 + $0x58] sm:$0x3] %vm178_vm4, %v147_v37  ;;  %191 = vst.msk [vmem:[#allocation2 + $0x68] sm:$0x3] %vm178_vm4, %v149_v42  ;;  %v319_v50 = vld [vmem:[%s13670_s0 + $0x99] sm:$0x3] }
  0x1b   :  { %271 = vst.msk [vmem:[#allocation2 + $0x58] sm:$0x3] %vm260_vm5, %v229_v38  ;;  %273 = vst.msk [vmem:[#allocation2 + $0x68] sm:$0x3] %vm260_vm5, %v231_v43  ;;  %v71_v51 = vld [vmem:[%s13670_s0 + $0x88] sm:$0x3] }
  0x1c   :  { %108 = vst.msk [vmem:[#allocation2 + $0x60] sm:$0xff] %vm94_vm0, %v8779_v45  ;;  %110 = vst.msk [vmem:[#allocation2 + $0x70] sm:$0xff] %vm94_vm0, %v8799_v49  ;;  %v153_v52 = vld [vmem:[%s13670_s0 + $0x88] sm:$0x3]  ;;  %v8830_v54 = vld [vmem:[%s13670_s0 + $0x80] sm:$0xff] }
  0x1d   :  { %111 = vst.msk [vmem:[#allocation2 + $0x78] sm:$0x3] %vm96_vm3, %v69_v46  ;;  %113 = vst.msk [vmem:[#allocation2 + $0x88] sm:$0x3] %vm96_vm3, %v71_v51  ;;  %v235_v53 = vld [vmem:[%s13670_s0 + $0x88] sm:$0x3] }
  0x1e   :  { %410 = vrot.lane.b32.xlu1 %v315_v28, %s8458_s13  ;;  %408 = vrot.lane.b32.xlu0 %v8709_v33, %s8458_s13  ;;  %190 = vst.msk [vmem:[#allocation2 + $0x60] sm:$0xff] %vm176_vm1, %v8779_v45  ;;  %192 = vst.msk [vmem:[#allocation2 + $0x70] sm:$0xff] %vm176_vm1, %v8799_v49  ;;  %v8835_v55 = vld [vmem:[%s13670_s0 + $0x91] sm:$0xff]  ;;  %v321_v60 = vld [vmem:[%s13670_s0 + $0xb9] sm:$0x3] }
  0x1f   :  { %193 = vst.msk [vmem:[#allocation2 + $0x78] sm:$0x3] %vm178_vm4, %v151_v47  ;;  %195 = vst.msk [vmem:[#allocation2 + $0x88] sm:$0x3] %vm178_vm4, %v153_v52  ;;  %v73_v56 = vld [vmem:[%s13670_s0 + $0x98] sm:$0x3] }
  0x20   :  { %272 = vst.msk [vmem:[#allocation2 + $0x60] sm:$0xff] %vm258_vm2, %v8779_v45  ;;  %274 = vst.msk [vmem:[#allocation2 + $0x70] sm:$0xff] %vm258_vm2, %v8799_v49  ;;  %v155_v57 = vld [vmem:[%s13670_s0 + $0x98] sm:$0x3]  ;;  %v8858_v59 = vld [vmem:[%s13670_s0 + $0x90] sm:$0xff] }
  0x21   :  { %275 = vst.msk [vmem:[#allocation2 + $0x78] sm:$0x3] %vm260_vm5, %v233_v48  ;;  %277 = vst.msk [vmem:[#allocation2 + $0x88] sm:$0x3] %vm260_vm5, %v235_v53  ;;  %v237_v58 = vld [vmem:[%s13670_s0 + $0x98] sm:$0x3] }
  0x22   :  { %414 = vrot.lane.b32.xlu1 %v317_v39, %s8458_s13  ;;  %412 = vrot.lane.b32.xlu0 %v8770_v44, %s8458_s13  ;;  %112 = vst.msk [vmem:[#allocation2 + $0x80] sm:$0xff] %vm94_vm0, %v8830_v54  ;;  %114 = vst.msk [vmem:[#allocation2 + $0x90] sm:$0xff] %vm94_vm0, %v8858_v59  ;;  %v75_v61 = vld [vmem:[%s13670_s0 + $0xb8] sm:$0x3]  ;;  %v8892_v3 = vld [vmem:[%s13670_s0 + $0xb0] sm:$0xff] }
  0x23   :  { %194 = vst.msk [vmem:[#allocation2 + $0x80] sm:$0xff] %vm176_vm1, %v8830_v54  ;;  %v157_v62 = vld [vmem:[%s13670_s0 + $0xb8] sm:$0x3]  ;;  %196 = vst.msk [vmem:[#allocation2 + $0x90] sm:$0xff] %vm176_vm1, %v8858_v59  ;;  %v77_v4 = vld [vmem:[%s13670_s0 + $0xc8] sm:$0x3] }
  0x24   :  { %115 = vst.msk [vmem:[#allocation2 + $0x98] sm:$0x3] %vm96_vm3, %v73_v56  ;;  %v239_v63 = vld [vmem:[%s13670_s0 + $0xb8] sm:$0x3]  ;;  %117 = vst.msk [vmem:[#allocation2 + $0xa8] sm:$0x3] %vm96_vm3, %v75_v61 }
  0x25   :  { %276 = vst.msk [vmem:[#allocation2 + $0x80] sm:$0xff] %vm258_vm2, %v8830_v54  ;;  %v8883_v2 = vld [vmem:[%s13670_s0 + $0xb1] sm:$0xff]  ;;  %278 = vst.msk [vmem:[#allocation2 + $0x90] sm:$0xff] %vm258_vm2, %v8858_v59  ;;  %v159_v6 = vld [vmem:[%s13670_s0 + $0xc8] sm:$0x3] }
  0x26   :  { %197 = vst.msk [vmem:[#allocation2 + $0x98] sm:$0x3] %vm178_vm4, %v155_v57  ;;  %418 = vrot.lane.b32.xlu1 %v319_v50, %s8458_s13  ;;  %416 = vrot.lane.b32.xlu0 %v8835_v55, %s8458_s13  ;;  %199 = vst.msk [vmem:[#allocation2 + $0xa8] sm:$0x3] %vm178_vm4, %v157_v62  ;;  %v241_v8 = vld [vmem:[%s13670_s0 + $0xc8] sm:$0x3] }
  0x27   :  { %279 = vst.msk [vmem:[#allocation2 + $0x98] sm:$0x3] %vm260_vm5, %v237_v58  ;;  %281 = vst.msk [vmem:[#allocation2 + $0xa8] sm:$0x3] %vm260_vm5, %v239_v63  ;;  %v8915_v10 = vld [vmem:[%s13670_s0 + $0xc0] sm:$0xff]  ;;  %v8938_v18 = vld [vmem:[%s13670_s0 + $0xd0] sm:$0xff] }
  0x28   :  { %116 = vst.msk [vmem:[#allocation2 + $0xa0] sm:$0xff] %vm94_vm0, %v8892_v3  ;;  %v79_v14 = vld [vmem:[%s13670_s0 + $0xd8] sm:$0x3]  ;;  %v323_v15 = vld [vmem:[%s13670_s0 + $0xc9] sm:$0x3]  ;;  %118 = vst.msk [vmem:[#allocation2 + $0xb0] sm:$0xff] %vm94_vm0, %v8915_v10 }
  0x29   :  { %198 = vst.msk [vmem:[#allocation2 + $0xa0] sm:$0xff] %vm176_vm1, %v8892_v3  ;;  %v161_v16 = vld [vmem:[%s13670_s0 + $0xd8] sm:$0x3]  ;;  %v8946_v19 = vld [vmem:[%s13670_s0 + $0xc1] sm:$0xff]  ;;  %200 = vst.msk [vmem:[#allocation2 + $0xb0] sm:$0xff] %vm176_vm1, %v8915_v10 }
  0x2a   :  { %119 = vst.msk [vmem:[#allocation2 + $0xb8] sm:$0x3] %vm96_vm3, %v77_v4  ;;  %121 = vst.msk [vmem:[#allocation2 + $0xc8] sm:$0x3] %vm96_vm3, %v79_v14  ;;  %v243_v17 = vld [vmem:[%s13670_s0 + $0xd8] sm:$0x3]  ;;  %422 = vrot.lane.b32.xlu1 %v321_v60, %s8458_s13  ;;  %420 = vrot.lane.b32.xlu0 %v8883_v2, %s8458_s13 }
  0x2b   :  { %280 = vst.msk [vmem:[#allocation2 + $0xa0] sm:$0xff] %vm258_vm2, %v8892_v3  ;;  %v81_v20 = vld [vmem:[%s13670_s0 + $0xe8] sm:$0x3]  ;;  %282 = vst.msk [vmem:[#allocation2 + $0xb0] sm:$0xff] %vm258_vm2, %v8915_v10  ;;  %v8972_v24 = vld [vmem:[%s13670_s0 + $0xe0] sm:$0xff] }
  0x2c   :  { %201 = vst.msk [vmem:[#allocation2 + $0xb8] sm:$0x3] %vm178_vm4, %v159_v6  ;;  %203 = vst.msk [vmem:[#allocation2 + $0xc8] sm:$0x3] %vm178_vm4, %v161_v16  ;;  %v163_v22 = vld [vmem:[%s13670_s0 + $0xe8] sm:$0x3] }
  0x2d   :  { %283 = vst.msk [vmem:[#allocation2 + $0xb8] sm:$0x3] %vm260_vm5, %v241_v8  ;;  %285 = vst.msk [vmem:[#allocation2 + $0xc8] sm:$0x3] %vm260_vm5, %v243_v17  ;;  %v245_v23 = vld [vmem:[%s13670_s0 + $0xe8] sm:$0x3] }
  0x2e   :  { %120 = vst.msk [vmem:[#allocation2 + $0xc0] sm:$0xff] %vm94_vm0, %v8938_v18  ;;  %122 = vst.msk [vmem:[#allocation2 + $0xd0] sm:$0xff] %vm94_vm0, %v8972_v24  ;;  %v83_v26 = vld [vmem:[%s13670_s0 + $0xf8] sm:$0x3]  ;;  %v8995_v29 = vld [vmem:[%s13670_s0 + $0xf0] sm:$0xff]  ;;  %426 = vrot.lane.b32.xlu1 %v323_v15, %s8458_s13  ;;  %424 = vrot.lane.b32.xlu0 %v8946_v19, %s8458_s13 }
  0x2f   :  { %202 = vst.msk [vmem:[#allocation2 + $0xc0] sm:$0xff] %vm176_vm1, %v8938_v18  ;;  %v165_v27 = vld [vmem:[%s13670_s0 + $0xf8] sm:$0x3]  ;;  %204 = vst.msk [vmem:[#allocation2 + $0xd0] sm:$0xff] %vm176_vm1, %v8972_v24  ;;  %v9008_v31 = vld [vmem:[%s13670_s0 + $0x100] sm:$0xff] }
  0x30   :  { %123 = vst.msk [vmem:[#allocation2 + $0xd8] sm:$0x3] %vm96_vm3, %v81_v20  ;;  %125 = vst.msk [vmem:[#allocation2 + $0xe8] sm:$0x3] %vm96_vm3, %v83_v26  ;;  %v247_v28 = vld [vmem:[%s13670_s0 + $0xf8] sm:$0x3] }
  0x31   :  { %284 = vst.msk [vmem:[#allocation2 + $0xc0] sm:$0xff] %vm258_vm2, %v8938_v18  ;;  %286 = vst.msk [vmem:[#allocation2 + $0xd0] sm:$0xff] %vm258_vm2, %v8972_v24 }
  0x32   :  { %205 = vst.msk [vmem:[#allocation2 + $0xd8] sm:$0x3] %vm178_vm4, %v163_v22  ;;  %207 = vst.msk [vmem:[#allocation2 + $0xe8] sm:$0x3] %vm178_vm4, %v165_v27 }
  0x33   :  { %287 = vst.msk [vmem:[#allocation2 + $0xd8] sm:$0x3] %vm260_vm5, %v245_v23 }
  0x34   :  { %124 = vst.msk [vmem:[#allocation2 + $0xe0] sm:$0xff] %vm94_vm0, %v8995_v29 }
  0x35   :  { %14 = vsyncpa [#allocation9], 0  ;;  %v325_v32 = vld [vmem:[%s13670_s0 + $0xd9] sm:$0x3]  ;;  %v9016_v34 = vld [vmem:[%s13670_s0 + $0xd1] sm:$0xff]  ;;  %206 = vst.msk [vmem:[#allocation2 + $0xe0] sm:$0xff] %vm176_vm1, %v8995_v29 }
  0x36   :  { %289 = vst.msk [vmem:[#allocation2 + $0xe8] sm:$0x3] %vm260_vm5, %v247_v28  ;;  %v85_v36 = vld [vmem:[%s13670_s0 + $0x108] sm:$0x3]  ;;  %v9042_v39 = vld [vmem:[%s13670_s0 + $0x110] sm:$0xff]  ;;  %430 = vrot.lane.b32.xlu1 %v325_v32, %s8458_s13  ;;  %428 = vrot.lane.b32.xlu0 %v9016_v34, %s8458_s13  ;;  %vm500_vm6 = vcmask 130144  }
  0x37   :  { %126 = vst.msk [vmem:[#allocation2 + $0xf0] sm:$0xff] %vm94_vm0, %v9008_v31  ;;  %v167_v37 = vld [vmem:[%s13670_s0 + $0x108] sm:$0x3]  ;;  %128 = vst.msk [vmem:[#allocation2 + $0x100] sm:$0xff] %vm94_vm0, %v9042_v39  ;;  %v87_v43 = vld [vmem:[%s13670_s0 + $0x118] sm:$0x3] }
  0x38   :  { %288 = vst.msk [vmem:[#allocation2 + $0xe0] sm:$0xff] %vm258_vm2, %v8995_v29  ;;  %v249_v38 = vld [vmem:[%s13670_s0 + $0x108] sm:$0x3]  ;;  %v169_v46 = vld [vmem:[%s13670_s0 + $0x118] sm:$0x3]  ;;  %v9076_v48 = vld [vmem:[%s13670_s0 + $0x120] sm:$0xff] }
  0x39   :  { %208 = vst.msk [vmem:[#allocation2 + $0xf0] sm:$0xff] %vm176_vm1, %v9008_v31  ;;  %v327_v41 = vld [vmem:[%s13670_s0 + $0xe9] sm:$0x3]  ;;  %v9056_v42 = vld [vmem:[%s13670_s0 + $0xe1] sm:$0xff]  ;;  %210 = vst.msk [vmem:[#allocation2 + $0x100] sm:$0xff] %vm176_vm1, %v9042_v39  ;;  %vm502_vm7 = vcmask 124000  }
  0x3a   :  { %127 = vst.msk [vmem:[#allocation2 + $0xf8] sm:$0x3] %vm96_vm3, %v85_v36  ;;  %v251_v47 = vld [vmem:[%s13670_s0 + $0x118] sm:$0x3]  ;;  %129 = vst.msk [vmem:[#allocation2 + $0x108] sm:$0x3] %vm96_vm3, %v87_v43  ;;  %434 = vrot.lane.b32.xlu1 %v327_v41, %s8458_s13  ;;  %432 = vrot.lane.b32.xlu0 %v9056_v42, %s8458_s13 }
  0x3b   :  { %290 = vst.msk [vmem:[#allocation2 + $0xf0] sm:$0xff] %vm258_vm2, %v9008_v31  ;;  %292 = vst.msk [vmem:[#allocation2 + $0x100] sm:$0xff] %vm258_vm2, %v9042_v39  ;;  %v329_v50 = vld [vmem:[%s13670_s0 + $0xf9] sm:$0x3]  ;;  %v9090_v51 = vld [vmem:[%s13670_s0 + $0xf1] sm:$0xff]  ;;  %s8459_s11 = smov 8  }
  0x3c   :  { %209 = vst.msk [vmem:[#allocation2 + $0xf8] sm:$0x3] %vm178_vm4, %v167_v37  ;;  %211 = vst.msk [vmem:[#allocation2 + $0x108] sm:$0x3] %vm178_vm4, %v169_v46  ;;  %v89_v52 = vld [vmem:[%s13670_s0 + $0x128] sm:$0x3] }
  0x3d   :  { %291 = vst.msk [vmem:[#allocation2 + $0xf8] sm:$0x3] %vm260_vm5, %v249_v38  ;;  %293 = vst.msk [vmem:[#allocation2 + $0x108] sm:$0x3] %vm260_vm5, %v251_v47  ;;  %v171_v53 = vld [vmem:[%s13670_s0 + $0x128] sm:$0x3] }
  0x3e   :  { %130 = vst.msk [vmem:[#allocation2 + $0x110] sm:$0xff] %vm94_vm0, %v9076_v48  ;;  %v253_v56 = vld [vmem:[%s13670_s0 + $0x128] sm:$0x3]  ;;  %v9110_v57 = vld [vmem:[%s13670_s0 + $0x130] sm:$0xff]  ;;  %438 = vrot.lane.b32.xlu1 %v329_v50, %s8458_s13  ;;  %436 = vrot.lane.b32.xlu0 %v9090_v51, %s8458_s13  ;;  %vm744_vm8 = vcmask 156800   ;;  %vm742_vm9 = vcmask 162944  }
  0x3f   :  { %212 = vst.msk [vmem:[#allocation2 + $0x110] sm:$0xff] %vm176_vm1, %v9076_v48  ;;  %v331_v58 = vld [vmem:[%s13670_s0 + $0x109] sm:$0x3]  ;;  %v9124_v60 = vld [vmem:[%s13670_s0 + $0x101] sm:$0xff]  ;;  %v91_v61 = vld [vmem:[%s13670_s0 + $0x138] sm:$0x3] }
  0x40   :  { %294 = vst.msk [vmem:[#allocation2 + $0x110] sm:$0xff] %vm258_vm2, %v9076_v48  ;;  %v173_v62 = vld [vmem:[%s13670_s0 + $0x138] sm:$0x3]  ;;  %v9144_v4 = vld [vmem:[%s13670_s0 + $0x140] sm:$0xff]  ;;  %v93_v14 = vld [vmem:[%s13670_s0 + $0x148] sm:$0x3] }
  0x41   :  { %131 = vst.msk [vmem:[#allocation2 + $0x118] sm:$0x3] %vm96_vm3, %v89_v52  ;;  %v255_v63 = vld [vmem:[%s13670_s0 + $0x138] sm:$0x3]  ;;  %133 = vst.msk [vmem:[#allocation2 + $0x128] sm:$0x3] %vm96_vm3, %v91_v61 }
  0x42   :  { %213 = vst.msk [vmem:[#allocation2 + $0x118] sm:$0x3] %vm178_vm4, %v171_v53  ;;  %442 = vrot.lane.b32.xlu1 %v331_v58, %s8458_s13  ;;  %440 = vrot.lane.b32.xlu0 %v9124_v60, %s8458_s13  ;;  %215 = vst.msk [vmem:[#allocation2 + $0x128] sm:$0x3] %vm178_vm4, %v173_v62  ;;  %v333_v6 = vld [vmem:[%s13670_s0 + $0x119] sm:$0x3] }
  0x43   :  { %132 = vst.msk [vmem:[#allocation2 + $0x120] sm:$0xff] %vm94_vm0, %v9110_v57  ;;  %134 = vst.msk [vmem:[#allocation2 + $0x130] sm:$0xff] %vm94_vm0, %v9144_v4  ;;  %v9158_v8 = vld [vmem:[%s13670_s0 + $0x111] sm:$0xff]  ;;  %v175_v15 = vld [vmem:[%s13670_s0 + $0x148] sm:$0x3]  ;;  %vm986_vm10 = vcmask 189600  }
  0x44   :  { %295 = vst.msk [vmem:[#allocation2 + $0x118] sm:$0x3] %vm260_vm5, %v253_v56  ;;  %297 = vst.msk [vmem:[#allocation2 + $0x128] sm:$0x3] %vm260_vm5, %v255_v63  ;;  %v257_v16 = vld [vmem:[%s13670_s0 + $0x148] sm:$0x3] }
  0x45   :  { %214 = vst.msk [vmem:[#allocation2 + $0x120] sm:$0xff] %vm176_vm1, %v9110_v57  ;;  %216 = vst.msk [vmem:[#allocation2 + $0x130] sm:$0xff] %vm176_vm1, %v9144_v4  ;;  %v335_v17 = vld [vmem:[%s13670_s0 + $0x129] sm:$0x3]  ;;  %v9185_v20 = vld [vmem:[%s13670_s0 + $0x121] sm:$0xff]  ;;  %vm984_vm11 = vcmask 195744  }
  0x46   :  { %296 = vst.msk [vmem:[#allocation2 + $0x120] sm:$0xff] %vm258_vm2, %v9110_v57  ;;  %298 = vst.msk [vmem:[#allocation2 + $0x130] sm:$0xff] %vm258_vm2, %v9144_v4  ;;  %446 = vrot.lane.b32.xlu1 %v333_v6, %s8458_s13  ;;  %444 = vrot.lane.b32.xlu0 %v9158_v8, %s8458_s13  ;;  %v337_v22 = vld [vmem:[%s13670_s0 + $0x139] sm:$0x3]  ;;  %v9197_v23 = vld [vmem:[%s13670_s0 + $0x131] sm:$0xff]  ;;  %vm1228_vm12 = vcmask 222400  }
  0x47   :  { %135 = vst.msk [vmem:[#allocation2 + $0x138] sm:$0x3] %vm96_vm3, %v93_v14  ;;  %v339_v26 = vld [vmem:[%s13670_s0 + $0x149] sm:$0x3]  ;;  %v9208_v27 = vld [vmem:[%s13670_s0 + $0x141] sm:$0xff]  ;;  %vm1226_vm13 = vcmask 228544  }
  0x48   :  { %217 = vst.msk [vmem:[#allocation2 + $0x138] sm:$0x3] %vm178_vm4, %v175_v15  ;;  %v543_v28 = vld [vmem:[%s13670_s0 + $0x9] sm:$0x3]  ;;  %v545_v32 = vld [vmem:[%s13670_s0 + $0x19] sm:$0x3] }
  0x49   :  { %299 = vst.msk [vmem:[#allocation2 + $0x138] sm:$0x3] %vm260_vm5, %v257_v16  ;;  %v547_v36 = vld [vmem:[%s13670_s0 + $0x29] sm:$0x3]  ;;  %v567_v47 = vld [vmem:[%s13670_s0 + $0xd9] sm:$0x3] }
  0x4a   :  { %450 = vrot.lane.b32.xlu1 %v335_v17, %s8458_s13  ;;  %448 = vrot.lane.b32.xlu0 %v9185_v20, %s8458_s13  ;;  %v569_v52 = vld [vmem:[%s13670_s0 + $0xe9] sm:$0x3]  ;;  %v571_v56 = vld [vmem:[%s13670_s0 + $0xf9] sm:$0x3]  ;;  %s8460_s26 = smov 20   ;;  %vm1470_vm14 = vcmask 255200  }
  0x4b   :  { %v573_v61 = vld [vmem:[%s13670_s0 + $0x109] sm:$0x3]  ;;  %v575_v63 = vld [vmem:[%s13670_s0 + $0x119] sm:$0x3]  ;;  %vm1468_vm15 = vcmask 261344   ;;  %vm1712_vm0 = vcmask 288000  }
  0x4c   :  { %v577_v14 = vld [vmem:[%s13670_s0 + $0x129] sm:$0x3]  ;;  %v579_v16 = vld [vmem:[%s13670_s0 + $0x139] sm:$0x3]  ;;  %vm1710_vm1 = vcmask 294144   ;;  %s8461_s18 = smov 16  }
  0x4d   :  { %vm1954_vm2 = vcmask 320800   ;;  %vm1952_vm3 = vcmask 326944   ;;  %s8462_s22 = smov 28   ;;  %s8463_s12 = smov 60   ;;  %vm13680_vm4 = vcmask 353600   ;;  %vm2194_vm5 = vcmask 359744  }
  0x4e   :  { %454 = vrot.lane.b32.xlu1 %v337_v22, %s8458_s13  ;;  %452 = vrot.lane.b32.xlu0 %v9197_v23, %s8458_s13  ;;  %v581_v22 = vld [vmem:[%s13670_s0 + $0x149] sm:$0x3]  ;;  %s8464_s30 = smov 72   ;;  %s8465_s24 = smov 68  }
  0x4f   :  { %s13730_s25 = smov 80   ;;  %s13728_s29 = smov 6  }
  0x50   :  { %s13726_s10 = smov 18   ;;  %s8470_s14 = smov 24  }
  0x51   :  { %s8471_s15 = smov 30   ;;  %s13724_s16 = smov 36  }
  0x52   :  { %458 = vrot.lane.b32.xlu1 %v339_v26, %s8458_s13  ;;  %456 = vrot.lane.b32.xlu0 %v9208_v27, %s8458_s13  ;;  %s8473_s20 = smov 42   ;;  %s13720_s21 = smov 54  }
  0x53   :  { %s8478_s27 = smov 120   ;;  %s8479_s19 = smov 102  }
  0x54   :  { %s14094_s17 = smov 80  }
  0x56   :  { %624 = vrot.lane.b32.xlu1 %v543_v28, %s8458_s13  ;;  %622 = vrot.lane.b32.xlu0 %v8541_v1, %s8458_s13  ;;  %v549_v1 = vld [vmem:[%s13670_s0 + $0x39] sm:$0x3]  ;;  %v785_v28 = vld [vmem:[%s13670_s0 + $0x8] sm:$0x3] }
  0x5a   :  { %628 = vrot.lane.b32.xlu1 %v545_v32, %s8458_s13  ;;  %626 = vrot.lane.b32.xlu0 %v8536_v0, %s8458_s13  ;;  %v551_v0 = vld [vmem:[%s13670_s0 + $0x49] sm:$0x3] }
  0x5e   :  { %632 = vrot.lane.b32.xlu1 %v547_v36, %s8458_s13  ;;  %630 = vrot.lane.b32.xlu0 %v8561_v5, %s8458_s13  ;;  %v553_v5 = vld [vmem:[%s13670_s0 + $0x59] sm:$0x3] }
  0x62   :  { %636 = vrot.lane.b32.xlu1 %v549_v1, %s8458_s13  ;;  %634 = vrot.lane.b32.xlu0 %v8572_v7, %s8458_s13  ;;  %v555_v7 = vld [vmem:[%s13670_s0 + $0x69] sm:$0x3] }
  0x66   :  { %640 = vrot.lane.b32.xlu1 %v551_v0, %s8458_s13  ;;  %638 = vrot.lane.b32.xlu0 %v8583_v9, %s8458_s13  ;;  %v557_v9 = vld [vmem:[%s13670_s0 + $0x79] sm:$0x3]  ;;  %v789_v0 = vld [vmem:[%s13670_s0 + $0x28] sm:$0x3] }
  0x6a   :  { %644 = vrot.lane.b32.xlu1 %v553_v5, %s8458_s13  ;;  %642 = vrot.lane.b32.xlu0 %v8594_v11, %s8458_s13  ;;  %v559_v11 = vld [vmem:[%s13670_s0 + $0x89] sm:$0x3] }
  0x6e   :  { %648 = vrot.lane.b32.xlu1 %v555_v7, %s8458_s13  ;;  %646 = vrot.lane.b32.xlu0 %v8642_v21, %s8458_s13  ;;  %v561_v21 = vld [vmem:[%s13670_s0 + $0x99] sm:$0x3] }
  0x72   :  { %652 = vrot.lane.b32.xlu1 %v557_v9, %s8458_s13  ;;  %650 = vrot.lane.b32.xlu0 %v8709_v33, %s8458_s13  ;;  %v563_v33 = vld [vmem:[%s13670_s0 + $0xb9] sm:$0x3] }
  0x73   :  { %v791_v9 = vld [vmem:[%s13670_s0 + $0x38] sm:$0x3] }
  0x74   :  { %v385_v37 = vpop.permute.xlu1 %384  ;;  %v381_v38 = vpop.permute.xlu0 %380 }
  0x75   :  { %504 = vst.msk [vmem:[#allocation2 + $0x10] sm:$0xff] %vm500_vm6, %v385_v37  ;;  %501 = vst.msk [vmem:[#allocation2] sm:$0xff] %vm500_vm6, %v381_v38  ;;  %v793_v37 = vld [vmem:[%s13670_s0 + $0x48] sm:$0x3] }
  0x76   :  { %656 = vrot.lane.b32.xlu1 %v559_v11, %s8458_s13  ;;  %654 = vrot.lane.b32.xlu0 %v8770_v44, %s8458_s13 }
  0x78   :  { %v387_v44 = vpop.permute.xlu1 %386  ;;  %v383_v41 = vpop.permute.xlu0 %382 }
  0x79   :  { %505 = vst.msk [vmem:[#allocation2 + $0x18] sm:$0x3] %vm502_vm7, %v387_v44  ;;  %503 = vst.msk [vmem:[#allocation2 + $0x8] sm:$0x3] %vm502_vm7, %v383_v41  ;;  %v795_v44 = vld [vmem:[%s13670_s0 + $0x58] sm:$0x3] }
  0x7a   :  { %660 = vrot.lane.b32.xlu1 %v561_v21, %s8458_s13  ;;  %658 = vrot.lane.b32.xlu0 %v8835_v55, %s8458_s13  ;;  %v565_v55 = vld [vmem:[%s13670_s0 + $0xc9] sm:$0x3] }
  0x7c   :  { %v391_v43 = vpop.permute.xlu1 %390  ;;  %v389_v46 = vpop.permute.xlu0 %388 }
  0x7d   :  { %507 = vst.msk [vmem:[#allocation2 + $0x28] sm:$0x3] %vm502_vm7, %v391_v43  ;;  %v797_v43 = vld [vmem:[%s13670_s0 + $0x68] sm:$0x3] }
  0x7e   :  { %664 = vrot.lane.b32.xlu1 %v563_v33, %s8458_s13  ;;  %662 = vrot.lane.b32.xlu0 %v8883_v2, %s8458_s13  ;;  %506 = vst.msk [vmem:[#allocation2 + $0x20] sm:$0xff] %vm500_vm6, %v389_v46 }
  0x80   :  { %v395_v2 = vpop.permute.xlu1 %394  ;;  %v393_v50 = vpop.permute.xlu0 %392 }
  0x81   :  { %509 = vst.msk [vmem:[#allocation2 + $0x38] sm:$0x3] %vm502_vm7, %v395_v2  ;;  %v799_v2 = vld [vmem:[%s13670_s0 + $0x78] sm:$0x3] }
  0x82   :  { %668 = vrot.lane.b32.xlu1 %v565_v55, %s8458_s13  ;;  %666 = vrot.lane.b32.xlu0 %v8946_v19, %s8458_s13  ;;  %508 = vst.msk [vmem:[#allocation2 + $0x30] sm:$0xff] %vm500_vm6, %v393_v50 }
  0x84   :  { %v399_v19 = vpop.permute.xlu1 %398  ;;  %v397_v53 = vpop.permute.xlu0 %396 }
  0x85   :  { %511 = vst.msk [vmem:[#allocation2 + $0x48] sm:$0x3] %vm502_vm7, %v399_v19  ;;  %v801_v19 = vld [vmem:[%s13670_s0 + $0x88] sm:$0x3] }
  0x86   :  { %672 = vrot.lane.b32.xlu1 %v567_v47, %s8458_s13  ;;  %670 = vrot.lane.b32.xlu0 %v9016_v34, %s8458_s13  ;;  %510 = vst.msk [vmem:[#allocation2 + $0x40] sm:$0xff] %vm500_vm6, %v397_v53 }
  0x88   :  { %v403_v34 = vpop.permute.xlu1 %402  ;;  %v401_v58 = vpop.permute.xlu0 %400 }
  0x89   :  { %513 = vst.msk [vmem:[#allocation2 + $0x58] sm:$0x3] %vm502_vm7, %v403_v34  ;;  %v803_v34 = vld [vmem:[%s13670_s0 + $0x98] sm:$0x3] }
  0x8a   :  { %676 = vrot.lane.b32.xlu1 %v569_v52, %s8458_s13  ;;  %674 = vrot.lane.b32.xlu0 %v9056_v42, %s8458_s13  ;;  %512 = vst.msk [vmem:[#allocation2 + $0x50] sm:$0xff] %vm500_vm6, %v401_v58 }
  0x8c   :  { %v407_v42 = vpop.permute.xlu1 %406  ;;  %v405_v62 = vpop.permute.xlu0 %404 }
  0x8d   :  { %515 = vst.msk [vmem:[#allocation2 + $0x68] sm:$0x3] %vm502_vm7, %v407_v42  ;;  %v805_v42 = vld [vmem:[%s13670_s0 + $0xb8] sm:$0x3] }
  0x8e   :  { %680 = vrot.lane.b32.xlu1 %v571_v56, %s8458_s13  ;;  %678 = vrot.lane.b32.xlu0 %v9090_v51, %s8458_s13  ;;  %514 = vst.msk [vmem:[#allocation2 + $0x60] sm:$0xff] %vm500_vm6, %v405_v62 }
  0x90   :  { %v411_v51 = vpop.permute.xlu1 %410  ;;  %v409_v6 = vpop.permute.xlu0 %408 }
  0x91   :  { %517 = vst.msk [vmem:[#allocation2 + $0x78] sm:$0x3] %vm502_vm7, %v411_v51  ;;  %v807_v51 = vld [vmem:[%s13670_s0 + $0xc8] sm:$0x3] }
  0x92   :  { %684 = vrot.lane.b32.xlu1 %v573_v61, %s8458_s13  ;;  %682 = vrot.lane.b32.xlu0 %v9124_v60, %s8458_s13  ;;  %516 = vst.msk [vmem:[#allocation2 + $0x70] sm:$0xff] %vm500_vm6, %v409_v6 }
  0x94   :  { %v415_v60 = vpop.permute.xlu1 %414  ;;  %v413_v15 = vpop.permute.xlu0 %412 }
  0x95   :  { %519 = vst.msk [vmem:[#allocation2 + $0x88] sm:$0x3] %vm502_vm7, %v415_v60  ;;  %v809_v60 = vld [vmem:[%s13670_s0 + $0xd8] sm:$0x3] }
  0x96   :  { %688 = vrot.lane.b32.xlu1 %v575_v63, %s8458_s13  ;;  %686 = vrot.lane.b32.xlu0 %v9158_v8, %s8458_s13  ;;  %518 = vst.msk [vmem:[#allocation2 + $0x80] sm:$0xff] %vm500_vm6, %v413_v15 }
  0x98   :  { %v419_v8 = vpop.permute.xlu1 %418  ;;  %v417_v17 = vpop.permute.xlu0 %416 }
  0x99   :  { %521 = vst.msk [vmem:[#allocation2 + $0x98] sm:$0x3] %vm502_vm7, %v419_v8  ;;  %v811_v8 = vld [vmem:[%s13670_s0 + $0xe8] sm:$0x3] }
  0x9a   :  { %692 = vrot.lane.b32.xlu1 %v577_v14, %s8458_s13  ;;  %690 = vrot.lane.b32.xlu0 %v9185_v20, %s8458_s13  ;;  %520 = vst.msk [vmem:[#allocation2 + $0x90] sm:$0xff] %vm500_vm6, %v417_v17 }
  0x9c   :  { %v423_v20 = vpop.permute.xlu1 %422  ;;  %v421_v26 = vpop.permute.xlu0 %420 }
  0x9d   :  { %523 = vst.msk [vmem:[#allocation2 + $0xa8] sm:$0x3] %vm502_vm7, %v423_v20  ;;  %v813_v20 = vld [vmem:[%s13670_s0 + $0xf8] sm:$0x3] }
  0x9e   :  { %696 = vrot.lane.b32.xlu1 %v579_v16, %s8458_s13  ;;  %694 = vrot.lane.b32.xlu0 %v9197_v23, %s8458_s13  ;;  %522 = vst.msk [vmem:[#allocation2 + $0xa0] sm:$0xff] %vm500_vm6, %v421_v26 }
  0xa0   :  { %v427_v23 = vpop.permute.xlu1 %426  ;;  %v425_v32 = vpop.permute.xlu0 %424 }
  0xa1   :  { %525 = vst.msk [vmem:[#allocation2 + $0xb8] sm:$0x3] %vm502_vm7, %v427_v23  ;;  %v815_v23 = vld [vmem:[%s13670_s0 + $0x108] sm:$0x3] }
  0xa2   :  { %700 = vrot.lane.b32.xlu1 %v581_v22, %s8458_s13  ;;  %698 = vrot.lane.b32.xlu0 %v9208_v27, %s8458_s13  ;;  %524 = vst.msk [vmem:[#allocation2 + $0xb0] sm:$0xff] %vm500_vm6, %v425_v32  ;;  %v787_v27 = vld [vmem:[%s13670_s0 + $0x18] sm:$0x3] }
  0xa6   :  { %866 = vrot.lane.b32.xlu1 %v785_v28, %s8459_s11  ;;  %864 = vrot.lane.b32.xlu0 %v8604_v13, %s8459_s11 }
  0xa8   :  { %v431_v36 = vpop.permute.xlu1 %430  ;;  %v429_v1 = vpop.permute.xlu0 %428 }
  0xa9   :  { %527 = vst.msk [vmem:[#allocation2 + $0xc8] sm:$0x3] %vm502_vm7, %v431_v36  ;;  %v817_v36 = vld [vmem:[%s13670_s0 + $0x118] sm:$0x3] }
  0xaa   :  { %526 = vst.msk [vmem:[#allocation2 + $0xc0] sm:$0xff] %vm500_vm6, %v429_v1  ;;  %870 = vrot.lane.b32.xlu1 %v787_v27, %s8459_s11  ;;  %868 = vrot.lane.b32.xlu0 %v8599_v12, %s8459_s11 }
  0xac   :  { %v435_v5 = vpop.permute.xlu1 %434  ;;  %v433_v7 = vpop.permute.xlu0 %432 }
  0xad   :  { %529 = vst.msk [vmem:[#allocation2 + $0xd8] sm:$0x3] %vm502_vm7, %v435_v5  ;;  %v819_v5 = vld [vmem:[%s13670_s0 + $0x128] sm:$0x3] }
  0xae   :  { %528 = vst.msk [vmem:[#allocation2 + $0xd0] sm:$0xff] %vm500_vm6, %v433_v7  ;;  %874 = vrot.lane.b32.xlu1 %v789_v0, %s8459_s11  ;;  %872 = vrot.lane.b32.xlu0 %v8665_v25, %s8459_s11 }
  0xb0   :  { %v439_v11 = vpop.permute.xlu1 %438  ;;  %v437_v21 = vpop.permute.xlu0 %436 }
  0xb1   :  { %531 = vst.msk [vmem:[#allocation2 + $0xe8] sm:$0x3] %vm502_vm7, %v439_v11  ;;  %v821_v11 = vld [vmem:[%s13670_s0 + $0x138] sm:$0x3] }
  0xb2   :  { %530 = vst.msk [vmem:[#allocation2 + $0xe0] sm:$0xff] %vm500_vm6, %v437_v21  ;;  %878 = vrot.lane.b32.xlu1 %v791_v9, %s8459_s11  ;;  %876 = vrot.lane.b32.xlu0 %v8690_v30, %s8459_s11 }
  0xb4   :  { %v443_v38 = vpop.permute.xlu1 %442  ;;  %v441_v33 = vpop.permute.xlu0 %440 }
  0xb5   :  { %533 = vst.msk [vmem:[#allocation2 + $0xf8] sm:$0x3] %vm502_vm7, %v443_v38  ;;  %v823_v38 = vld [vmem:[%s13670_s0 + $0x148] sm:$0x3] }
  0xb6   :  { %532 = vst.msk [vmem:[#allocation2 + $0xf0] sm:$0xff] %vm500_vm6, %v441_v33  ;;  %882 = vrot.lane.b32.xlu1 %v793_v37, %s8459_s11  ;;  %880 = vrot.lane.b32.xlu0 %v8721_v35, %s8459_s11 }
  0xb8   :  { %v447_v41 = vpop.permute.xlu1 %446  ;;  %v445_v55 = vpop.permute.xlu0 %444 }
  0xb9   :  { %535 = vst.msk [vmem:[#allocation2 + $0x108] sm:$0x3] %vm502_vm7, %v447_v41  ;;  %v1027_v41 = vld [vmem:[%s13670_s0 + $0x8] sm:$0x3] }
  0xba   :  { %534 = vst.msk [vmem:[#allocation2 + $0x100] sm:$0xff] %vm500_vm6, %v445_v55  ;;  %886 = vrot.lane.b32.xlu1 %v795_v44, %s8459_s11  ;;  %884 = vrot.lane.b32.xlu0 %v8747_v40, %s8459_s11 }
  0xbc   :  { %v451_v46 = vpop.permute.xlu1 %450  ;;  %v449_v47 = vpop.permute.xlu0 %448 }
  0xbd   :  { %537 = vst.msk [vmem:[#allocation2 + $0x118] sm:$0x3] %vm502_vm7, %v451_v46  ;;  %v1029_v46 = vld [vmem:[%s13670_s0 + $0x18] sm:$0x3] }
  0xbe   :  { %536 = vst.msk [vmem:[#allocation2 + $0x110] sm:$0xff] %vm500_vm6, %v449_v47  ;;  %890 = vrot.lane.b32.xlu1 %v797_v43, %s8459_s11  ;;  %888 = vrot.lane.b32.xlu0 %v8779_v45, %s8459_s11 }
  0xc0   :  { %v455_v50 = vpop.permute.xlu1 %454  ;;  %v453_v52 = vpop.permute.xlu0 %452 }
  0xc1   :  { %539 = vst.msk [vmem:[#allocation2 + $0x128] sm:$0x3] %vm502_vm7, %v455_v50  ;;  %v1031_v50 = vld [vmem:[%s13670_s0 + $0x28] sm:$0x3] }
  0xc2   :  { %538 = vst.msk [vmem:[#allocation2 + $0x120] sm:$0xff] %vm500_vm6, %v453_v52  ;;  %894 = vrot.lane.b32.xlu1 %v799_v2, %s8459_s11  ;;  %892 = vrot.lane.b32.xlu0 %v8799_v49, %s8459_s11 }
  0xc4   :  { %v459_v53 = vpop.permute.xlu1 %458  ;;  %v457_v56 = vpop.permute.xlu0 %456 }
  0xc5   :  { %541 = vst.msk [vmem:[#allocation2 + $0x138] sm:$0x3] %vm502_vm7, %v459_v53  ;;  %vm13682_vm7 = vcmask 425344  }
  0xc6   :  { %540 = vst.msk [vmem:[#allocation2 + $0x130] sm:$0xff] %vm500_vm6, %v457_v56  ;;  %898 = vrot.lane.b32.xlu1 %v801_v19, %s8459_s11  ;;  %896 = vrot.lane.b32.xlu0 %v8830_v54, %s8459_s11  ;;  %v1033_v19 = vld [vmem:[%s13670_s0 + $0x38] sm:$0x3]  ;;  %v1035_v56 = vld [vmem:[%s13670_s0 + $0x48] sm:$0x3]  ;;  %vm13681_vm6 = vcmask 392544  }
  0xc8   :  { %v625_v58 = vpop.permute.xlu1 %624  ;;  %v623_v61 = vpop.permute.xlu0 %622 }
  0xc9   :  { %745 = vst.msk [vmem:[#allocation2 + $0x8] sm:$0x3] %vm744_vm8, %v625_v58  ;;  %v1037_v58 = vld [vmem:[%s13670_s0 + $0x58] sm:$0x3] }
  0xca   :  { %743 = vst.msk [vmem:[#allocation2] sm:$0xff] %vm742_vm9, %v623_v61  ;;  %902 = vrot.lane.b32.xlu1 %v803_v34, %s8459_s11  ;;  %900 = vrot.lane.b32.xlu0 %v8858_v59, %s8459_s11 }
  0xcc   :  { %v629_v62 = vpop.permute.xlu1 %628  ;;  %v627_v63 = vpop.permute.xlu0 %626 }
  0xcd   :  { %747 = vst.msk [vmem:[#allocation2 + $0x18] sm:$0x3] %vm744_vm8, %v629_v62 }
  0xce   :  { %746 = vst.msk [vmem:[#allocation2 + $0x10] sm:$0xff] %vm742_vm9, %v627_v63  ;;  %906 = vrot.lane.b32.xlu1 %v805_v42, %s8459_s11  ;;  %904 = vrot.lane.b32.xlu0 %v8892_v3, %s8459_s11  ;;  %v1039_v42 = vld [vmem:[%s13670_s0 + $0x68] sm:$0x3]  ;;  %v1041_v63 = vld [vmem:[%s13670_s0 + $0x78] sm:$0x3] }
  0xd0   :  { %v633_v6 = vpop.permute.xlu1 %632  ;;  %v631_v14 = vpop.permute.xlu0 %630 }
  0xd1   :  { %749 = vst.msk [vmem:[#allocation2 + $0x28] sm:$0x3] %vm744_vm8, %v633_v6  ;;  %v1043_v6 = vld [vmem:[%s13670_s0 + $0x88] sm:$0x3] }
  0xd2   :  { %748 = vst.msk [vmem:[#allocation2 + $0x20] sm:$0xff] %vm742_vm9, %v631_v14  ;;  %910 = vrot.lane.b32.xlu1 %v807_v51, %s8459_s11  ;;  %908 = vrot.lane.b32.xlu0 %v8915_v10, %s8459_s11 }
  0xd4   :  { %v637_v15 = vpop.permute.xlu1 %636  ;;  %v635_v16 = vpop.permute.xlu0 %634 }
  0xd5   :  { %751 = vst.msk [vmem:[#allocation2 + $0x38] sm:$0x3] %vm744_vm8, %v637_v15 }
  0xd6   :  { %750 = vst.msk [vmem:[#allocation2 + $0x30] sm:$0xff] %vm742_vm9, %v635_v16  ;;  %914 = vrot.lane.b32.xlu1 %v809_v60, %s8459_s11  ;;  %912 = vrot.lane.b32.xlu0 %v8938_v18, %s8459_s11 }
  0xd8   :  { %v641_v17 = vpop.permute.xlu1 %640  ;;  %v639_v22 = vpop.permute.xlu0 %638 }
  0xd9   :  { %753 = vst.msk [vmem:[#allocation2 + $0x48] sm:$0x3] %vm744_vm8, %v641_v17  ;;  %v1049_v17 = vld [vmem:[%s13670_s0 + $0xc8] sm:$0x3] }
  0xda   :  { %752 = vst.msk [vmem:[#allocation2 + $0x40] sm:$0xff] %vm742_vm9, %v639_v22  ;;  %918 = vrot.lane.b32.xlu1 %v811_v8, %s8459_s11  ;;  %916 = vrot.lane.b32.xlu0 %v8972_v24, %s8459_s11 }
  0xdc   :  { %v645_v26 = vpop.permute.xlu1 %644  ;;  %v643_v28 = vpop.permute.xlu0 %642 }
  0xdd   :  { %755 = vst.msk [vmem:[#allocation2 + $0x58] sm:$0x3] %vm744_vm8, %v645_v26 }
  0xde   :  { %754 = vst.msk [vmem:[#allocation2 + $0x50] sm:$0xff] %vm742_vm9, %v643_v28  ;;  %922 = vrot.lane.b32.xlu1 %v813_v20, %s8459_s11  ;;  %920 = vrot.lane.b32.xlu0 %v8995_v29, %s8459_s11  ;;  %v1051_v20 = vld [vmem:[%s13670_s0 + $0xd8] sm:$0x3]  ;;  %v1053_v28 = vld [vmem:[%s13670_s0 + $0xe8] sm:$0x3] }
  0xe0   :  { %v649_v32 = vpop.permute.xlu1 %648  ;;  %v647_v27 = vpop.permute.xlu0 %646 }
  0xe1   :  { %757 = vst.msk [vmem:[#allocation2 + $0x68] sm:$0x3] %vm744_vm8, %v649_v32  ;;  %v1055_v32 = vld [vmem:[%s13670_s0 + $0xf8] sm:$0x3] }
  0xe2   :  { %756 = vst.msk [vmem:[#allocation2 + $0x60] sm:$0xff] %vm742_vm9, %v647_v27  ;;  %926 = vrot.lane.b32.xlu1 %v815_v23, %s8459_s11  ;;  %924 = vrot.lane.b32.xlu0 %v9008_v31, %s8459_s11 }
  0xe4   :  { %v653_v1 = vpop.permute.xlu1 %652  ;;  %v651_v0 = vpop.permute.xlu0 %650 }
  0xe5   :  { %759 = vst.msk [vmem:[#allocation2 + $0x78] sm:$0x3] %vm744_vm8, %v653_v1  ;;  %v1057_v1 = vld [vmem:[%s13670_s0 + $0x108] sm:$0x3] }
  0xe6   :  { %758 = vst.msk [vmem:[#allocation2 + $0x70] sm:$0xff] %vm742_vm9, %v651_v0  ;;  %930 = vrot.lane.b32.xlu1 %v817_v36, %s8459_s11  ;;  %928 = vrot.lane.b32.xlu0 %v9042_v39, %s8459_s11 }
  0xe8   :  { %v657_v7 = vpop.permute.xlu1 %656  ;;  %v655_v9 = vpop.permute.xlu0 %654 }
  0xe9   :  { %761 = vst.msk [vmem:[#allocation2 + $0x88] sm:$0x3] %vm744_vm8, %v657_v7  ;;  %v1059_v7 = vld [vmem:[%s13670_s0 + $0x118] sm:$0x3] }
  0xea   :  { %760 = vst.msk [vmem:[#allocation2 + $0x80] sm:$0xff] %vm742_vm9, %v655_v9  ;;  %934 = vrot.lane.b32.xlu1 %v819_v5, %s8459_s11  ;;  %932 = vrot.lane.b32.xlu0 %v9076_v48, %s8459_s11 }
  0xec   :  { %v661_v21 = vpop.permute.xlu1 %660  ;;  %v659_v37 = vpop.permute.xlu0 %658 }
  0xed   :  { %763 = vst.msk [vmem:[#allocation2 + $0x98] sm:$0x3] %vm744_vm8, %v661_v21  ;;  %v1061_v21 = vld [vmem:[%s13670_s0 + $0x128] sm:$0x3] }
  0xee   :  { %762 = vst.msk [vmem:[#allocation2 + $0x90] sm:$0xff] %vm742_vm9, %v659_v37  ;;  %938 = vrot.lane.b32.xlu1 %v821_v11, %s8459_s11  ;;  %936 = vrot.lane.b32.xlu0 %v9110_v57, %s8459_s11 }
  0xf0   :  { %v665_v33 = vpop.permute.xlu1 %664  ;;  %v663_v44 = vpop.permute.xlu0 %662 }
  0xf1   :  { %765 = vst.msk [vmem:[#allocation2 + $0xa8] sm:$0x3] %vm744_vm8, %v665_v33  ;;  %v1063_v33 = vld [vmem:[%s13670_s0 + $0x138] sm:$0x3] }
  0xf2   :  { %764 = vst.msk [vmem:[#allocation2 + $0xa0] sm:$0xff] %vm742_vm9, %v663_v44  ;;  %942 = vrot.lane.b32.xlu1 %v823_v38, %s8459_s11  ;;  %940 = vrot.lane.b32.xlu0 %v9144_v4, %s8459_s11 }
  0xf4   :  { %v669_v55 = vpop.permute.xlu1 %668  ;;  %v667_v43 = vpop.permute.xlu0 %666 }
  0xf5   :  { %767 = vst.msk [vmem:[#allocation2 + $0xb8] sm:$0x3] %vm744_vm8, %v669_v55  ;;  %v1065_v55 = vld [vmem:[%s13670_s0 + $0x148] sm:$0x3] }
  0xf6   :  { %766 = vst.msk [vmem:[#allocation2 + $0xb0] sm:$0xff] %vm742_vm9, %v667_v43  ;;  %1108 = vrot.lane.b32.xlu1 %v1027_v41, %s8459_s11  ;;  %1106 = vrot.lane.b32.xlu0 %v8604_v13, %s8459_s11 }
  0xf8   :  { %v673_v47 = vpop.permute.xlu1 %672  ;;  %v671_v2 = vpop.permute.xlu0 %670 }
  0xf9   :  { %769 = vst.msk [vmem:[#allocation2 + $0xc8] sm:$0x3] %vm744_vm8, %v673_v47  ;;  %v1269_v47 = vld [vmem:[%s13670_s0 + $0x8] sm:$0x3] }
  0xfa   :  { %768 = vst.msk [vmem:[#allocation2 + $0xc0] sm:$0xff] %vm742_vm9, %v671_v2  ;;  %1112 = vrot.lane.b32.xlu1 %v1029_v46, %s8459_s11  ;;  %1110 = vrot.lane.b32.xlu0 %v8599_v12, %s8459_s11  ;;  %v9681_v2 = vld [vmem:[%s13670_s0] sm:$0xff] }
  0xfc   :  { %v677_v13 = vpop.permute.xlu1 %676  ;;  %v675_v52 = vpop.permute.xlu0 %674 }
  0xfd   :  { %771 = vst.msk [vmem:[#allocation2 + $0xd8] sm:$0x3] %vm744_vm8, %v677_v13 }
  0xfe   :  { %770 = vst.msk [vmem:[#allocation2 + $0xd0] sm:$0xff] %vm742_vm9, %v675_v52  ;;  %1116 = vrot.lane.b32.xlu1 %v1031_v50, %s8459_s11  ;;  %1114 = vrot.lane.b32.xlu0 %v8665_v25, %s8459_s11  ;;  %v1271_v52 = vld [vmem:[%s13670_s0 + $0x18] sm:$0x3] }
 0x100   :  { %v681_v12 = vpop.permute.xlu1 %680  ;;  %v679_v53 = vpop.permute.xlu0 %678 }
 0x101   :  { %773 = vst.msk [vmem:[#allocation2 + $0xe8] sm:$0x3] %vm744_vm8, %v681_v12 }
 0x102   :  { %772 = vst.msk [vmem:[#allocation2 + $0xe0] sm:$0xff] %vm742_vm9, %v679_v53  ;;  %1120 = vrot.lane.b32.xlu1 %v1033_v19, %s8459_s11  ;;  %1118 = vrot.lane.b32.xlu0 %v8690_v30, %s8459_s11  ;;  %v9694_v19 = vld [vmem:[%s13670_s0 + $0x10] sm:$0xff] }
 0x104   :  { %v685_v25 = vpop.permute.xlu1 %684  ;;  %v683_v34 = vpop.permute.xlu0 %682 }
 0x105   :  { %775 = vst.msk [vmem:[#allocation2 + $0xf8] sm:$0x3] %vm744_vm8, %v685_v25  ;;  %v9707_v25 = vld [vmem:[%s13670_s0 + $0x20] sm:$0xff] }
 0x106   :  { %774 = vst.msk [vmem:[#allocation2 + $0xf0] sm:$0xff] %vm742_vm9, %v683_v34  ;;  %1124 = vrot.lane.b32.xlu1 %v1035_v56, %s8459_s11  ;;  %1122 = vrot.lane.b32.xlu0 %v8721_v35, %s8459_s11  ;;  %v1273_v56 = vld [vmem:[%s13670_s0 + $0x28] sm:$0x3] }
 0x108   :  { %v689_v30 = vpop.permute.xlu1 %688  ;;  %v687_v61 = vpop.permute.xlu0 %686 }
 0x109   :  { %777 = vst.msk [vmem:[#allocation2 + $0x108] sm:$0x3] %vm744_vm8, %v689_v30  ;;  %v1275_v30 = vld [vmem:[%s13670_s0 + $0x38] sm:$0x3] }
 0x10a   :  { %776 = vst.msk [vmem:[#allocation2 + $0x100] sm:$0xff] %vm742_vm9, %v687_v61  ;;  %1128 = vrot.lane.b32.xlu1 %v1037_v58, %s8459_s11  ;;  %1126 = vrot.lane.b32.xlu0 %v8747_v40, %s8459_s11  ;;  %v9720_v61 = vld [vmem:[%s13670_s0 + $0x30] sm:$0xff] }
 0x10c   :  { %v693_v35 = vpop.permute.xlu1 %692  ;;  %v691_v62 = vpop.permute.xlu0 %690 }
 0x10d   :  { %779 = vst.msk [vmem:[#allocation2 + $0x118] sm:$0x3] %vm744_vm8, %v693_v35 }
 0x10e   :  { %778 = vst.msk [vmem:[#allocation2 + $0x110] sm:$0xff] %vm742_vm9, %v691_v62  ;;  %1132 = vrot.lane.b32.xlu1 %v1039_v42, %s8459_s11  ;;  %1130 = vrot.lane.b32.xlu0 %v8779_v45, %s8459_s11  ;;  %v1277_v62 = vld [vmem:[%s13670_s0 + $0x48] sm:$0x3] }
 0x110   :  { %v697_v40 = vpop.permute.xlu1 %696  ;;  %v695_v51 = vpop.permute.xlu0 %694 }
 0x111   :  { %781 = vst.msk [vmem:[#allocation2 + $0x128] sm:$0x3] %vm744_vm8, %v697_v40 }
 0x112   :  { %780 = vst.msk [vmem:[#allocation2 + $0x120] sm:$0xff] %vm742_vm9, %v695_v51  ;;  %1136 = vrot.lane.b32.xlu1 %v1041_v63, %s8459_s11  ;;  %1134 = vrot.lane.b32.xlu0 %v8799_v49, %s8459_s11  ;;  %v1045_v49 = vld [vmem:[%s13670_s0 + $0x98] sm:$0x3]  ;;  %v9733_v63 = vld [vmem:[%s13670_s0 + $0x40] sm:$0xff] }
 0x114   :  { %v701_v45 = vpop.permute.xlu1 %700  ;;  %v699_v14 = vpop.permute.xlu0 %698 }
 0x115   :  { %783 = vst.msk [vmem:[#allocation2 + $0x138] sm:$0x3] %vm744_vm8, %v701_v45  ;;  %v9746_v45 = vld [vmem:[%s13670_s0 + $0x50] sm:$0xff]  ;;  %vm13683_vm8 = vcmask 386400  }
 0x116   :  { %782 = vst.msk [vmem:[#allocation2 + $0x130] sm:$0xff] %vm742_vm9, %v699_v14  ;;  %1140 = vrot.lane.b32.xlu1 %v1043_v6, %s8459_s11  ;;  %1138 = vrot.lane.b32.xlu0 %v8830_v54, %s8459_s11  ;;  %v1047_v54 = vld [vmem:[%s13670_s0 + $0xb8] sm:$0x3]  ;;  %vm13684_vm9 = vcmask 458144  }
 0x117   :  { %v1279_v6 = vld [vmem:[%s13670_s0 + $0x58] sm:$0x3] }
 0x118   :  { %v867_v60 = vpop.permute.xlu1 %866  ;;  %v865_v15 = vpop.permute.xlu0 %864 }
 0x119   :  { %987 = vst.msk [vmem:[#allocation2 + $0x8] sm:$0x3] %vm986_vm10, %v867_v60  ;;  %v1281_v60 = vld [vmem:[%s13670_s0 + $0x68] sm:$0x3] }
 0x11a   :  { %985 = vst.msk [vmem:[#allocation2] sm:$0xff] %vm984_vm11, %v865_v15  ;;  %1144 = vrot.lane.b32.xlu1 %v1045_v49, %s8459_s11  ;;  %1142 = vrot.lane.b32.xlu0 %v8858_v59, %s8459_s11  ;;  %v9759_v15 = vld [vmem:[%s13670_s0 + $0x60] sm:$0xff] }
 0x11c   :  { %v871_v16 = vpop.permute.xlu1 %870  ;;  %v869_v8 = vpop.permute.xlu0 %868 }
 0x11d   :  { %989 = vst.msk [vmem:[#allocation2 + $0x18] sm:$0x3] %vm986_vm10, %v871_v16 }
 0x11e   :  { %988 = vst.msk [vmem:[#allocation2 + $0x10] sm:$0xff] %vm984_vm11, %v869_v8  ;;  %1148 = vrot.lane.b32.xlu1 %v1047_v54, %s8459_s11  ;;  %1146 = vrot.lane.b32.xlu0 %v8892_v3, %s8459_s11  ;;  %v1283_v8 = vld [vmem:[%s13670_s0 + $0x78] sm:$0x3] }
 0x120   :  { %v875_v59 = vpop.permute.xlu1 %874  ;;  %v873_v22 = vpop.permute.xlu0 %872 }
 0x121   :  { %991 = vst.msk [vmem:[#allocation2 + $0x28] sm:$0x3] %vm986_vm10, %v875_v59 }
 0x122   :  { %990 = vst.msk [vmem:[#allocation2 + $0x20] sm:$0xff] %vm984_vm11, %v873_v22  ;;  %1152 = vrot.lane.b32.xlu1 %v1049_v17, %s8459_s11  ;;  %1150 = vrot.lane.b32.xlu0 %v8915_v10, %s8459_s11  ;;  %v9772_v17 = vld [vmem:[%s13670_s0 + $0x70] sm:$0xff] }
 0x124   :  { %v879_v3 = vpop.permute.xlu1 %878  ;;  %v877_v26 = vpop.permute.xlu0 %876 }
 0x125   :  { %993 = vst.msk [vmem:[#allocation2 + $0x38] sm:$0x3] %vm986_vm10, %v879_v3  ;;  %v9785_v3 = vld [vmem:[%s13670_s0 + $0x80] sm:$0xff] }
 0x126   :  { %992 = vst.msk [vmem:[#allocation2 + $0x30] sm:$0xff] %vm984_vm11, %v877_v26  ;;  %1156 = vrot.lane.b32.xlu1 %v1051_v20, %s8459_s11  ;;  %1154 = vrot.lane.b32.xlu0 %v8938_v18, %s8459_s11  ;;  %v1285_v20 = vld [vmem:[%s13670_s0 + $0x88] sm:$0x3] }
 0x128   :  { %v883_v10 = vpop.permute.xlu1 %882  ;;  %v881_v23 = vpop.permute.xlu0 %880 }
 0x129   :  { %995 = vst.msk [vmem:[#allocation2 + $0x48] sm:$0x3] %vm986_vm10, %v883_v10  ;;  %v1287_v10 = vld [vmem:[%s13670_s0 + $0x98] sm:$0x3] }
 0x12a   :  { %994 = vst.msk [vmem:[#allocation2 + $0x40] sm:$0xff] %vm984_vm11, %v881_v23  ;;  %1160 = vrot.lane.b32.xlu1 %v1053_v28, %s8459_s11  ;;  %1158 = vrot.lane.b32.xlu0 %v8972_v24, %s8459_s11  ;;  %v9798_v23 = vld [vmem:[%s13670_s0 + $0x90] sm:$0xff] }
 0x12c   :  { %v887_v27 = vpop.permute.xlu1 %886  ;;  %v885_v36 = vpop.permute.xlu0 %884 }
 0x12d   :  { %997 = vst.msk [vmem:[#allocation2 + $0x58] sm:$0x3] %vm986_vm10, %v887_v27 }
 0x12e   :  { %996 = vst.msk [vmem:[#allocation2 + $0x50] sm:$0xff] %vm984_vm11, %v885_v36  ;;  %1164 = vrot.lane.b32.xlu1 %v1055_v32, %s8459_s11  ;;  %1162 = vrot.lane.b32.xlu0 %v8995_v29, %s8459_s11  ;;  %v1289_v36 = vld [vmem:[%s13670_s0 + $0xb8] sm:$0x3] }
 0x130   :  { %v891_v0 = vpop.permute.xlu1 %890  ;;  %v889_v5 = vpop.permute.xlu0 %888 }
 0x131   :  { %999 = vst.msk [vmem:[#allocation2 + $0x68] sm:$0x3] %vm986_vm10, %v891_v0 }
 0x132   :  { %998 = vst.msk [vmem:[#allocation2 + $0x60] sm:$0xff] %vm984_vm11, %v889_v5  ;;  %1168 = vrot.lane.b32.xlu1 %v1057_v1, %s8459_s11  ;;  %1166 = vrot.lane.b32.xlu0 %v9008_v31, %s8459_s11  ;;  %v9811_v1 = vld [vmem:[%s13670_s0 + $0xb0] sm:$0xff] }
 0x134   :  { %v895_v9 = vpop.permute.xlu1 %894  ;;  %v893_v11 = vpop.permute.xlu0 %892 }
 0x135   :  { %1001 = vst.msk [vmem:[#allocation2 + $0x78] sm:$0x3] %vm986_vm10, %v895_v9  ;;  %v9824_v9 = vld [vmem:[%s13670_s0 + $0xc0] sm:$0xff] }
 0x136   :  { %1000 = vst.msk [vmem:[#allocation2 + $0x70] sm:$0xff] %vm984_vm11, %v893_v11  ;;  %1172 = vrot.lane.b32.xlu1 %v1059_v7, %s8459_s11  ;;  %1170 = vrot.lane.b32.xlu0 %v9042_v39, %s8459_s11  ;;  %v1291_v7 = vld [vmem:[%s13670_s0 + $0xc8] sm:$0x3] }
 0x138   :  { %v899_v37 = vpop.permute.xlu1 %898  ;;  %v897_v38 = vpop.permute.xlu0 %896 }
 0x139   :  { %1003 = vst.msk [vmem:[#allocation2 + $0x88] sm:$0x3] %vm986_vm10, %v899_v37  ;;  %v1293_v37 = vld [vmem:[%s13670_s0 + $0xd8] sm:$0x3] }
 0x13a   :  { %1002 = vst.msk [vmem:[#allocation2 + $0x80] sm:$0xff] %vm984_vm11, %v897_v38  ;;  %1176 = vrot.lane.b32.xlu1 %v1061_v21, %s8459_s11  ;;  %1174 = vrot.lane.b32.xlu0 %v9076_v48, %s8459_s11 }
 0x13c   :  { %v903_v44 = vpop.permute.xlu1 %902  ;;  %v901_v41 = vpop.permute.xlu0 %900 }
 0x13d   :  { %1005 = vst.msk [vmem:[#allocation2 + $0x98] sm:$0x3] %vm986_vm10, %v903_v44  ;;  %v1295_v44 = vld [vmem:[%s13670_s0 + $0xe8] sm:$0x3] }
 0x13e   :  { %1004 = vst.msk [vmem:[#allocation2 + $0x90] sm:$0xff] %vm984_vm11, %v901_v41  ;;  %1180 = vrot.lane.b32.xlu1 %v1063_v33, %s8459_s11  ;;  %1178 = vrot.lane.b32.xlu0 %v9110_v57, %s8459_s11 }
 0x140   :  { %v907_v43 = vpop.permute.xlu1 %906  ;;  %v905_v46 = vpop.permute.xlu0 %904 }
 0x141   :  { %1007 = vst.msk [vmem:[#allocation2 + $0xa8] sm:$0x3] %vm986_vm10, %v907_v43  ;;  %v1297_v43 = vld [vmem:[%s13670_s0 + $0xf8] sm:$0x3] }
 0x142   :  { %1006 = vst.msk [vmem:[#allocation2 + $0xa0] sm:$0xff] %vm984_vm11, %v905_v46  ;;  %1184 = vrot.lane.b32.xlu1 %v1065_v55, %s8459_s11  ;;  %1182 = vrot.lane.b32.xlu0 %v9144_v4, %s8459_s11 }
 0x144   :  { %v911_v50 = vpop.permute.xlu1 %910  ;;  %v909_v13 = vpop.permute.xlu0 %908 }
 0x145   :  { %1009 = vst.msk [vmem:[#allocation2 + $0xb8] sm:$0x3] %vm986_vm10, %v911_v50 }
 0x146   :  { %1008 = vst.msk [vmem:[#allocation2 + $0xb0] sm:$0xff] %vm984_vm11, %v909_v13  ;;  %1350 = vrot.lane.b32.xlu1 %v1269_v47, %s8459_s11  ;;  %1348 = vrot.lane.b32.xlu0 %v9681_v2, %s8459_s11  ;;  %v1299_v47 = vld [vmem:[%s13670_s0 + $0x108] sm:$0x3]  ;;  %v1301_v13 = vld [vmem:[%s13670_s0 + $0x118] sm:$0x3] }
 0x148   :  { %v915_v12 = vpop.permute.xlu1 %914  ;;  %v913_v53 = vpop.permute.xlu0 %912 }
 0x149   :  { %1011 = vst.msk [vmem:[#allocation2 + $0xc8] sm:$0x3] %vm986_vm10, %v915_v12  ;;  %v1303_v12 = vld [vmem:[%s13670_s0 + $0x128] sm:$0x3] }
 0x14a   :  { %1010 = vst.msk [vmem:[#allocation2 + $0xc0] sm:$0xff] %vm984_vm11, %v913_v53  ;;  %1354 = vrot.lane.b32.xlu1 %v1271_v52, %s8459_s11  ;;  %1352 = vrot.lane.b32.xlu0 %v9694_v19, %s8459_s11 }
 0x14c   :  { %v919_v34 = vpop.permute.xlu1 %918  ;;  %v917_v58 = vpop.permute.xlu0 %916 }
 0x14d   :  { %1013 = vst.msk [vmem:[#allocation2 + $0xd8] sm:$0x3] %vm986_vm10, %v919_v34 }
 0x14e   :  { %1012 = vst.msk [vmem:[#allocation2 + $0xd0] sm:$0xff] %vm984_vm11, %v917_v58  ;;  %1358 = vrot.lane.b32.xlu1 %v1273_v56, %s8459_s11  ;;  %1356 = vrot.lane.b32.xlu0 %v9707_v25, %s8459_s11  ;;  %v1305_v56 = vld [vmem:[%s13670_s0 + $0x138] sm:$0x3]  ;;  %v1307_v58 = vld [vmem:[%s13670_s0 + $0x148] sm:$0x3] }
 0x150   :  { %v923_v42 = vpop.permute.xlu1 %922  ;;  %v921_v35 = vpop.permute.xlu0 %920 }
 0x151   :  { %1015 = vst.msk [vmem:[#allocation2 + $0xe8] sm:$0x3] %vm986_vm10, %v923_v42  ;;  %v1511_v42 = vld [vmem:[%s13670_s0 + $0x9] sm:$0x3] }
 0x152   :  { %1014 = vst.msk [vmem:[#allocation2 + $0xe0] sm:$0xff] %vm984_vm11, %v921_v35  ;;  %1362 = vrot.lane.b32.xlu1 %v1275_v30, %s8459_s11  ;;  %1360 = vrot.lane.b32.xlu0 %v9720_v61, %s8459_s11 }
 0x154   :  { %v927_v40 = vpop.permute.xlu1 %926  ;;  %v925_v51 = vpop.permute.xlu0 %924 }
 0x155   :  { %1017 = vst.msk [vmem:[#allocation2 + $0xf8] sm:$0x3] %vm986_vm10, %v927_v40  ;;  %v9914_v40 = vld [vmem:[%s13670_s0 + $0x11] sm:$0xff] }
 0x156   :  { %1016 = vst.msk [vmem:[#allocation2 + $0xf0] sm:$0xff] %vm984_vm11, %v925_v51  ;;  %1366 = vrot.lane.b32.xlu1 %v1277_v62, %s8459_s11  ;;  %1364 = vrot.lane.b32.xlu0 %v9733_v63, %s8459_s11 }
 0x158   :  { %v931_v14 = vpop.permute.xlu1 %930  ;;  %v929_v49 = vpop.permute.xlu0 %928 }
 0x159   :  { %1019 = vst.msk [vmem:[#allocation2 + $0x108] sm:$0x3] %vm986_vm10, %v931_v14  ;;  %v1515_v14 = vld [vmem:[%s13670_s0 + $0x29] sm:$0x3] }
 0x15a   :  { %1018 = vst.msk [vmem:[#allocation2 + $0x100] sm:$0xff] %vm984_vm11, %v929_v49  ;;  %1370 = vrot.lane.b32.xlu1 %v1279_v6, %s8459_s11  ;;  %1368 = vrot.lane.b32.xlu0 %v9746_v45, %s8459_s11  ;;  %v9927_v49 = vld [vmem:[%s13670_s0 + $0x21] sm:$0xff] }
 0x15c   :  { %v935_v54 = vpop.permute.xlu1 %934  ;;  %v933_v16 = vpop.permute.xlu0 %932 }
 0x15d   :  { %1021 = vst.msk [vmem:[#allocation2 + $0x118] sm:$0x3] %vm986_vm10, %v935_v54 }
 0x15e   :  { %1020 = vst.msk [vmem:[#allocation2 + $0x110] sm:$0xff] %vm984_vm11, %v933_v16  ;;  %1374 = vrot.lane.b32.xlu1 %v1281_v60, %s8459_s11  ;;  %1372 = vrot.lane.b32.xlu0 %v9759_v15, %s8459_s11  ;;  %v1517_v16 = vld [vmem:[%s13670_s0 + $0x39] sm:$0x3] }
 0x160   :  { %v939_v59 = vpop.permute.xlu1 %938  ;;  %v937_v22 = vpop.permute.xlu0 %936 }
 0x161   :  { %1023 = vst.msk [vmem:[#allocation2 + $0x128] sm:$0x3] %vm986_vm10, %v939_v59 }
 0x162   :  { %1022 = vst.msk [vmem:[#allocation2 + $0x120] sm:$0xff] %vm984_vm11, %v937_v22  ;;  %1378 = vrot.lane.b32.xlu1 %v1283_v8, %s8459_s11  ;;  %1376 = vrot.lane.b32.xlu0 %v9772_v17, %s8459_s11  ;;  %v9940_v8 = vld [vmem:[%s13670_s0 + $0x31] sm:$0xff] }
 0x164   :  { %v943_v26 = vpop.permute.xlu1 %942  ;;  %v941_v28 = vpop.permute.xlu0 %940 }
 0x165   :  { %1025 = vst.msk [vmem:[#allocation2 + $0x138] sm:$0x3] %vm986_vm10, %v943_v26  ;;  %v9953_v26 = vld [vmem:[%s13670_s0 + $0x41] sm:$0xff]  ;;  %vm13685_vm10 = vcmask 419200  }
 0x166   :  { %1024 = vst.msk [vmem:[#allocation2 + $0x130] sm:$0xff] %vm984_vm11, %v941_v28  ;;  %1382 = vrot.lane.b32.xlu1 %v1285_v20, %s8459_s11  ;;  %1380 = vrot.lane.b32.xlu0 %v9785_v3, %s8459_s11  ;;  %v1519_v20 = vld [vmem:[%s13670_s0 + $0x49] sm:$0x3]  ;;  %vm33_vm11 = vcmask 816128  }
 0x168   :  { %v1109_v32 = vpop.permute.xlu1 %1108  ;;  %v1107_v27 = vpop.permute.xlu0 %1106 }
 0x169   :  { %1229 = vst.msk [vmem:[#allocation2 + $0x8] sm:$0x3] %vm1228_vm12, %v1109_v32  ;;  %v1521_v32 = vld [vmem:[%s13670_s0 + $0x59] sm:$0x3] }
 0x16a   :  { %1227 = vst.msk [vmem:[#allocation2] sm:$0xff] %vm1226_vm13, %v1107_v27  ;;  %1386 = vrot.lane.b32.xlu1 %v1287_v10, %s8459_s11  ;;  %1384 = vrot.lane.b32.xlu0 %v9798_v23, %s8459_s11  ;;  %v9966_v27 = vld [vmem:[%s13670_s0 + $0x51] sm:$0xff] }
 0x16c   :  { %v1113_v0 = vpop.permute.xlu1 %1112  ;;  %v1111_v5 = vpop.permute.xlu0 %1110 }
 0x16d   :  { %1231 = vst.msk [vmem:[#allocation2 + $0x18] sm:$0x3] %vm1228_vm12, %v1113_v0 }
 0x16e   :  { %1230 = vst.msk [vmem:[#allocation2 + $0x10] sm:$0xff] %vm1226_vm13, %v1111_v5  ;;  %1390 = vrot.lane.b32.xlu1 %v1289_v36, %s8459_s11  ;;  %1388 = vrot.lane.b32.xlu0 %v9811_v1, %s8459_s11  ;;  %v1523_v5 = vld [vmem:[%s13670_s0 + $0x69] sm:$0x3] }
 0x170   :  { %v1117_v11 = vpop.permute.xlu1 %1116  ;;  %v1115_v21 = vpop.permute.xlu0 %1114 }
 0x171   :  { %1233 = vst.msk [vmem:[#allocation2 + $0x28] sm:$0x3] %vm1228_vm12, %v1117_v11 }
 0x172   :  { %1232 = vst.msk [vmem:[#allocation2 + $0x20] sm:$0xff] %vm1226_vm13, %v1115_v21  ;;  %1394 = vrot.lane.b32.xlu1 %v1291_v7, %s8459_s11  ;;  %1392 = vrot.lane.b32.xlu0 %v9824_v9, %s8459_s11  ;;  %v9979_v7 = vld [vmem:[%s13670_s0 + $0x61] sm:$0xff] }
 0x174   :  { %v1121_v38 = vpop.permute.xlu1 %1120  ;;  %v1119_v33 = vpop.permute.xlu0 %1118 }
 0x175   :  { %1235 = vst.msk [vmem:[#allocation2 + $0x38] sm:$0x3] %vm1228_vm12, %v1121_v38  ;;  %v9992_v38 = vld [vmem:[%s13670_s0 + $0x71] sm:$0xff] }
 0x176   :  { %1234 = vst.msk [vmem:[#allocation2 + $0x30] sm:$0xff] %vm1226_vm13, %v1119_v33  ;;  %1398 = vrot.lane.b32.xlu1 %v1293_v37, %s8459_s11  ;;  %1396 = vrot.lane.b32.xlu0 %v8938_v18, %s8459_s11  ;;  %v1525_v37 = vld [vmem:[%s13670_s0 + $0x79] sm:$0x3] }
 0x178   :  { %v1125_v41 = vpop.permute.xlu1 %1124  ;;  %v1123_v55 = vpop.permute.xlu0 %1122 }
 0x179   :  { %1237 = vst.msk [vmem:[#allocation2 + $0x48] sm:$0x3] %vm1228_vm12, %v1125_v41  ;;  %v1527_v41 = vld [vmem:[%s13670_s0 + $0x89] sm:$0x3] }
 0x17a   :  { %1236 = vst.msk [vmem:[#allocation2 + $0x40] sm:$0xff] %vm1226_vm13, %v1123_v55  ;;  %1402 = vrot.lane.b32.xlu1 %v1295_v44, %s8459_s11  ;;  %1400 = vrot.lane.b32.xlu0 %v8972_v24, %s8459_s11  ;;  %v10005_v55 = vld [vmem:[%s13670_s0 + $0x81] sm:$0xff] }
 0x17c   :  { %v1129_v18 = vpop.permute.xlu1 %1128  ;;  %v1127_v46 = vpop.permute.xlu0 %1126 }
 0x17d   :  { %1239 = vst.msk [vmem:[#allocation2 + $0x58] sm:$0x3] %vm1228_vm12, %v1129_v18 }
 0x17e   :  { %1238 = vst.msk [vmem:[#allocation2 + $0x50] sm:$0xff] %vm1226_vm13, %v1127_v46  ;;  %1406 = vrot.lane.b32.xlu1 %v1297_v43, %s8459_s11  ;;  %1404 = vrot.lane.b32.xlu0 %v8995_v29, %s8459_s11  ;;  %v1529_v46 = vld [vmem:[%s13670_s0 + $0x99] sm:$0x3] }
 0x180   :  { %v1133_v24 = vpop.permute.xlu1 %1132  ;;  %v1131_v50 = vpop.permute.xlu0 %1130 }
 0x181   :  { %1241 = vst.msk [vmem:[#allocation2 + $0x68] sm:$0x3] %vm1228_vm12, %v1133_v24 }
 0x182   :  { %1240 = vst.msk [vmem:[#allocation2 + $0x60] sm:$0xff] %vm1226_vm13, %v1131_v50  ;;  %1410 = vrot.lane.b32.xlu1 %v1299_v47, %s8459_s11  ;;  %1408 = vrot.lane.b32.xlu0 %v9008_v31, %s8459_s11  ;;  %v10018_v47 = vld [vmem:[%s13670_s0 + $0x91] sm:$0xff] }
 0x184   :  { %v1137_v29 = vpop.permute.xlu1 %1136  ;;  %v1135_v52 = vpop.permute.xlu0 %1134 }
 0x185   :  { %1243 = vst.msk [vmem:[#allocation2 + $0x78] sm:$0x3] %vm1228_vm12, %v1137_v29  ;;  %v10031_v29 = vld [vmem:[%s13670_s0 + $0xb1] sm:$0xff] }
 0x186   :  { %1242 = vst.msk [vmem:[#allocation2 + $0x70] sm:$0xff] %vm1226_vm13, %v1135_v52  ;;  %1414 = vrot.lane.b32.xlu1 %v1301_v13, %s8459_s11  ;;  %1412 = vrot.lane.b32.xlu0 %v9042_v39, %s8459_s11  ;;  %v1531_v13 = vld [vmem:[%s13670_s0 + $0xb9] sm:$0x3] }
 0x188   :  { %v1141_v31 = vpop.permute.xlu1 %1140  ;;  %v1139_v53 = vpop.permute.xlu0 %1138 }
 0x189   :  { %1245 = vst.msk [vmem:[#allocation2 + $0x88] sm:$0x3] %vm1228_vm12, %v1141_v31  ;;  %v1533_v31 = vld [vmem:[%s13670_s0 + $0xc9] sm:$0x3] }
 0x18a   :  { %1244 = vst.msk [vmem:[#allocation2 + $0x80] sm:$0xff] %vm1226_vm13, %v1139_v53  ;;  %1418 = vrot.lane.b32.xlu1 %v1303_v12, %s8459_s11  ;;  %1416 = vrot.lane.b32.xlu0 %v9076_v48, %s8459_s11  ;;  %v10044_v53 = vld [vmem:[%s13670_s0 + $0xc1] sm:$0xff] }
 0x18c   :  { %v1145_v39 = vpop.permute.xlu1 %1144  ;;  %v1143_v34 = vpop.permute.xlu0 %1142 }
 0x18d   :  { %1247 = vst.msk [vmem:[#allocation2 + $0x98] sm:$0x3] %vm1228_vm12, %v1145_v39 }
 0x18e   :  { %1246 = vst.msk [vmem:[#allocation2 + $0x90] sm:$0xff] %vm1226_vm13, %v1143_v34  ;;  %1422 = vrot.lane.b32.xlu1 %v1305_v56, %s8459_s11  ;;  %1420 = vrot.lane.b32.xlu0 %v9110_v57, %s8459_s11  ;;  %v9901_v57 = vld [vmem:[%s13670_s0 + $0x1] sm:$0xff]  ;;  %v1535_v34 = vld [vmem:[%s13670_s0 + $0xd9] sm:$0x3] }
 0x190   :  { %v1149_v48 = vpop.permute.xlu1 %1148  ;;  %v1147_v30 = vpop.permute.xlu0 %1146 }
 0x191   :  { %1249 = vst.msk [vmem:[#allocation2 + $0xa8] sm:$0x3] %vm1228_vm12, %v1149_v48 }
 0x192   :  { %1248 = vst.msk [vmem:[#allocation2 + $0xa0] sm:$0xff] %vm1226_vm13, %v1147_v30  ;;  %1426 = vrot.lane.b32.xlu1 %v1307_v58, %s8459_s11  ;;  %1424 = vrot.lane.b32.xlu0 %v9144_v4, %s8459_s11  ;;  %v1513_v4 = vld [vmem:[%s13670_s0 + $0x19] sm:$0x3]  ;;  %v10057_v58 = vld [vmem:[%s13670_s0 + $0xd1] sm:$0xff] }
 0x194   :  { %v1153_v35 = vpop.permute.xlu1 %1152  ;;  %v1151_v62 = vpop.permute.xlu0 %1150 }
 0x195   :  { %1251 = vst.msk [vmem:[#allocation2 + $0xb8] sm:$0x3] %vm1228_vm12, %v1153_v35  ;;  %v10070_v35 = vld [vmem:[%s13670_s0 + $0xe1] sm:$0xff] }
 0x196   :  { %1250 = vst.msk [vmem:[#allocation2 + $0xb0] sm:$0xff] %vm1226_vm13, %v1151_v62  ;;  %1592 = vrot.lane.b32.xlu1 %v1511_v42, %s8460_s26  ;;  %1590 = vrot.lane.b32.xlu0 %v9901_v57, %s8460_s26  ;;  %v1537_v42 = vld [vmem:[%s13670_s0 + $0xe9] sm:$0x3] }
 0x198   :  { %v1157_v51 = vpop.permute.xlu1 %1156  ;;  %v1155_v6 = vpop.permute.xlu0 %1154 }
 0x199   :  { %1253 = vst.msk [vmem:[#allocation2 + $0xc8] sm:$0x3] %vm1228_vm12, %v1157_v51  ;;  %v1539_v51 = vld [vmem:[%s13670_s0 + $0xf9] sm:$0x3] }
 0x19a   :  { %1252 = vst.msk [vmem:[#allocation2 + $0xc0] sm:$0xff] %vm1226_vm13, %v1155_v6  ;;  %1596 = vrot.lane.b32.xlu1 %v1513_v4, %s8460_s26  ;;  %1594 = vrot.lane.b32.xlu0 %v9914_v40, %s8460_s26  ;;  %v10083_v6 = vld [vmem:[%s13670_s0 + $0xf1] sm:$0xff] }
 0x19c   :  { %v1161_v60 = vpop.permute.xlu1 %1160  ;;  %v1159_v54 = vpop.permute.xlu0 %1158 }
 0x19d   :  { %1255 = vst.msk [vmem:[#allocation2 + $0xd8] sm:$0x3] %vm1228_vm12, %v1161_v60 }
 0x19e   :  { %1254 = vst.msk [vmem:[#allocation2 + $0xd0] sm:$0xff] %vm1226_vm13, %v1159_v54  ;;  %1600 = vrot.lane.b32.xlu1 %v1515_v14, %s8460_s26  ;;  %1598 = vrot.lane.b32.xlu0 %v9927_v49, %s8460_s26  ;;  %v1541_v54 = vld [vmem:[%s13670_s0 + $0x109] sm:$0x3] }
 0x1a0   :  { %v1165_v59 = vpop.permute.xlu1 %1164  ;;  %v1163_v22 = vpop.permute.xlu0 %1162 }
 0x1a1   :  { %1257 = vst.msk [vmem:[#allocation2 + $0xe8] sm:$0x3] %vm1228_vm12, %v1165_v59 }
 0x1a2   :  { %1256 = vst.msk [vmem:[#allocation2 + $0xe0] sm:$0xff] %vm1226_vm13, %v1163_v22  ;;  %1604 = vrot.lane.b32.xlu1 %v1517_v16, %s8460_s26  ;;  %1602 = vrot.lane.b32.xlu0 %v9940_v8, %s8460_s26  ;;  %v10096_v16 = vld [vmem:[%s13670_s0 + $0x101] sm:$0xff] }
 0x1a4   :  { %v1169_v28 = vpop.permute.xlu1 %1168  ;;  %v1167_v10 = vpop.permute.xlu0 %1166 }
 0x1a5   :  { %1259 = vst.msk [vmem:[#allocation2 + $0xf8] sm:$0x3] %vm1228_vm12, %v1169_v28  ;;  %v10109_v28 = vld [vmem:[%s13670_s0 + $0x111] sm:$0xff] }
 0x1a6   :  { %1258 = vst.msk [vmem:[#allocation2 + $0xf0] sm:$0xff] %vm1226_vm13, %v1167_v10  ;;  %1608 = vrot.lane.b32.xlu1 %v1519_v20, %s8460_s26  ;;  %1606 = vrot.lane.b32.xlu0 %v9953_v26, %s8460_s26  ;;  %v1543_v20 = vld [vmem:[%s13670_s0 + $0x119] sm:$0x3] }
 0x1a8   :  { %v1173_v36 = vpop.permute.xlu1 %1172  ;;  %v1171_v0 = vpop.permute.xlu0 %1170 }
 0x1a9   :  { %1261 = vst.msk [vmem:[#allocation2 + $0x108] sm:$0x3] %vm1228_vm12, %v1173_v36  ;;  %v1545_v36 = vld [vmem:[%s13670_s0 + $0x129] sm:$0x3] }
 0x1aa   :  { %1260 = vst.msk [vmem:[#allocation2 + $0x100] sm:$0xff] %vm1226_vm13, %v1171_v0  ;;  %1612 = vrot.lane.b32.xlu1 %v1521_v32, %s8460_s26  ;;  %1610 = vrot.lane.b32.xlu0 %v9966_v27, %s8460_s26  ;;  %v10122_v0 = vld [vmem:[%s13670_s0 + $0x121] sm:$0xff] }
 0x1ac   :  { %v1177_v11 = vpop.permute.xlu1 %1176  ;;  %v1175_v21 = vpop.permute.xlu0 %1174 }
 0x1ad   :  { %1263 = vst.msk [vmem:[#allocation2 + $0x118] sm:$0x3] %vm1228_vm12, %v1177_v11 }
 0x1ae   :  { %1262 = vst.msk [vmem:[#allocation2 + $0x110] sm:$0xff] %vm1226_vm13, %v1175_v21  ;;  %1616 = vrot.lane.b32.xlu1 %v1523_v5, %s8460_s26  ;;  %1614 = vrot.lane.b32.xlu0 %v9979_v7, %s8460_s26  ;;  %v1547_v21 = vld [vmem:[%s13670_s0 + $0x139] sm:$0x3] }
 0x1b0   :  { %v1181_v33 = vpop.permute.xlu1 %1180  ;;  %v1179_v44 = vpop.permute.xlu0 %1178 }
 0x1b1   :  { %1265 = vst.msk [vmem:[#allocation2 + $0x128] sm:$0x3] %vm1228_vm12, %v1181_v33 }
 0x1b2   :  { %1264 = vst.msk [vmem:[#allocation2 + $0x120] sm:$0xff] %vm1226_vm13, %v1179_v44  ;;  %1620 = vrot.lane.b32.xlu1 %v1525_v37, %s8460_s26  ;;  %1618 = vrot.lane.b32.xlu0 %v9992_v38, %s8460_s26  ;;  %v10135_v37 = vld [vmem:[%s13670_s0 + $0x131] sm:$0xff] }
 0x1b4   :  { %v1185_v43 = vpop.permute.xlu1 %1184  ;;  %v1183_v18 = vpop.permute.xlu0 %1182 }
 0x1b5   :  { %1267 = vst.msk [vmem:[#allocation2 + $0x138] sm:$0x3] %vm1228_vm12, %v1185_v43  ;;  %v10148_v43 = vld [vmem:[%s13670_s0 + $0x141] sm:$0xff]  ;;  %vm13687_vm12 = vcmask 490944  }
 0x1b6   :  { %1266 = vst.msk [vmem:[#allocation2 + $0x130] sm:$0xff] %vm1226_vm13, %v1183_v18  ;;  %1624 = vrot.lane.b32.xlu1 %v1527_v41, %s8460_s26  ;;  %1622 = vrot.lane.b32.xlu0 %v10005_v55, %s8460_s26  ;;  %v1549_v41 = vld [vmem:[%s13670_s0 + $0x149] sm:$0x3]  ;;  %vm13686_vm13 = vcmask 452000  }
 0x1b8   :  { %v1351_v24 = vpop.permute.xlu1 %1350  ;;  %v1349_v50 = vpop.permute.xlu0 %1348 }
 0x1b9   :  { %1471 = vst.msk [vmem:[#allocation2 + $0x8] sm:$0x3] %vm1470_vm14, %v1351_v24  ;;  %v1753_v24 = vld [vmem:[%s13670_s0 + $0x9] sm:$0x3] }
 0x1ba   :  { %1469 = vst.msk [vmem:[#allocation2] sm:$0xff] %vm1468_vm15, %v1349_v50  ;;  %1628 = vrot.lane.b32.xlu1 %v1529_v46, %s8460_s26  ;;  %1626 = vrot.lane.b32.xlu0 %v10018_v47, %s8460_s26 }
 0x1bc   :  { %v1355_v52 = vpop.permute.xlu1 %1354  ;;  %v1353_v12 = vpop.permute.xlu0 %1352 }
 0x1bd   :  { %1473 = vst.msk [vmem:[#allocation2 + $0x18] sm:$0x3] %vm1470_vm14, %v1355_v52  ;;  %v1755_v52 = vld [vmem:[%s13670_s0 + $0x19] sm:$0x3] }
 0x1be   :  { %1472 = vst.msk [vmem:[#allocation2 + $0x10] sm:$0xff] %vm1468_vm15, %v1353_v12  ;;  %1632 = vrot.lane.b32.xlu1 %v1531_v13, %s8460_s26  ;;  %1630 = vrot.lane.b32.xlu0 %v10031_v29, %s8460_s26 }
 0x1c0   :  { %v1359_v56 = vpop.permute.xlu1 %1358  ;;  %v1357_v39 = vpop.permute.xlu0 %1356 }
 0x1c1   :  { %1475 = vst.msk [vmem:[#allocation2 + $0x28] sm:$0x3] %vm1470_vm14, %v1359_v56  ;;  %v1757_v56 = vld [vmem:[%s13670_s0 + $0x29] sm:$0x3] }
 0x1c2   :  { %1474 = vst.msk [vmem:[#allocation2 + $0x20] sm:$0xff] %vm1468_vm15, %v1357_v39  ;;  %1636 = vrot.lane.b32.xlu1 %v1533_v31, %s8460_s26  ;;  %1634 = vrot.lane.b32.xlu0 %v10044_v53, %s8460_s26 }
 0x1c4   :  { %v1363_v48 = vpop.permute.xlu1 %1362  ;;  %v1361_v30 = vpop.permute.xlu0 %1360 }
 0x1c5   :  { %1477 = vst.msk [vmem:[#allocation2 + $0x38] sm:$0x3] %vm1470_vm14, %v1363_v48  ;;  %v1759_v48 = vld [vmem:[%s13670_s0 + $0x39] sm:$0x3] }
 0x1c6   :  { %1476 = vst.msk [vmem:[#allocation2 + $0x30] sm:$0xff] %vm1468_vm15, %v1361_v30  ;;  %1640 = vrot.lane.b32.xlu1 %v1535_v34, %s8460_s26  ;;  %1638 = vrot.lane.b32.xlu0 %v10057_v58, %s8460_s26 }
 0x1c8   :  { %v1367_v62 = vpop.permute.xlu1 %1366  ;;  %v1365_v4 = vpop.permute.xlu0 %1364 }
 0x1c9   :  { %1479 = vst.msk [vmem:[#allocation2 + $0x48] sm:$0x3] %vm1470_vm14, %v1367_v62 }
 0x1ca   :  { %1478 = vst.msk [vmem:[#allocation2 + $0x40] sm:$0xff] %vm1468_vm15, %v1365_v4  ;;  %1644 = vrot.lane.b32.xlu1 %v1537_v42, %s8460_s26  ;;  %1642 = vrot.lane.b32.xlu0 %v10070_v35, %s8460_s26  ;;  %v1761_v42 = vld [vmem:[%s13670_s0 + $0x49] sm:$0x3]  ;;  %v1763_v4 = vld [vmem:[%s13670_s0 + $0x59] sm:$0x3] }
 0x1cc   :  { %v1371_v14 = vpop.permute.xlu1 %1370  ;;  %v1369_v60 = vpop.permute.xlu0 %1368 }
 0x1cd   :  { %1481 = vst.msk [vmem:[#allocation2 + $0x58] sm:$0x3] %vm1470_vm14, %v1371_v14  ;;  %v1765_v14 = vld [vmem:[%s13670_s0 + $0x69] sm:$0x3] }
 0x1ce   :  { %1480 = vst.msk [vmem:[#allocation2 + $0x50] sm:$0xff] %vm1468_vm15, %v1369_v60  ;;  %1648 = vrot.lane.b32.xlu1 %v1539_v51, %s8460_s26  ;;  %1646 = vrot.lane.b32.xlu0 %v10083_v6, %s8460_s26 }
 0x1d0   :  { %v1375_v59 = vpop.permute.xlu1 %1374  ;;  %v1373_v22 = vpop.permute.xlu0 %1372 }
 0x1d1   :  { %1483 = vst.msk [vmem:[#allocation2 + $0x68] sm:$0x3] %vm1470_vm14, %v1375_v59 }
 0x1d2   :  { %1482 = vst.msk [vmem:[#allocation2 + $0x60] sm:$0xff] %vm1468_vm15, %v1373_v22  ;;  %1652 = vrot.lane.b32.xlu1 %v1541_v54, %s8460_s26  ;;  %1650 = vrot.lane.b32.xlu0 %v10096_v16, %s8460_s26  ;;  %v1767_v54 = vld [vmem:[%s13670_s0 + $0x79] sm:$0x3]  ;;  %v1769_v22 = vld [vmem:[%s13670_s0 + $0x89] sm:$0x3] }
 0x1d4   :  { %v1379_v10 = vpop.permute.xlu1 %1378  ;;  %v1377_v32 = vpop.permute.xlu0 %1376 }
 0x1d5   :  { %1485 = vst.msk [vmem:[#allocation2 + $0x78] sm:$0x3] %vm1470_vm14, %v1379_v10 }
 0x1d6   :  { %1484 = vst.msk [vmem:[#allocation2 + $0x70] sm:$0xff] %vm1468_vm15, %v1377_v32  ;;  %1656 = vrot.lane.b32.xlu1 %v1543_v20, %s8460_s26  ;;  %1654 = vrot.lane.b32.xlu0 %v10109_v28, %s8460_s26 }
 0x1d8   :  { %v1383_v5 = vpop.permute.xlu1 %1382  ;;  %v1381_v11 = vpop.permute.xlu0 %1380 }
 0x1d9   :  { %1487 = vst.msk [vmem:[#allocation2 + $0x88] sm:$0x3] %vm1470_vm14, %v1383_v5 }
 0x1da   :  { %1486 = vst.msk [vmem:[#allocation2 + $0x80] sm:$0xff] %vm1468_vm15, %v1381_v11  ;;  %1660 = vrot.lane.b32.xlu1 %v1545_v36, %s8460_s26  ;;  %1658 = vrot.lane.b32.xlu0 %v10122_v0, %s8460_s26  ;;  %v1775_v11 = vld [vmem:[%s13670_s0 + $0xc9] sm:$0x3] }
 0x1dc   :  { %v1387_v33 = vpop.permute.xlu1 %1386  ;;  %v1385_v44 = vpop.permute.xlu0 %1384 }
 0x1dd   :  { %1489 = vst.msk [vmem:[#allocation2 + $0x98] sm:$0x3] %vm1470_vm14, %v1387_v33  ;;  %v1777_v33 = vld [vmem:[%s13670_s0 + $0xd9] sm:$0x3] }
 0x1de   :  { %1488 = vst.msk [vmem:[#allocation2 + $0x90] sm:$0xff] %vm1468_vm15, %v1385_v44  ;;  %1664 = vrot.lane.b32.xlu1 %v1547_v21, %s8460_s26  ;;  %1662 = vrot.lane.b32.xlu0 %v10135_v37, %s8460_s26 }
 0x1e0   :  { %v1391_v18 = vpop.permute.xlu1 %1390  ;;  %v1389_v46 = vpop.permute.xlu0 %1388 }
 0x1e1   :  { %1491 = vst.msk [vmem:[#allocation2 + $0xa8] sm:$0x3] %vm1470_vm14, %v1391_v18 }
 0x1e2   :  { %1490 = vst.msk [vmem:[#allocation2 + $0xa0] sm:$0xff] %vm1468_vm15, %v1389_v46  ;;  %1668 = vrot.lane.b32.xlu1 %v1549_v41, %s8460_s26  ;;  %1666 = vrot.lane.b32.xlu0 %v10148_v43, %s8460_s26  ;;  %v1779_v41 = vld [vmem:[%s13670_s0 + $0xe9] sm:$0x3]  ;;  %v1781_v46 = vld [vmem:[%s13670_s0 + $0xf9] sm:$0x3] }
 0x1e4   :  { %v1395_v50 = vpop.permute.xlu1 %1394  ;;  %v1393_v13 = vpop.permute.xlu0 %1392 }
 0x1e5   :  { %1493 = vst.msk [vmem:[#allocation2 + $0xb8] sm:$0x3] %vm1470_vm14, %v1395_v50  ;;  %v1783_v50 = vld [vmem:[%s13670_s0 + $0x109] sm:$0x3] }
 0x1e6   :  { %1492 = vst.msk [vmem:[#allocation2 + $0xb0] sm:$0xff] %vm1468_vm15, %v1393_v13  ;;  %1834 = vrot.lane.b32.xlu1 %v1753_v24, %s8460_s26  ;;  %1832 = vrot.lane.b32.xlu0 %v9901_v57, %s8460_s26 }
 0x1e8   :  { %v1399_v12 = vpop.permute.xlu1 %1398  ;;  %v1397_v31 = vpop.permute.xlu0 %1396 }
 0x1e9   :  { %1495 = vst.msk [vmem:[#allocation2 + $0xc8] sm:$0x3] %vm1470_vm14, %v1399_v12 }
 0x1ea   :  { %1494 = vst.msk [vmem:[#allocation2 + $0xc0] sm:$0xff] %vm1468_vm15, %v1397_v31  ;;  %1838 = vrot.lane.b32.xlu1 %v1755_v52, %s8460_s26  ;;  %1836 = vrot.lane.b32.xlu0 %v9914_v40, %s8460_s26  ;;  %v1785_v52 = vld [vmem:[%s13670_s0 + $0x119] sm:$0x3]  ;;  %v1787_v31 = vld [vmem:[%s13670_s0 + $0x129] sm:$0x3] }
 0x1ec   :  { %v1403_v39 = vpop.permute.xlu1 %1402  ;;  %v1401_v34 = vpop.permute.xlu0 %1400 }
 0x1ed   :  { %1497 = vst.msk [vmem:[#allocation2 + $0xd8] sm:$0x3] %vm1470_vm14, %v1403_v39  ;;  %v1789_v39 = vld [vmem:[%s13670_s0 + $0x139] sm:$0x3] }
 0x1ee   :  { %1496 = vst.msk [vmem:[#allocation2 + $0xd0] sm:$0xff] %vm1468_vm15, %v1401_v34  ;;  %1842 = vrot.lane.b32.xlu1 %v1757_v56, %s8460_s26  ;;  %1840 = vrot.lane.b32.xlu0 %v9927_v49, %s8460_s26 }
 0x1f0   :  { %v1407_v40 = vpop.permute.xlu1 %1406  ;;  %v1405_v30 = vpop.permute.xlu0 %1404 }
 0x1f1   :  { %1499 = vst.msk [vmem:[#allocation2 + $0xe8] sm:$0x3] %vm1470_vm14, %v1407_v40 }
 0x1f2   :  { %1498 = vst.msk [vmem:[#allocation2 + $0xe0] sm:$0xff] %vm1468_vm15, %v1405_v30  ;;  %1846 = vrot.lane.b32.xlu1 %v1759_v48, %s8460_s26  ;;  %1844 = vrot.lane.b32.xlu0 %v9940_v8, %s8460_s26  ;;  %v1791_v48 = vld [vmem:[%s13670_s0 + $0x149] sm:$0x3] }
 0x1f3   :  { %v1995_v30 = vld [vmem:[%s13670_s0 + $0x8] sm:$0x3] }
 0x1f4   :  { %v1411_v49 = vpop.permute.xlu1 %1410  ;;  %v1409_v62 = vpop.permute.xlu0 %1408 }
 0x1f5   :  { %1501 = vst.msk [vmem:[#allocation2 + $0xf8] sm:$0x3] %vm1470_vm14, %v1411_v49 }
 0x1f6   :  { %1500 = vst.msk [vmem:[#allocation2 + $0xf0] sm:$0xff] %vm1468_vm15, %v1409_v62  ;;  %1850 = vrot.lane.b32.xlu1 %v1761_v42, %s8460_s26  ;;  %1848 = vrot.lane.b32.xlu0 %v9953_v26, %s8460_s26 }
 0x1f8   :  { %v1415_v8 = vpop.permute.xlu1 %1414  ;;  %v1413_v51 = vpop.permute.xlu0 %1412 }
 0x1f9   :  { %1503 = vst.msk [vmem:[#allocation2 + $0x108] sm:$0x3] %vm1470_vm14, %v1415_v8 }
 0x1fa   :  { %1502 = vst.msk [vmem:[#allocation2 + $0x100] sm:$0xff] %vm1468_vm15, %v1413_v51  ;;  %1854 = vrot.lane.b32.xlu1 %v1763_v4, %s8460_s26  ;;  %1852 = vrot.lane.b32.xlu0 %v9966_v27, %s8460_s26  ;;  %v1999_v4 = vld [vmem:[%s13670_s0 + $0x28] sm:$0x3]  ;;  %v2001_v51 = vld [vmem:[%s13670_s0 + $0x38] sm:$0x3] }
 0x1fc   :  { %v1419_v26 = vpop.permute.xlu1 %1418  ;;  %v1417_v60 = vpop.permute.xlu0 %1416 }
 0x1fd   :  { %1505 = vst.msk [vmem:[#allocation2 + $0x118] sm:$0x3] %vm1470_vm14, %v1419_v26  ;;  %v2003_v26 = vld [vmem:[%s13670_s0 + $0x48] sm:$0x3] }
 0x1fe   :  { %1504 = vst.msk [vmem:[#allocation2 + $0x110] sm:$0xff] %vm1468_vm15, %v1417_v60  ;;  %1858 = vrot.lane.b32.xlu1 %v1765_v14, %s8460_s26  ;;  %1856 = vrot.lane.b32.xlu0 %v9979_v7, %s8460_s26 }
 0x200   :  { %v1423_v27 = vpop.permute.xlu1 %1422  ;;  %v1421_v59 = vpop.permute.xlu0 %1420 }
 0x201   :  { %1507 = vst.msk [vmem:[#allocation2 + $0x128] sm:$0x3] %vm1470_vm14, %v1423_v27 }
 0x202   :  { %1506 = vst.msk [vmem:[#allocation2 + $0x120] sm:$0xff] %vm1468_vm15, %v1421_v59  ;;  %1862 = vrot.lane.b32.xlu1 %v1767_v54, %s8460_s26  ;;  %1860 = vrot.lane.b32.xlu0 %v9992_v38, %s8460_s26  ;;  %v1771_v38 = vld [vmem:[%s13670_s0 + $0x99] sm:$0x3]  ;;  %v2007_v59 = vld [vmem:[%s13670_s0 + $0x68] sm:$0x3] }
 0x203   :  { %v2005_v54 = vld [vmem:[%s13670_s0 + $0x58] sm:$0x3] }
 0x204   :  { %v1427_v7 = vpop.permute.xlu1 %1426  ;;  %v1425_v20 = vpop.permute.xlu0 %1424 }
 0x205   :  { %1509 = vst.msk [vmem:[#allocation2 + $0x138] sm:$0x3] %vm1470_vm14, %v1427_v7  ;;  %v2009_v7 = vld [vmem:[%s13670_s0 + $0x78] sm:$0x3]  ;;  %vm5806_vm14 = vcmask 1043456  }
 0x206   :  { %1508 = vst.msk [vmem:[#allocation2 + $0x130] sm:$0xff] %vm1468_vm15, %v1425_v20  ;;  %1866 = vrot.lane.b32.xlu1 %v1769_v22, %s8460_s26  ;;  %1864 = vrot.lane.b32.xlu0 %v10005_v55, %s8460_s26  ;;  %v1773_v55 = vld [vmem:[%s13670_s0 + $0xb9] sm:$0x3]  ;;  %vm13699_vm15 = vcmask 484800  }
 0x208   :  { %v1593_v10 = vpop.permute.xlu1 %1592  ;;  %v1591_v32 = vpop.permute.xlu0 %1590 }
 0x209   :  { %1713 = vst.msk [vmem:[#allocation2 + $0x8] sm:$0x3] %vm1712_vm0, %v1593_v10 }
 0x20a   :  { %1711 = vst.msk [vmem:[#allocation2] sm:$0xff] %vm1710_vm1, %v1591_v32  ;;  %1870 = vrot.lane.b32.xlu1 %v1771_v38, %s8460_s26  ;;  %1868 = vrot.lane.b32.xlu0 %v10018_v47, %s8460_s26  ;;  %v2011_v38 = vld [vmem:[%s13670_s0 + $0x88] sm:$0x3] }
 0x20c   :  { %v1597_v36 = vpop.permute.xlu1 %1596  ;;  %v1595_v5 = vpop.permute.xlu0 %1594 }
 0x20d   :  { %1715 = vst.msk [vmem:[#allocation2 + $0x18] sm:$0x3] %vm1712_vm0, %v1597_v36 }
 0x20e   :  { %1714 = vst.msk [vmem:[#allocation2 + $0x10] sm:$0xff] %vm1710_vm1, %v1595_v5  ;;  %1874 = vrot.lane.b32.xlu1 %v1773_v55, %s8460_s26  ;;  %1872 = vrot.lane.b32.xlu0 %v10031_v29, %s8460_s26 }
 0x210   :  { %v1601_v47 = vpop.permute.xlu1 %1600  ;;  %v1599_v21 = vpop.permute.xlu0 %1598 }
 0x211   :  { %1717 = vst.msk [vmem:[#allocation2 + $0x28] sm:$0x3] %vm1712_vm0, %v1601_v47 }
 0x212   :  { %1716 = vst.msk [vmem:[#allocation2 + $0x20] sm:$0xff] %vm1710_vm1, %v1599_v21  ;;  %1878 = vrot.lane.b32.xlu1 %v1775_v11, %s8460_s26  ;;  %1876 = vrot.lane.b32.xlu0 %v10044_v53, %s8460_s26  ;;  %v2017_v11 = vld [vmem:[%s13670_s0 + $0xc8] sm:$0x3]  ;;  %v2019_v21 = vld [vmem:[%s13670_s0 + $0xd8] sm:$0x3] }
 0x214   :  { %v1605_v29 = vpop.permute.xlu1 %1604  ;;  %v1603_v44 = vpop.permute.xlu0 %1602 }
 0x215   :  { %1719 = vst.msk [vmem:[#allocation2 + $0x38] sm:$0x3] %vm1712_vm0, %v1605_v29 }
 0x216   :  { %1718 = vst.msk [vmem:[#allocation2 + $0x30] sm:$0xff] %vm1710_vm1, %v1603_v44  ;;  %1882 = vrot.lane.b32.xlu1 %v1777_v33, %s8460_s26  ;;  %1880 = vrot.lane.b32.xlu0 %v10057_v58, %s8460_s26  ;;  %v2020_v44 = vld [vmem:[%s13670_s0 + $0xe0] sm:$0xff] }
 0x218   :  { %v1609_v53 = vpop.permute.xlu1 %1608  ;;  %v1607_v18 = vpop.permute.xlu0 %1606 }
 0x219   :  { %1721 = vst.msk [vmem:[#allocation2 + $0x48] sm:$0x3] %vm1712_vm0, %v1609_v53 }
 0x21a   :  { %1720 = vst.msk [vmem:[#allocation2 + $0x40] sm:$0xff] %vm1710_vm1, %v1607_v18  ;;  %1886 = vrot.lane.b32.xlu1 %v1779_v41, %s8460_s26  ;;  %1884 = vrot.lane.b32.xlu0 %v10070_v35, %s8460_s26  ;;  %v2023_v18 = vld [vmem:[%s13670_s0 + $0xf8] sm:$0x3] }
 0x21c   :  { %v1613_v58 = vpop.permute.xlu1 %1612  ;;  %v1611_v24 = vpop.permute.xlu0 %1610 }
 0x21d   :  { %1723 = vst.msk [vmem:[#allocation2 + $0x58] sm:$0x3] %vm1712_vm0, %v1613_v58 }
 0x21e   :  { %1722 = vst.msk [vmem:[#allocation2 + $0x50] sm:$0xff] %vm1710_vm1, %v1611_v24  ;;  %1890 = vrot.lane.b32.xlu1 %v1781_v46, %s8460_s26  ;;  %1888 = vrot.lane.b32.xlu0 %v10083_v6, %s8460_s26  ;;  %v2022_v46 = vld [vmem:[%s13670_s0 + $0xf0] sm:$0xff] }
 0x220   :  { %v1617_v35 = vpop.permute.xlu1 %1616  ;;  %v1615_v13 = vpop.permute.xlu0 %1614 }
 0x221   :  { %1725 = vst.msk [vmem:[#allocation2 + $0x68] sm:$0x3] %vm1712_vm0, %v1617_v35  ;;  %v2024_v35 = vld [vmem:[%s13670_s0 + $0x100] sm:$0xff] }
 0x222   :  { %1724 = vst.msk [vmem:[#allocation2 + $0x60] sm:$0xff] %vm1710_vm1, %v1615_v13  ;;  %1894 = vrot.lane.b32.xlu1 %v1783_v50, %s8460_s26  ;;  %1892 = vrot.lane.b32.xlu0 %v10096_v16, %s8460_s26  ;;  %v2025_v50 = vld [vmem:[%s13670_s0 + $0x108] sm:$0x3] }
 0x224   :  { %v1621_v6 = vpop.permute.xlu1 %1620  ;;  %v1619_v12 = vpop.permute.xlu0 %1618 }
 0x225   :  { %1727 = vst.msk [vmem:[#allocation2 + $0x78] sm:$0x3] %vm1712_vm0, %v1621_v6  ;;  %v2027_v6 = vld [vmem:[%s13670_s0 + $0x118] sm:$0x3] }
 0x226   :  { %1726 = vst.msk [vmem:[#allocation2 + $0x70] sm:$0xff] %vm1710_vm1, %v1619_v12  ;;  %1898 = vrot.lane.b32.xlu1 %v1785_v52, %s8460_s26  ;;  %1896 = vrot.lane.b32.xlu0 %v10109_v28, %s8460_s26  ;;  %v2026_v12 = vld [vmem:[%s13670_s0 + $0x110] sm:$0xff] }
 0x228   :  { %v1625_v16 = vpop.permute.xlu1 %1624  ;;  %v1623_v56 = vpop.permute.xlu0 %1622 }
 0x229   :  { %1729 = vst.msk [vmem:[#allocation2 + $0x88] sm:$0x3] %vm1712_vm0, %v1625_v16 }
 0x22a   :  { %1728 = vst.msk [vmem:[#allocation2 + $0x80] sm:$0xff] %vm1710_vm1, %v1623_v56  ;;  %1902 = vrot.lane.b32.xlu1 %v1787_v31, %s8460_s26  ;;  %1900 = vrot.lane.b32.xlu0 %v10122_v0, %s8460_s26  ;;  %v2029_v56 = vld [vmem:[%s13670_s0 + $0x128] sm:$0x3] }
 0x22c   :  { %v1629_v28 = vpop.permute.xlu1 %1628  ;;  %v1627_v34 = vpop.permute.xlu0 %1626 }
 0x22d   :  { %1731 = vst.msk [vmem:[#allocation2 + $0x98] sm:$0x3] %vm1712_vm0, %v1629_v28 }
 0x22e   :  { %1730 = vst.msk [vmem:[#allocation2 + $0x90] sm:$0xff] %vm1710_vm1, %v1627_v34  ;;  %1906 = vrot.lane.b32.xlu1 %v1789_v39, %s8460_s26  ;;  %1904 = vrot.lane.b32.xlu0 %v10135_v37, %s8460_s26  ;;  %v2028_v39 = vld [vmem:[%s13670_s0 + $0x120] sm:$0xff] }
 0x230   :  { %v1633_v0 = vpop.permute.xlu1 %1632  ;;  %v1631_v40 = vpop.permute.xlu0 %1630 }
 0x231   :  { %1733 = vst.msk [vmem:[#allocation2 + $0xa8] sm:$0x3] %vm1712_vm0, %v1633_v0  ;;  %v2030_v0 = vld [vmem:[%s13670_s0 + $0x130] sm:$0xff] }
 0x232   :  { %1732 = vst.msk [vmem:[#allocation2 + $0xa0] sm:$0xff] %vm1710_vm1, %v1631_v40  ;;  %1910 = vrot.lane.b32.xlu1 %v1791_v48, %s8460_s26  ;;  %1908 = vrot.lane.b32.xlu0 %v10148_v43, %s8460_s26  ;;  %v1997_v43 = vld [vmem:[%s13670_s0 + $0x18] sm:$0x3]  ;;  %s13722_s26 = smov 48  }
 0x233   :  { %v2031_v48 = vld [vmem:[%s13670_s0 + $0x138] sm:$0x3] }
 0x234   :  { %v1637_v37 = vpop.permute.xlu1 %1636  ;;  %v1635_v42 = vpop.permute.xlu0 %1634 }
 0x235   :  { %1735 = vst.msk [vmem:[#allocation2 + $0xb8] sm:$0x3] %vm1712_vm0, %v1637_v37  ;;  %v2236_v37 = vld [vmem:[%s13670_s0] sm:$0xff] }
 0x236   :  { %1734 = vst.msk [vmem:[#allocation2 + $0xb0] sm:$0xff] %vm1710_vm1, %v1635_v42  ;;  %2076 = vrot.lane.b32.xlu1 %v1995_v30, %s8461_s18  ;;  %2074 = vrot.lane.b32.xlu0 %v9681_v2, %s8461_s18  ;;  %v2032_v42 = vld [vmem:[%s13670_s0 + $0x140] sm:$0xff] }
 0x238   :  { %v1641_v49 = vpop.permute.xlu1 %1640  ;;  %v1639_v62 = vpop.permute.xlu0 %1638 }
 0x239   :  { %1737 = vst.msk [vmem:[#allocation2 + $0xc8] sm:$0x3] %vm1712_vm0, %v1641_v49 }
 0x23a   :  { %1736 = vst.msk [vmem:[#allocation2 + $0xc0] sm:$0xff] %vm1710_vm1, %v1639_v62  ;;  %2080 = vrot.lane.b32.xlu1 %v1997_v43, %s8461_s18  ;;  %2078 = vrot.lane.b32.xlu0 %v9694_v19, %s8461_s18  ;;  %v2237_v62 = vld [vmem:[%s13670_s0 + $0x8] sm:$0x3] }
 0x23c   :  { %v1645_v2 = vpop.permute.xlu1 %1644  ;;  %v1643_v8 = vpop.permute.xlu0 %1642 }
 0x23d   :  { %1739 = vst.msk [vmem:[#allocation2 + $0xd8] sm:$0x3] %vm1712_vm0, %v1645_v2 }
 0x23e   :  { %1738 = vst.msk [vmem:[#allocation2 + $0xd0] sm:$0xff] %vm1710_vm1, %v1643_v8  ;;  %2084 = vrot.lane.b32.xlu1 %v1999_v4, %s8461_s18  ;;  %2082 = vrot.lane.b32.xlu0 %v9707_v25, %s8461_s18  ;;  %v2479_v8 = vld [vmem:[%s13670_s0 + $0x8] sm:$0x3] }
 0x240   :  { %v1649_v19 = vpop.permute.xlu1 %1648  ;;  %v1647_v14 = vpop.permute.xlu0 %1646 }
 0x241   :  { %1741 = vst.msk [vmem:[#allocation2 + $0xe8] sm:$0x3] %vm1712_vm0, %v1649_v19 }
 0x242   :  { %1740 = vst.msk [vmem:[#allocation2 + $0xe0] sm:$0xff] %vm1710_vm1, %v1647_v14  ;;  %2088 = vrot.lane.b32.xlu1 %v2001_v51, %s8461_s18  ;;  %2086 = vrot.lane.b32.xlu0 %v9720_v61, %s8461_s18  ;;  %v2721_v14 = vld [vmem:[%s13670_s0 + $0x9] sm:$0x3] }
 0x244   :  { %v1653_v25 = vpop.permute.xlu1 %1652  ;;  %v1651_v60 = vpop.permute.xlu0 %1650 }
 0x245   :  { %1743 = vst.msk [vmem:[#allocation2 + $0xf8] sm:$0x3] %vm1712_vm0, %v1653_v25 }
 0x246   :  { %1742 = vst.msk [vmem:[#allocation2 + $0xf0] sm:$0xff] %vm1710_vm1, %v1651_v60  ;;  %2092 = vrot.lane.b32.xlu1 %v2003_v26, %s8461_s18  ;;  %2090 = vrot.lane.b32.xlu0 %v9733_v63, %s8461_s18  ;;  %v2963_v60 = vld [vmem:[%s13670_s0 + $0x9] sm:$0x3] }
 0x248   :  { %v1657_v61 = vpop.permute.xlu1 %1656  ;;  %v1655_v27 = vpop.permute.xlu0 %1654 }
 0x249   :  { %1745 = vst.msk [vmem:[#allocation2 + $0x108] sm:$0x3] %vm1712_vm0, %v1657_v61 }
 0x24a   :  { %1744 = vst.msk [vmem:[#allocation2 + $0x100] sm:$0xff] %vm1710_vm1, %v1655_v27  ;;  %2096 = vrot.lane.b32.xlu1 %v2005_v54, %s8461_s18  ;;  %2094 = vrot.lane.b32.xlu0 %v9746_v45, %s8461_s18  ;;  %v10520_v54 = vld [vmem:[%s13670_s0 + $0x10] sm:$0xff] }
 0x24c   :  { %v1661_v63 = vpop.permute.xlu1 %1660  ;;  %v1659_v22 = vpop.permute.xlu0 %1658 }
 0x24d   :  { %1747 = vst.msk [vmem:[#allocation2 + $0x118] sm:$0x3] %vm1712_vm0, %v1661_v63 }
 0x24e   :  { %1746 = vst.msk [vmem:[#allocation2 + $0x110] sm:$0xff] %vm1710_vm1, %v1659_v22  ;;  %2100 = vrot.lane.b32.xlu1 %v2007_v59, %s8461_s18  ;;  %2098 = vrot.lane.b32.xlu0 %v9759_v15, %s8461_s18  ;;  %v7646_v22 = vld [vmem:[%s13670_s0 + $0x18] sm:$0x3] }
 0x250   :  { %v1665_v45 = vpop.permute.xlu1 %1664  ;;  %v1663_v20 = vpop.permute.xlu0 %1662 }
 0x251   :  { %1749 = vst.msk [vmem:[#allocation2 + $0x128] sm:$0x3] %vm1712_vm0, %v1665_v45 }
 0x252   :  { %1748 = vst.msk [vmem:[#allocation2 + $0x120] sm:$0xff] %vm1710_vm1, %v1663_v20  ;;  %2104 = vrot.lane.b32.xlu1 %v2009_v7, %s8461_s18  ;;  %2102 = vrot.lane.b32.xlu0 %v9772_v17, %s8461_s18  ;;  %v2013_v17 = vld [vmem:[%s13670_s0 + $0x98] sm:$0x3] }
 0x253   :  { %v2481_v20 = vld [vmem:[%s13670_s0 + $0x18] sm:$0x3] }
 0x254   :  { %v1669_v15 = vpop.permute.xlu1 %1668  ;;  %v1667_v10 = vpop.permute.xlu0 %1666 }
 0x255   :  { %1751 = vst.msk [vmem:[#allocation2 + $0x138] sm:$0x3] %vm1712_vm0, %v1669_v15  ;;  %vm13689_vm0 = vcmask 523744  }
 0x256   :  { %1750 = vst.msk [vmem:[#allocation2 + $0x130] sm:$0xff] %vm1710_vm1, %v1667_v10  ;;  %2108 = vrot.lane.b32.xlu1 %v2011_v38, %s8461_s18  ;;  %2106 = vrot.lane.b32.xlu0 %v9785_v3, %s8461_s18  ;;  %v2015_v3 = vld [vmem:[%s13670_s0 + $0xb8] sm:$0x3]  ;;  %vm13714_vm1 = vcmask 517600  }
 0x257   :  { %v7686_v10 = vld [vmem:[%s13670_s0 + $0x18] sm:$0x3] }
 0x258   :  { %v1835_v32 = vpop.permute.xlu1 %1834  ;;  %v1833_v55 = vpop.permute.xlu0 %1832 }
 0x259   :  { %1955 = vst.msk [vmem:[#allocation2 + $0x8] sm:$0x3] %vm1954_vm2, %v1835_v32 }
 0x25a   :  { %1953 = vst.msk [vmem:[#allocation2] sm:$0xff] %vm1952_vm3, %v1833_v55  ;;  %2112 = vrot.lane.b32.xlu1 %v2013_v17, %s8461_s18  ;;  %2110 = vrot.lane.b32.xlu0 %v9798_v23, %s8461_s18  ;;  %v10557_v17 = vld [vmem:[%s13670_s0 + $0x11] sm:$0xff] }
 0x25c   :  { %v1839_v36 = vpop.permute.xlu1 %1838  ;;  %v1837_v5 = vpop.permute.xlu0 %1836 }
 0x25d   :  { %1957 = vst.msk [vmem:[#allocation2 + $0x18] sm:$0x3] %vm1954_vm2, %v1839_v36 }
 0x25e   :  { %1956 = vst.msk [vmem:[#allocation2 + $0x10] sm:$0xff] %vm1952_vm3, %v1837_v5  ;;  %2116 = vrot.lane.b32.xlu1 %v2015_v3, %s8461_s18  ;;  %2114 = vrot.lane.b32.xlu0 %v9811_v1, %s8461_s18  ;;  %v2018_v1 = vld [vmem:[%s13670_s0 + $0xd0] sm:$0xff]  ;;  %v2723_v3 = vld [vmem:[%s13670_s0 + $0x19] sm:$0x3] }
 0x260   :  { %v1843_v23 = vpop.permute.xlu1 %1842  ;;  %v1841_v47 = vpop.permute.xlu0 %1840 }
 0x261   :  { %1959 = vst.msk [vmem:[#allocation2 + $0x28] sm:$0x3] %vm1954_vm2, %v1843_v23 }
 0x262   :  { %1958 = vst.msk [vmem:[#allocation2 + $0x20] sm:$0xff] %vm1952_vm3, %v1841_v47  ;;  %2120 = vrot.lane.b32.xlu1 %v2017_v11, %s8461_s18  ;;  %2118 = vrot.lane.b32.xlu0 %v9824_v9, %s8461_s18  ;;  %v2021_v9 = vld [vmem:[%s13670_s0 + $0xe8] sm:$0x3]  ;;  %v7726_v11 = vld [vmem:[%s13670_s0 + $0x18] sm:$0x3] }
 0x264   :  { %v1847_v33 = vpop.permute.xlu1 %1846  ;;  %v1845_v29 = vpop.permute.xlu0 %1844 }
 0x265   :  { %1961 = vst.msk [vmem:[#allocation2 + $0x38] sm:$0x3] %vm1954_vm2, %v1847_v33 }
 0x266   :  { %1960 = vst.msk [vmem:[#allocation2 + $0x30] sm:$0xff] %vm1952_vm3, %v1845_v29  ;;  %2124 = vrot.lane.b32.xlu1 %v2019_v21, %s8461_s18  ;;  %2122 = vrot.lane.b32.xlu0 %v2018_v1, %s8461_s18  ;;  %v10583_v21 = vld [vmem:[%s13670_s0 + $0x20] sm:$0xff]  ;;  %v2965_v29 = vld [vmem:[%s13670_s0 + $0x19] sm:$0x3] }
 0x268   :  { %v1851_v41 = vpop.permute.xlu1 %1850  ;;  %v1849_v53 = vpop.permute.xlu0 %1848 }
 0x269   :  { %1963 = vst.msk [vmem:[#allocation2 + $0x48] sm:$0x3] %vm1954_vm2, %v1851_v41  ;;  %v7766_v41 = vld [vmem:[%s13670_s0 + $0x19] sm:$0x3] }
 0x26a   :  { %1962 = vst.msk [vmem:[#allocation2 + $0x40] sm:$0xff] %vm1952_vm3, %v1849_v53  ;;  %2128 = vrot.lane.b32.xlu1 %v2021_v9, %s8461_s18  ;;  %2126 = vrot.lane.b32.xlu0 %v2020_v44, %s8461_s18 }
 0x26c   :  { %v1855_v58 = vpop.permute.xlu1 %1854  ;;  %v1853_v24 = vpop.permute.xlu0 %1852 }
 0x26d   :  { %1965 = vst.msk [vmem:[#allocation2 + $0x58] sm:$0x3] %vm1954_vm2, %v1855_v58 }
 0x26e   :  { %1964 = vst.msk [vmem:[#allocation2 + $0x50] sm:$0xff] %vm1952_vm3, %v1853_v24  ;;  %2132 = vrot.lane.b32.xlu1 %v2023_v18, %s8461_s18  ;;  %2130 = vrot.lane.b32.xlu0 %v2022_v46, %s8461_s18  ;;  %v2241_v46 = vld [vmem:[%s13670_s0 + $0x28] sm:$0x3] }
 0x270   :  { %v1859_v13 = vpop.permute.xlu1 %1858  ;;  %v1857_v52 = vpop.permute.xlu0 %1856 }
 0x271   :  { %1967 = vst.msk [vmem:[#allocation2 + $0x68] sm:$0x3] %vm1954_vm2, %v1859_v13 }
 0x272   :  { %1966 = vst.msk [vmem:[#allocation2 + $0x60] sm:$0xff] %vm1952_vm3, %v1857_v52  ;;  %2136 = vrot.lane.b32.xlu1 %v2025_v50, %s8461_s18  ;;  %2134 = vrot.lane.b32.xlu0 %v2024_v35, %s8461_s18  ;;  %v7648_v50 = vld [vmem:[%s13670_s0 + $0x28] sm:$0x3]  ;;  %v7806_v52 = vld [vmem:[%s13670_s0 + $0x19] sm:$0x3] }
 0x274   :  { %v1863_v31 = vpop.permute.xlu1 %1862  ;;  %v1861_v16 = vpop.permute.xlu0 %1860 }
 0x275   :  { %1969 = vst.msk [vmem:[#allocation2 + $0x78] sm:$0x3] %vm1954_vm2, %v1863_v31  ;;  %v10634_v31 = vld [vmem:[%s13670_s0 + $0x21] sm:$0xff] }
 0x276   :  { %1968 = vst.msk [vmem:[#allocation2 + $0x70] sm:$0xff] %vm1952_vm3, %v1861_v16  ;;  %2140 = vrot.lane.b32.xlu1 %v2027_v6, %s8461_s18  ;;  %2138 = vrot.lane.b32.xlu0 %v2026_v12, %s8461_s18  ;;  %v2483_v16 = vld [vmem:[%s13670_s0 + $0x28] sm:$0x3] }
 0x278   :  { %v1867_v28 = vpop.permute.xlu1 %1866  ;;  %v1865_v34 = vpop.permute.xlu0 %1864 }
 0x279   :  { %1971 = vst.msk [vmem:[#allocation2 + $0x88] sm:$0x3] %vm1954_vm2, %v1867_v28  ;;  %v7688_v28 = vld [vmem:[%s13670_s0 + $0x28] sm:$0x3] }
 0x27a   :  { %1970 = vst.msk [vmem:[#allocation2 + $0x80] sm:$0xff] %vm1952_vm3, %v1865_v34  ;;  %2144 = vrot.lane.b32.xlu1 %v2029_v56, %s8461_s18  ;;  %2142 = vrot.lane.b32.xlu0 %v2028_v39, %s8461_s18 }
 0x27c   :  { %v1871_v40 = vpop.permute.xlu1 %1870  ;;  %v1869_v30 = vpop.permute.xlu0 %1868 }
 0x27d   :  { %1973 = vst.msk [vmem:[#allocation2 + $0x98] sm:$0x3] %vm1954_vm2, %v1871_v40 }
 0x27e   :  { %1972 = vst.msk [vmem:[#allocation2 + $0x90] sm:$0xff] %vm1952_vm3, %v1869_v30  ;;  %2148 = vrot.lane.b32.xlu1 %v2031_v48, %s8461_s18  ;;  %2146 = vrot.lane.b32.xlu0 %v2030_v0, %s8461_s18  ;;  %v7846_v0 = vld [vmem:[%s13670_s0 + $0x18] sm:$0x3] }
 0x280   :  { %v1875_v43 = vpop.permute.xlu1 %1874  ;;  %v1873_v49 = vpop.permute.xlu0 %1872 }
 0x281   :  { %1975 = vst.msk [vmem:[#allocation2 + $0xa8] sm:$0x3] %vm1954_vm2, %v1875_v43 }
 0x282   :  { %1974 = vst.msk [vmem:[#allocation2 + $0xa0] sm:$0xff] %vm1952_vm3, %v1873_v49  ;;  %2316 = vrot.lane.b32.xlu1 %v2236_v37, %s8461_s18  ;;  %2150 = vrot.lane.b32.xlu0 %v2032_v42, %s8461_s18  ;;  %v7728_v49 = vld [vmem:[%s13670_s0 + $0x28] sm:$0x3] }
 0x284   :  { %v1879_v4 = vpop.permute.xlu1 %1878  ;;  %v1877_v2 = vpop.permute.xlu0 %1876 }
 0x285   :  { %1977 = vst.msk [vmem:[#allocation2 + $0xb8] sm:$0x3] %vm1954_vm2, %v1879_v4 }
 0x286   :  { %1976 = vst.msk [vmem:[#allocation2 + $0xb0] sm:$0xff] %vm1952_vm3, %v1877_v2  ;;  %2558 = vrot.lane.b32.xlu1 %v2236_v37, %s8461_s18  ;;  %2318 = vrot.lane.b32.xlu0 %v2237_v62, %s8461_s18  ;;  %v2725_v37 = vld [vmem:[%s13670_s0 + $0x29] sm:$0x3]  ;;  %v7886_v2 = vld [vmem:[%s13670_s0 + $0x18] sm:$0x3] }
 0x288   :  { %v1883_v51 = vpop.permute.xlu1 %1882  ;;  %v1881_v19 = vpop.permute.xlu0 %1880 }
 0x289   :  { %1979 = vst.msk [vmem:[#allocation2 + $0xc8] sm:$0x3] %vm1954_vm2, %v1883_v51 }
 0x28a   :  { %1978 = vst.msk [vmem:[#allocation2 + $0xc0] sm:$0xff] %vm1952_vm3, %v1881_v19  ;;  %2800 = vrot.lane.b32.xlu1 %v9901_v57, %s8462_s22  ;;  %2560 = vrot.lane.b32.xlu0 %v2479_v8, %s8461_s18  ;;  %v2967_v19 = vld [vmem:[%s13670_s0 + $0x29] sm:$0x3] }
 0x28c   :  { %v1887_v26 = vpop.permute.xlu1 %1886  ;;  %v1885_v25 = vpop.permute.xlu0 %1884 }
 0x28d   :  { %1981 = vst.msk [vmem:[#allocation2 + $0xd8] sm:$0x3] %vm1954_vm2, %v1887_v26 }
 0x28e   :  { %1980 = vst.msk [vmem:[#allocation2 + $0xd0] sm:$0xff] %vm1952_vm3, %v1885_v25  ;;  %3042 = vrot.lane.b32.xlu1 %v9901_v57, %s8462_s22  ;;  %2802 = vrot.lane.b32.xlu0 %v2721_v14, %s8462_s22  ;;  %v2239_v57 = vld [vmem:[%s13670_s0 + $0x18] sm:$0x3]  ;;  %v10690_v14 = vld [vmem:[%s13670_s0 + $0x30] sm:$0xff] }
 0x290   :  { %v1891_v61 = vpop.permute.xlu1 %1890  ;;  %v1889_v27 = vpop.permute.xlu0 %1888 }
 0x291   :  { %1983 = vst.msk [vmem:[#allocation2 + $0xe8] sm:$0x3] %vm1954_vm2, %v1891_v61 }
 0x292   :  { %1982 = vst.msk [vmem:[#allocation2 + $0xe0] sm:$0xff] %vm1952_vm3, %v1889_v27  ;;  %3044 = vrot.lane.b32.xlu1 %v2963_v60, %s8462_s22  ;;  %2320 = vrot.lane.b32.xlu0 %v10520_v54, %s8461_s18  ;;  %v7768_v60 = vld [vmem:[%s13670_s0 + $0x29] sm:$0x3]  ;;  %v7926_v27 = vld [vmem:[%s13670_s0 + $0x18] sm:$0x3] }
 0x294   :  { %v1895_v59 = vpop.permute.xlu1 %1894  ;;  %v1893_v63 = vpop.permute.xlu0 %1892 }
 0x295   :  { %1985 = vst.msk [vmem:[#allocation2 + $0xf8] sm:$0x3] %vm1954_vm2, %v1895_v59 }
 0x296   :  { %1984 = vst.msk [vmem:[#allocation2 + $0xf0] sm:$0xff] %vm1952_vm3, %v1893_v63  ;;  %2322 = vrot.lane.b32.xlu1 %v2239_v57, %s8461_s18  ;;  %3285 = vrot.lane.b32.xlu0 %v10520_v54, %s8463_s12  ;;  %v5665_v63 = vld [vmem:[%s13671_s1] sm:$0xff] }
 0x298   :  { %v1899_v7 = vpop.permute.xlu1 %1898  ;;  %v1897_v45 = vpop.permute.xlu0 %1896 }
 0x299   :  { %1987 = vst.msk [vmem:[#allocation2 + $0x108] sm:$0x3] %vm1954_vm2, %v1899_v7  ;;  %v2243_v7 = vld [vmem:[%s13670_s0 + $0x38] sm:$0x3] }
 0x29a   :  { %1986 = vst.msk [vmem:[#allocation2 + $0x100] sm:$0xff] %vm1952_vm3, %v1897_v45  ;;  %3287 = vrot.lane.b32.xlu1 %v7646_v22, %s8463_s12  ;;  %2562 = vrot.lane.b32.xlu0 %v10520_v54, %s8461_s18  ;;  %v5666_v22 = vld [vmem:[%s13671_s1 + $0x8] sm:$0xff] }
 0x29b   :  { %v8260_v45 = vpack.c.bf16 %v5666_v22, %v5665_v63 }
 0x29c   :  { %v1903_v38 = vpop.permute.xlu1 %1902  ;;  %v1901_v15 = vpop.permute.xlu0 %1900 }
 0x29d   :  { %1989 = vst.msk [vmem:[#allocation2 + $0x118] sm:$0x3] %vm1954_vm2, %v1903_v38  ;;  %8261 = vmatprep.subr.bf16.mxu0 %v8260_v45 }
 0x29e   :  { %1988 = vst.msk [vmem:[#allocation2 + $0x110] sm:$0xff] %vm1952_vm3, %v1901_v15  ;;  %2564 = vrot.lane.b32.xlu1 %v2481_v20, %s8461_s18  ;;  %3527 = vrot.lane.b32.xlu0 %v10520_v54, %s8463_s12  ;;  %v5667_v15 = vld [vmem:[%s13671_s1 + $0x10] sm:$0xff] }
 0x29f   :  { %8263 = vmatpush3.bf16.msra.mxu0 %v8260_v45 }
 0x2a0   :  { %v1907_v32 = vpop.permute.xlu1 %1906  ;;  %v1905_v55 = vpop.permute.xlu0 %1904 }
 0x2a1   :  { %1991 = vst.msk [vmem:[#allocation2 + $0x128] sm:$0x3] %vm1954_vm2, %v1907_v32  ;;  %v7650_v32 = vld [vmem:[%s13670_s0 + $0x38] sm:$0x3] }
 0x2a2   :  { %1990 = vst.msk [vmem:[#allocation2 + $0x120] sm:$0xff] %vm1952_vm3, %v1905_v55  ;;  %3529 = vrot.lane.b32.xlu1 %v7686_v10, %s8463_s12  ;;  %2804 = vrot.lane.b32.xlu0 %v10557_v17, %s8462_s22  ;;  %v5668_v10 = vld [vmem:[%s13671_s1 + $0x18] sm:$0xff] }
 0x2a3   :  { %v8264_v55 = vpack.c.bf16 %v5668_v10, %v5667_v15 }
 0x2a4   :  { %v1911_v36 = vpop.permute.xlu1 %1910  ;;  %v1909_v5 = vpop.permute.xlu0 %1908 }
 0x2a5   :  { %1993 = vst.msk [vmem:[#allocation2 + $0x138] sm:$0x3] %vm1954_vm2, %v1911_v36  ;;  %8265 = vmatprep.subr.bf16.mxu0 %v8264_v55  ;;  %vm13713_vm2 = vcmask 556544  }
 0x2a6   :  { %1992 = vst.msk [vmem:[#allocation2 + $0x130] sm:$0xff] %vm1952_vm3, %v1909_v5  ;;  %2806 = vrot.lane.b32.xlu1 %v2723_v3, %s8462_s22  ;;  %3769 = vrot.lane.b32.xlu0 %v10520_v54, %s8463_s12  ;;  %v5669_v5 = vld [vmem:[%s13671_s1 + $0x20] sm:$0xff]  ;;  %vm13698_vm3 = vcmask 550400  }
 0x2a7   :  { %8267 = vmatpush3.bf16.msra.mxu0 %v8264_v55 }
 0x2a8   :  { %v2077_v23 = vpop.permute.xlu1 %2076  ;;  %v2075_v47 = vpop.permute.xlu0 %2074 }
 0x2a9   :  { %2197 = vst.msk [vmem:[#allocation2 + $0x8] sm:$0x3] %vm13680_vm4, %v2077_v23  ;;  %v7808_v23 = vld [vmem:[%s13670_s0 + $0x29] sm:$0x3] }
 0x2aa   :  { %2195 = vst.msk [vmem:[#allocation2] sm:$0xff] %vm2194_vm5, %v2075_v47  ;;  %3771 = vrot.lane.b32.xlu1 %v7726_v11, %s8463_s12  ;;  %3046 = vrot.lane.b32.xlu0 %v10557_v17, %s8462_s22  ;;  %v5670_v11 = vld [vmem:[%s13671_s1 + $0x28] sm:$0xff] }
 0x2ab   :  { %v8268_v47 = vpack.c.bf16 %v5670_v11, %v5669_v5 }
 0x2ac   :  { %v2081_v1 = vpop.permute.xlu1 %2080  ;;  %v2079_v33 = vpop.permute.xlu0 %2078 }
 0x2ad   :  { %2199 = vst.msk [vmem:[#allocation2 + $0x18] sm:$0x3] %vm13680_vm4, %v2081_v1  ;;  %8269 = vmatprep.subr.bf16.mxu0 %v8268_v47 }
 0x2ae   :  { %2198 = vst.msk [vmem:[#allocation2 + $0x10] sm:$0xff] %vm2194_vm5, %v2079_v33  ;;  %2324 = vrot.lane.b32.xlu1 %v10583_v21, %s8461_s18  ;;  %4011 = vrot.lane.b32.xlu0 %v10557_v17, %s8464_s30 }
 0x2af   :  { %8271 = vmatpush3.bf16.msra.mxu0 %v8268_v47 }
 0x2b0   :  { %v2085_v9 = vpop.permute.xlu1 %2084  ;;  %v2083_v44 = vpop.permute.xlu0 %2082 }
 0x2b1   :  { %2201 = vst.msk [vmem:[#allocation2 + $0x28] sm:$0x3] %vm13680_vm4, %v2085_v9  ;;  %v5672_v9 = vld [vmem:[%s13671_s1 + $0x38] sm:$0xff] }
 0x2b2   :  { %2200 = vst.msk [vmem:[#allocation2 + $0x20] sm:$0xff] %vm2194_vm5, %v2083_v44  ;;  %3289 = vrot.lane.b32.xlu1 %v10583_v21, %s8463_s12  ;;  %3048 = vrot.lane.b32.xlu0 %v2965_v29, %s8462_s22  ;;  %v5671_v29 = vld [vmem:[%s13671_s1 + $0x30] sm:$0xff]  ;;  %v7966_v44 = vld [vmem:[%s13670_s0 + $0x19] sm:$0x3] }
 0x2b4   :  { %v2089_v53 = vpop.permute.xlu1 %2088  ;;  %v2087_v18 = vpop.permute.xlu0 %2086 }
 0x2b5   :  { %2203 = vst.msk [vmem:[#allocation2 + $0x38] sm:$0x3] %vm13680_vm4, %v2089_v53 }
 0x2b6   :  { %2202 = vst.msk [vmem:[#allocation2 + $0x30] sm:$0xff] %vm2194_vm5, %v2087_v18  ;;  %4253 = vrot.lane.b32.xlu1 %v10557_v17, %s8464_s30  ;;  %4013 = vrot.lane.b32.xlu0 %v7766_v41, %s8464_s30  ;;  %v8272_v41 = vpack.c.bf16 %v5672_v9, %v5671_v29  ;;  %v10962_v29 = vld [vmem:[%s13670_s0 + $0x41] sm:$0xff] }
 0x2b8   :  { %v2093_v58 = vpop.permute.xlu1 %2092  ;;  %v2091_v24 = vpop.permute.xlu0 %2090  ;;  %8273 = vmatprep.subr.bf16.mxu0 %v8272_v41 }
 0x2b9   :  { %2205 = vst.msk [vmem:[#allocation2 + $0x48] sm:$0x3] %vm13680_vm4, %v2093_v58  ;;  %v5674_v58 = vld [vmem:[%s13671_s1 + $0x48] sm:$0xff]  ;;  %8275 = vmatpush3.bf16.msra.mxu0 %v8272_v41 }
 0x2ba   :  { %2204 = vst.msk [vmem:[#allocation2 + $0x40] sm:$0xff] %vm2194_vm5, %v2091_v24  ;;  %2566 = vrot.lane.b32.xlu1 %v10583_v21, %s8461_s18  ;;  %2326 = vrot.lane.b32.xlu0 %v2241_v46, %s8461_s18  ;;  %v5673_v46 = vld [vmem:[%s13671_s1 + $0x40] sm:$0xff]  ;;  %v2485_v24 = vld [vmem:[%s13670_s0 + $0x38] sm:$0x3] }
 0x2bc   :  { %v2097_v35 = vpop.permute.xlu1 %2096  ;;  %v2095_v13 = vpop.permute.xlu0 %2094 }
 0x2bd   :  { %2207 = vst.msk [vmem:[#allocation2 + $0x58] sm:$0x3] %vm13680_vm4, %v2097_v35 }
 0x2be   :  { %2206 = vst.msk [vmem:[#allocation2 + $0x50] sm:$0xff] %vm2194_vm5, %v2095_v13  ;;  %3531 = vrot.lane.b32.xlu1 %v10583_v21, %s8463_s12  ;;  %3291 = vrot.lane.b32.xlu0 %v7648_v50, %s8463_s12  ;;  %v8276_v50 = vpack.c.bf16 %v5674_v58, %v5673_v46 }
 0x2c0   :  { %v2101_v6 = vpop.permute.xlu1 %2100  ;;  %v2099_v12 = vpop.permute.xlu0 %2098  ;;  %8277 = vmatprep.subr.bf16.mxu0 %v8276_v50 }
 0x2c1   :  { %2209 = vst.msk [vmem:[#allocation2 + $0x68] sm:$0x3] %vm13680_vm4, %v2101_v6  ;;  %v5676_v6 = vld [vmem:[%s13671_s1 + $0x58] sm:$0xff]  ;;  %8279 = vmatpush3.bf16.msra.mxu0 %v8276_v50 }
 0x2c2   :  { %2208 = vst.msk [vmem:[#allocation2 + $0x60] sm:$0xff] %vm2194_vm5, %v2099_v12  ;;  %4495 = vrot.lane.b32.xlu1 %v10520_v54, %s8465_s24  ;;  %4255 = vrot.lane.b32.xlu0 %v7806_v52, %s8464_s30  ;;  %v5675_v52 = vld [vmem:[%s13671_s1 + $0x50] sm:$0xff]  ;;  %v7690_v12 = vld [vmem:[%s13670_s0 + $0x38] sm:$0x3] }
 0x2c4   :  { %v2105_v56 = vpop.permute.xlu1 %2104  ;;  %v2103_v39 = vpop.permute.xlu0 %2102 }
 0x2c5   :  { %2211 = vst.msk [vmem:[#allocation2 + $0x78] sm:$0x3] %vm13680_vm4, %v2105_v56  ;;  %v8467_v56 = vmov 0.0  }
 0x2c6   :  { %2210 = vst.msk [vmem:[#allocation2 + $0x70] sm:$0xff] %vm2194_vm5, %v2103_v39  ;;  %2808 = vrot.lane.b32.xlu1 %v10634_v31, %s8462_s22  ;;  %2568 = vrot.lane.b32.xlu0 %v2483_v16, %s8461_s18  ;;  %v10795_v16 = vld [vmem:[%s13670_s0 + $0x31] sm:$0xff]  ;;  %7054 = vst [vmem:[#allocation4] sm:$0xf0] %v8467_v56 }
 0x2c7   :  { %34 = vst.msk [vmem:[#allocation2 + $0xa] sm:$0x3f] %vm33_vm11, %v8467_v56  ;;  %35 = vst.msk [vmem:[#allocation2 + $0x1a] sm:$0x3f] %vm33_vm11, %v8467_v56 }
 0x2c8   :  { %v2109_v34 = vpop.permute.xlu1 %2108  ;;  %v2107_v48 = vpop.permute.xlu0 %2106  ;;  %36 = vst.msk [vmem:[#allocation2 + $0x2a] sm:$0x3f] %vm33_vm11, %v8467_v56  ;;  %37 = vst.msk [vmem:[#allocation2 + $0x3a] sm:$0x3f] %vm33_vm11, %v8467_v56 }
 0x2c9   :  { %2213 = vst.msk [vmem:[#allocation2 + $0x88] sm:$0x3] %vm13680_vm4, %v2109_v34  ;;  %7057 = vst [vmem:[#allocation4 + $0x10] sm:$0xf0] %v8467_v56  ;;  %v7848_v34 = vld [vmem:[%s13670_s0 + $0x28] sm:$0x3] }
 0x2ca   :  { %2212 = vst.msk [vmem:[#allocation2 + $0x80] sm:$0xff] %vm2194_vm5, %v2107_v48  ;;  %3773 = vrot.lane.b32.xlu1 %v10583_v21, %s8463_s12  ;;  %3533 = vrot.lane.b32.xlu0 %v7688_v28, %s8463_s12 }
 0x2cb   :  { %38 = vst.msk [vmem:[#allocation2 + $0x4a] sm:$0x3f] %vm33_vm11, %v8467_v56  ;;  %39 = vst.msk [vmem:[#allocation2 + $0x5a] sm:$0x3f] %vm33_vm11, %v8467_v56 }
 0x2cc   :  { %v2113_v40 = vpop.permute.xlu1 %2112  ;;  %v2111_v30 = vpop.permute.xlu0 %2110  ;;  %40 = vst.msk [vmem:[#allocation2 + $0x6a] sm:$0x3f] %vm33_vm11, %v8467_v56  ;;  %41 = vst.msk [vmem:[#allocation2 + $0x7a] sm:$0x3f] %vm33_vm11, %v8467_v56 }
 0x2cd   :  { %2215 = vst.msk [vmem:[#allocation2 + $0x98] sm:$0x3] %vm13680_vm4, %v2113_v40  ;;  %v5677_v40 = vld [vmem:[%s13671_s1 + $0x60] sm:$0xf]  ;;  %s8476_s1 = smov 110  }
 0x2ce   :  { %2214 = vst.msk [vmem:[#allocation2 + $0x90] sm:$0xff] %vm2194_vm5, %v2111_v30  ;;  %4737 = vrot.lane.b32.xlu1 %v10520_v54, %s8465_s24  ;;  %4497 = vrot.lane.b32.xlu0 %v7846_v0, %s8465_s24  ;;  %v8006_v30 = vld [vmem:[%s13670_s0 + $0x19] sm:$0x3] }
 0x2cf   :  { %42 = vst.msk [vmem:[#allocation2 + $0x8a] sm:$0x3f] %vm33_vm11, %v8467_v56  ;;  %43 = vst.msk [vmem:[#allocation2 + $0x9a] sm:$0x3f] %vm33_vm11, %v8467_v56 }
 0x2d0   :  { %v2117_v42 = vpop.permute.xlu1 %2116  ;;  %v2115_v43 = vpop.permute.xlu0 %2114  ;;  %44 = vst.msk [vmem:[#allocation2 + $0xaa] sm:$0x3f] %vm33_vm11, %v8467_v56  ;;  %45 = vst.msk [vmem:[#allocation2 + $0xba] sm:$0x3f] %vm33_vm11, %v8467_v56 }
 0x2d1   :  { %2217 = vst.msk [vmem:[#allocation2 + $0xa8] sm:$0x3] %vm13680_vm4, %v2117_v42 }
 0x2d2   :  { %2216 = vst.msk [vmem:[#allocation2 + $0xa0] sm:$0xff] %vm2194_vm5, %v2115_v43  ;;  %3050 = vrot.lane.b32.xlu1 %v10634_v31, %s8462_s22  ;;  %2810 = vrot.lane.b32.xlu0 %v2725_v37, %s8462_s22  ;;  %v2727_v43 = vld [vmem:[%s13670_s0 + $0x39] sm:$0x3] }
 0x2d3   :  { %46 = vst.msk [vmem:[#allocation2 + $0xca] sm:$0x3f] %vm33_vm11, %v8467_v56  ;;  %47 = vst.msk [vmem:[#allocation2 + $0xda] sm:$0x3f] %vm33_vm11, %v8467_v56 }
 0x2d4   :  { %v2121_v62 = vpop.permute.xlu1 %2120  ;;  %v2119_v4 = vpop.permute.xlu0 %2118  ;;  %48 = vst.msk [vmem:[#allocation2 + $0xea] sm:$0x3f] %vm33_vm11, %v8467_v56  ;;  %49 = vst.msk [vmem:[#allocation2 + $0xfa] sm:$0x3f] %vm33_vm11, %v8467_v56 }
 0x2d5   :  { %2219 = vst.msk [vmem:[#allocation2 + $0xb8] sm:$0x3] %vm13680_vm4, %v2121_v62 }
 0x2d6   :  { %2218 = vst.msk [vmem:[#allocation2 + $0xb0] sm:$0xff] %vm2194_vm5, %v2119_v4  ;;  %4015 = vrot.lane.b32.xlu1 %v10634_v31, %s8464_s30  ;;  %3775 = vrot.lane.b32.xlu0 %v7728_v49, %s8463_s12  ;;  %v7730_v4 = vld [vmem:[%s13670_s0 + $0x38] sm:$0x3] }
 0x2d7   :  { %50 = vst.msk [vmem:[#allocation2 + $0x10a] sm:$0x3f] %vm33_vm11, %v8467_v56  ;;  %51 = vst.msk [vmem:[#allocation2 + $0x11a] sm:$0x3f] %vm33_vm11, %v8467_v56 }
 0x2d8   :  { %v2125_v8 = vpop.permute.xlu1 %2124  ;;  %v2123_v51 = vpop.permute.xlu0 %2122  ;;  %52 = vst.msk [vmem:[#allocation2 + $0x12a] sm:$0x3f] %vm33_vm11, %v8467_v56  ;;  %53 = vst.msk [vmem:[#allocation2 + $0x13a] sm:$0x3f] %vm33_vm11, %v8467_v56  ;;  %vm13688_vm11 = vcmask 583200  }
 0x2d9   :  { %2221 = vst.msk [vmem:[#allocation2 + $0xc8] sm:$0x3] %vm13680_vm4, %v2125_v8 }
 0x2da   :  { %2220 = vst.msk [vmem:[#allocation2 + $0xc0] sm:$0xff] %vm2194_vm5, %v2123_v51  ;;  %4979 = vrot.lane.b32.xlu1 %v10520_v54, %s8465_s24  ;;  %4739 = vrot.lane.b32.xlu0 %v7886_v2, %s8465_s24  ;;  %v7888_v51 = vld [vmem:[%s13670_s0 + $0x28] sm:$0x3] }
 0x2dc   :  { %v2129_v26 = vpop.permute.xlu1 %2128  ;;  %v2127_v25 = vpop.permute.xlu0 %2126 }
 0x2dd   :  { %2223 = vst.msk [vmem:[#allocation2 + $0xd8] sm:$0x3] %vm13680_vm4, %v2129_v26 }
 0x2de   :  { %2222 = vst.msk [vmem:[#allocation2 + $0xd0] sm:$0xff] %vm2194_vm5, %v2127_v25  ;;  %3052 = vrot.lane.b32.xlu1 %v2967_v19, %s8462_s22  ;;  %2328 = vrot.lane.b32.xlu0 %v10690_v14, %s8461_s18  ;;  %v2969_v25 = vld [vmem:[%s13670_s0 + $0x39] sm:$0x3] }
 0x2e0   :  { %v2133_v54 = vpop.permute.xlu1 %2132  ;;  %v2131_v61 = vpop.permute.xlu0 %2130 }
 0x2e1   :  { %2225 = vst.msk [vmem:[#allocation2 + $0xe8] sm:$0x3] %vm13680_vm4, %v2133_v54 }
 0x2e2   :  { %2224 = vst.msk [vmem:[#allocation2 + $0xe0] sm:$0xff] %vm2194_vm5, %v2131_v61  ;;  %4017 = vrot.lane.b32.xlu1 %v7768_v60, %s8464_s30  ;;  %3293 = vrot.lane.b32.xlu0 %v10690_v14, %s8463_s12  ;;  %v10893_v60 = vld [vmem:[%s13670_s0 + $0x40] sm:$0xff] }
 0x2e4   :  { %v2137_v57 = vpop.permute.xlu1 %2136  ;;  %v2135_v59 = vpop.permute.xlu0 %2134 }
 0x2e5   :  { %2227 = vst.msk [vmem:[#allocation2 + $0xf8] sm:$0x3] %vm13680_vm4, %v2137_v57 }
 0x2e6   :  { %2226 = vst.msk [vmem:[#allocation2 + $0xf0] sm:$0xff] %vm2194_vm5, %v2135_v59  ;;  %4981 = vrot.lane.b32.xlu1 %v7926_v27, %s8465_s24  ;;  %4257 = vrot.lane.b32.xlu0 %v10634_v31, %s8464_s30  ;;  %v7928_v59 = vld [vmem:[%s13670_s0 + $0x28] sm:$0x3] }
 0x2e8   :  { %v2141_v20 = vpop.permute.xlu1 %2140  ;;  %v2139_v38 = vpop.permute.xlu0 %2138 }
 0x2e9   :  { %2229 = vst.msk [vmem:[#allocation2 + $0x108] sm:$0x3] %vm13680_vm4, %v2141_v20 }
 0x2ea   :  { %2228 = vst.msk [vmem:[#allocation2 + $0x100] sm:$0xff] %vm2194_vm5, %v2139_v38  ;;  %2330 = vrot.lane.b32.xlu1 %v2243_v7, %s8461_s18  ;;  %5221 = vrot.lane.b32.xlu0 %v10557_v17, %s13730_s25  ;;  %v2245_v7 = vld [vmem:[%s13670_s0 + $0x48] sm:$0x3] }
 0x2eb   :  { %v7652_v38 = vld [vmem:[%s13670_s0 + $0x48] sm:$0x3] }
 0x2ec   :  { %v2145_v3 = vpop.permute.xlu1 %2144  ;;  %v2143_v36 = vpop.permute.xlu0 %2142 }
 0x2ed   :  { %2231 = vst.msk [vmem:[#allocation2 + $0x118] sm:$0x3] %vm13680_vm4, %v2145_v3 }
 0x2ee   :  { %2230 = vst.msk [vmem:[#allocation2 + $0x110] sm:$0xff] %vm2194_vm5, %v2143_v36  ;;  %3295 = vrot.lane.b32.xlu1 %v7650_v32, %s8463_s12  ;;  %2570 = vrot.lane.b32.xlu0 %v10690_v14, %s8461_s18  ;;  %v7810_v32 = vld [vmem:[%s13670_s0 + $0x39] sm:$0x3]  ;;  %v7968_v36 = vld [vmem:[%s13670_s0 + $0x29] sm:$0x3] }
 0x2f0   :  { %v2149_v1 = vpop.permute.xlu1 %2148  ;;  %v2147_v33 = vpop.permute.xlu0 %2146 }
 0x2f1   :  { %2233 = vst.msk [vmem:[#allocation2 + $0x128] sm:$0x3] %vm13680_vm4, %v2149_v1  ;;  %vm13691_vm4 = vcmask 654944  }
 0x2f2   :  { %2232 = vst.msk [vmem:[#allocation2 + $0x120] sm:$0xff] %vm2194_vm5, %v2147_v33  ;;  %4259 = vrot.lane.b32.xlu1 %v7808_v23, %s8464_s30  ;;  %3535 = vrot.lane.b32.xlu0 %v10690_v14, %s8463_s12  ;;  %v2487_v23 = vld [vmem:[%s13670_s0 + $0x48] sm:$0x3] }
 0x2f3   :  { %v7692_v33 = vld [vmem:[%s13670_s0 + $0x48] sm:$0x3] }
 0x2f4   :  { %v2317_v53 = vpop.permute.xlu1 %2316  ;;  %v2151_v18 = vpop.permute.xlu0 %2150 }
 0x2f5   :  { %2437 = vst.msk [vmem:[#allocation2] sm:$0xff] %vm13681_vm6, %v2317_v53 }
 0x2f6   :  { %2234 = vst.msk [vmem:[#allocation2 + $0x130] sm:$0xff] %vm2194_vm5, %v2151_v18  ;;  %5223 = vrot.lane.b32.xlu1 %v7966_v44, %s13730_s25  ;;  %4499 = vrot.lane.b32.xlu0 %v10583_v21, %s8465_s24  ;;  %vm13694_vm5 = vcmask 589344   ;;  %v8008_v18 = vld [vmem:[%s13670_s0 + $0x29] sm:$0x3] }
 0x2f8   :  { %v2559_v35 = vpop.permute.xlu1 %2558  ;;  %v2319_v13 = vpop.permute.xlu0 %2318 }
 0x2f9   :  { %2679 = vst.msk [vmem:[#allocation2] sm:$0xff] %vm13682_vm7, %v2559_v35 }
 0x2fa   :  { %2439 = vst.msk [vmem:[#allocation2 + $0x8] sm:$0x3] %vm13683_vm8, %v2319_v13  ;;  %2572 = vrot.lane.b32.xlu1 %v2485_v24, %s8461_s18  ;;  %5463 = vrot.lane.b32.xlu0 %v10557_v17, %s13730_s25  ;;  %v8280_v17 = vpack.c.bf16 %v5676_v6, %v5675_v52  ;;  %v2729_v24 = vld [vmem:[%s13670_s0 + $0x49] sm:$0x3] }
 0x2fb   :  { %v7732_v13 = vld [vmem:[%s13670_s0 + $0x48] sm:$0x3] }
 0x2fc   :  { %v2801_v39 = vpop.permute.xlu1 %2800  ;;  %v2561_v28 = vpop.permute.xlu0 %2560  ;;  %8281 = vmatprep.subr.bf16.mxu0 %v8280_v17 }
 0x2fd   :  { %2921 = vst.msk [vmem:[#allocation2] sm:$0xff] %vm13684_vm9, %v2801_v39  ;;  %8283 = vmatpush3.bf16.msra.mxu0 %v8280_v17 }
 0x2fe   :  { %2681 = vst.msk [vmem:[#allocation2 + $0x8] sm:$0x3] %vm13685_vm10, %v2561_v28  ;;  %3537 = vrot.lane.b32.xlu1 %v7690_v12, %s8463_s12  ;;  %2812 = vrot.lane.b32.xlu0 %v10795_v16, %s8462_s22  ;;  %v7890_v12 = vld [vmem:[%s13670_s0 + $0x38] sm:$0x3]  ;;  %v2971_v28 = vld [vmem:[%s13670_s0 + $0x49] sm:$0x3] }
 0x2ff   :  { %8180 = vmatprep.subr.msk.mxu0 %vm5806_vm14, %v5677_v40 }
 0x300   :  { %v3043_v48 = vpop.permute.xlu1 %3042  ;;  %v2803_v0 = vpop.permute.xlu0 %2802 }
 0x301   :  { %3163 = vst.msk [vmem:[#allocation2] sm:$0xff] %vm13687_vm12, %v3043_v48  ;;  %8181 = vmatpush3.msk.msra.mxu0 %vm5806_vm14, %v5677_v40  ;;  %vm13702_vm14 = vcmask 622144  }
 0x302   :  { %2923 = vst.msk [vmem:[#allocation2 + $0x8] sm:$0x3] %vm13686_vm13, %v2803_v0  ;;  %4501 = vrot.lane.b32.xlu1 %v7848_v34, %s8465_s24  ;;  %3777 = vrot.lane.b32.xlu0 %v10690_v14, %s8463_s12  ;;  %v11015_v34 = vld [vmem:[%s13670_s0 + $0x50] sm:$0xff] }
 0x304   :  { %v3045_v37 = vpop.permute.xlu1 %3044  ;;  %v2321_v42 = vpop.permute.xlu0 %2320 }
 0x305   :  { %3165 = vst.msk [vmem:[#allocation2 + $0x8] sm:$0x3] %vm13699_vm15, %v3045_v37  ;;  %v7930_v37 = vld [vmem:[%s13670_s0 + $0x38] sm:$0x3] }
 0x306   :  { %2440 = vst.msk [vmem:[#allocation2 + $0x10] sm:$0xff] %vm13681_vm6, %v2321_v42  ;;  %5465 = vrot.lane.b32.xlu1 %v8006_v30, %s13730_s25  ;;  %4741 = vrot.lane.b32.xlu0 %v10583_v21, %s8465_s24 }
 0x308   :  { %v2323_v49 = vpop.permute.xlu1 %2322  ;;  %v3286_v62 = vpop.permute.xlu0 %3285 }
 0x309   :  { %2441 = vst.msk [vmem:[#allocation2 + $0x18] sm:$0x3] %vm13683_vm8, %v2323_v49  ;;  %v2247_v49 = vld [vmem:[%s13670_s0 + $0x58] sm:$0x3] }
 0x30a   :  { %3406 = vst.msk [vmem:[#allocation2] sm:$0xff] %vm13689_vm0, %v3286_v62  ;;  %3054 = vrot.lane.b32.xlu1 %v10795_v16, %s8462_s22  ;;  %2814 = vrot.lane.b32.xlu0 %v2727_v43, %s8462_s22 }
 0x30c   :  { %v3288_v2 = vpop.permute.xlu1 %3287  ;;  %v2563_v8 = vpop.permute.xlu0 %2562 }
 0x30d   :  { %3408 = vst.msk [vmem:[#allocation2 + $0x8] sm:$0x3] %vm13714_vm1, %v3288_v2  ;;  %v7654_v2 = vld [vmem:[%s13670_s0 + $0x58] sm:$0x3] }
 0x30e   :  { %2682 = vst.msk [vmem:[#allocation2 + $0x10] sm:$0xff] %vm13682_vm7, %v2563_v8  ;;  %4019 = vrot.lane.b32.xlu1 %v10795_v16, %s8464_s30  ;;  %3779 = vrot.lane.b32.xlu0 %v7730_v4, %s8463_s12 }
 0x310   :  { %v2565_v19 = vpop.permute.xlu1 %2564  ;;  %v3528_v26 = vpop.permute.xlu0 %3527 }
 0x311   :  { %2683 = vst.msk [vmem:[#allocation2 + $0x18] sm:$0x3] %vm13685_vm10, %v2565_v19  ;;  %v7812_v19 = vld [vmem:[%s13670_s0 + $0x49] sm:$0x3] }
 0x312   :  { %3648 = vst.msk [vmem:[#allocation2] sm:$0xff] %vm13713_vm2, %v3528_v26  ;;  %4983 = vrot.lane.b32.xlu1 %v10583_v21, %s8465_s24  ;;  %4743 = vrot.lane.b32.xlu0 %v7888_v51, %s8465_s24  ;;  %v7770_v21 = vld [vmem:[%s13670_s0 + $0x39] sm:$0x3] }
 0x314   :  { %v3530_v54 = vpop.permute.xlu1 %3529  ;;  %v2805_v61 = vpop.permute.xlu0 %2804 }
 0x315   :  { %3650 = vst.msk [vmem:[#allocation2 + $0x8] sm:$0x3] %vm13698_vm3, %v3530_v54  ;;  %v7970_v54 = vld [vmem:[%s13670_s0 + $0x39] sm:$0x3] }
 0x316   :  { %2924 = vst.msk [vmem:[#allocation2 + $0x10] sm:$0xff] %vm13684_vm9, %v2805_v61  ;;  %3056 = vrot.lane.b32.xlu1 %v2969_v25, %s8462_s22  ;;  %2332 = vrot.lane.b32.xlu0 %v10893_v60, %s8461_s18 }
 0x318   :  { %v2807_v27 = vpop.permute.xlu1 %2806  ;;  %v3770_v57 = vpop.permute.xlu0 %3769 }
 0x319   :  { %2925 = vst.msk [vmem:[#allocation2 + $0x18] sm:$0x3] %vm13686_vm13, %v2807_v27  ;;  %v2489_v27 = vld [vmem:[%s13670_s0 + $0x58] sm:$0x3] }
 0x31a   :  { %3890 = vst.msk [vmem:[#allocation2] sm:$0xff] %vm13694_vm5, %v3770_v57  ;;  %4021 = vrot.lane.b32.xlu1 %v7770_v21, %s8464_s30  ;;  %3297 = vrot.lane.b32.xlu0 %v10893_v60, %s8463_s12 }
 0x31c   :  { %v3772_v63 = vpop.permute.xlu1 %3771  ;;  %v3047_v22 = vpop.permute.xlu0 %3046 }
 0x31d   :  { %3892 = vst.msk [vmem:[#allocation2 + $0x8] sm:$0x3] %vm13688_vm11, %v3772_v63  ;;  %v7694_v63 = vld [vmem:[%s13670_s0 + $0x58] sm:$0x3] }
 0x31e   :  { %3166 = vst.msk [vmem:[#allocation2 + $0x10] sm:$0xff] %vm13687_vm12, %v3047_v22  ;;  %4985 = vrot.lane.b32.xlu1 %v7928_v59, %s8465_s24  ;;  %4261 = vrot.lane.b32.xlu0 %v10795_v16, %s8464_s30  ;;  %v11084_v22 = vld [vmem:[%s13670_s0 + $0x51] sm:$0xff] }
 0x320   :  { %v2325_v45 = vpop.permute.xlu1 %2324  ;;  %v4012_v20 = vpop.permute.xlu0 %4011 }
 0x321   :  { %2442 = vst.msk [vmem:[#allocation2 + $0x20] sm:$0xff] %vm13681_vm6, %v2325_v45  ;;  %vm13690_vm6 = vcmask 616000  }
 0x322   :  { %4132 = vst.msk [vmem:[#allocation2] sm:$0xff] %vm13702_vm14, %v4012_v20  ;;  %2334 = vrot.lane.b32.xlu1 %v2245_v7, %s8461_s18  ;;  %5225 = vrot.lane.b32.xlu0 %v10634_v31, %s13730_s25 }
 0x324   :  { %v3290_v15 = vpop.permute.xlu1 %3289  ;;  %v3049_v10 = vpop.permute.xlu0 %3048 }
 0x325   :  { %3409 = vst.msk [vmem:[#allocation2 + $0x10] sm:$0xff] %vm13689_vm0, %v3290_v15  ;;  %v8010_v15 = vld [vmem:[%s13670_s0 + $0x39] sm:$0x3] }
 0x326   :  { %3167 = vst.msk [vmem:[#allocation2 + $0x18] sm:$0x3] %vm13699_vm15, %v3049_v10  ;;  %3299 = vrot.lane.b32.xlu1 %v7652_v38, %s8463_s12  ;;  %2574 = vrot.lane.b32.xlu0 %v10893_v60, %s8461_s18 }
 0x328   :  { %v4254_v55 = vpop.permute.xlu1 %4253  ;;  %v4014_v3 = vpop.permute.xlu0 %4013 }
 0x329   :  { %4374 = vst.msk [vmem:[#allocation2] sm:$0xff] %vm13691_vm4, %v4254_v55 }
 0x32a   :  { %4134 = vst.msk [vmem:[#allocation2 + $0x8] sm:$0x3] %vm13690_vm6, %v4014_v3  ;;  %4263 = vrot.lane.b32.xlu1 %v7810_v32, %s8464_s30  ;;  %3539 = vrot.lane.b32.xlu0 %v10893_v60, %s8463_s12  ;;  %v2731_v3 = vld [vmem:[%s13670_s0 + $0x59] sm:$0x3] }
 0x32c   :  { %v2567_v5 = vpop.permute.xlu1 %2566  ;;  %v2327_v11 = vpop.permute.xlu0 %2326 }
 0x32d   :  { %2684 = vst.msk [vmem:[#allocation2 + $0x20] sm:$0xff] %vm13682_vm7, %v2567_v5  ;;  %vm13693_vm7 = vcmask 687744  }
 0x32e   :  { %2443 = vst.msk [vmem:[#allocation2 + $0x28] sm:$0x3] %vm13683_vm8, %v2327_v11  ;;  %5227 = vrot.lane.b32.xlu1 %v7968_v36, %s13730_s25  ;;  %4503 = vrot.lane.b32.xlu0 %v10690_v14, %s8465_s24  ;;  %vm13712_vm8 = vcmask 648800   ;;  %v7734_v11 = vld [vmem:[%s13670_s0 + $0x58] sm:$0x3] }
 0x330   :  { %v3532_v47 = vpop.permute.xlu1 %3531  ;;  %v3292_v1 = vpop.permute.xlu0 %3291 }
 0x331   :  { %3651 = vst.msk [vmem:[#allocation2 + $0x10] sm:$0xff] %vm13713_vm2, %v3532_v47 }
 0x332   :  { %3410 = vst.msk [vmem:[#allocation2 + $0x18] sm:$0x3] %vm13714_vm1, %v3292_v1  ;;  %2576 = vrot.lane.b32.xlu1 %v2487_v23, %s8461_s18  ;;  %5467 = vrot.lane.b32.xlu0 %v10634_v31, %s13730_s25  ;;  %v7850_v31 = vld [vmem:[%s13670_s0 + $0x38] sm:$0x3]  ;;  %v7892_v1 = vld [vmem:[%s13670_s0 + $0x48] sm:$0x3] }
 0x334   :  { %v4496_v9 = vpop.permute.xlu1 %4495  ;;  %v4256_v44 = vpop.permute.xlu0 %4255 }
 0x335   :  { %4616 = vst.msk [vmem:[#allocation2] sm:$0xff] %vm13693_vm7, %v4496_v9 }
 0x336   :  { %4376 = vst.msk [vmem:[#allocation2 + $0x8] sm:$0x3] %vm13712_vm8, %v4256_v44  ;;  %3541 = vrot.lane.b32.xlu1 %v7692_v33, %s8463_s12  ;;  %2816 = vrot.lane.b32.xlu0 %v10962_v29, %s8462_s22 }
 0x338   :  { %v2809_v41 = vpop.permute.xlu1 %2808  ;;  %v2569_v53 = vpop.permute.xlu0 %2568 }
 0x339   :  { %2926 = vst.msk [vmem:[#allocation2 + $0x20] sm:$0xff] %vm13684_vm9, %v2809_v41  ;;  %vm13696_vm9 = vcmask 720544   ;;  %v11139_v41 = vld [vmem:[%s13670_s0 + $0x60] sm:$0xff] }
 0x33a   :  { %2685 = vst.msk [vmem:[#allocation2 + $0x28] sm:$0x3] %vm13685_vm10, %v2569_v53  ;;  %4505 = vrot.lane.b32.xlu1 %v7850_v31, %s8465_s24  ;;  %3781 = vrot.lane.b32.xlu0 %v10893_v60, %s8463_s12  ;;  %vm13695_vm10 = vcmask 681600   ;;  %v2973_v31 = vld [vmem:[%s13670_s0 + $0x59] sm:$0x3] }
 0x33c   :  { %v3774_v46 = vpop.permute.xlu1 %3773  ;;  %v3534_v58 = vpop.permute.xlu0 %3533 }
 0x33d   :  { %3893 = vst.msk [vmem:[#allocation2 + $0x10] sm:$0xff] %vm13694_vm5, %v3774_v46 }
 0x33e   :  { %3652 = vst.msk [vmem:[#allocation2 + $0x18] sm:$0x3] %vm13698_vm3, %v3534_v58  ;;  %5469 = vrot.lane.b32.xlu1 %v8008_v18, %s13730_s25  ;;  %4745 = vrot.lane.b32.xlu0 %v10690_v14, %s8465_s24 }
 0x340   :  { %v4738_v50 = vpop.permute.xlu1 %4737  ;;  %v4498_v35 = vpop.permute.xlu0 %4497 }
 0x341   :  { %4858 = vst.msk [vmem:[#allocation2] sm:$0xff] %vm13696_vm9, %v4738_v50 }
 0x342   :  { %4618 = vst.msk [vmem:[#allocation2 + $0x8] sm:$0x3] %vm13695_vm10, %v4498_v35  ;;  %3058 = vrot.lane.b32.xlu1 %v10962_v29, %s8462_s22  ;;  %2818 = vrot.lane.b32.xlu0 %v2729_v24, %s8462_s22  ;;  %v7932_v24 = vld [vmem:[%s13670_s0 + $0x48] sm:$0x3] }
 0x344   :  { %v3051_v52 = vpop.permute.xlu1 %3050  ;;  %v2811_v6 = vpop.permute.xlu0 %2810 }
 0x345   :  { %3168 = vst.msk [vmem:[#allocation2 + $0x20] sm:$0xff] %vm13687_vm12, %v3051_v52  ;;  %vm13700_vm12 = vcmask 714400  }
 0x346   :  { %2927 = vst.msk [vmem:[#allocation2 + $0x28] sm:$0x3] %vm13686_vm13, %v2811_v6  ;;  %4023 = vrot.lane.b32.xlu1 %v10962_v29, %s8464_s30  ;;  %3783 = vrot.lane.b32.xlu0 %v7732_v13, %s8463_s12  ;;  %vm13701_vm13 = vcmask 753344   ;;  %v2249_v13 = vld [vmem:[%s13670_s0 + $0x68] sm:$0x3] }
 0x348   :  { %v4016_v17 = vpop.permute.xlu1 %4015  ;;  %v3776_v39 = vpop.permute.xlu0 %3775 }
 0x349   :  { %4135 = vst.msk [vmem:[#allocation2 + $0x10] sm:$0xff] %vm13702_vm14, %v4016_v17 }
 0x34a   :  { %3894 = vst.msk [vmem:[#allocation2 + $0x18] sm:$0x3] %vm13688_vm11, %v3776_v39  ;;  %4987 = vrot.lane.b32.xlu1 %v10690_v14, %s8465_s24  ;;  %4747 = vrot.lane.b32.xlu0 %v7890_v12, %s8465_s24  ;;  %v7772_v14 = vld [vmem:[%s13670_s0 + $0x49] sm:$0x3]  ;;  %vm13732_vm11 = vcmask 392544  }
 0x34b   :  { %v7656_v12 = vld [vmem:[%s13670_s0 + $0x68] sm:$0x3] }
 0x34c   :  { %v4980_v48 = vpop.permute.xlu1 %4979  ;;  %v4740_v0 = vpop.permute.xlu0 %4739 }
 0x34d   :  { %5100 = vst.msk [vmem:[#allocation2] sm:$0xff] %vm13701_vm13, %v4980_v48 }
 0x34e   :  { %4860 = vst.msk [vmem:[#allocation2 + $0x8] sm:$0x3] %vm13700_vm12, %v4740_v0  ;;  %3060 = vrot.lane.b32.xlu1 %v2971_v28, %s8462_s22  ;;  %2336 = vrot.lane.b32.xlu0 %v11015_v34, %s8461_s18  ;;  %v7814_v28 = vld [vmem:[%s13670_s0 + $0x59] sm:$0x3] }
 0x350   :  { %v3053_v40 = vpop.permute.xlu1 %3052  ;;  %v2329_v30 = vpop.permute.xlu0 %2328 }
 0x351   :  { %3169 = vst.msk [vmem:[#allocation2 + $0x28] sm:$0x3] %vm13699_vm15, %v3053_v40 }
 0x352   :  { %2444 = vst.msk [vmem:[#allocation2 + $0x30] sm:$0xff] %vm13732_vm11, %v2329_v30  ;;  %4025 = vrot.lane.b32.xlu1 %v7772_v14, %s8464_s30  ;;  %3301 = vrot.lane.b32.xlu0 %v11015_v34, %s8463_s12  ;;  %vm13711_vm11 = vcmask 747200   ;;  %v7972_v14 = vld [vmem:[%s13670_s0 + $0x49] sm:$0x3] }
 0x354   :  { %v4018_v42 = vpop.permute.xlu1 %4017  ;;  %v3294_v43 = vpop.permute.xlu0 %3293 }
 0x355   :  { %4136 = vst.msk [vmem:[#allocation2 + $0x18] sm:$0x3] %vm13690_vm6, %v4018_v42  ;;  %vm13733_vm6 = vcmask 386400  }
 0x356   :  { %3411 = vst.msk [vmem:[#allocation2 + $0x20] sm:$0xff] %vm13689_vm0, %v3294_v43  ;;  %4989 = vrot.lane.b32.xlu1 %v7930_v37, %s8465_s24  ;;  %4265 = vrot.lane.b32.xlu0 %v10962_v29, %s8464_s30  ;;  %vm13710_vm0 = vcmask 786144   ;;  %v2491_v37 = vld [vmem:[%s13670_s0 + $0x68] sm:$0x3] }
 0x358   :  { %v4982_v62 = vpop.permute.xlu1 %4981  ;;  %v4258_v4 = vpop.permute.xlu0 %4257 }
 0x359   :  { %5102 = vst.msk [vmem:[#allocation2 + $0x8] sm:$0x3] %vm13711_vm11, %v4982_v62  ;;  %v11208_v62 = vld [vmem:[%s13670_s0 + $0x61] sm:$0xff] }
 0x35a   :  { %4377 = vst.msk [vmem:[#allocation2 + $0x10] sm:$0xff] %vm13691_vm4, %v4258_v4  ;;  %2338 = vrot.lane.b32.xlu1 %v2247_v49, %s8461_s18  ;;  %5229 = vrot.lane.b32.xlu0 %v10795_v16, %s13730_s25  ;;  %vm13734_vm4 = vcmask 425344   ;;  %v7696_v49 = vld [vmem:[%s13670_s0 + $0x68] sm:$0x3] }
 0x35c   :  { %v2331_v8 = vpop.permute.xlu1 %2330  ;;  %v5222_v51 = vpop.permute.xlu0 %5221 }
 0x35d   :  { %2445 = vst.msk [vmem:[#allocation2 + $0x38] sm:$0x3] %vm13733_vm6, %v2331_v8  ;;  %vm13706_vm6 = vcmask 818944  }
 0x35e   :  { %5342 = vst.msk [vmem:[#allocation2] sm:$0xff] %vm13710_vm0, %v5222_v51  ;;  %3303 = vrot.lane.b32.xlu1 %v7654_v2, %s8463_s12  ;;  %2578 = vrot.lane.b32.xlu0 %v11015_v34, %s8461_s18 }
 0x360   :  { %v3296_v26 = vpop.permute.xlu1 %3295  ;;  %v2571_v25 = vpop.permute.xlu0 %2570 }
 0x361   :  { %3412 = vst.msk [vmem:[#allocation2 + $0x28] sm:$0x3] %vm13714_vm1, %v3296_v26 }
 0x362   :  { %2686 = vst.msk [vmem:[#allocation2 + $0x30] sm:$0xff] %vm13734_vm4, %v2571_v25  ;;  %4267 = vrot.lane.b32.xlu1 %v7812_v19, %s8464_s30  ;;  %3543 = vrot.lane.b32.xlu0 %v11015_v34, %s8463_s12  ;;  %vm13692_vm4 = vcmask 780000   ;;  %v8012_v19 = vld [vmem:[%s13670_s0 + $0x49] sm:$0x3] }
 0x364   :  { %v4260_v61 = vpop.permute.xlu1 %4259  ;;  %v3536_v21 = vpop.permute.xlu0 %3535 }
 0x365   :  { %4378 = vst.msk [vmem:[#allocation2 + $0x18] sm:$0x3] %vm13712_vm8, %v4260_v61  ;;  %v2733_v61 = vld [vmem:[%s13670_s0 + $0x69] sm:$0x3] }
 0x366   :  { %3653 = vst.msk [vmem:[#allocation2 + $0x20] sm:$0xff] %vm13713_vm2, %v3536_v21  ;;  %5231 = vrot.lane.b32.xlu1 %v7970_v54, %s13730_s25  ;;  %4507 = vrot.lane.b32.xlu0 %v10893_v60, %s8465_s24 }
 0x368   :  { %v5224_v57 = vpop.permute.xlu1 %5223  ;;  %v4500_v59 = vpop.permute.xlu0 %4499 }
 0x369   :  { %5344 = vst.msk [vmem:[#allocation2 + $0x8] sm:$0x3] %vm13692_vm4, %v5224_v57  ;;  %vm13735_vm4 = vcmask 419200   ;;  %v7736_v57 = vld [vmem:[%s13670_s0 + $0x68] sm:$0x3] }
 0x36a   :  { %4619 = vst.msk [vmem:[#allocation2 + $0x10] sm:$0xff] %vm13693_vm7, %v4500_v59  ;;  %2580 = vrot.lane.b32.xlu1 %v2489_v27, %s8461_s18  ;;  %5471 = vrot.lane.b32.xlu0 %v10795_v16, %s13730_s25  ;;  %v7852_v16 = vld [vmem:[%s13670_s0 + $0x48] sm:$0x3]  ;;  %vm13736_vm7 = vcmask 458144  }
 0x36c   :  { %v2573_v7 = vpop.permute.xlu1 %2572  ;;  %v5464_v45 = vpop.permute.xlu0 %5463 }
 0x36d   :  { %2687 = vst.msk [vmem:[#allocation2 + $0x38] sm:$0x3] %vm13735_vm4, %v2573_v7  ;;  %vm13709_vm4 = vcmask 818176   ;;  %v7894_v7 = vld [vmem:[%s13670_s0 + $0x58] sm:$0x3] }
 0x36e   :  { %5584 = vst.msk [vmem:[#allocation2] sm:$0xff] %vm13706_vm6, %v5464_v45  ;;  %3545 = vrot.lane.b32.xlu1 %v7694_v63, %s8463_s12  ;;  %2820 = vrot.lane.b32.xlu0 %v11084_v22, %s8462_s22 }
 0x370   :  { %v3538_v20 = vpop.permute.xlu1 %3537  ;;  %v2813_v38 = vpop.permute.xlu0 %2812 }
 0x371   :  { %3654 = vst.msk [vmem:[#allocation2 + $0x28] sm:$0x3] %vm13698_vm3, %v3538_v20 }
 0x372   :  { %2928 = vst.msk [vmem:[#allocation2 + $0x30] sm:$0xff] %vm13736_vm7, %v2813_v38  ;;  %4509 = vrot.lane.b32.xlu1 %v7852_v16, %s8465_s24  ;;  %3785 = vrot.lane.b32.xlu0 %v11015_v34, %s8463_s12  ;;  %vm13697_vm7 = vcmask 812800   ;;  %v2975_v38 = vld [vmem:[%s13670_s0 + $0x69] sm:$0x3] }
 0x374   :  { %v4502_v10 = vpop.permute.xlu1 %4501  ;;  %v3778_v32 = vpop.permute.xlu0 %3777 }
 0x375   :  { %v5625_v55 = vld [vmem:[#allocation2] sm:$0xff]  ;;  %4620 = vst.msk [vmem:[#allocation2 + $0x18] sm:$0x3] %vm13695_vm10, %v4502_v10  ;;  %vm13738_vm10 = vcmask 452000  }
 0x376   :  { %3895 = vst.msk [vmem:[#allocation2 + $0x20] sm:$0xff] %vm13694_vm5, %v3778_v32  ;;  %8182 = vmatprep.mubr.msk.f32.mxu0 %vm13709_vm4, %v5625_v55  ;;  %5473 = vrot.lane.b32.xlu1 %v8010_v15, %s13730_s25  ;;  %vm13737_vm5 = vcmask 490944   ;;  %v11263_v15 = vld [vmem:[%s13670_s0 + $0x70] sm:$0xff] }
 0x377   :  { %4749 = vrot.lane.b32.xlu0 %v10893_v60, %s8465_s24 }
 0x378   :  { %v5466_v36 = vpop.permute.xlu1 %5465  ;;  %v4742_v5 = vpop.permute.xlu0 %4741 }
 0x379   :  { %5586 = vst.msk [vmem:[#allocation2 + $0x8] sm:$0x3] %vm13697_vm7, %v5466_v36  ;;  %v7934_v36 = vld [vmem:[%s13670_s0 + $0x58] sm:$0x3] }
 0x37a   :  { %4861 = vst.msk [vmem:[#allocation2 + $0x10] sm:$0xff] %vm13696_vm9, %v4742_v5  ;;  %3062 = vrot.lane.b32.xlu1 %v11084_v22, %s8462_s22  ;;  %vm13739_vm9 = vcmask 583200  }
 0x37b   :  { %2822 = vrot.lane.b32.xlu0 %v2731_v3, %s8462_s22 }
 0x37c   :  { %v3055_v23 = vpop.permute.xlu1 %3054  ;;  %v2815_v47 = vpop.permute.xlu0 %2814 }
 0x37d   :  { %3170 = vst.msk [vmem:[#allocation2 + $0x30] sm:$0xff] %vm13737_vm5, %v3055_v23  ;;  %vm13742_vm5 = vcmask 523744   ;;  %v2251_v23 = vld [vmem:[%s13670_s0 + $0x78] sm:$0x3] }
 0x37e   :  { %2929 = vst.msk [vmem:[#allocation2 + $0x38] sm:$0x3] %vm13738_vm10, %v2815_v47  ;;  %4027 = vrot.lane.b32.xlu1 %v11084_v22, %s8464_s30  ;;  %vm13741_vm10 = vcmask 616000  }
 0x37f   :  { %3787 = vrot.lane.b32.xlu0 %v7734_v11, %s8463_s12 }
 0x380   :  { %v4020_v33 = vpop.permute.xlu1 %4019  ;;  %v3780_v9 = vpop.permute.xlu0 %3779  ;;  %v5626_v44 = vld [vmem:[#allocation2 + $0x8] sm:$0xff] }
 0x381   :  { %4137 = vst.msk [vmem:[#allocation2 + $0x20] sm:$0xff] %vm13702_vm14, %v4020_v33  ;;  %8183 = vmatmul.mubr.msk.f32.vlgmr.msra.gmra.mrb[0].mxu0 %vm13709_vm4, %v5626_v44  ;;  %v7658_v33 = vld [vmem:[%s13670_s0 + $0x78] sm:$0x3] }
 0x382   :  { %3896 = vst.msk [vmem:[#allocation2 + $0x28] sm:$0x3] %vm13739_vm9, %v3780_v9  ;;  %4991 = vrot.lane.b32.xlu1 %v10893_v60, %s8465_s24  ;;  %v7774_v60 = vld [vmem:[%s13670_s0 + $0x59] sm:$0x3]  ;;  %vm13740_vm9 = vcmask 392544  }
 0x383   :  { %4751 = vrot.lane.b32.xlu0 %v7892_v1, %s8465_s24 }
 0x384   :  { %v4984_v53 = vpop.permute.xlu1 %4983  ;;  %v4744_v18 = vpop.permute.xlu0 %4743 }
 0x385   :  { %5103 = vst.msk [vmem:[#allocation2 + $0x10] sm:$0xff] %vm13701_vm13, %v4984_v53 }
 0x386   :  { %4862 = vst.msk [vmem:[#allocation2 + $0x18] sm:$0x3] %vm13700_vm12, %v4744_v18  ;;  %3064 = vrot.lane.b32.xlu1 %v2973_v31, %s8462_s22  ;;  %v7816_v31 = vld [vmem:[%s13670_s0 + $0x69] sm:$0x3] }
 0x387   :  { %2340 = vrot.lane.b32.xlu0 %v11139_v41, %s8461_s18 }
 0x388   :  { %v3057_v46 = vpop.permute.xlu1 %3056  ;;  %v2333_v58 = vpop.permute.xlu0 %2332 }
 0x389   :  { %3171 = vst.msk [vmem:[#allocation2 + $0x38] sm:$0x3] %vm13699_vm15, %v3057_v46 }
 0x38a   :  { %2446 = vst.msk [vmem:[#allocation2 + $0x40] sm:$0xff] %vm13740_vm9, %v2333_v58  ;;  %4029 = vrot.lane.b32.xlu1 %v7774_v60, %s8464_s30  ;;  %vm13743_vm9 = vcmask 654944   ;;  %v7974_v60 = vld [vmem:[%s13670_s0 + $0x59] sm:$0x3] }
 0x38b   :  { %3305 = vrot.lane.b32.xlu0 %v11139_v41, %s8463_s12 }
 0x38c   :  { %v4022_v50 = vpop.permute.xlu1 %4021  ;;  %v3298_v35 = vpop.permute.xlu0 %3297 }
 0x38d   :  { %4138 = vst.msk [vmem:[#allocation2 + $0x28] sm:$0x3] %vm13741_vm10, %v4022_v50  ;;  %vm13744_vm10 = vcmask 386400  }
 0x38e   :  { %3413 = vst.msk [vmem:[#allocation2 + $0x30] sm:$0xff] %vm13742_vm5, %v3298_v35  ;;  %4993 = vrot.lane.b32.xlu1 %v7932_v24, %s8465_s24  ;;  %vm13745_vm5 = vcmask 425344   ;;  %v2493_v24 = vld [vmem:[%s13670_s0 + $0x78] sm:$0x3] }
 0x38f   :  { %4269 = vrot.lane.b32.xlu0 %v11084_v22, %s8464_s30 }
 0x390   :  { %v4986_v52 = vpop.permute.xlu1 %4985  ;;  %v4262_v6 = vpop.permute.xlu0 %4261 }
 0x391   :  { %5104 = vst.msk [vmem:[#allocation2 + $0x18] sm:$0x3] %vm13711_vm11, %v4986_v52  ;;  %v11332_v52 = vld [vmem:[%s13670_s0 + $0x71] sm:$0xff] }
 0x392   :  { %4379 = vst.msk [vmem:[#allocation2 + $0x20] sm:$0xff] %vm13743_vm9, %v4262_v6  ;;  %2342 = vrot.lane.b32.xlu1 %v2249_v13, %s8461_s18  ;;  %vm13746_vm9 = vcmask 780000   ;;  %v7698_v13 = vld [vmem:[%s13670_s0 + $0x78] sm:$0x3] }
 0x393   :  { %5233 = vrot.lane.b32.xlu0 %v10962_v29, %s13730_s25 }
 0x394   :  { %v2335_v17 = vpop.permute.xlu1 %2334  ;;  %v5226_v39 = vpop.permute.xlu0 %5225 }
 0x395   :  { %2447 = vst.msk [vmem:[#allocation2 + $0x48] sm:$0x3] %vm13744_vm10, %v2335_v17  ;;  %vm13747_vm10 = vcmask 687744  }
 0x396   :  { %5345 = vst.msk [vmem:[#allocation2 + $0x10] sm:$0xff] %vm13710_vm0, %v5226_v39  ;;  %3307 = vrot.lane.b32.xlu1 %v7656_v12, %s8463_s12 }
 0x397   :  { %2582 = vrot.lane.b32.xlu0 %v11139_v41, %s8461_s18 }
 0x398   :  { %v3300_v48 = vpop.permute.xlu1 %3299  ;;  %v2575_v0 = vpop.permute.xlu0 %2574 }
 0x399   :  { %3414 = vst.msk [vmem:[#allocation2 + $0x38] sm:$0x3] %vm13714_vm1, %v3300_v48 }
 0x39a   :  { %2688 = vst.msk [vmem:[#allocation2 + $0x40] sm:$0xff] %vm13745_vm5, %v2575_v0  ;;  %4271 = vrot.lane.b32.xlu1 %v7814_v28, %s8464_s30  ;;  %vm13748_vm5 = vcmask 419200   ;;  %v8014_v28 = vld [vmem:[%s13670_s0 + $0x59] sm:$0x3] }
 0x39b   :  { %3547 = vrot.lane.b32.xlu0 %v11139_v41, %s8463_s12 }
 0x39c   :  { %v4264_v40 = vpop.permute.xlu1 %4263  ;;  %v3540_v30 = vpop.permute.xlu0 %3539 }
 0x39d   :  { %4380 = vst.msk [vmem:[#allocation2 + $0x28] sm:$0x3] %vm13712_vm8, %v4264_v40  ;;  %v2735_v40 = vld [vmem:[%s13670_s0 + $0x79] sm:$0x3] }
 0x39e   :  { %3655 = vst.msk [vmem:[#allocation2 + $0x30] sm:$0xff] %vm13713_vm2, %v3540_v30  ;;  %5235 = vrot.lane.b32.xlu1 %v7972_v14, %s13730_s25 }
 0x39f   :  { %4511 = vrot.lane.b32.xlu0 %v11015_v34, %s8465_s24 }
 0x3a0   :  { %v5228_v42 = vpop.permute.xlu1 %5227  ;;  %v4504_v43 = vpop.permute.xlu0 %4503 }
 0x3a1   :  { %5346 = vst.msk [vmem:[#allocation2 + $0x18] sm:$0x3] %vm13746_vm9, %v5228_v42  ;;  %vm13749_vm9 = vcmask 458144   ;;  %v7738_v42 = vld [vmem:[%s13670_s0 + $0x78] sm:$0x3] }
 0x3a2   :  { %4621 = vst.msk [vmem:[#allocation2 + $0x20] sm:$0xff] %vm13747_vm10, %v4504_v43  ;;  %2584 = vrot.lane.b32.xlu1 %v2491_v37, %s8461_s18  ;;  %vm13750_vm10 = vcmask 681600  }
 0x3a3   :  { %5475 = vrot.lane.b32.xlu0 %v10962_v29, %s13730_s25  ;;  %v7854_v29 = vld [vmem:[%s13670_s0 + $0x58] sm:$0x3] }
 0x3a4   :  { %v2577_v4 = vpop.permute.xlu1 %2576  ;;  %v5468_v2 = vpop.permute.xlu0 %5467 }
 0x3a5   :  { %2689 = vst.msk [vmem:[#allocation2 + $0x48] sm:$0x3] %vm13748_vm5, %v2577_v4  ;;  %vm13751_vm5 = vcmask 589344   ;;  %v7896_v4 = vld [vmem:[%s13670_s0 + $0x68] sm:$0x3] }
 0x3a6   :  { %5587 = vst.msk [vmem:[#allocation2 + $0x10] sm:$0xff] %vm13706_vm6, %v5468_v2  ;;  %3549 = vrot.lane.b32.xlu1 %v7696_v49, %s8463_s12 }
 0x3a7   :  { %2824 = vrot.lane.b32.xlu0 %v11208_v62, %s8462_s22 }
 0x3a8   :  { %v3542_v8 = vpop.permute.xlu1 %3541  ;;  %v2817_v51 = vpop.permute.xlu0 %2816 }
 0x3a9   :  { %3656 = vst.msk [vmem:[#allocation2 + $0x38] sm:$0x3] %vm13698_vm3, %v3542_v8 }
 0x3aa   :  { %2930 = vst.msk [vmem:[#allocation2 + $0x40] sm:$0xff] %vm13749_vm9, %v2817_v51  ;;  %4513 = vrot.lane.b32.xlu1 %v7854_v29, %s8465_s24  ;;  %vm13752_vm9 = vcmask 720544   ;;  %v2977_v51 = vld [vmem:[%s13670_s0 + $0x79] sm:$0x3] }
 0x3ab   :  { %3789 = vrot.lane.b32.xlu0 %v11139_v41, %s8463_s12 }
 0x3ac   :  { %v4506_v26 = vpop.permute.xlu1 %4505  ;;  %v3782_v25 = vpop.permute.xlu0 %3781 }
 0x3ad   :  { %v5627_v54 = vld [vmem:[#allocation2 + $0x10] sm:$0xff]  ;;  %4622 = vst.msk [vmem:[#allocation2 + $0x28] sm:$0x3] %vm13750_vm10, %v4506_v26  ;;  %vm13753_vm10 = vcmask 490944  }
 0x3ae   :  { %3897 = vst.msk [vmem:[#allocation2 + $0x30] sm:$0xff] %vm13751_vm5, %v3782_v25  ;;  %8185 = vmatprep.mubr.msk.f32.mxu0 %vm13709_vm4, %v5627_v54  ;;  %5477 = vrot.lane.b32.xlu1 %v8012_v19, %s13730_s25  ;;  %vm13754_vm5 = vcmask 452000   ;;  %v11387_v19 = vld [vmem:[%s13670_s0 + $0x80] sm:$0xff] }
 0x3af   :  { %4753 = vrot.lane.b32.xlu0 %v11015_v34, %s8465_s24 }
 0x3b0   :  { %v5470_v21 = vpop.permute.xlu1 %5469  ;;  %v4746_v27 = vpop.permute.xlu0 %4745 }
 0x3b1   :  { %5588 = vst.msk [vmem:[#allocation2 + $0x18] sm:$0x3] %vm13697_vm7, %v5470_v21  ;;  %v7936_v21 = vld [vmem:[%s13670_s0 + $0x68] sm:$0x3] }
 0x3b2   :  { %4863 = vst.msk [vmem:[#allocation2 + $0x20] sm:$0xff] %vm13752_vm9, %v4746_v27  ;;  %3066 = vrot.lane.b32.xlu1 %v11208_v62, %s8462_s22  ;;  %vm13755_vm9 = vcmask 583200  }
 0x3b3   :  { %2826 = vrot.lane.b32.xlu0 %v2733_v61, %s8462_s22 }
 0x3b4   :  { %v3059_v59 = vpop.permute.xlu1 %3058  ;;  %v2819_v63 = vpop.permute.xlu0 %2818 }
 0x3b5   :  { %3172 = vst.msk [vmem:[#allocation2 + $0x40] sm:$0xff] %vm13753_vm10, %v3059_v59  ;;  %vm13756_vm10 = vcmask 392544   ;;  %v2253_v59 = vld [vmem:[%s13670_s0 + $0x88] sm:$0x3] }
 0x3b6   :  { %2931 = vst.msk [vmem:[#allocation2 + $0x48] sm:$0x3] %vm13754_vm5, %v2819_v63  ;;  %4031 = vrot.lane.b32.xlu1 %v11208_v62, %s8464_s30  ;;  %vm13757_vm5 = vcmask 616000  }
 0x3b7   :  { %3791 = vrot.lane.b32.xlu0 %v7736_v57, %s8463_s12 }
 0x3b8   :  { %v4024_v45 = vpop.permute.xlu1 %4023  ;;  %v3784_v16 = vpop.permute.xlu0 %3783  ;;  %v5628_v20 = vld [vmem:[#allocation2 + $0x18] sm:$0xff] }
 0x3b9   :  { %4139 = vst.msk [vmem:[#allocation2 + $0x30] sm:$0xff] %vm13702_vm14, %v4024_v45  ;;  %8186 = vmatmul.mubr.msk.f32.gmra.mrb[2].mxu0 %vm13709_vm4, %v5628_v20  ;;  %v7660_v45 = vld [vmem:[%s13670_s0 + $0x88] sm:$0x3] }
 0x3ba   :  { %3898 = vst.msk [vmem:[#allocation2 + $0x38] sm:$0x3] %vm13755_vm9, %v3784_v16  ;;  %4995 = vrot.lane.b32.xlu1 %v11015_v34, %s8465_s24  ;;  %v7776_v34 = vld [vmem:[%s13670_s0 + $0x69] sm:$0x3]  ;;  %vm13758_vm9 = vcmask 523744  }
 0x3bb   :  { %4755 = vrot.lane.b32.xlu0 %v7894_v7, %s8465_s24 }
 0x3bc   :  { %v4988_v10 = vpop.permute.xlu1 %4987  ;;  %v4748_v32 = vpop.permute.xlu0 %4747 }
 0x3bd   :  { %5105 = vst.msk [vmem:[#allocation2 + $0x20] sm:$0xff] %vm13701_vm13, %v4988_v10 }
 0x3be   :  { %4864 = vst.msk [vmem:[#allocation2 + $0x28] sm:$0x3] %vm13700_vm12, %v4748_v32  ;;  %3068 = vrot.lane.b32.xlu1 %v2975_v38, %s8462_s22  ;;  %v7818_v38 = vld [vmem:[%s13670_s0 + $0x79] sm:$0x3] }
 0x3bf   :  { %2344 = vrot.lane.b32.xlu0 %v11263_v15, %s8461_s18 }
 0x3c0   :  { %v3061_v55 = vpop.permute.xlu1 %3060  ;;  %v2337_v3 = vpop.permute.xlu0 %2336 }
 0x3c1   :  { %3173 = vst.msk [vmem:[#allocation2 + $0x48] sm:$0x3] %vm13699_vm15, %v3061_v55 }
 0x3c2   :  { %2448 = vst.msk [vmem:[#allocation2 + $0x50] sm:$0xff] %vm13756_vm10, %v2337_v3  ;;  %4033 = vrot.lane.b32.xlu1 %v7776_v34, %s8464_s30  ;;  %vm13759_vm10 = vcmask 654944   ;;  %v7976_v34 = vld [vmem:[%s13670_s0 + $0x69] sm:$0x3] }
 0x3c3   :  { %3309 = vrot.lane.b32.xlu0 %v11263_v15, %s8463_s12 }
 0x3c4   :  { %v4026_v5 = vpop.permute.xlu1 %4025  ;;  %v3302_v11 = vpop.permute.xlu0 %3301 }
 0x3c5   :  { %4140 = vst.msk [vmem:[#allocation2 + $0x38] sm:$0x3] %vm13757_vm5, %v4026_v5  ;;  %vm13760_vm5 = vcmask 386400  }
 0x3c6   :  { %3415 = vst.msk [vmem:[#allocation2 + $0x40] sm:$0xff] %vm13758_vm9, %v3302_v11  ;;  %4997 = vrot.lane.b32.xlu1 %v7934_v36, %s8465_s24  ;;  %vm13761_vm9 = vcmask 425344   ;;  %v2495_v36 = vld [vmem:[%s13670_s0 + $0x88] sm:$0x3] }
 0x3c7   :  { %4273 = vrot.lane.b32.xlu0 %v11208_v62, %s8464_s30 }
 0x3c8   :  { %v4990_v47 = vpop.permute.xlu1 %4989  ;;  %v4266_v1 = vpop.permute.xlu0 %4265 }
 0x3c9   :  { %5106 = vst.msk [vmem:[#allocation2 + $0x28] sm:$0x3] %vm13711_vm11, %v4990_v47  ;;  %v11456_v47 = vld [vmem:[%s13670_s0 + $0x81] sm:$0xff] }
 0x3ca   :  { %4381 = vst.msk [vmem:[#allocation2 + $0x30] sm:$0xff] %vm13759_vm10, %v4266_v1  ;;  %2346 = vrot.lane.b32.xlu1 %v2251_v23, %s8461_s18  ;;  %vm13762_vm10 = vcmask 780000   ;;  %v7700_v23 = vld [vmem:[%s13670_s0 + $0x88] sm:$0x3] }
 0x3cb   :  { %5237 = vrot.lane.b32.xlu0 %v11084_v22, %s13730_s25 }
 0x3cc   :  { %v2339_v9 = vpop.permute.xlu1 %2338  ;;  %v5230_v44 = vpop.permute.xlu0 %5229 }
 0x3cd   :  { %2449 = vst.msk [vmem:[#allocation2 + $0x58] sm:$0x3] %vm13760_vm5, %v2339_v9  ;;  %vm13763_vm5 = vcmask 687744  }
 0x3ce   :  { %5347 = vst.msk [vmem:[#allocation2 + $0x20] sm:$0xff] %vm13710_vm0, %v5230_v44  ;;  %3311 = vrot.lane.b32.xlu1 %v7658_v33, %s8463_s12 }
 0x3cf   :  { %2586 = vrot.lane.b32.xlu0 %v11263_v15, %s8461_s18 }
 0x3d0   :  { %v3304_v53 = vpop.permute.xlu1 %3303  ;;  %v2579_v18 = vpop.permute.xlu0 %2578 }
 0x3d1   :  { %3416 = vst.msk [vmem:[#allocation2 + $0x48] sm:$0x3] %vm13714_vm1, %v3304_v53 }
 0x3d2   :  { %2690 = vst.msk [vmem:[#allocation2 + $0x50] sm:$0xff] %vm13761_vm9, %v2579_v18  ;;  %4275 = vrot.lane.b32.xlu1 %v7816_v31, %s8464_s30  ;;  %vm13764_vm9 = vcmask 419200   ;;  %v8016_v31 = vld [vmem:[%s13670_s0 + $0x69] sm:$0x3] }
 0x3d3   :  { %3551 = vrot.lane.b32.xlu0 %v11263_v15, %s8463_s12 }
 0x3d4   :  { %v4268_v46 = vpop.permute.xlu1 %4267  ;;  %v3544_v58 = vpop.permute.xlu0 %3543 }
 0x3d5   :  { %4382 = vst.msk [vmem:[#allocation2 + $0x38] sm:$0x3] %vm13712_vm8, %v4268_v46  ;;  %v2737_v46 = vld [vmem:[%s13670_s0 + $0x89] sm:$0x3] }
 0x3d6   :  { %3657 = vst.msk [vmem:[#allocation2 + $0x40] sm:$0xff] %vm13713_vm2, %v3544_v58  ;;  %5239 = vrot.lane.b32.xlu1 %v7974_v60, %s13730_s25 }
 0x3d7   :  { %4515 = vrot.lane.b32.xlu0 %v11139_v41, %s8465_s24 }
 0x3d8   :  { %v5232_v50 = vpop.permute.xlu1 %5231  ;;  %v4508_v35 = vpop.permute.xlu0 %4507 }
 0x3d9   :  { %5348 = vst.msk [vmem:[#allocation2 + $0x28] sm:$0x3] %vm13762_vm10, %v5232_v50  ;;  %vm13765_vm10 = vcmask 458144   ;;  %v7740_v50 = vld [vmem:[%s13670_s0 + $0x88] sm:$0x3] }
 0x3da   :  { %4623 = vst.msk [vmem:[#allocation2 + $0x30] sm:$0xff] %vm13763_vm5, %v4508_v35  ;;  %2588 = vrot.lane.b32.xlu1 %v2493_v24, %s8461_s18  ;;  %vm13766_vm5 = vcmask 681600  }
 0x3db   :  { %5479 = vrot.lane.b32.xlu0 %v11084_v22, %s13730_s25  ;;  %v7856_v22 = vld [vmem:[%s13670_s0 + $0x68] sm:$0x3] }
 0x3dc   :  { %v2581_v6 = vpop.permute.xlu1 %2580  ;;  %v5472_v12 = vpop.permute.xlu0 %5471 }
 0x3dd   :  { %2691 = vst.msk [vmem:[#allocation2 + $0x58] sm:$0x3] %vm13764_vm9, %v2581_v6  ;;  %vm13767_vm9 = vcmask 589344   ;;  %v7898_v6 = vld [vmem:[%s13670_s0 + $0x78] sm:$0x3] }
 0x3de   :  { %5589 = vst.msk [vmem:[#allocation2 + $0x20] sm:$0xff] %vm13706_vm6, %v5472_v12  ;;  %3553 = vrot.lane.b32.xlu1 %v7698_v13, %s8463_s12 }
 0x3df   :  { %2828 = vrot.lane.b32.xlu0 %v11332_v52, %s8462_s22 }
 0x3e0   :  { %v3546_v17 = vpop.permute.xlu1 %3545  ;;  %v2821_v39 = vpop.permute.xlu0 %2820 }
 0x3e1   :  { %3658 = vst.msk [vmem:[#allocation2 + $0x48] sm:$0x3] %vm13698_vm3, %v3546_v17 }
 0x3e2   :  { %2932 = vst.msk [vmem:[#allocation2 + $0x50] sm:$0xff] %vm13765_vm10, %v2821_v39  ;;  %4517 = vrot.lane.b32.xlu1 %v7856_v22, %s8465_s24  ;;  %vm13768_vm10 = vcmask 720544   ;;  %v2979_v39 = vld [vmem:[%s13670_s0 + $0x89] sm:$0x3] }
 0x3e3   :  { %3793 = vrot.lane.b32.xlu0 %v11263_v15, %s8463_s12 }
 0x3e4   :  { %v4510_v48 = vpop.permute.xlu1 %4509  ;;  %v3786_v0 = vpop.permute.xlu0 %3785 }
 0x3e5   :  { %v5629_v14 = vld [vmem:[#allocation2 + $0x20] sm:$0xff]  ;;  %4624 = vst.msk [vmem:[#allocation2 + $0x38] sm:$0x3] %vm13766_vm5, %v4510_v48  ;;  %vm13769_vm5 = vcmask 490944  }
 0x3e6   :  { %3899 = vst.msk [vmem:[#allocation2 + $0x40] sm:$0xff] %vm13767_vm9, %v3786_v0  ;;  %8188 = vmatprep.mubr.msk.f32.mxu0 %vm13709_vm4, %v5629_v14  ;;  %5481 = vrot.lane.b32.xlu1 %v8014_v28, %s13730_s25  ;;  %vm13770_vm9 = vcmask 452000   ;;  %v11511_v28 = vld [vmem:[%s13670_s0 + $0x90] sm:$0xff] }
 0x3e7   :  { %4757 = vrot.lane.b32.xlu0 %v11139_v41, %s8465_s24 }
 0x3e8   :  { %v5474_v30 = vpop.permute.xlu1 %5473 }
 0x3e9   :  { %v4750_v37 = vpop.permute.xlu0 %4749  ;;  %5590 = vst.msk [vmem:[#allocation2 + $0x28] sm:$0x3] %vm13697_vm7, %v5474_v30  ;;  %v7938_v30 = vld [vmem:[%s13670_s0 + $0x78] sm:$0x3] }
 0x3ea   :  { %4865 = vst.msk [vmem:[#allocation2 + $0x30] sm:$0xff] %vm13768_vm10, %v4750_v37  ;;  %3070 = vrot.lane.b32.xlu1 %v11332_v52, %s8462_s22  ;;  %vm13771_vm10 = vcmask 583200  }
 0x3eb   :  { %2830 = vrot.lane.b32.xlu0 %v2735_v40, %s8462_s22 }
 0x3ec   :  { %v3063_v43 = vpop.permute.xlu1 %3062 }
 0x3ed   :  { %v2823_v49 = vpop.permute.xlu0 %2822  ;;  %3174 = vst.msk [vmem:[#allocation2 + $0x50] sm:$0xff] %vm13769_vm5, %v3063_v43  ;;  %vm13772_vm5 = vcmask 392544   ;;  %v2255_v43 = vld [vmem:[%s13670_s0 + $0x98] sm:$0x3] }
 0x3ee   :  { %2933 = vst.msk [vmem:[#allocation2 + $0x58] sm:$0x3] %vm13770_vm9, %v2823_v49  ;;  %4035 = vrot.lane.b32.xlu1 %v11332_v52, %s8464_s30  ;;  %vm13773_vm9 = vcmask 616000  }
 0x3ef   :  { %3795 = vrot.lane.b32.xlu0 %v7738_v42, %s8463_s12 }
 0x3f0   :  { %v4028_v2 = vpop.permute.xlu1 %4027  ;;  %v5630_v8 = vld [vmem:[#allocation2 + $0x28] sm:$0xff] }
 0x3f1   :  { %v3788_v29 = vpop.permute.xlu0 %3787  ;;  %4141 = vst.msk [vmem:[#allocation2 + $0x40] sm:$0xff] %vm13702_vm14, %v4028_v2  ;;  %8189 = vmatmul.mubr.msk.f32.gmra.mrb[4].mxu0 %vm13709_vm4, %v5630_v8  ;;  %v7662_v2 = vld [vmem:[%s13670_s0 + $0x98] sm:$0x3] }
 0x3f2   :  { %3900 = vst.msk [vmem:[#allocation2 + $0x48] sm:$0x3] %vm13771_vm10, %v3788_v29  ;;  %4999 = vrot.lane.b32.xlu1 %v11139_v41, %s8465_s24  ;;  %v7778_v41 = vld [vmem:[%s13670_s0 + $0x79] sm:$0x3]  ;;  %vm13774_vm10 = vcmask 523744  }
 0x3f3   :  { %4759 = vrot.lane.b32.xlu0 %v7896_v4, %s8465_s24 }
 0x3f4   :  { %v4992_v26 = vpop.permute.xlu1 %4991 }
 0x3f5   :  { %v4752_v25 = vpop.permute.xlu0 %4751  ;;  %5107 = vst.msk [vmem:[#allocation2 + $0x30] sm:$0xff] %vm13701_vm13, %v4992_v26 }
 0x3f6   :  { %4866 = vst.msk [vmem:[#allocation2 + $0x38] sm:$0x3] %vm13700_vm12, %v4752_v25  ;;  %3072 = vrot.lane.b32.xlu1 %v2977_v51, %s8462_s22  ;;  %v7820_v51 = vld [vmem:[%s13670_s0 + $0x89] sm:$0x3] }
 0x3f7   :  { %2348 = vrot.lane.b32.xlu0 %v11387_v19, %s8461_s18 }
 0x3f8   :  { %v3065_v54 = vpop.permute.xlu1 %3064 }
 0x3f9   :  { %v2341_v61 = vpop.permute.xlu0 %2340  ;;  %3175 = vst.msk [vmem:[#allocation2 + $0x58] sm:$0x3] %vm13699_vm15, %v3065_v54 }
 0x3fa   :  { %2450 = vst.msk [vmem:[#allocation2 + $0x60] sm:$0xff] %vm13772_vm5, %v2341_v61  ;;  %4037 = vrot.lane.b32.xlu1 %v7778_v41, %s8464_s30  ;;  %vm13775_vm5 = vcmask 654944   ;;  %v7978_v41 = vld [vmem:[%s13670_s0 + $0x79] sm:$0x3] }
 0x3fb   :  { %3313 = vrot.lane.b32.xlu0 %v11387_v19, %s8463_s12 }
 0x3fc   :  { %v4030_v27 = vpop.permute.xlu1 %4029 }
 0x3fd   :  { %v3306_v57 = vpop.permute.xlu0 %3305  ;;  %4142 = vst.msk [vmem:[#allocation2 + $0x48] sm:$0x3] %vm13773_vm9, %v4030_v27  ;;  %vm13776_vm9 = vcmask 386400  }
 0x3fe   :  { %3417 = vst.msk [vmem:[#allocation2 + $0x50] sm:$0xff] %vm13774_vm10, %v3306_v57  ;;  %5001 = vrot.lane.b32.xlu1 %v7936_v21, %s8465_s24  ;;  %vm13777_vm10 = vcmask 425344   ;;  %v2497_v21 = vld [vmem:[%s13670_s0 + $0x98] sm:$0x3] }
 0x3ff   :  { %4277 = vrot.lane.b32.xlu0 %v11332_v52, %s8464_s30 }
 0x400   :  { %v4994_v63 = vpop.permute.xlu1 %4993 }
 0x401   :  { %v4270_v7 = vpop.permute.xlu0 %4269  ;;  %5108 = vst.msk [vmem:[#allocation2 + $0x38] sm:$0x3] %vm13711_vm11, %v4994_v63  ;;  %v11580_v63 = vld [vmem:[%s13670_s0 + $0x91] sm:$0xff] }
 0x402   :  { %4383 = vst.msk [vmem:[#allocation2 + $0x40] sm:$0xff] %vm13775_vm5, %v4270_v7  ;;  %2350 = vrot.lane.b32.xlu1 %v2253_v59, %s8461_s18  ;;  %vm13778_vm5 = vcmask 780000   ;;  %v7702_v59 = vld [vmem:[%s13670_s0 + $0x98] sm:$0x3] }
 0x403   :  { %5241 = vrot.lane.b32.xlu0 %v11208_v62, %s13730_s25 }
 0x404   :  { %v2343_v16 = vpop.permute.xlu1 %2342 }
 0x405   :  { %v5234_v20 = vpop.permute.xlu0 %5233  ;;  %2451 = vst.msk [vmem:[#allocation2 + $0x68] sm:$0x3] %vm13776_vm9, %v2343_v16  ;;  %vm13779_vm9 = vcmask 687744  }
 0x406   :  { %5349 = vst.msk [vmem:[#allocation2 + $0x30] sm:$0xff] %vm13710_vm0, %v5234_v20  ;;  %3315 = vrot.lane.b32.xlu1 %v7660_v45, %s8463_s12 }
 0x407   :  { %2590 = vrot.lane.b32.xlu0 %v11387_v19, %s8461_s18 }
 0x408   :  { %v3308_v10 = vpop.permute.xlu1 %3307 }
 0x409   :  { %v2583_v32 = vpop.permute.xlu0 %2582  ;;  %3418 = vst.msk [vmem:[#allocation2 + $0x58] sm:$0x3] %vm13714_vm1, %v3308_v10  ;;  %v11601_v10 = vld [vmem:[%s13672_s2] ss:$0 sm:$0xff] }
 0x40a   :  { %2692 = vst.msk [vmem:[#allocation2 + $0x60] sm:$0xff] %vm13777_vm10, %v2583_v32  ;;  %4279 = vrot.lane.b32.xlu1 %v7818_v38, %s8464_s30  ;;  %vm13780_vm10 = vcmask 419200   ;;  %v8018_v38 = vld [vmem:[%s13670_s0 + $0x79] sm:$0x3] }
 0x40b   :  { %3555 = vrot.lane.b32.xlu0 %v11387_v19, %s8463_s12 }
 0x40c   :  { %v4272_v55 = vpop.permute.xlu1 %4271 }
 0x40d   :  { %v3548_v3 = vpop.permute.xlu0 %3547  ;;  %4384 = vst.msk [vmem:[#allocation2 + $0x48] sm:$0x3] %vm13712_vm8, %v4272_v55 }
 0x40e   :  { %3659 = vst.msk [vmem:[#allocation2 + $0x50] sm:$0xff] %vm13713_vm2, %v3548_v3  ;;  %5243 = vrot.lane.b32.xlu1 %v7976_v34, %s13730_s25 }
 0x40f   :  { %4519 = vrot.lane.b32.xlu0 %v11263_v15, %s8465_s24 }
 0x410   :  { %v5236_v5 = vpop.permute.xlu1 %5235 }
 0x411   :  { %v4512_v11 = vpop.permute.xlu0 %4511  ;;  %5350 = vst.msk [vmem:[#allocation2 + $0x38] sm:$0x3] %vm13778_vm5, %v5236_v5  ;;  %vm13781_vm5 = vcmask 458144  }
 0x412   :  { %4625 = vst.msk [vmem:[#allocation2 + $0x40] sm:$0xff] %vm13779_vm9, %v4512_v11  ;;  %2592 = vrot.lane.b32.xlu1 %v2495_v36, %s8461_s18  ;;  %vm13782_vm9 = vcmask 681600  }
 0x413   :  { %5483 = vrot.lane.b32.xlu0 %v11208_v62, %s13730_s25  ;;  %v7858_v62 = vld [vmem:[%s13670_s0 + $0x78] sm:$0x3] }
 0x414   :  { %v2585_v1 = vpop.permute.xlu1 %2584 }
 0x415   :  { %v5476_v33 = vpop.permute.xlu0 %5475  ;;  %2693 = vst.msk [vmem:[#allocation2 + $0x68] sm:$0x3] %vm13780_vm10, %v2585_v1  ;;  %vm13783_vm10 = vcmask 589344  }
 0x416   :  { %5591 = vst.msk [vmem:[#allocation2 + $0x30] sm:$0xff] %vm13706_vm6, %v5476_v33  ;;  %3557 = vrot.lane.b32.xlu1 %v7700_v23, %s8463_s12  ;;  %v2739_v23 = vld [vmem:[%s13670_s0 + $0x99] sm:$0x3] }
 0x417   :  { %2832 = vrot.lane.b32.xlu0 %v11456_v47, %s8462_s22 }
 0x418   :  { %v3550_v9 = vpop.permute.xlu1 %3549 }
 0x419   :  { %v2825_v44 = vpop.permute.xlu0 %2824  ;;  %3660 = vst.msk [vmem:[#allocation2 + $0x58] sm:$0x3] %vm13698_vm3, %v3550_v9 }
 0x41a   :  { %2934 = vst.msk [vmem:[#allocation2 + $0x60] sm:$0xff] %vm13781_vm5, %v2825_v44  ;;  %4521 = vrot.lane.b32.xlu1 %v7858_v62, %s8465_s24  ;;  %vm13784_vm5 = vcmask 720544   ;;  %v7742_v62 = vld [vmem:[%s13670_s0 + $0x98] sm:$0x3] }
 0x41b   :  { %3797 = vrot.lane.b32.xlu0 %v11387_v19, %s8463_s12 }
 0x41c   :  { %v4514_v53 = vpop.permute.xlu1 %4513 }
 0x41d   :  { %v3790_v18 = vpop.permute.xlu0 %3789  ;;  %v5631_v60 = vld [vmem:[#allocation2 + $0x30] sm:$0xff]  ;;  %4626 = vst.msk [vmem:[#allocation2 + $0x48] sm:$0x3] %vm13782_vm9, %v4514_v53  ;;  %vm13785_vm9 = vcmask 490944  }
 0x41e   :  { %3901 = vst.msk [vmem:[#allocation2 + $0x50] sm:$0xff] %vm13783_vm10, %v3790_v18  ;;  %8191 = vmatprep.mubr.msk.f32.mxu0 %vm13709_vm4, %v5631_v60  ;;  %5485 = vrot.lane.b32.xlu1 %v8016_v31, %s13730_s25  ;;  %vm13786_vm10 = vcmask 452000   ;;  %v7900_v31 = vld [vmem:[%s13670_s0 + $0x88] sm:$0x3] }
 0x41f   :  { %4761 = vrot.lane.b32.xlu0 %v11263_v15, %s8465_s24 }
 0x420   :  { %v5478_v58 = vpop.permute.xlu1 %5477 }
 0x421   :  { %v4754_v24 = vpop.permute.xlu0 %4753  ;;  %5592 = vst.msk [vmem:[#allocation2 + $0x38] sm:$0x3] %vm13697_vm7, %v5478_v58 }
 0x422   :  { %4867 = vst.msk [vmem:[#allocation2 + $0x40] sm:$0xff] %vm13784_vm5, %v4754_v24  ;;  %3074 = vrot.lane.b32.xlu1 %v11456_v47, %s8462_s22  ;;  %vm13787_vm5 = vcmask 583200   ;;  %v2981_v24 = vld [vmem:[%s13670_s0 + $0x99] sm:$0x3] }
 0x423   :  { %2834 = vrot.lane.b32.xlu0 %v2737_v46, %s8462_s22 }
 0x424   :  { %v3067_v35 = vpop.permute.xlu1 %3066 }
 0x425   :  { %v2827_v13 = vpop.permute.xlu0 %2826  ;;  %3176 = vst.msk [vmem:[#allocation2 + $0x60] sm:$0xff] %vm13785_vm9, %v3067_v35  ;;  %vm13788_vm9 = vcmask 392544  }
 0x426   :  { %2935 = vst.msk [vmem:[#allocation2 + $0x68] sm:$0x3] %vm13786_vm10, %v2827_v13  ;;  %4039 = vrot.lane.b32.xlu1 %v11456_v47, %s8464_s30  ;;  %vm13789_vm10 = vcmask 616000  }
 0x427   :  { %3799 = vrot.lane.b32.xlu0 %v7740_v50, %s8463_s12  ;;  %v2256_v50 = vld [vmem:[%s13670_s0 + $0xb0] sm:$0xff] }
 0x428   :  { %v4032_v12 = vpop.permute.xlu1 %4031  ;;  %v5632_v17 = vld [vmem:[#allocation2 + $0x38] sm:$0xff] }
 0x429   :  { %v3792_v22 = vpop.permute.xlu0 %3791  ;;  %4143 = vst.msk [vmem:[#allocation2 + $0x50] sm:$0xff] %vm13702_vm14, %v4032_v12  ;;  %8192 = vmatmul.mubr.msk.f32.gmra.mrb[6].mxu0 %vm13709_vm4, %v5632_v17  ;;  %v7940_v17 = vld [vmem:[%s13670_s0 + $0x88] sm:$0x3] }
 0x42a   :  { %3902 = vst.msk [vmem:[#allocation2 + $0x58] sm:$0x3] %vm13787_vm5, %v3792_v22  ;;  %5003 = vrot.lane.b32.xlu1 %v11263_v15, %s8465_s24  ;;  %v7780_v15 = vld [vmem:[%s13670_s0 + $0x89] sm:$0x3]  ;;  %vm13790_vm5 = vcmask 523744  }
 0x42b   :  { %4763 = vrot.lane.b32.xlu0 %v7898_v6, %s8465_s24  ;;  %v11654_v6 = vld [vmem:[%s13670_s0 + $0xa0] sm:$0xff] }
 0x42c   :  { %v4996_v48 = vpop.permute.xlu1 %4995 }
 0x42d   :  { %v4756_v0 = vpop.permute.xlu0 %4755  ;;  %5109 = vst.msk [vmem:[#allocation2 + $0x40] sm:$0xff] %vm13701_vm13, %v4996_v48 }
 0x42e   :  { %4868 = vst.msk [vmem:[#allocation2 + $0x48] sm:$0x3] %vm13700_vm12, %v4756_v0  ;;  %3076 = vrot.lane.b32.xlu1 %v2979_v39, %s8462_s22  ;;  %v2257_v0 = vld [vmem:[%s13670_s0 + $0xb8] sm:$0x3] }
 0x42f   :  { %2352 = vrot.lane.b32.xlu0 %v11511_v28, %s8461_s18 }
 0x430   :  { %v3069_v14 = vpop.permute.xlu1 %3068 }
 0x431   :  { %v2345_v40 = vpop.permute.xlu0 %2344  ;;  %3177 = vst.msk [vmem:[#allocation2 + $0x68] sm:$0x3] %vm13699_vm15, %v3069_v14 }
 0x432   :  { %2452 = vst.msk [vmem:[#allocation2 + $0x70] sm:$0xff] %vm13788_vm9, %v2345_v40  ;;  %4041 = vrot.lane.b32.xlu1 %v7780_v15, %s8464_s30  ;;  %vm13791_vm9 = vcmask 654944   ;;  %v7664_v40 = vld [vmem:[%s13670_s0 + $0xa8] sm:$0x3] }
 0x433   :  { %3317 = vrot.lane.b32.xlu0 %v11511_v28, %s8463_s12 }
 0x434   :  { %v4034_v37 = vpop.permute.xlu1 %4033 }
 0x435   :  { %v3310_v42 = vpop.permute.xlu0 %3309  ;;  %4144 = vst.msk [vmem:[#allocation2 + $0x58] sm:$0x3] %vm13789_vm10, %v4034_v37  ;;  %vm13792_vm10 = vcmask 386400  }
 0x436   :  { %3419 = vst.msk [vmem:[#allocation2 + $0x60] sm:$0xff] %vm13790_vm5, %v3310_v42  ;;  %5005 = vrot.lane.b32.xlu1 %v7938_v30, %s8465_s24  ;;  %vm13793_vm5 = vcmask 425344   ;;  %v7822_v42 = vld [vmem:[%s13670_s0 + $0x99] sm:$0x3] }
 0x437   :  { %4281 = vrot.lane.b32.xlu0 %v11456_v47, %s8464_s30 }
 0x438   :  { %v4998_v49 = vpop.permute.xlu1 %4997 }
 0x439   :  { %v4274_v4 = vpop.permute.xlu0 %4273  ;;  %5110 = vst.msk [vmem:[#allocation2 + $0x48] sm:$0x3] %vm13711_vm11, %v4998_v49 }
 0x43a   :  { %4385 = vst.msk [vmem:[#allocation2 + $0x50] sm:$0xff] %vm13791_vm9, %v4274_v4  ;;  %2354 = vrot.lane.b32.xlu1 %v2255_v43, %s8461_s18  ;;  %vm13794_vm9 = vcmask 780000   ;;  %v7980_v4 = vld [vmem:[%s13670_s0 + $0x89] sm:$0x3] }
 0x43b   :  { %5245 = vrot.lane.b32.xlu0 %v11332_v52, %s13730_s25 }
 0x43c   :  { %v2347_v29 = vpop.permute.xlu1 %2346 }
 0x43d   :  { %v5238_v8 = vpop.permute.xlu0 %5237  ;;  %2453 = vst.msk [vmem:[#allocation2 + $0x78] sm:$0x3] %vm13792_vm10, %v2347_v29  ;;  %vm13795_vm10 = vcmask 687744  }
 0x43e   :  { %5351 = vst.msk [vmem:[#allocation2 + $0x40] sm:$0xff] %vm13710_vm0, %v5238_v8  ;;  %3319 = vrot.lane.b32.xlu1 %v7662_v2, %s8463_s12  ;;  %v2499_v8 = vld [vmem:[%s13670_s0 + $0xb8] sm:$0x3] }
 0x43f   :  { %2594 = vrot.lane.b32.xlu0 %v11511_v28, %s8461_s18 }
 0x440   :  { %v3312_v26 = vpop.permute.xlu1 %3311 }
 0x441   :  { %v2587_v25 = vpop.permute.xlu0 %2586  ;;  %3420 = vst.msk [vmem:[#allocation2 + $0x68] sm:$0x3] %vm13714_vm1, %v3312_v26 }
 0x442   :  { %2694 = vst.msk [vmem:[#allocation2 + $0x70] sm:$0xff] %vm13793_vm5, %v2587_v25  ;;  %4283 = vrot.lane.b32.xlu1 %v7820_v51, %s8464_s30  ;;  %vm13796_vm5 = vcmask 419200   ;;  %v7704_v25 = vld [vmem:[%s13670_s0 + $0xa8] sm:$0x3] }
 0x443   :  { %3559 = vrot.lane.b32.xlu0 %v11511_v28, %s8463_s12 }
 0x444   :  { %v4276_v54 = vpop.permute.xlu1 %4275 }
 0x445   :  { %v3552_v61 = vpop.permute.xlu0 %3551  ;;  %4386 = vst.msk [vmem:[#allocation2 + $0x58] sm:$0x3] %vm13712_vm8, %v4276_v54 }
 0x446   :  { %3661 = vst.msk [vmem:[#allocation2 + $0x60] sm:$0xff] %vm13713_vm2, %v3552_v61  ;;  %5247 = vrot.lane.b32.xlu1 %v7978_v41, %s13730_s25  ;;  %v2740_v41 = vld [vmem:[%s13670_s0 + $0xb1] sm:$0xff] }
 0x447   :  { %4523 = vrot.lane.b32.xlu0 %v11387_v19, %s8465_s24 }
 0x448   :  { %v5240_v27 = vpop.permute.xlu1 %5239 }
 0x449   :  { %v4516_v57 = vpop.permute.xlu0 %4515  ;;  %5352 = vst.msk [vmem:[#allocation2 + $0x48] sm:$0x3] %vm13794_vm9, %v5240_v27  ;;  %vm13797_vm9 = vcmask 458144  }
 0x44a   :  { %4627 = vst.msk [vmem:[#allocation2 + $0x50] sm:$0xff] %vm13795_vm10, %v4516_v57  ;;  %2596 = vrot.lane.b32.xlu1 %v2497_v21, %s8461_s18  ;;  %vm13798_vm10 = vcmask 681600   ;;  %v8020_v57 = vld [vmem:[%s13670_s0 + $0x89] sm:$0x3] }
 0x44b   :  { %5487 = vrot.lane.b32.xlu0 %v11332_v52, %s13730_s25  ;;  %v7860_v52 = vld [vmem:[%s13670_s0 + $0x88] sm:$0x3] }
 0x44c   :  { %v2589_v7 = vpop.permute.xlu1 %2588 }
 0x44d   :  { %v5480_v45 = vpop.permute.xlu0 %5479  ;;  %2695 = vst.msk [vmem:[#allocation2 + $0x78] sm:$0x3] %vm13796_vm5, %v2589_v7  ;;  %vm13799_vm5 = vcmask 589344  }
 0x44e   :  { %5593 = vst.msk [vmem:[#allocation2 + $0x40] sm:$0xff] %vm13706_vm6, %v5480_v45  ;;  %3561 = vrot.lane.b32.xlu1 %v7702_v59, %s8463_s12 }
 0x44f   :  { %2836 = vrot.lane.b32.xlu0 %v11580_v63, %s8462_s22 }
 0x450   :  { %v3554_v16 = vpop.permute.xlu1 %3553 }
 0x451   :  { %v2829_v20 = vpop.permute.xlu0 %2828  ;;  %3662 = vst.msk [vmem:[#allocation2 + $0x68] sm:$0x3] %vm13698_vm3, %v3554_v16 }
 0x452   :  { %2936 = vst.msk [vmem:[#allocation2 + $0x70] sm:$0xff] %vm13797_vm9, %v2829_v20  ;;  %4525 = vrot.lane.b32.xlu1 %v7860_v52, %s8465_s24  ;;  %vm13800_vm9 = vcmask 720544  }
 0x453   :  { %3801 = vrot.lane.b32.xlu0 %v11511_v28, %s8463_s12 }
 0x454   :  { %v4518_v32 = vpop.permute.xlu1 %4517  ;;  %v8184_v3 = vpop.f32.mrb[0].mxu0 }
 0x455   :  { %v3794_v34 = vpop.permute.xlu0 %3793  ;;  %v5633_v55 = vld [vmem:[#allocation2 + $0x40] sm:$0xff]  ;;  %4628 = vst.msk [vmem:[#allocation2 + $0x58] sm:$0x3] %vm13798_vm10, %v4518_v32  ;;  %v5882_v36 = vadd.f32 %v8184_v3, %v11601_v10  ;;  %v5876_v5 = vpop.f32.mrb[1].mxu0  ;;  %vm13801_vm10 = vcmask 490944  }
 0x456   :  { %3903 = vst.msk [vmem:[#allocation2 + $0x60] sm:$0xff] %vm13799_vm5, %v3794_v34  ;;  %8194 = vmatprep.mubr.msk.f32.mxu0 %vm13709_vm4, %v5633_v55  ;;  %5489 = vrot.lane.b32.xlu1 %v8018_v38, %s13730_s25  ;;  %v5877_v11 = vadd.f32 %v11601_v10, %v5876_v5  ;;  %vm13802_vm5 = vcmask 452000   ;;  %v2741_v32 = vld [vmem:[%s13670_s0 + $0xb9] sm:$0x3]  ;;  %v11747_v3 = vld [vmem:[%s13670_s0 + $0xa1] sm:$0xff] }
 0x457   :  { %4765 = vrot.lane.b32.xlu0 %v11387_v19, %s8465_s24  ;;  %8345 = vtanh.f32 %v5882_v36  ;;  %v7744_v36 = vld [vmem:[%s13670_s0 + $0xa8] sm:$0x3] }
 0x458   :  { %v5482_v1 = vpop.permute.xlu1 %5481  ;;  %8347 = vtanh.f32 %v5877_v11 }
 0x459   :  { %v4758_v33 = vpop.permute.xlu0 %4757  ;;  %5594 = vst.msk [vmem:[#allocation2 + $0x48] sm:$0x3] %vm13697_vm7, %v5482_v1  ;;  %vm13803_vm7 = vcmask 583200  }
 0x45a   :  { %4869 = vst.msk [vmem:[#allocation2 + $0x50] sm:$0xff] %vm13800_vm9, %v4758_v33  ;;  %3078 = vrot.lane.b32.xlu1 %v11580_v63, %s8462_s22  ;;  %vm6115_vm9 = vcmask 48128  }
 0x45b   :  { %2838 = vrot.lane.b32.xlu0 %v2739_v23, %s8462_s22  ;;  %v7902_v23 = vld [vmem:[%s13670_s0 + $0x98] sm:$0x3] }
 0x45c   :  { %v3071_v9 = vpop.permute.xlu1 %3070 }
 0x45d   :  { %v2831_v44 = vpop.permute.xlu0 %2830  ;;  %3178 = vst.msk [vmem:[#allocation2 + $0x70] sm:$0xff] %vm13801_vm10, %v3071_v9  ;;  %vm13805_vm10 = vcmask 616000  }
 0x45e   :  { %2937 = vst.msk [vmem:[#allocation2 + $0x78] sm:$0x3] %vm13802_vm5, %v2831_v44  ;;  %4043 = vrot.lane.b32.xlu1 %v11580_v63, %s8464_s30  ;;  %vm13806_vm5 = vcmask 523744  }
 0x45f   :  { %3803 = vrot.lane.b32.xlu0 %v7742_v62, %s8463_s12 }
 0x460   :  { %v4036_v53 = vpop.permute.xlu1 %4035  ;;  %v5634_v60 = vld [vmem:[#allocation2 + $0x48] sm:$0xff] }
 0x461   :  { %v3796_v18 = vpop.permute.xlu0 %3795  ;;  %4145 = vst.msk [vmem:[#allocation2 + $0x60] sm:$0xff] %vm13702_vm14, %v4036_v53  ;;  %8195 = vmatmul.mubr.msk.f32.gmra.mrb[8].mxu0 %vm13709_vm4, %v5634_v60  ;;  %v8346_v46 = vpop.eup %8345  ;;  %v11773_v53 = vld [vmem:[%s13670_s0 + $0xc0] sm:$0xff] }
 0x462   :  { %3904 = vst.msk [vmem:[#allocation2 + $0x68] sm:$0x3] %vm13803_vm7, %v3796_v18  ;;  %5007 = vrot.lane.b32.xlu1 %v11387_v19, %s8465_s24  ;;  %v8348_v58 = vpop.eup %8347  ;;  %v7782_v19 = vld [vmem:[%s13670_s0 + $0x99] sm:$0x3]  ;;  %vm13804_vm7 = vcmask 392544  }
 0x463   :  { %4767 = vrot.lane.b32.xlu0 %v7900_v31, %s8465_s24  ;;  %6117 = vst.msk [vmem:[#allocation3 + $0x8] sm:$0xff] %vm6115_vm9, %v8346_v46  ;;  %6116 = vst.msk [vmem:[#allocation3] sm:$0xff] %vm6115_vm9, %v8348_v58  ;;  %v2983_v31 = vld [vmem:[%s13670_s0 + $0xb9] sm:$0x3] }
 0x464   :  { %v5000_v35 = vpop.permute.xlu1 %4999 }
 0x465   :  { %v4760_v13 = vpop.permute.xlu0 %4759  ;;  %5111 = vst.msk [vmem:[#allocation2 + $0x50] sm:$0xff] %vm13701_vm13, %v5000_v35 }
 0x466   :  { %4870 = vst.msk [vmem:[#allocation2 + $0x58] sm:$0x3] %vm13700_vm12, %v4760_v13  ;;  %3080 = vrot.lane.b32.xlu1 %v2981_v24, %s8462_s22  ;;  %v7942_v24 = vld [vmem:[%s13670_s0 + $0x98] sm:$0x3]  ;;  %v2259_v13 = vld [vmem:[%s13670_s0 + $0xc8] sm:$0x3] }
 0x467   :  { %2356 = vrot.lane.b32.xlu0 %v2256_v50, %s8461_s18 }
 0x468   :  { %v3073_v12 = vpop.permute.xlu1 %3072 }
 0x469   :  { %v2349_v22 = vpop.permute.xlu0 %2348  ;;  %3179 = vst.msk [vmem:[#allocation2 + $0x78] sm:$0x3] %vm13699_vm15, %v3073_v12 }
 0x46a   :  { %2454 = vst.msk [vmem:[#allocation2 + $0x80] sm:$0xff] %vm13804_vm7, %v2349_v22  ;;  %4045 = vrot.lane.b32.xlu1 %v7782_v19, %s8464_s30  ;;  %vm13807_vm7 = vcmask 654944   ;;  %v7666_v22 = vld [vmem:[%s13670_s0 + $0xc8] sm:$0x3] }
 0x46b   :  { %3321 = vrot.lane.b32.xlu0 %v11654_v6, %s8463_s12 }
 0x46c   :  { %v4038_v39 = vpop.permute.xlu1 %4037 }
 0x46d   :  { %v3314_v48 = vpop.permute.xlu0 %3313  ;;  %4146 = vst.msk [vmem:[#allocation2 + $0x68] sm:$0x3] %vm13805_vm10, %v4038_v39  ;;  %vm13808_vm10 = vcmask 386400  }
 0x46e   :  { %3421 = vst.msk [vmem:[#allocation2 + $0x70] sm:$0xff] %vm13806_vm5, %v3314_v48  ;;  %5009 = vrot.lane.b32.xlu1 %v7940_v17, %s8465_s24  ;;  %vm13809_vm5 = vcmask 425344   ;;  %v7824_v48 = vld [vmem:[%s13670_s0 + $0xa9] sm:$0x3] }
 0x46f   :  { %4285 = vrot.lane.b32.xlu0 %v11580_v63, %s8464_s30 }
 0x470   :  { %v5002_v15 = vpop.permute.xlu1 %5001 }
 0x471   :  { %v4278_v14 = vpop.permute.xlu0 %4277  ;;  %5112 = vst.msk [vmem:[#allocation2 + $0x58] sm:$0x3] %vm13711_vm11, %v5002_v15 }
 0x472   :  { %4387 = vst.msk [vmem:[#allocation2 + $0x60] sm:$0xff] %vm13807_vm7, %v4278_v14  ;;  %2358 = vrot.lane.b32.xlu1 %v2257_v0, %s8461_s18  ;;  %vm13810_vm7 = vcmask 780000   ;;  %v7982_v14 = vld [vmem:[%s13670_s0 + $0x99] sm:$0x3] }
 0x473   :  { %5249 = vrot.lane.b32.xlu0 %v11456_v47, %s13730_s25 }
 0x474   :  { %v2351_v30 = vpop.permute.xlu1 %2350 }
 0x475   :  { %v5242_v37 = vpop.permute.xlu0 %5241  ;;  %2455 = vst.msk [vmem:[#allocation2 + $0x88] sm:$0x3] %vm13808_vm10, %v2351_v30  ;;  %vm13811_vm10 = vcmask 687744  }
 0x476   :  { %5353 = vst.msk [vmem:[#allocation2 + $0x50] sm:$0xff] %vm13710_vm0, %v5242_v37  ;;  %3323 = vrot.lane.b32.xlu1 %v7664_v40, %s8463_s12  ;;  %v2501_v37 = vld [vmem:[%s13670_s0 + $0xc8] sm:$0x3] }
 0x477   :  { %2598 = vrot.lane.b32.xlu0 %v2256_v50, %s8461_s18 }
 0x478   :  { %v3316_v43 = vpop.permute.xlu1 %3315 }
 0x479   :  { %v2591_v49 = vpop.permute.xlu0 %2590  ;;  %3422 = vst.msk [vmem:[#allocation2 + $0x78] sm:$0x3] %vm13714_vm1, %v3316_v43 }
 0x47a   :  { %2696 = vst.msk [vmem:[#allocation2 + $0x80] sm:$0xff] %vm13809_vm5, %v2591_v49  ;;  %4287 = vrot.lane.b32.xlu1 %v7822_v42, %s8464_s30  ;;  %vm13812_vm5 = vcmask 419200   ;;  %v7706_v49 = vld [vmem:[%s13670_s0 + $0xc8] sm:$0x3] }
 0x47b   :  { %3563 = vrot.lane.b32.xlu0 %v11654_v6, %s8463_s12 }
 0x47c   :  { %v4280_v2 = vpop.permute.xlu1 %4279 }
 0x47d   :  { %v3556_v29 = vpop.permute.xlu0 %3555  ;;  %4388 = vst.msk [vmem:[#allocation2 + $0x68] sm:$0x3] %vm13712_vm8, %v4280_v2 }
 0x47e   :  { %3663 = vst.msk [vmem:[#allocation2 + $0x70] sm:$0xff] %vm13713_vm2, %v3556_v29  ;;  %5251 = vrot.lane.b32.xlu1 %v7980_v4, %s13730_s25  ;;  %v11843_v4 = vld [vmem:[%s13670_s0 + $0xc1] sm:$0xff] }
 0x47f   :  { %4527 = vrot.lane.b32.xlu0 %v11511_v28, %s8465_s24 }
 0x480   :  { %v5244_v51 = vpop.permute.xlu1 %5243 }
 0x481   :  { %v4520_v26 = vpop.permute.xlu0 %4519  ;;  %5354 = vst.msk [vmem:[#allocation2 + $0x58] sm:$0x3] %vm13810_vm7, %v5244_v51  ;;  %vm13813_vm7 = vcmask 458144  }
 0x482   :  { %4629 = vst.msk [vmem:[#allocation2 + $0x60] sm:$0xff] %vm13811_vm10, %v4520_v26  ;;  %2600 = vrot.lane.b32.xlu1 %v2499_v8, %s8461_s18  ;;  %vm13814_vm10 = vcmask 681600   ;;  %v8022_v26 = vld [vmem:[%s13670_s0 + $0x99] sm:$0x3] }
 0x483   :  { %5491 = vrot.lane.b32.xlu0 %v11456_v47, %s13730_s25  ;;  %v7862_v47 = vld [vmem:[%s13670_s0 + $0x98] sm:$0x3] }
 0x484   :  { %v2593_v54 = vpop.permute.xlu1 %2592 }
 0x485   :  { %v5484_v61 = vpop.permute.xlu0 %5483  ;;  %2697 = vst.msk [vmem:[#allocation2 + $0x88] sm:$0x3] %vm13812_vm5, %v2593_v54  ;;  %vm13815_vm5 = vcmask 589344  }
 0x486   :  { %5595 = vst.msk [vmem:[#allocation2 + $0x50] sm:$0xff] %vm13706_vm6, %v5484_v61  ;;  %3565 = vrot.lane.b32.xlu1 %v7704_v25, %s8463_s12 }
 0x487   :  { %2840 = vrot.lane.b32.xlu0 %v2740_v41, %s8462_s22 }
 0x488   :  { %v3558_v21 = vpop.permute.xlu1 %3557 }
 0x489   :  { %v2833_v27 = vpop.permute.xlu0 %2832  ;;  %3664 = vst.msk [vmem:[#allocation2 + $0x78] sm:$0x3] %vm13698_vm3, %v3558_v21 }
 0x48a   :  { %2938 = vst.msk [vmem:[#allocation2 + $0x80] sm:$0xff] %vm13813_vm7, %v2833_v27  ;;  %4529 = vrot.lane.b32.xlu1 %v7862_v47, %s8465_s24  ;;  %vm13816_vm7 = vcmask 812800  }
 0x48b   :  { %3805 = vrot.lane.b32.xlu0 %v11654_v6, %s8463_s12 }
 0x48c   :  { %v4522_v59 = vpop.permute.xlu1 %4521  ;;  %v8187_v52 = vpop.f32.mrb[2].mxu0 }
 0x48d   :  { %v3798_v7 = vpop.permute.xlu0 %3797  ;;  %v5635_v45 = vld [vmem:[#allocation2 + $0x50] sm:$0xff]  ;;  %4630 = vst.msk [vmem:[#allocation2 + $0x68] sm:$0x3] %vm13814_vm10, %v4522_v59  ;;  %v5892_v16 = vadd.f32 %v8187_v52, %v11601_v10  ;;  %v5886_v20 = vpop.f32.mrb[3].mxu0  ;;  %vm13817_vm10 = vcmask 720544  }
 0x48e   :  { %3905 = vst.msk [vmem:[#allocation2 + $0x70] sm:$0xff] %vm13815_vm5, %v3798_v7  ;;  %8197 = vmatprep.mubr.msk.f32.mxu0 %vm13709_vm4, %v5635_v45  ;;  %5493 = vrot.lane.b32.xlu1 %v8020_v57, %s13730_s25  ;;  %v5887_v38 = vadd.f32 %v11601_v10, %v5886_v20  ;;  %vm13818_vm5 = vcmask 490944   ;;  %v2743_v57 = vld [vmem:[%s13670_s0 + $0xc9] sm:$0x3] }
 0x48f   :  { %4769 = vrot.lane.b32.xlu0 %v11511_v28, %s8465_s24  ;;  %8349 = vtanh.f32 %v5892_v16  ;;  %v7746_v45 = vld [vmem:[%s13670_s0 + $0xc8] sm:$0x3] }
 0x490   :  { %v5486_v34 = vpop.permute.xlu1 %5485  ;;  %8351 = vtanh.f32 %v5887_v38  ;;  %v7904_v20 = vld [vmem:[%s13670_s0 + $0xa8] sm:$0x3] }
 0x491   :  { %v4762_v55 = vpop.permute.xlu0 %4761  ;;  %5596 = vst.msk [vmem:[#allocation2 + $0x58] sm:$0x3] %vm13816_vm7, %v5486_v34  ;;  %vm13819_vm7 = vcmask 452000  }
 0x492   :  { %4871 = vst.msk [vmem:[#allocation2 + $0x60] sm:$0xff] %vm13817_vm10, %v4762_v55  ;;  %3082 = vrot.lane.b32.xlu1 %v2740_v41, %s8462_s22  ;;  %vm13820_vm10 = vcmask 583200  }
 0x493   :  { %2842 = vrot.lane.b32.xlu0 %v2741_v32, %s8462_s22 }
 0x494   :  { %v3075_v5 = vpop.permute.xlu1 %3074 }
 0x495   :  { %v2835_v11 = vpop.permute.xlu0 %2834  ;;  %3180 = vst.msk [vmem:[#allocation2 + $0x80] sm:$0xff] %vm13818_vm5, %v3075_v5  ;;  %vm13821_vm5 = vcmask 392544   ;;  %v2985_v5 = vld [vmem:[%s13670_s0 + $0xc9] sm:$0x3] }
 0x496   :  { %2939 = vst.msk [vmem:[#allocation2 + $0x88] sm:$0x3] %vm13819_vm7, %v2835_v11  ;;  %4047 = vrot.lane.b32.xlu1 %v11747_v3, %s8464_s30  ;;  %vm13822_vm7 = vcmask 616000   ;;  %v11901_v11 = vld [vmem:[%s13670_s0 + $0xd0] sm:$0xff] }
 0x497   :  { %3807 = vrot.lane.b32.xlu0 %v7744_v36, %s8463_s12 }
 0x498   :  { %v4040_v1 = vpop.permute.xlu1 %4039  ;;  %v5636_v62 = vld [vmem:[#allocation2 + $0x58] sm:$0xff] }
 0x499   :  { %v3800_v33 = vpop.permute.xlu0 %3799  ;;  %4147 = vst.msk [vmem:[#allocation2 + $0x70] sm:$0xff] %vm13702_vm14, %v4040_v1  ;;  %8198 = vmatmul.mubr.msk.f32.gmra.mrb[10].mxu0 %vm13709_vm4, %v5636_v62  ;;  %v8350_v9 = vpop.eup %8349 }
 0x49a   :  { %3906 = vst.msk [vmem:[#allocation2 + $0x78] sm:$0x3] %vm13820_vm10, %v3800_v33  ;;  %5011 = vrot.lane.b32.xlu1 %v11511_v28, %s8465_s24  ;;  %v8352_v44 = vpop.eup %8351  ;;  %v7784_v28 = vld [vmem:[%s13670_s0 + $0xa9] sm:$0x3]  ;;  %vm13823_vm10 = vcmask 523744  }
 0x49b   :  { %4771 = vrot.lane.b32.xlu0 %v7902_v23, %s8465_s24  ;;  %6119 = vst.msk [vmem:[#allocation3 + $0x18] sm:$0xff] %vm6115_vm9, %v8350_v9  ;;  %6118 = vst.msk [vmem:[#allocation3 + $0x10] sm:$0xff] %vm6115_vm9, %v8352_v44  ;;  %v7944_v9 = vld [vmem:[%s13670_s0 + $0xa8] sm:$0x3] }
 0x49c   :  { %v5004_v18 = vpop.permute.xlu1 %5003 }
 0x49d   :  { %v4764_v60 = vpop.permute.xlu0 %4763  ;;  %5113 = vst.msk [vmem:[#allocation2 + $0x60] sm:$0xff] %vm13701_vm13, %v5004_v18  ;;  %v2261_v18 = vld [vmem:[%s13670_s0 + $0xd8] sm:$0x3] }
 0x49e   :  { %4872 = vst.msk [vmem:[#allocation2 + $0x68] sm:$0x3] %vm13700_vm12, %v4764_v60  ;;  %3084 = vrot.lane.b32.xlu1 %v2983_v31, %s8462_s22 }
 0x49f   :  { %2360 = vrot.lane.b32.xlu0 %v11773_v53, %s8461_s18 }
 0x4a0   :  { %v3077_v46 = vpop.permute.xlu1 %3076 }
 0x4a1   :  { %v2353_v58 = vpop.permute.xlu0 %2352  ;;  %3181 = vst.msk [vmem:[#allocation2 + $0x88] sm:$0x3] %vm13699_vm15, %v3077_v46  ;;  %v7668_v46 = vld [vmem:[%s13670_s0 + $0xd8] sm:$0x3] }
 0x4a2   :  { %2456 = vst.msk [vmem:[#allocation2 + $0x90] sm:$0xff] %vm13821_vm5, %v2353_v58  ;;  %4049 = vrot.lane.b32.xlu1 %v7784_v28, %s8464_s30  ;;  %vm13824_vm5 = vcmask 654944  }
 0x4a3   :  { %3325 = vrot.lane.b32.xlu0 %v11773_v53, %s8463_s12 }
 0x4a4   :  { %v4042_v50 = vpop.permute.xlu1 %4041 }
 0x4a5   :  { %v3318_v35 = vpop.permute.xlu0 %3317  ;;  %4148 = vst.msk [vmem:[#allocation2 + $0x78] sm:$0x3] %vm13822_vm7, %v4042_v50  ;;  %vm13825_vm7 = vcmask 386400   ;;  %v7826_v50 = vld [vmem:[%s13670_s0 + $0xc9] sm:$0x3] }
 0x4a6   :  { %3423 = vst.msk [vmem:[#allocation2 + $0x80] sm:$0xff] %vm13823_vm10, %v3318_v35  ;;  %5013 = vrot.lane.b32.xlu1 %v7942_v24, %s8465_s24  ;;  %vm13826_vm10 = vcmask 425344  }
 0x4a7   :  { %4289 = vrot.lane.b32.xlu0 %v11747_v3, %s8464_s30 }
 0x4a8   :  { %v5006_v19 = vpop.permute.xlu1 %5005 }
 0x4a9   :  { %v4282_v12 = vpop.permute.xlu0 %4281  ;;  %5114 = vst.msk [vmem:[#allocation2 + $0x68] sm:$0x3] %vm13711_vm11, %v5006_v19  ;;  %v7984_v19 = vld [vmem:[%s13670_s0 + $0xa9] sm:$0x3] }
 0x4aa   :  { %4389 = vst.msk [vmem:[#allocation2 + $0x70] sm:$0xff] %vm13824_vm5, %v4282_v12  ;;  %2362 = vrot.lane.b32.xlu1 %v2259_v13, %s8461_s18  ;;  %vm13827_vm5 = vcmask 780000  }
 0x4ab   :  { %5253 = vrot.lane.b32.xlu0 %v11580_v63, %s13730_s25 }
 0x4ac   :  { %v2355_v17 = vpop.permute.xlu1 %2354 }
 0x4ad   :  { %v5246_v39 = vpop.permute.xlu0 %5245  ;;  %2457 = vst.msk [vmem:[#allocation2 + $0x98] sm:$0x3] %vm13825_vm7, %v2355_v17  ;;  %vm13828_vm7 = vcmask 687744   ;;  %v2503_v17 = vld [vmem:[%s13670_s0 + $0xd8] sm:$0x3] }
 0x4ae   :  { %5355 = vst.msk [vmem:[#allocation2 + $0x60] sm:$0xff] %vm13710_vm0, %v5246_v39  ;;  %3327 = vrot.lane.b32.xlu1 %v7666_v22, %s8463_s12 }
 0x4af   :  { %2602 = vrot.lane.b32.xlu0 %v11773_v53, %s8461_s18 }
 0x4b0   :  { %v3320_v0 = vpop.permute.xlu1 %3319 }
 0x4b1   :  { %v2595_v15 = vpop.permute.xlu0 %2594  ;;  %3424 = vst.msk [vmem:[#allocation2 + $0x88] sm:$0x3] %vm13714_vm1, %v3320_v0  ;;  %v7708_v0 = vld [vmem:[%s13670_s0 + $0xd8] sm:$0x3] }
 0x4b2   :  { %2698 = vst.msk [vmem:[#allocation2 + $0x90] sm:$0xff] %vm13826_vm10, %v2595_v15  ;;  %4291 = vrot.lane.b32.xlu1 %v7824_v48, %s8464_s30  ;;  %vm13829_vm10 = vcmask 419200   ;;  %v11971_v15 = vld [vmem:[%s13670_s0 + $0xd1] sm:$0xff] }
 0x4b3   :  { %3567 = vrot.lane.b32.xlu0 %v11773_v53, %s8463_s12 }
 0x4b4   :  { %v4284_v40 = vpop.permute.xlu1 %4283 }
 0x4b5   :  { %v3560_v30 = vpop.permute.xlu0 %3559  ;;  %4390 = vst.msk [vmem:[#allocation2 + $0x78] sm:$0x3] %vm13712_vm8, %v4284_v40 }
 0x4b6   :  { %3665 = vst.msk [vmem:[#allocation2 + $0x80] sm:$0xff] %vm13713_vm2, %v3560_v30  ;;  %5255 = vrot.lane.b32.xlu1 %v7982_v14, %s13730_s25 }
 0x4b7   :  { %4531 = vrot.lane.b32.xlu0 %v11654_v6, %s8465_s24 }
 0x4b8   :  { %v5248_v42 = vpop.permute.xlu1 %5247 }
 0x4b9   :  { %v4524_v43 = vpop.permute.xlu0 %4523  ;;  %5356 = vst.msk [vmem:[#allocation2 + $0x68] sm:$0x3] %vm13827_vm5, %v5248_v42  ;;  %vm13830_vm5 = vcmask 458144   ;;  %v8024_v42 = vld [vmem:[%s13670_s0 + $0xa9] sm:$0x3] }
 0x4ba   :  { %4631 = vst.msk [vmem:[#allocation2 + $0x70] sm:$0xff] %vm13828_vm7, %v4524_v43  ;;  %2604 = vrot.lane.b32.xlu1 %v2501_v37, %s8461_s18  ;;  %vm13831_vm7 = vcmask 681600  }
 0x4bb   :  { %5495 = vrot.lane.b32.xlu0 %v11580_v63, %s13730_s25  ;;  %v7864_v63 = vld [vmem:[%s13670_s0 + $0xa8] sm:$0x3] }
 0x4bc   :  { %v2597_v2 = vpop.permute.xlu1 %2596 }
 0x4bd   :  { %v5488_v29 = vpop.permute.xlu0 %5487  ;;  %2699 = vst.msk [vmem:[#allocation2 + $0x98] sm:$0x3] %vm13829_vm10, %v2597_v2  ;;  %vm13832_vm10 = vcmask 589344  }
 0x4be   :  { %5597 = vst.msk [vmem:[#allocation2 + $0x60] sm:$0xff] %vm13706_vm6, %v5488_v29  ;;  %3569 = vrot.lane.b32.xlu1 %v7706_v49, %s8463_s12 }
 0x4bf   :  { %2844 = vrot.lane.b32.xlu0 %v11843_v4, %s8462_s22 }
 0x4c0   :  { %v3562_v8 = vpop.permute.xlu1 %3561 }
 0x4c1   :  { %v2837_v51 = vpop.permute.xlu0 %2836  ;;  %3666 = vst.msk [vmem:[#allocation2 + $0x88] sm:$0x3] %vm13698_vm3, %v3562_v8  ;;  %vm13836_vm3 = vcmask 452000  }
 0x4c2   :  { %2940 = vst.msk [vmem:[#allocation2 + $0x90] sm:$0xff] %vm13830_vm5, %v2837_v51  ;;  %4533 = vrot.lane.b32.xlu1 %v7864_v63, %s8465_s24  ;;  %vm13833_vm5 = vcmask 812800  }
 0x4c3   :  { %3809 = vrot.lane.b32.xlu0 %v11773_v53, %s8463_s12 }
 0x4c4   :  { %v4526_v25 = vpop.permute.xlu1 %4525  ;;  %v8190_v61 = vpop.f32.mrb[4].mxu0 }
 0x4c5   :  { %v3802_v41 = vpop.permute.xlu0 %3801  ;;  %v5637_v54 = vld [vmem:[#allocation2 + $0x60] sm:$0xff]  ;;  %4632 = vst.msk [vmem:[#allocation2 + $0x78] sm:$0x3] %vm13831_vm7, %v4526_v25  ;;  %v5902_v47 = vadd.f32 %v8190_v61, %v11601_v10  ;;  %v5896_v21 = vpop.f32.mrb[5].mxu0  ;;  %vm13834_vm7 = vcmask 720544  }
 0x4c6   :  { %3907 = vst.msk [vmem:[#allocation2 + $0x80] sm:$0xff] %vm13832_vm10, %v3802_v41  ;;  %8200 = vmatprep.mubr.msk.f32.mxu0 %vm13709_vm4, %v5637_v54  ;;  %5497 = vrot.lane.b32.xlu1 %v8022_v26, %s13730_s25  ;;  %v5897_v27 = vadd.f32 %v11601_v10, %v5896_v21  ;;  %vm13835_vm10 = vcmask 490944   ;;  %v2745_v26 = vld [vmem:[%s13670_s0 + $0xd9] sm:$0x3]  ;;  %v7906_v21 = vld [vmem:[%s13670_s0 + $0xc8] sm:$0x3] }
 0x4c7   :  { %4773 = vrot.lane.b32.xlu0 %v11654_v6, %s8465_s24  ;;  %8353 = vtanh.f32 %v5902_v47  ;;  %v7748_v54 = vld [vmem:[%s13670_s0 + $0xd8] sm:$0x3] }
 0x4c8   :  { %v5490_v59 = vpop.permute.xlu1 %5489  ;;  %8355 = vtanh.f32 %v5897_v27 }
 0x4c9   :  { %v4766_v7 = vpop.permute.xlu0 %4765  ;;  %5598 = vst.msk [vmem:[#allocation2 + $0x68] sm:$0x3] %vm13833_vm5, %v5490_v59  ;;  %vm13837_vm5 = vcmask 583200  }
 0x4ca   :  { %4873 = vst.msk [vmem:[#allocation2 + $0x70] sm:$0xff] %vm13834_vm7, %v4766_v7  ;;  %3086 = vrot.lane.b32.xlu1 %v11843_v4, %s8462_s22  ;;  %vm13839_vm7 = vcmask 616000  }
 0x4cb   :  { %2846 = vrot.lane.b32.xlu0 %v2743_v57, %s8462_s22 }
 0x4cc   :  { %v3079_v52 = vpop.permute.xlu1 %3078 }
 0x4cd   :  { %v2839_v16 = vpop.permute.xlu0 %2838  ;;  %3182 = vst.msk [vmem:[#allocation2 + $0x90] sm:$0xff] %vm13835_vm10, %v3079_v52  ;;  %vm13840_vm10 = vcmask 523744   ;;  %v2987_v52 = vld [vmem:[%s13670_s0 + $0xd9] sm:$0x3] }
 0x4ce   :  { %2941 = vst.msk [vmem:[#allocation2 + $0x98] sm:$0x3] %vm13836_vm3, %v2839_v16  ;;  %4051 = vrot.lane.b32.xlu1 %v11843_v4, %s8464_s30  ;;  %vm13838_vm3 = vcmask 392544   ;;  %v12029_v16 = vld [vmem:[%s13670_s0 + $0xe0] sm:$0xff] }
 0x4cf   :  { %3811 = vrot.lane.b32.xlu0 %v7746_v45, %s8463_s12 }
 0x4d0   :  { %v4044_v38 = vpop.permute.xlu1 %4043  ;;  %v5638_v34 = vld [vmem:[#allocation2 + $0x68] sm:$0xff] }
 0x4d1   :  { %v3804_v32 = vpop.permute.xlu0 %3803  ;;  %4149 = vst.msk [vmem:[#allocation2 + $0x80] sm:$0xff] %vm13702_vm14, %v4044_v38  ;;  %8201 = vmatmul.mubr.msk.f32.gmra.mrb[12].mxu0 %vm13709_vm4, %v5638_v34  ;;  %v8354_v55 = vpop.eup %8353 }
 0x4d2   :  { %3908 = vst.msk [vmem:[#allocation2 + $0x88] sm:$0x3] %vm13837_vm5, %v3804_v32  ;;  %5015 = vrot.lane.b32.xlu1 %v11654_v6, %s8465_s24  ;;  %v8356_v36 = vpop.eup %8355  ;;  %v7786_v6 = vld [vmem:[%s13670_s0 + $0xc9] sm:$0x3]  ;;  %vm13841_vm5 = vcmask 654944  }
 0x4d3   :  { %4775 = vrot.lane.b32.xlu0 %v7904_v20, %s8465_s24  ;;  %6121 = vst.msk [vmem:[#allocation3 + $0x28] sm:$0xff] %vm6115_vm9, %v8354_v55  ;;  %6120 = vst.msk [vmem:[#allocation3 + $0x20] sm:$0xff] %vm6115_vm9, %v8356_v36  ;;  %v7946_v55 = vld [vmem:[%s13670_s0 + $0xc8] sm:$0x3] }
 0x4d4   :  { %v5008_v23 = vpop.permute.xlu1 %5007 }
 0x4d5   :  { %v4768_v1 = vpop.permute.xlu0 %4767  ;;  %5115 = vst.msk [vmem:[#allocation2 + $0x70] sm:$0xff] %vm13701_vm13, %v5008_v23  ;;  %v2263_v23 = vld [vmem:[%s13670_s0 + $0xe8] sm:$0x3] }
 0x4d6   :  { %4874 = vst.msk [vmem:[#allocation2 + $0x78] sm:$0x3] %vm13700_vm12, %v4768_v1  ;;  %3088 = vrot.lane.b32.xlu1 %v2985_v5, %s8462_s22 }
 0x4d7   :  { %2364 = vrot.lane.b32.xlu0 %v11901_v11, %s8461_s18 }
 0x4d8   :  { %v3081_v33 = vpop.permute.xlu1 %3080 }
 0x4d9   :  { %v2357_v62 = vpop.permute.xlu0 %2356  ;;  %3183 = vst.msk [vmem:[#allocation2 + $0x98] sm:$0x3] %vm13699_vm15, %v3081_v33  ;;  %v7670_v33 = vld [vmem:[%s13670_s0 + $0xe8] sm:$0x3] }
 0x4da   :  { %2458 = vst.msk [vmem:[#allocation2 + $0xa0] sm:$0xff] %vm13838_vm3, %v2357_v62  ;;  %4053 = vrot.lane.b32.xlu1 %v7786_v6, %s8464_s30  ;;  %vm13842_vm3 = vcmask 386400  }
 0x4db   :  { %3329 = vrot.lane.b32.xlu0 %v11901_v11, %s8463_s12 }
 0x4dc   :  { %v4046_v44 = vpop.permute.xlu1 %4045 }
 0x4dd   :  { %v3322_v31 = vpop.permute.xlu0 %3321  ;;  %4150 = vst.msk [vmem:[#allocation2 + $0x88] sm:$0x3] %vm13839_vm7, %v4046_v44  ;;  %vm13843_vm7 = vcmask 425344   ;;  %v7828_v44 = vld [vmem:[%s13670_s0 + $0xd9] sm:$0x3] }
 0x4de   :  { %3425 = vst.msk [vmem:[#allocation2 + $0x90] sm:$0xff] %vm13840_vm10, %v3322_v31  ;;  %5017 = vrot.lane.b32.xlu1 %v7944_v9, %s8465_s24  ;;  %vm13844_vm10 = vcmask 780000  }
 0x4df   :  { %4293 = vrot.lane.b32.xlu0 %v11843_v4, %s8464_s30 }
 0x4e0   :  { %v5010_v60 = vpop.permute.xlu1 %5009 }
 0x4e1   :  { %v4286_v28 = vpop.permute.xlu0 %4285  ;;  %5116 = vst.msk [vmem:[#allocation2 + $0x78] sm:$0x3] %vm13711_vm11, %v5010_v60  ;;  %v7986_v60 = vld [vmem:[%s13670_s0 + $0xc9] sm:$0x3] }
 0x4e2   :  { %4391 = vst.msk [vmem:[#allocation2 + $0x80] sm:$0xff] %vm13841_vm5, %v4286_v28  ;;  %2366 = vrot.lane.b32.xlu1 %v2261_v18, %s8461_s18  ;;  %vm13845_vm5 = vcmask 687744  }
 0x4e3   :  { %5257 = vrot.lane.b32.xlu0 %v11747_v3, %s13730_s25 }
 0x4e4   :  { %v2359_v58 = vpop.permute.xlu1 %2358 }
 0x4e5   :  { %v5250_v24 = vpop.permute.xlu0 %5249  ;;  %2459 = vst.msk [vmem:[#allocation2 + $0xa8] sm:$0x3] %vm13842_vm3, %v2359_v58  ;;  %vm13846_vm3 = vcmask 419200   ;;  %v2505_v58 = vld [vmem:[%s13670_s0 + $0xe8] sm:$0x3] }
 0x4e6   :  { %5357 = vst.msk [vmem:[#allocation2 + $0x70] sm:$0xff] %vm13710_vm0, %v5250_v24  ;;  %3331 = vrot.lane.b32.xlu1 %v7668_v46, %s8463_s12 }
 0x4e7   :  { %2606 = vrot.lane.b32.xlu0 %v11901_v11, %s8461_s18 }
 0x4e8   :  { %v3324_v35 = vpop.permute.xlu1 %3323 }
 0x4e9   :  { %v2599_v13 = vpop.permute.xlu0 %2598  ;;  %3426 = vst.msk [vmem:[#allocation2 + $0x98] sm:$0x3] %vm13714_vm1, %v3324_v35  ;;  %v7710_v35 = vld [vmem:[%s13670_s0 + $0xe8] sm:$0x3] }
 0x4ea   :  { %2700 = vst.msk [vmem:[#allocation2 + $0xa0] sm:$0xff] %vm13843_vm7, %v2599_v13  ;;  %4295 = vrot.lane.b32.xlu1 %v7826_v50, %s8464_s30  ;;  %vm13847_vm7 = vcmask 550400   ;;  %v12099_v13 = vld [vmem:[%s13670_s0 + $0xe1] sm:$0xff] }
 0x4eb   :  { %3571 = vrot.lane.b32.xlu0 %v11901_v11, %s8463_s12 }
 0x4ec   :  { %v4288_v12 = vpop.permute.xlu1 %4287 }
 0x4ed   :  { %v3564_v22 = vpop.permute.xlu0 %3563  ;;  %4392 = vst.msk [vmem:[#allocation2 + $0x88] sm:$0x3] %vm13712_vm8, %v4288_v12 }
 0x4ee   :  { %3667 = vst.msk [vmem:[#allocation2 + $0x90] sm:$0xff] %vm13713_vm2, %v3564_v22  ;;  %5259 = vrot.lane.b32.xlu1 %v7984_v19, %s13730_s25 }
 0x4ef   :  { %4535 = vrot.lane.b32.xlu0 %v11773_v53, %s8465_s24 }
 0x4f0   :  { %v5252_v39 = vpop.permute.xlu1 %5251 }
 0x4f1   :  { %v4528_v48 = vpop.permute.xlu0 %4527  ;;  %5358 = vst.msk [vmem:[#allocation2 + $0x78] sm:$0x3] %vm13844_vm10, %v5252_v39  ;;  %vm13848_vm10 = vcmask 458144   ;;  %v8026_v39 = vld [vmem:[%s13670_s0 + $0xc9] sm:$0x3] }
 0x4f2   :  { %4633 = vst.msk [vmem:[#allocation2 + $0x80] sm:$0xff] %vm13845_vm5, %v4528_v48  ;;  %2608 = vrot.lane.b32.xlu1 %v2503_v17, %s8461_s18  ;;  %vm13849_vm5 = vcmask 681600  }
 0x4f3   :  { %5499 = vrot.lane.b32.xlu0 %v11747_v3, %s13730_s25  ;;  %v7866_v3 = vld [vmem:[%s13670_s0 + $0xc8] sm:$0x3] }
 0x4f4   :  { %v2601_v14 = vpop.permute.xlu1 %2600 }
 0x4f5   :  { %v5492_v40 = vpop.permute.xlu0 %5491  ;;  %2701 = vst.msk [vmem:[#allocation2 + $0xa8] sm:$0x3] %vm13846_vm3, %v2601_v14  ;;  %vm13850_vm3 = vcmask 589344  }
 0x4f6   :  { %5599 = vst.msk [vmem:[#allocation2 + $0x70] sm:$0xff] %vm13706_vm6, %v5492_v40  ;;  %3573 = vrot.lane.b32.xlu1 %v7708_v0, %s8463_s12 }
 0x4f7   :  { %2848 = vrot.lane.b32.xlu0 %v11971_v15, %s8462_s22 }
 0x4f8   :  { %v3566_v30 = vpop.permute.xlu1 %3565 }
 0x4f9   :  { %v2841_v37 = vpop.permute.xlu0 %2840  ;;  %3668 = vst.msk [vmem:[#allocation2 + $0x98] sm:$0x3] %vm13847_vm7, %v3566_v30  ;;  %vm13851_vm7 = vcmask 812800  }
 0x4fa   :  { %2942 = vst.msk [vmem:[#allocation2 + $0xa0] sm:$0xff] %vm13848_vm10, %v2841_v37  ;;  %4537 = vrot.lane.b32.xlu1 %v7866_v3, %s8465_s24  ;;  %vm13852_vm10 = vcmask 720544  }
 0x4fb   :  { %3813 = vrot.lane.b32.xlu0 %v11901_v11, %s8463_s12 }
 0x4fc   :  { %v4530_v43 = vpop.permute.xlu1 %4529  ;;  %v8193_v29 = vpop.f32.mrb[6].mxu0 }
 0x4fd   :  { %v3806_v49 = vpop.permute.xlu0 %3805  ;;  %v5639_v2 = vld [vmem:[#allocation2 + $0x70] sm:$0xff]  ;;  %4634 = vst.msk [vmem:[#allocation2 + $0x88] sm:$0x3] %vm13849_vm5, %v4530_v43  ;;  %v5912_v63 = vadd.f32 %v8193_v29, %v11601_v10  ;;  %v5906_v8 = vpop.f32.mrb[7].mxu0  ;;  %vm13853_vm5 = vcmask 490944  }
 0x4fe   :  { %3909 = vst.msk [vmem:[#allocation2 + $0x90] sm:$0xff] %vm13850_vm3, %v3806_v49  ;;  %8203 = vmatprep.mubr.msk.f32.mxu0 %vm13709_vm4, %v5639_v2  ;;  %5501 = vrot.lane.b32.xlu1 %v8024_v42, %s13730_s25  ;;  %v5907_v51 = vadd.f32 %v11601_v10, %v5906_v8  ;;  %vm13854_vm3 = vcmask 452000   ;;  %v2747_v42 = vld [vmem:[%s13670_s0 + $0xe9] sm:$0x3] }
 0x4ff   :  { %4777 = vrot.lane.b32.xlu0 %v11773_v53, %s8465_s24  ;;  %8357 = vtanh.f32 %v5912_v63  ;;  %v7908_v63 = vld [vmem:[%s13670_s0 + $0xd8] sm:$0x3] }
 0x500   :  { %v5494_v25 = vpop.permute.xlu1 %5493  ;;  %8359 = vtanh.f32 %v5907_v51 }
 0x501   :  { %v4770_v41 = vpop.permute.xlu0 %4769  ;;  %5600 = vst.msk [vmem:[#allocation2 + $0x78] sm:$0x3] %vm13851_vm7, %v5494_v25  ;;  %vm13855_vm7 = vcmask 583200  }
 0x502   :  { %4875 = vst.msk [vmem:[#allocation2 + $0x80] sm:$0xff] %vm13852_vm10, %v4770_v41  ;;  %3090 = vrot.lane.b32.xlu1 %v11971_v15, %s8462_s22  ;;  %vm13856_vm10 = vcmask 392544  }
 0x503   :  { %2850 = vrot.lane.b32.xlu0 %v2745_v26, %s8462_s22 }
 0x504   :  { %v3083_v61 = vpop.permute.xlu1 %3082 }
 0x505   :  { %v2843_v47 = vpop.permute.xlu0 %2842  ;;  %3184 = vst.msk [vmem:[#allocation2 + $0xa0] sm:$0xff] %vm13853_vm5, %v3083_v61  ;;  %vm13857_vm5 = vcmask 616000   ;;  %v12157_v61 = vld [vmem:[%s13670_s0 + $0xf0] sm:$0xff] }
 0x506   :  { %2943 = vst.msk [vmem:[#allocation2 + $0xa8] sm:$0x3] %vm13854_vm3, %v2843_v47  ;;  %4055 = vrot.lane.b32.xlu1 %v11971_v15, %s8464_s30  ;;  %vm13858_vm3 = vcmask 523744  }
 0x507   :  { %3815 = vrot.lane.b32.xlu0 %v7748_v54, %s8463_s12  ;;  %v2989_v54 = vld [vmem:[%s13670_s0 + $0xe9] sm:$0x3] }
 0x508   :  { %v4048_v27 = vpop.permute.xlu1 %4047  ;;  %v5640_v59 = vld [vmem:[#allocation2 + $0x78] sm:$0xff] }
 0x509   :  { %v3808_v57 = vpop.permute.xlu0 %3807  ;;  %4151 = vst.msk [vmem:[#allocation2 + $0x90] sm:$0xff] %vm13702_vm14, %v4048_v27  ;;  %8204 = vmatmul.mubr.msk.f32.gmra.mrb[14].mxu0 %vm13709_vm4, %v5640_v59  ;;  %v8358_v7 = vpop.eup %8357  ;;  %v7948_v59 = vld [vmem:[%s13670_s0 + $0xd8] sm:$0x3] }
 0x50a   :  { %3910 = vst.msk [vmem:[#allocation2 + $0x98] sm:$0x3] %vm13855_vm7, %v3808_v57  ;;  %5019 = vrot.lane.b32.xlu1 %v11773_v53, %s8465_s24  ;;  %v8360_v45 = vpop.eup %8359  ;;  %v7788_v53 = vld [vmem:[%s13670_s0 + $0xd9] sm:$0x3]  ;;  %vm13859_vm7 = vcmask 654944  }
 0x50b   :  { %4779 = vrot.lane.b32.xlu0 %v7906_v21, %s8465_s24  ;;  %6123 = vst.msk [vmem:[#allocation3 + $0x38] sm:$0xff] %vm6115_vm9, %v8358_v7  ;;  %6122 = vst.msk [vmem:[#allocation3 + $0x30] sm:$0xff] %vm6115_vm9, %v8360_v45 }
 0x50c   :  { %v5012_v20 = vpop.permute.xlu1 %5011 }
 0x50d   :  { %v4772_v38 = vpop.permute.xlu0 %4771  ;;  %5117 = vst.msk [vmem:[#allocation2 + $0x80] sm:$0xff] %vm13701_vm13, %v5012_v20 }
 0x50e   :  { %4876 = vst.msk [vmem:[#allocation2 + $0x88] sm:$0x3] %vm13700_vm12, %v4772_v38  ;;  %3092 = vrot.lane.b32.xlu1 %v2987_v52, %s8462_s22  ;;  %v2265_v52 = vld [vmem:[%s13670_s0 + $0xf8] sm:$0x3] }
 0x50f   :  { %2368 = vrot.lane.b32.xlu0 %v12029_v16, %s8461_s18 }
 0x510   :  { %v3085_v32 = vpop.permute.xlu1 %3084 }
 0x511   :  { %v2361_v34 = vpop.permute.xlu0 %2360  ;;  %3185 = vst.msk [vmem:[#allocation2 + $0xa8] sm:$0x3] %vm13699_vm15, %v3085_v32 }
 0x512   :  { %2460 = vst.msk [vmem:[#allocation2 + $0xb0] sm:$0xff] %vm13856_vm10, %v2361_v34  ;;  %4057 = vrot.lane.b32.xlu1 %v7788_v53, %s8464_s30  ;;  %vm13860_vm10 = vcmask 386400   ;;  %v7672_v53 = vld [vmem:[%s13670_s0 + $0xf8] sm:$0x3] }
 0x513   :  { %3333 = vrot.lane.b32.xlu0 %v12029_v16, %s8463_s12 }
 0x514   :  { %v4050_v36 = vpop.permute.xlu1 %4049 }
 0x515   :  { %v3326_v5 = vpop.permute.xlu0 %3325  ;;  %4152 = vst.msk [vmem:[#allocation2 + $0x98] sm:$0x3] %vm13857_vm5, %v4050_v36  ;;  %vm13861_vm5 = vcmask 425344  }
 0x516   :  { %3427 = vst.msk [vmem:[#allocation2 + $0xa0] sm:$0xff] %vm13858_vm3, %v3326_v5  ;;  %5021 = vrot.lane.b32.xlu1 %v7946_v55, %s8465_s24  ;;  %vm13862_vm3 = vcmask 780000   ;;  %v7830_v55 = vld [vmem:[%s13670_s0 + $0xe9] sm:$0x3] }
 0x517   :  { %4297 = vrot.lane.b32.xlu0 %v11971_v15, %s8464_s30 }
 0x518   :  { %v5014_v1 = vpop.permute.xlu1 %5013 }
 0x519   :  { %v4290_v6 = vpop.permute.xlu0 %4289  ;;  %5118 = vst.msk [vmem:[#allocation2 + $0x88] sm:$0x3] %vm13711_vm11, %v5014_v1 }
 0x51a   :  { %4393 = vst.msk [vmem:[#allocation2 + $0x90] sm:$0xff] %vm13859_vm7, %v4290_v6  ;;  %2370 = vrot.lane.b32.xlu1 %v2263_v23, %s8461_s18  ;;  %vm13863_vm7 = vcmask 687744   ;;  %v7988_v23 = vld [vmem:[%s13670_s0 + $0xd9] sm:$0x3] }
 0x51b   :  { %5261 = vrot.lane.b32.xlu0 %v11843_v4, %s13730_s25 }
 0x51c   :  { %v2363_v62 = vpop.permute.xlu1 %2362 }
 0x51d   :  { %v5254_v9 = vpop.permute.xlu0 %5253  ;;  %2461 = vst.msk [vmem:[#allocation2 + $0xb8] sm:$0x3] %vm13860_vm10, %v2363_v62  ;;  %vm13864_vm10 = vcmask 419200  }
 0x51e   :  { %5359 = vst.msk [vmem:[#allocation2 + $0x80] sm:$0xff] %vm13710_vm0, %v5254_v9  ;;  %3335 = vrot.lane.b32.xlu1 %v7670_v33, %s8463_s12  ;;  %v2507_v33 = vld [vmem:[%s13670_s0 + $0xf8] sm:$0x3] }
 0x51f   :  { %2610 = vrot.lane.b32.xlu0 %v12029_v16, %s8461_s18 }
 0x520   :  { %v3328_v31 = vpop.permute.xlu1 %3327 }
 0x521   :  { %v2603_v18 = vpop.permute.xlu0 %2602  ;;  %3428 = vst.msk [vmem:[#allocation2 + $0xa8] sm:$0x3] %vm13714_vm1, %v3328_v31  ;;  %v12227_v31 = vld [vmem:[%s13670_s0 + $0xf1] sm:$0xff] }
 0x522   :  { %2702 = vst.msk [vmem:[#allocation2 + $0xb0] sm:$0xff] %vm13861_vm5, %v2603_v18  ;;  %4299 = vrot.lane.b32.xlu1 %v7828_v44, %s8464_s30  ;;  %vm13865_vm5 = vcmask 550400   ;;  %v7712_v44 = vld [vmem:[%s13670_s0 + $0xf8] sm:$0x3] }
 0x523   :  { %3575 = vrot.lane.b32.xlu0 %v12029_v16, %s8463_s12 }
 0x524   :  { %v4292_v28 = vpop.permute.xlu1 %4291 }
 0x525   :  { %v3568_v46 = vpop.permute.xlu0 %3567  ;;  %4394 = vst.msk [vmem:[#allocation2 + $0x98] sm:$0x3] %vm13712_vm8, %v4292_v28 }
 0x526   :  { %3669 = vst.msk [vmem:[#allocation2 + $0xa0] sm:$0xff] %vm13713_vm2, %v3568_v46  ;;  %5263 = vrot.lane.b32.xlu1 %v7986_v60, %s13730_s25 }
 0x527   :  { %4539 = vrot.lane.b32.xlu0 %v11901_v11, %s8465_s24 }
 0x528   :  { %v5256_v24 = vpop.permute.xlu1 %5255 }
 0x529   :  { %v4532_v50 = vpop.permute.xlu0 %4531  ;;  %5360 = vst.msk [vmem:[#allocation2 + $0x88] sm:$0x3] %vm13862_vm3, %v5256_v24  ;;  %vm13866_vm3 = vcmask 458144  }
 0x52a   :  { %4635 = vst.msk [vmem:[#allocation2 + $0x90] sm:$0xff] %vm13863_vm7, %v4532_v50  ;;  %2612 = vrot.lane.b32.xlu1 %v2505_v58, %s8461_s18  ;;  %vm13867_vm7 = vcmask 681600   ;;  %v8028_v58 = vld [vmem:[%s13670_s0 + $0xd9] sm:$0x3] }
 0x52b   :  { %5503 = vrot.lane.b32.xlu0 %v11843_v4, %s13730_s25  ;;  %v7868_v4 = vld [vmem:[%s13670_s0 + $0xd8] sm:$0x3] }
 0x52c   :  { %v2605_v19 = vpop.permute.xlu1 %2604 }
 0x52d   :  { %v5496_v12 = vpop.permute.xlu0 %5495  ;;  %2703 = vst.msk [vmem:[#allocation2 + $0xb8] sm:$0x3] %vm13864_vm10, %v2605_v19  ;;  %vm13868_vm10 = vcmask 589344  }
 0x52e   :  { %5601 = vst.msk [vmem:[#allocation2 + $0x80] sm:$0xff] %vm13706_vm6, %v5496_v12  ;;  %3577 = vrot.lane.b32.xlu1 %v7710_v35, %s8463_s12  ;;  %v12251_v12 = vld [vmem:[%s13672_s2] ss:$0 sm:$0xff] }
 0x52f   :  { %2852 = vrot.lane.b32.xlu0 %v12099_v13, %s8462_s22 }
 0x530   :  { %v3570_v22 = vpop.permute.xlu1 %3569 }
 0x531   :  { %v2845_v17 = vpop.permute.xlu0 %2844  ;;  %3670 = vst.msk [vmem:[#allocation2 + $0xa8] sm:$0x3] %vm13865_vm5, %v3570_v22  ;;  %vm13869_vm5 = vcmask 812800  }
 0x532   :  { %2944 = vst.msk [vmem:[#allocation2 + $0xb0] sm:$0xff] %vm13866_vm3, %v2845_v17  ;;  %4541 = vrot.lane.b32.xlu1 %v7868_v4, %s8465_s24  ;;  %vm13870_vm3 = vcmask 720544  }
 0x533   :  { %3817 = vrot.lane.b32.xlu0 %v12029_v16, %s8463_s12 }
 0x534   :  { %v4534_v48 = vpop.permute.xlu1 %4533  ;;  %v8196_v40 = vpop.f32.mrb[8].mxu0 }
 0x535   :  { %v3810_v0 = vpop.permute.xlu0 %3809  ;;  %v5641_v14 = vld [vmem:[#allocation2 + $0x80] sm:$0xff]  ;;  %4636 = vst.msk [vmem:[#allocation2 + $0x98] sm:$0x3] %vm13867_vm7, %v4534_v48  ;;  %v5922_v3 = vadd.f32 %v8196_v40, %v11601_v10  ;;  %v5916_v30 = vpop.f32.mrb[9].mxu0  ;;  %vm13871_vm7 = vcmask 490944  }
 0x536   :  { %3911 = vst.msk [vmem:[#allocation2 + $0xa0] sm:$0xff] %vm13868_vm10, %v3810_v0  ;;  %8206 = vmatprep.mubr.msk.f32.mxu0 %vm13709_vm4, %v5641_v14  ;;  %5505 = vrot.lane.b32.xlu1 %v8026_v39, %s13730_s25  ;;  %v5917_v37 = vadd.f32 %v11601_v10, %v5916_v30  ;;  %v7750_v10 = vld [vmem:[%s13670_s0 + $0xe8] sm:$0x3]  ;;  %vm13872_vm10 = vcmask 452000   ;;  %v2749_v39 = vld [vmem:[%s13670_s0 + $0xf9] sm:$0x3] }
 0x537   :  { %4781 = vrot.lane.b32.xlu0 %v11901_v11, %s8465_s24  ;;  %8361 = vtanh.f32 %v5922_v3  ;;  %v7752_v14 = vld [vmem:[%s13670_s0 + $0xf8] sm:$0x3]  ;;  %v7910_v30 = vld [vmem:[%s13670_s0 + $0xe8] sm:$0x3] }
 0x538   :  { %v5498_v43 = vpop.permute.xlu1 %5497  ;;  %8363 = vtanh.f32 %v5917_v37 }
 0x539   :  { %v4774_v49 = vpop.permute.xlu0 %4773  ;;  %5602 = vst.msk [vmem:[#allocation2 + $0x88] sm:$0x3] %vm13869_vm5, %v5498_v43  ;;  %vm13873_vm5 = vcmask 583200  }
 0x53a   :  { %4877 = vst.msk [vmem:[#allocation2 + $0x90] sm:$0xff] %vm13870_vm3, %v4774_v49  ;;  %3094 = vrot.lane.b32.xlu1 %v12099_v13, %s8462_s22  ;;  %vm13874_vm3 = vcmask 392544  }
 0x53b   :  { %2854 = vrot.lane.b32.xlu0 %v2747_v42, %s8462_s22 }
 0x53c   :  { %v3087_v2 = vpop.permute.xlu1 %3086 }
 0x53d   :  { %v2847_v29 = vpop.permute.xlu0 %2846  ;;  %3186 = vst.msk [vmem:[#allocation2 + $0xb0] sm:$0xff] %vm13871_vm7, %v3087_v2  ;;  %vm13875_vm7 = vcmask 616000   ;;  %v2991_v2 = vld [vmem:[%s13670_s0 + $0xf9] sm:$0x3] }
 0x53e   :  { %2945 = vst.msk [vmem:[#allocation2 + $0xb8] sm:$0x3] %vm13872_vm10, %v2847_v29  ;;  %4059 = vrot.lane.b32.xlu1 %v12099_v13, %s8464_s30  ;;  %vm13876_vm10 = vcmask 523744   ;;  %v12290_v29 = vld [vmem:[%s13670_s0 + $0x100] sm:$0xff] }
 0x53f   :  { %3819 = vrot.lane.b32.xlu0 %v7750_v10, %s8463_s12 }
 0x540   :  { %v4052_v8 = vpop.permute.xlu1 %4051  ;;  %v5642_v26 = vld [vmem:[#allocation2 + $0x88] sm:$0xff] }
 0x541   :  { %v3812_v51 = vpop.permute.xlu0 %3811  ;;  %4153 = vst.msk [vmem:[#allocation2 + $0xa0] sm:$0xff] %vm13702_vm14, %v4052_v8  ;;  %8207 = vmatmul.mubr.msk.f32.gmra.mrb[16].mxu0 %vm13709_vm4, %v5642_v26  ;;  %v8362_v25 = vpop.eup %8361 }
 0x542   :  { %3912 = vst.msk [vmem:[#allocation2 + $0xa8] sm:$0x3] %vm13873_vm5, %v3812_v51  ;;  %5023 = vrot.lane.b32.xlu1 %v11901_v11, %s8465_s24  ;;  %v8364_v41 = vpop.eup %8363  ;;  %v7790_v11 = vld [vmem:[%s13670_s0 + $0xe9] sm:$0x3]  ;;  %vm13877_vm5 = vcmask 654944  }
 0x543   :  { %4783 = vrot.lane.b32.xlu0 %v7908_v63, %s8465_s24  ;;  %6125 = vst.msk [vmem:[#allocation3 + $0x48] sm:$0xff] %vm6115_vm9, %v8362_v25  ;;  %6124 = vst.msk [vmem:[#allocation3 + $0x40] sm:$0xff] %vm6115_vm9, %v8364_v41  ;;  %v7950_v25 = vld [vmem:[%s13670_s0 + $0xe8] sm:$0x3] }
 0x544   :  { %v5016_v47 = vpop.permute.xlu1 %5015 }
 0x545   :  { %v4776_v21 = vpop.permute.xlu0 %4775  ;;  %5119 = vst.msk [vmem:[#allocation2 + $0x90] sm:$0xff] %vm13701_vm13, %v5016_v47  ;;  %v2267_v47 = vld [vmem:[%s13670_s0 + $0x108] sm:$0x3] }
 0x546   :  { %4878 = vst.msk [vmem:[#allocation2 + $0x98] sm:$0x3] %vm13700_vm12, %v4776_v21  ;;  %3096 = vrot.lane.b32.xlu1 %v2989_v54, %s8462_s22 }
 0x547   :  { %2372 = vrot.lane.b32.xlu0 %v12157_v61, %s8461_s18 }
 0x548   :  { %v3089_v27 = vpop.permute.xlu1 %3088 }
 0x549   :  { %v2365_v57 = vpop.permute.xlu0 %2364  ;;  %3187 = vst.msk [vmem:[#allocation2 + $0xb8] sm:$0x3] %vm13699_vm15, %v3089_v27  ;;  %v7674_v27 = vld [vmem:[%s13670_s0 + $0x108] sm:$0x3] }
 0x54a   :  { %2462 = vst.msk [vmem:[#allocation2 + $0xc0] sm:$0xff] %vm13874_vm3, %v2365_v57  ;;  %4061 = vrot.lane.b32.xlu1 %v7790_v11, %s8464_s30  ;;  %vm13878_vm3 = vcmask 386400  }
 0x54b   :  { %3337 = vrot.lane.b32.xlu0 %v12157_v61, %s8463_s12 }
 0x54c   :  { %v4054_v7 = vpop.permute.xlu1 %4053 }
 0x54d   :  { %v3330_v45 = vpop.permute.xlu0 %3329  ;;  %4154 = vst.msk [vmem:[#allocation2 + $0xa8] sm:$0x3] %vm13875_vm7, %v4054_v7  ;;  %vm13879_vm7 = vcmask 425344   ;;  %v7832_v7 = vld [vmem:[%s13670_s0 + $0xf9] sm:$0x3] }
 0x54e   :  { %3429 = vst.msk [vmem:[#allocation2 + $0xb0] sm:$0xff] %vm13876_vm10, %v3330_v45  ;;  %5025 = vrot.lane.b32.xlu1 %v7948_v59, %s8465_s24  ;;  %vm13880_vm10 = vcmask 780000  }
 0x54f   :  { %4301 = vrot.lane.b32.xlu0 %v12099_v13, %s8464_s30 }
 0x550   :  { %v5018_v20 = vpop.permute.xlu1 %5017 }
 0x551   :  { %v4294_v38 = vpop.permute.xlu0 %4293  ;;  %5120 = vst.msk [vmem:[#allocation2 + $0x98] sm:$0x3] %vm13711_vm11, %v5018_v20  ;;  %v7990_v20 = vld [vmem:[%s13670_s0 + $0xe9] sm:$0x3] }
 0x552   :  { %4395 = vst.msk [vmem:[#allocation2 + $0xa0] sm:$0xff] %vm13877_vm5, %v4294_v38  ;;  %2374 = vrot.lane.b32.xlu1 %v2265_v52, %s8461_s18  ;;  %vm13881_vm5 = vcmask 687744  }
 0x553   :  { %5265 = vrot.lane.b32.xlu0 %v11971_v15, %s13730_s25 }
 0x554   :  { %v2367_v32 = vpop.permute.xlu1 %2366 }
 0x555   :  { %v5258_v34 = vpop.permute.xlu0 %5257  ;;  %2463 = vst.msk [vmem:[#allocation2 + $0xc8] sm:$0x3] %vm13878_vm3, %v2367_v32  ;;  %vm13882_vm3 = vcmask 419200   ;;  %v2509_v32 = vld [vmem:[%s13670_s0 + $0x108] sm:$0x3] }
 0x556   :  { %5361 = vst.msk [vmem:[#allocation2 + $0x90] sm:$0xff] %vm13710_vm0, %v5258_v34  ;;  %3339 = vrot.lane.b32.xlu1 %v7672_v53, %s8463_s12 }
 0x557   :  { %2614 = vrot.lane.b32.xlu0 %v12157_v61, %s8461_s18 }
 0x558   :  { %v3332_v36 = vpop.permute.xlu1 %3331 }
 0x559   :  { %v2607_v5 = vpop.permute.xlu0 %2606  ;;  %3430 = vst.msk [vmem:[#allocation2 + $0xb8] sm:$0x3] %vm13714_vm1, %v3332_v36  ;;  %v7714_v36 = vld [vmem:[%s13670_s0 + $0x108] sm:$0x3] }
 0x55a   :  { %2704 = vst.msk [vmem:[#allocation2 + $0xc0] sm:$0xff] %vm13879_vm7, %v2607_v5  ;;  %4303 = vrot.lane.b32.xlu1 %v7830_v55, %s8464_s30  ;;  %vm13883_vm7 = vcmask 550400   ;;  %v12360_v5 = vld [vmem:[%s13670_s0 + $0x101] sm:$0xff] }
 0x55b   :  { %3579 = vrot.lane.b32.xlu0 %v12157_v61, %s8463_s12 }
 0x55c   :  { %v4296_v1 = vpop.permute.xlu1 %4295 }
 0x55d   :  { %v3572_v6 = vpop.permute.xlu0 %3571  ;;  %4396 = vst.msk [vmem:[#allocation2 + $0xa8] sm:$0x3] %vm13712_vm8, %v4296_v1 }
 0x55e   :  { %3671 = vst.msk [vmem:[#allocation2 + $0xb0] sm:$0xff] %vm13713_vm2, %v3572_v6  ;;  %5267 = vrot.lane.b32.xlu1 %v7988_v23, %s13730_s25 }
 0x55f   :  { %4543 = vrot.lane.b32.xlu0 %v12029_v16, %s8465_s24 }
 0x560   :  { %v5260_v62 = vpop.permute.xlu1 %5259 }
 0x561   :  { %v4536_v9 = vpop.permute.xlu0 %4535  ;;  %5362 = vst.msk [vmem:[#allocation2 + $0x98] sm:$0x3] %vm13880_vm10, %v5260_v62  ;;  %vm13884_vm10 = vcmask 458144   ;;  %v8030_v62 = vld [vmem:[%s13670_s0 + $0xe9] sm:$0x3] }
 0x562   :  { %4637 = vst.msk [vmem:[#allocation2 + $0xa0] sm:$0xff] %vm13881_vm5, %v4536_v9  ;;  %2616 = vrot.lane.b32.xlu1 %v2507_v33, %s8461_s18  ;;  %vm13885_vm5 = vcmask 681600  }
 0x563   :  { %5507 = vrot.lane.b32.xlu0 %v11971_v15, %s13730_s25  ;;  %v7870_v15 = vld [vmem:[%s13670_s0 + $0xe8] sm:$0x3] }
 0x564   :  { %v2609_v18 = vpop.permute.xlu1 %2608 }
 0x565   :  { %v5500_v60 = vpop.permute.xlu0 %5499  ;;  %2705 = vst.msk [vmem:[#allocation2 + $0xc8] sm:$0x3] %vm13882_vm3, %v2609_v18  ;;  %vm13886_vm3 = vcmask 589344  }
 0x566   :  { %5603 = vst.msk [vmem:[#allocation2 + $0x90] sm:$0xff] %vm13706_vm6, %v5500_v60  ;;  %3581 = vrot.lane.b32.xlu1 %v7712_v44, %s8463_s12 }
 0x567   :  { %2856 = vrot.lane.b32.xlu0 %v12227_v31, %s8462_s22 }
 0x568   :  { %v3574_v28 = vpop.permute.xlu1 %3573 }
 0x569   :  { %v2849_v46 = vpop.permute.xlu0 %2848  ;;  %3672 = vst.msk [vmem:[#allocation2 + $0xb8] sm:$0x3] %vm13883_vm7, %v3574_v28  ;;  %vm13887_vm7 = vcmask 812800  }
 0x56a   :  { %2946 = vst.msk [vmem:[#allocation2 + $0xc0] sm:$0xff] %vm13884_vm10, %v2849_v46  ;;  %4545 = vrot.lane.b32.xlu1 %v7870_v15, %s8465_s24  ;;  %vm13888_vm10 = vcmask 720544  }
 0x56b   :  { %3821 = vrot.lane.b32.xlu0 %v12157_v61, %s8463_s12 }
 0x56c   :  { %v4538_v24 = vpop.permute.xlu1 %4537  ;;  %v8199_v19 = vpop.f32.mrb[10].mxu0 }
 0x56d   :  { %v3814_v50 = vpop.permute.xlu0 %3813  ;;  %v5643_v35 = vld [vmem:[#allocation2 + $0x90] sm:$0xff]  ;;  %4638 = vst.msk [vmem:[#allocation2 + $0xa8] sm:$0x3] %vm13885_vm5, %v4538_v24  ;;  %v5932_v4 = vadd.f32 %v12251_v12, %v8199_v19  ;;  %v5926_v22 = vpop.f32.mrb[11].mxu0  ;;  %vm13889_vm5 = vcmask 490944  }
 0x56e   :  { %3913 = vst.msk [vmem:[#allocation2 + $0xb0] sm:$0xff] %vm13886_vm3, %v3814_v50  ;;  %8209 = vmatprep.mubr.msk.f32.mxu0 %vm13709_vm4, %v5643_v35  ;;  %5509 = vrot.lane.b32.xlu1 %v8028_v58, %s13730_s25  ;;  %v5927_v17 = vadd.f32 %v12251_v12, %v5926_v22  ;;  %vm13890_vm3 = vcmask 452000   ;;  %v2751_v58 = vld [vmem:[%s13670_s0 + $0x109] sm:$0x3]  ;;  %v7912_v22 = vld [vmem:[%s13670_s0 + $0xf8] sm:$0x3] }
 0x56f   :  { %4785 = vrot.lane.b32.xlu0 %v12029_v16, %s8465_s24  ;;  %8365 = vtanh.f32 %v5932_v4  ;;  %v7754_v35 = vld [vmem:[%s13670_s0 + $0x108] sm:$0x3] }
 0x570   :  { %v5502_v48 = vpop.permute.xlu1 %5501  ;;  %8367 = vtanh.f32 %v5927_v17 }
 0x571   :  { %v4778_v0 = vpop.permute.xlu0 %4777  ;;  %5604 = vst.msk [vmem:[#allocation2 + $0x98] sm:$0x3] %vm13887_vm7, %v5502_v48  ;;  %vm13891_vm7 = vcmask 583200  }
 0x572   :  { %4879 = vst.msk [vmem:[#allocation2 + $0xa0] sm:$0xff] %vm13888_vm10, %v4778_v0  ;;  %3098 = vrot.lane.b32.xlu1 %v12227_v31, %s8462_s22  ;;  %vm13892_vm10 = vcmask 392544  }
 0x573   :  { %2858 = vrot.lane.b32.xlu0 %v2749_v39, %s8462_s22 }
 0x574   :  { %v3091_v40 = vpop.permute.xlu1 %3090 }
 0x575   :  { %v2851_v3 = vpop.permute.xlu0 %2850  ;;  %3188 = vst.msk [vmem:[#allocation2 + $0xc0] sm:$0xff] %vm13889_vm5, %v3091_v40  ;;  %vm13893_vm5 = vcmask 616000   ;;  %v2993_v40 = vld [vmem:[%s13670_s0 + $0x109] sm:$0x3] }
 0x576   :  { %2947 = vst.msk [vmem:[#allocation2 + $0xc8] sm:$0x3] %vm13890_vm3, %v2851_v3  ;;  %4063 = vrot.lane.b32.xlu1 %v12227_v31, %s8464_s30  ;;  %vm13894_vm3 = vcmask 523744   ;;  %v12418_v3 = vld [vmem:[%s13670_s0 + $0x110] sm:$0xff] }
 0x577   :  { %3823 = vrot.lane.b32.xlu0 %v7752_v14, %s8463_s12 }
 0x578   :  { %v4056_v37 = vpop.permute.xlu1 %4055  ;;  %v5644_v43 = vld [vmem:[#allocation2 + $0x98] sm:$0xff] }
 0x579   :  { %v3816_v42 = vpop.permute.xlu0 %3815  ;;  %4155 = vst.msk [vmem:[#allocation2 + $0xb0] sm:$0xff] %vm13702_vm14, %v4056_v37  ;;  %8210 = vmatmul.mubr.msk.f32.gmra.mrb[18].mxu0 %vm13709_vm4, %v5644_v43  ;;  %v8366_v49 = vpop.eup %8365 }
 0x57a   :  { %3914 = vst.msk [vmem:[#allocation2 + $0xb8] sm:$0x3] %vm13891_vm7, %v3816_v42  ;;  %5027 = vrot.lane.b32.xlu1 %v12029_v16, %s8465_s24  ;;  %v8368_v10 = vpop.eup %8367  ;;  %v7792_v16 = vld [vmem:[%s13670_s0 + $0xf9] sm:$0x3]  ;;  %vm13895_vm7 = vcmask 654944  }
 0x57b   :  { %4787 = vrot.lane.b32.xlu0 %v7910_v30, %s8465_s24  ;;  %6127 = vst.msk [vmem:[#allocation3 + $0x58] sm:$0xff] %vm6115_vm9, %v8366_v49  ;;  %6126 = vst.msk [vmem:[#allocation3 + $0x50] sm:$0xff] %vm6115_vm9, %v8368_v10  ;;  %v7952_v49 = vld [vmem:[%s13670_s0 + $0xf8] sm:$0x3] }
 0x57c   :  { %v5020_v63 = vpop.permute.xlu1 %5019 }
 0x57d   :  { %v4780_v8 = vpop.permute.xlu0 %4779  ;;  %5121 = vst.msk [vmem:[#allocation2 + $0xa0] sm:$0xff] %vm13701_vm13, %v5020_v63  ;;  %v2269_v63 = vld [vmem:[%s13670_s0 + $0x118] sm:$0x3] }
 0x57e   :  { %4880 = vst.msk [vmem:[#allocation2 + $0xa8] sm:$0x3] %vm13700_vm12, %v4780_v8  ;;  %3100 = vrot.lane.b32.xlu1 %v2991_v2, %s8462_s22 }
 0x57f   :  { %2376 = vrot.lane.b32.xlu0 %v12290_v29, %s8461_s18 }
 0x580   :  { %v3093_v51 = vpop.permute.xlu1 %3092 }
 0x581   :  { %v2369_v26 = vpop.permute.xlu0 %2368  ;;  %3189 = vst.msk [vmem:[#allocation2 + $0xc8] sm:$0x3] %vm13699_vm15, %v3093_v51  ;;  %v7676_v51 = vld [vmem:[%s13670_s0 + $0x118] sm:$0x3] }
 0x582   :  { %2464 = vst.msk [vmem:[#allocation2 + $0xd0] sm:$0xff] %vm13892_vm10, %v2369_v26  ;;  %4065 = vrot.lane.b32.xlu1 %v7792_v16, %s8464_s30  ;;  %vm13896_vm10 = vcmask 386400  }
 0x583   :  { %3341 = vrot.lane.b32.xlu0 %v12290_v29, %s8463_s12 }
 0x584   :  { %v4058_v41 = vpop.permute.xlu1 %4057 }
 0x585   :  { %v3334_v54 = vpop.permute.xlu0 %3333  ;;  %4156 = vst.msk [vmem:[#allocation2 + $0xb8] sm:$0x3] %vm13893_vm5, %v4058_v41  ;;  %vm13897_vm5 = vcmask 425344   ;;  %v7834_v41 = vld [vmem:[%s13670_s0 + $0x109] sm:$0x3] }
 0x586   :  { %3431 = vst.msk [vmem:[#allocation2 + $0xc0] sm:$0xff] %vm13894_vm3, %v3334_v54  ;;  %5029 = vrot.lane.b32.xlu1 %v7950_v25, %s8465_s24  ;;  %vm13898_vm3 = vcmask 780000  }
 0x587   :  { %4305 = vrot.lane.b32.xlu0 %v12227_v31, %s8464_s30 }
 0x588   :  { %v5022_v21 = vpop.permute.xlu1 %5021 }
 0x589   :  { %v4298_v11 = vpop.permute.xlu0 %4297  ;;  %5122 = vst.msk [vmem:[#allocation2 + $0xa8] sm:$0x3] %vm13711_vm11, %v5022_v21  ;;  %v7992_v21 = vld [vmem:[%s13670_s0 + $0xf9] sm:$0x3] }
 0x58a   :  { %4397 = vst.msk [vmem:[#allocation2 + $0xb0] sm:$0xff] %vm13895_vm7, %v4298_v11  ;;  %2378 = vrot.lane.b32.xlu1 %v2267_v47, %s8461_s18  ;;  %vm13899_vm7 = vcmask 687744  }
 0x58b   :  { %5269 = vrot.lane.b32.xlu0 %v12099_v13, %s13730_s25 }
 0x58c   :  { %v2371_v57 = vpop.permute.xlu1 %2370 }
 0x58d   :  { %v5262_v59 = vpop.permute.xlu0 %5261  ;;  %2465 = vst.msk [vmem:[#allocation2 + $0xd8] sm:$0x3] %vm13896_vm10, %v2371_v57  ;;  %vm13900_vm10 = vcmask 419200   ;;  %v2511_v57 = vld [vmem:[%s13670_s0 + $0x118] sm:$0x3] }
 0x58e   :  { %5363 = vst.msk [vmem:[#allocation2 + $0xa0] sm:$0xff] %vm13710_vm0, %v5262_v59  ;;  %3343 = vrot.lane.b32.xlu1 %v7674_v27, %s8463_s12 }
 0x58f   :  { %2618 = vrot.lane.b32.xlu0 %v12290_v29, %s8461_s18 }
 0x590   :  { %v3336_v45 = vpop.permute.xlu1 %3335 }
 0x591   :  { %v2611_v52 = vpop.permute.xlu0 %2610  ;;  %3432 = vst.msk [vmem:[#allocation2 + $0xc8] sm:$0x3] %vm13714_vm1, %v3336_v45  ;;  %v7716_v45 = vld [vmem:[%s13670_s0 + $0x118] sm:$0x3] }
 0x592   :  { %2706 = vst.msk [vmem:[#allocation2 + $0xd0] sm:$0xff] %vm13897_vm5, %v2611_v52  ;;  %4307 = vrot.lane.b32.xlu1 %v7832_v7, %s8464_s30  ;;  %vm13901_vm5 = vcmask 550400   ;;  %v12488_v52 = vld [vmem:[%s13670_s0 + $0x111] sm:$0xff] }
 0x593   :  { %3583 = vrot.lane.b32.xlu0 %v12290_v29, %s8463_s12 }
 0x594   :  { %v4300_v38 = vpop.permute.xlu1 %4299 }
 0x595   :  { %v3576_v53 = vpop.permute.xlu0 %3575  ;;  %4398 = vst.msk [vmem:[#allocation2 + $0xb8] sm:$0x3] %vm13712_vm8, %v4300_v38 }
 0x596   :  { %3673 = vst.msk [vmem:[#allocation2 + $0xc0] sm:$0xff] %vm13713_vm2, %v3576_v53  ;;  %5271 = vrot.lane.b32.xlu1 %v7990_v20, %s13730_s25 }
 0x597   :  { %4547 = vrot.lane.b32.xlu0 %v12157_v61, %s8465_s24 }
 0x598   :  { %v5264_v34 = vpop.permute.xlu1 %5263 }
 0x599   :  { %v4540_v55 = vpop.permute.xlu0 %4539  ;;  %5364 = vst.msk [vmem:[#allocation2 + $0xa8] sm:$0x3] %vm13898_vm3, %v5264_v34  ;;  %vm13902_vm3 = vcmask 458144   ;;  %v8032_v34 = vld [vmem:[%s13670_s0 + $0xf9] sm:$0x3] }
 0x59a   :  { %4639 = vst.msk [vmem:[#allocation2 + $0xb0] sm:$0xff] %vm13899_vm7, %v4540_v55  ;;  %2620 = vrot.lane.b32.xlu1 %v2509_v32, %s8461_s18  ;;  %vm13903_vm7 = vcmask 681600  }
 0x59b   :  { %5511 = vrot.lane.b32.xlu0 %v12099_v13, %s13730_s25  ;;  %v7872_v13 = vld [vmem:[%s13670_s0 + $0xf8] sm:$0x3] }
 0x59c   :  { %v2613_v23 = vpop.permute.xlu1 %2612 }
 0x59d   :  { %v5504_v1 = vpop.permute.xlu0 %5503  ;;  %2707 = vst.msk [vmem:[#allocation2 + $0xd8] sm:$0x3] %vm13900_vm10, %v2613_v23  ;;  %vm13904_vm10 = vcmask 589344  }
 0x59e   :  { %5605 = vst.msk [vmem:[#allocation2 + $0xa0] sm:$0xff] %vm13706_vm6, %v5504_v1  ;;  %3585 = vrot.lane.b32.xlu1 %v7714_v36, %s8463_s12 }
 0x59f   :  { %2860 = vrot.lane.b32.xlu0 %v12360_v5, %s8462_s22 }
 0x5a0   :  { %v3578_v6 = vpop.permute.xlu1 %3577 }
 0x5a1   :  { %v2853_v33 = vpop.permute.xlu0 %2852  ;;  %3674 = vst.msk [vmem:[#allocation2 + $0xc8] sm:$0x3] %vm13901_vm5, %v3578_v6  ;;  %vm13905_vm5 = vcmask 812800  }
 0x5a2   :  { %2948 = vst.msk [vmem:[#allocation2 + $0xd0] sm:$0xff] %vm13902_vm3, %v2853_v33  ;;  %4549 = vrot.lane.b32.xlu1 %v7872_v13, %s8465_s24  ;;  %vm13906_vm3 = vcmask 720544  }
 0x5a3   :  { %3825 = vrot.lane.b32.xlu0 %v12290_v29, %s8463_s12 }
 0x5a4   :  { %v4542_v9 = vpop.permute.xlu1 %4541  ;;  %v8202_v60 = vpop.f32.mrb[12].mxu0 }
 0x5a5   :  { %v3818_v44 = vpop.permute.xlu0 %3817  ;;  %v5645_v18 = vld [vmem:[#allocation2 + $0xa0] sm:$0xff]  ;;  %4640 = vst.msk [vmem:[#allocation2 + $0xb8] sm:$0x3] %vm13903_vm7, %v4542_v9  ;;  %v5942_v15 = vadd.f32 %v12251_v12, %v8202_v60  ;;  %v5936_v28 = vpop.f32.mrb[13].mxu0  ;;  %vm13907_vm7 = vcmask 490944  }
 0x5a6   :  { %3915 = vst.msk [vmem:[#allocation2 + $0xc0] sm:$0xff] %vm13904_vm10, %v3818_v44  ;;  %8212 = vmatprep.mubr.msk.f32.mxu0 %vm13709_vm4, %v5645_v18  ;;  %5513 = vrot.lane.b32.xlu1 %v8030_v62, %s13730_s25  ;;  %v5937_v46 = vadd.f32 %v12251_v12, %v5936_v28  ;;  %vm13908_vm10 = vcmask 452000   ;;  %v2753_v62 = vld [vmem:[%s13670_s0 + $0x119] sm:$0x3]  ;;  %v7914_v28 = vld [vmem:[%s13670_s0 + $0x108] sm:$0x3] }
 0x5a7   :  { %4789 = vrot.lane.b32.xlu0 %v12157_v61, %s8465_s24  ;;  %8369 = vtanh.f32 %v5942_v15  ;;  %v7756_v18 = vld [vmem:[%s13670_s0 + $0x118] sm:$0x3] }
 0x5a8   :  { %v5506_v24 = vpop.permute.xlu1 %5505  ;;  %8371 = vtanh.f32 %v5937_v46 }
 0x5a9   :  { %v4782_v50 = vpop.permute.xlu0 %4781  ;;  %5606 = vst.msk [vmem:[#allocation2 + $0xa8] sm:$0x3] %vm13905_vm5, %v5506_v24  ;;  %vm13909_vm5 = vcmask 583200  }
 0x5aa   :  { %4881 = vst.msk [vmem:[#allocation2 + $0xb0] sm:$0xff] %vm13906_vm3, %v4782_v50  ;;  %3102 = vrot.lane.b32.xlu1 %v12360_v5, %s8462_s22  ;;  %vm13910_vm3 = vcmask 392544  }
 0x5ab   :  { %2862 = vrot.lane.b32.xlu0 %v2751_v58, %s8462_s22 }
 0x5ac   :  { %v3095_v19 = vpop.permute.xlu1 %3094 }
 0x5ad   :  { %v2855_v4 = vpop.permute.xlu0 %2854  ;;  %3190 = vst.msk [vmem:[#allocation2 + $0xd0] sm:$0xff] %vm13907_vm7, %v3095_v19  ;;  %vm13911_vm7 = vcmask 616000   ;;  %v2995_v19 = vld [vmem:[%s13670_s0 + $0x119] sm:$0x3] }
 0x5ae   :  { %2949 = vst.msk [vmem:[#allocation2 + $0xd8] sm:$0x3] %vm13908_vm10, %v2855_v4  ;;  %4067 = vrot.lane.b32.xlu1 %v12360_v5, %s8464_s30  ;;  %vm13912_vm10 = vcmask 523744   ;;  %v12546_v4 = vld [vmem:[%s13670_s0 + $0x120] sm:$0xff] }
 0x5af   :  { %3827 = vrot.lane.b32.xlu0 %v7754_v35, %s8463_s12 }
 0x5b0   :  { %v4060_v17 = vpop.permute.xlu1 %4059  ;;  %v5646_v48 = vld [vmem:[#allocation2 + $0xa8] sm:$0xff] }
 0x5b1   :  { %v3820_v39 = vpop.permute.xlu0 %3819  ;;  %4157 = vst.msk [vmem:[#allocation2 + $0xc0] sm:$0xff] %vm13702_vm14, %v4060_v17  ;;  %8213 = vmatmul.mubr.msk.f32.gmra.mrb[20].mxu0 %vm13709_vm4, %v5646_v48  ;;  %v8370_v0 = vpop.eup %8369  ;;  %v7796_v48 = vld [vmem:[%s13670_s0 + $0x119] sm:$0x3] }
 0x5b2   :  { %3916 = vst.msk [vmem:[#allocation2 + $0xc8] sm:$0x3] %vm13909_vm5, %v3820_v39  ;;  %5031 = vrot.lane.b32.xlu1 %v12157_v61, %s8465_s24  ;;  %v8372_v14 = vpop.eup %8371  ;;  %v7794_v61 = vld [vmem:[%s13670_s0 + $0x109] sm:$0x3]  ;;  %vm13913_vm5 = vcmask 654944  }
 0x5b3   :  { %4791 = vrot.lane.b32.xlu0 %v7912_v22, %s8465_s24  ;;  %6129 = vst.msk [vmem:[#allocation3 + $0x68] sm:$0xff] %vm6115_vm9, %v8370_v0  ;;  %6128 = vst.msk [vmem:[#allocation3 + $0x60] sm:$0xff] %vm6115_vm9, %v8372_v14  ;;  %v6158_v39 = vld [vmem:[#allocation3 + $0x20] sm:$0x1]  ;;  %v6159_v0 = vld [vmem:[#allocation3 + $0x30] sm:$0x1] }
 0x5b4   :  { %v5024_v30 = vpop.permute.xlu1 %5023 }
 0x5b5   :  { %v4784_v37 = vpop.permute.xlu0 %4783  ;;  %5123 = vst.msk [vmem:[#allocation2 + $0xb0] sm:$0xff] %vm13701_vm13, %v5024_v30  ;;  %v6160_v30 = vld [vmem:[#allocation3 + $0x40] sm:$0x1] }
 0x5b6   :  { %4882 = vst.msk [vmem:[#allocation2 + $0xb8] sm:$0x3] %vm13700_vm12, %v4784_v37  ;;  %3104 = vrot.lane.b32.xlu1 %v2993_v40, %s8462_s22 }
 0x5b7   :  { %2380 = vrot.lane.b32.xlu0 %v12418_v3, %s8461_s18 }
 0x5b8   :  { %v3097_v42 = vpop.permute.xlu1 %3096 }
 0x5b9   :  { %v2373_v43 = vpop.permute.xlu0 %2372  ;;  %3191 = vst.msk [vmem:[#allocation2 + $0xd8] sm:$0x3] %vm13699_vm15, %v3097_v42  ;;  %v6199_v42 = vrot.slane %v6158_v39, 6 }
 0x5ba   :  { %2466 = vst.msk [vmem:[#allocation2 + $0xe0] sm:$0xff] %vm13910_vm3, %v2373_v43  ;;  %4069 = vrot.lane.b32.xlu1 %v7794_v61, %s8464_s30  ;;  %vm13914_vm3 = vcmask 386400   ;;  %v6161_v61 = vld [vmem:[#allocation3 + $0x50] sm:$0x1]  ;;  %v6162_v43 = vld [vmem:[#allocation3 + $0x60] sm:$0x1] }
 0x5bb   :  { %3345 = vrot.lane.b32.xlu0 %v12418_v3, %s8463_s12 }
 0x5bc   :  { %v4062_v10 = vpop.permute.xlu1 %4061 }
 0x5bd   :  { %v3338_v2 = vpop.permute.xlu0 %3337  ;;  %4158 = vst.msk [vmem:[#allocation2 + $0xc8] sm:$0x3] %vm13911_vm7, %v4062_v10  ;;  %vm13915_vm7 = vcmask 425344   ;;  %v7954_v10 = vld [vmem:[%s13670_s0 + $0x108] sm:$0x3] }
 0x5be   :  { %3433 = vst.msk [vmem:[#allocation2 + $0xd0] sm:$0xff] %vm13912_vm10, %v3338_v2  ;;  %5033 = vrot.lane.b32.xlu1 %v7952_v49, %s8465_s24  ;;  %vm13916_vm10 = vcmask 780000   ;;  %v6202_v49 = vrot.slane %v6159_v0, 5  ;;  %v6205_v2 = vrot.slane %v6160_v30, 4 }
 0x5bf   :  { %4309 = vrot.lane.b32.xlu0 %v12360_v5, %s8464_s30 }
 0x5c0   :  { %v5026_v8 = vpop.permute.xlu1 %5025 }
 0x5c1   :  { %v4302_v16 = vpop.permute.xlu0 %4301  ;;  %5124 = vst.msk [vmem:[#allocation2 + $0xb8] sm:$0x3] %vm13711_vm11, %v5026_v8 }
 0x5c2   :  { %4399 = vst.msk [vmem:[#allocation2 + $0xc0] sm:$0xff] %vm13913_vm5, %v4302_v16  ;;  %2382 = vrot.lane.b32.xlu1 %v2269_v63, %s8461_s18  ;;  %vm13917_vm5 = vcmask 687744   ;;  %v6156_v63 = vld [vmem:[#allocation3] sm:$0x1] }
 0x5c3   :  { %5273 = vrot.lane.b32.xlu0 %v12227_v31, %s13730_s25 }
 0x5c4   :  { %v2375_v26 = vpop.permute.xlu1 %2374 }
 0x5c5   :  { %v5266_v25 = vpop.permute.xlu0 %5265  ;;  %2467 = vst.msk [vmem:[#allocation2 + $0xe8] sm:$0x3] %vm13914_vm3, %v2375_v26  ;;  %vm13918_vm3 = vcmask 419200  }
 0x5c6   :  { %5365 = vst.msk [vmem:[#allocation2 + $0xb0] sm:$0xff] %vm13710_vm0, %v5266_v25  ;;  %3347 = vrot.lane.b32.xlu1 %v7676_v51, %s8463_s12  ;;  %v6208_v51 = vrot.slane %v6161_v61, 3  ;;  %v6211_v25 = vrot.slane %v6162_v43, 2 }
 0x5c7   :  { %2622 = vrot.lane.b32.xlu0 %v12418_v3, %s8461_s18 }
 0x5c8   :  { %v3340_v54 = vpop.permute.xlu1 %3339 }
 0x5c9   :  { %v2615_v47 = vpop.permute.xlu0 %2614  ;;  %3434 = vst.msk [vmem:[#allocation2 + $0xd8] sm:$0x3] %vm13714_vm1, %v3340_v54 }
 0x5ca   :  { %2708 = vst.msk [vmem:[#allocation2 + $0xe0] sm:$0xff] %vm13915_vm7, %v2615_v47  ;;  %4311 = vrot.lane.b32.xlu1 %v7834_v41, %s8464_s30  ;;  %vm13919_vm7 = vcmask 550400  }
 0x5cb   :  { %3587 = vrot.lane.b32.xlu0 %v12418_v3, %s8463_s12 }
 0x5cc   :  { %v4304_v11 = vpop.permute.xlu1 %4303 }
 0x5cd   :  { %v3580_v27 = vpop.permute.xlu0 %3579  ;;  %4400 = vst.msk [vmem:[#allocation2 + $0xc8] sm:$0x3] %vm13712_vm8, %v4304_v11 }
 0x5ce   :  { %3675 = vst.msk [vmem:[#allocation2 + $0xd0] sm:$0xff] %vm13713_vm2, %v3580_v27  ;;  %5275 = vrot.lane.b32.xlu1 %v7992_v21, %s13730_s25  ;;  %v2271_v21 = vld [vmem:[%s13670_s0 + $0x128] sm:$0x3] }
 0x5cf   :  { %4551 = vrot.lane.b32.xlu0 %v12290_v29, %s8465_s24 }
 0x5d0   :  { %v5268_v59 = vpop.permute.xlu1 %5267 }
 0x5d1   :  { %v4544_v7 = vpop.permute.xlu0 %4543  ;;  %5366 = vst.msk [vmem:[#allocation2 + $0xb8] sm:$0x3] %vm13916_vm10, %v5268_v59  ;;  %vm13920_vm10 = vcmask 458144  }
 0x5d2   :  { %4641 = vst.msk [vmem:[#allocation2 + $0xc0] sm:$0xff] %vm13917_vm5, %v4544_v7  ;;  %2624 = vrot.lane.b32.xlu1 %v2511_v57, %s8461_s18  ;;  %vm13921_vm5 = vcmask 681600  }
 0x5d3   :  { %5515 = vrot.lane.b32.xlu0 %v12227_v31, %s13730_s25  ;;  %v7874_v31 = vld [vmem:[%s13670_s0 + $0x108] sm:$0x3] }
 0x5d4   :  { %v2617_v20 = vpop.permute.xlu1 %2616 }
 0x5d5   :  { %v5508_v38 = vpop.permute.xlu0 %5507  ;;  %2709 = vst.msk [vmem:[#allocation2 + $0xe8] sm:$0x3] %vm13918_vm3, %v2617_v20  ;;  %vm13922_vm3 = vcmask 589344  }
 0x5d6   :  { %5607 = vst.msk [vmem:[#allocation2 + $0xb0] sm:$0xff] %vm13706_vm6, %v5508_v38  ;;  %3589 = vrot.lane.b32.xlu1 %v7716_v45, %s8463_s12  ;;  %v7678_v38 = vld [vmem:[%s13670_s0 + $0x128] sm:$0x3] }
 0x5d7   :  { %2864 = vrot.lane.b32.xlu0 %v12488_v52, %s8462_s22 }
 0x5d8   :  { %v3582_v53 = vpop.permute.xlu1 %3581 }
 0x5d9   :  { %v2857_v32 = vpop.permute.xlu0 %2856  ;;  %3676 = vst.msk [vmem:[#allocation2 + $0xd8] sm:$0x3] %vm13919_vm7, %v3582_v53  ;;  %vm13923_vm7 = vcmask 812800  }
 0x5da   :  { %2950 = vst.msk [vmem:[#allocation2 + $0xe0] sm:$0xff] %vm13920_vm10, %v2857_v32  ;;  %4553 = vrot.lane.b32.xlu1 %v7874_v31, %s8465_s24  ;;  %vm13924_vm10 = vcmask 720544   ;;  %v7836_v32 = vld [vmem:[%s13670_s0 + $0x119] sm:$0x3] }
 0x5db   :  { %3829 = vrot.lane.b32.xlu0 %v12418_v3, %s8463_s12 }
 0x5dc   :  { %v4546_v55 = vpop.permute.xlu1 %4545  ;;  %v8205_v1 = vpop.f32.mrb[14].mxu0 }
 0x5dd   :  { %v3822_v36 = vpop.permute.xlu0 %3821  ;;  %v5647_v23 = vld [vmem:[#allocation2 + $0xb0] sm:$0xff]  ;;  %4642 = vst.msk [vmem:[#allocation2 + $0xc8] sm:$0x3] %vm13921_vm5, %v4546_v55  ;;  %v5952_v13 = vadd.f32 %v12251_v12, %v8205_v1  ;;  %v5946_v6 = vpop.f32.mrb[15].mxu0  ;;  %vm13925_vm5 = vcmask 490944  }
 0x5de   :  { %3917 = vst.msk [vmem:[#allocation2 + $0xd0] sm:$0xff] %vm13922_vm3, %v3822_v36  ;;  %8215 = vmatprep.mubr.msk.f32.mxu0 %vm13709_vm4, %v5647_v23  ;;  %5517 = vrot.lane.b32.xlu1 %v8032_v34, %s13730_s25  ;;  %v5947_v33 = vadd.f32 %v12251_v12, %v5946_v6  ;;  %vm13926_vm3 = vcmask 452000   ;;  %v7994_v36 = vld [vmem:[%s13670_s0 + $0x109] sm:$0x3] }
 0x5df   :  { %4793 = vrot.lane.b32.xlu0 %v12290_v29, %s8465_s24  ;;  %8373 = vtanh.f32 %v5952_v13  ;;  %v2513_v13 = vld [vmem:[%s13670_s0 + $0x128] sm:$0x3] }
 0x5e0   :  { %v5510_v9 = vpop.permute.xlu1 %5509  ;;  %8375 = vtanh.f32 %v5947_v33 }
 0x5e1   :  { %v4786_v44 = vpop.permute.xlu0 %4785  ;;  %5608 = vst.msk [vmem:[#allocation2 + $0xb8] sm:$0x3] %vm13923_vm7, %v5510_v9  ;;  %vm13927_vm7 = vcmask 583200   ;;  %v12624_v9 = vld [vmem:[%s13670_s0 + $0x121] sm:$0xff] }
 0x5e2   :  { %4883 = vst.msk [vmem:[#allocation2 + $0xc0] sm:$0xff] %vm13924_vm10, %v4786_v44  ;;  %3106 = vrot.lane.b32.xlu1 %v12488_v52, %s8462_s22  ;;  %vm13928_vm10 = vcmask 392544  }
 0x5e3   :  { %2866 = vrot.lane.b32.xlu0 %v2753_v62, %s8462_s22  ;;  %v7718_v62 = vld [vmem:[%s13670_s0 + $0x128] sm:$0x3] }
 0x5e4   :  { %v3099_v60 = vpop.permute.xlu1 %3098 }
 0x5e5   :  { %v2859_v15 = vpop.permute.xlu0 %2858  ;;  %3192 = vst.msk [vmem:[#allocation2 + $0xe0] sm:$0xff] %vm13925_vm5, %v3099_v60  ;;  %vm6197_vm5 = vcmask 1041409  }
 0x5e6   :  { %2951 = vst.msk [vmem:[#allocation2 + $0xe8] sm:$0x3] %vm13926_vm3, %v2859_v15  ;;  %4071 = vrot.lane.b32.xlu1 %v12488_v52, %s8464_s30  ;;  %vm13707_vm3 = vcmask 1042434  }
 0x5e7   :  { %3831 = vrot.lane.b32.xlu0 %v7756_v18, %s8463_s12 }
 0x5e8   :  { %v4064_v46 = vpop.permute.xlu1 %4063  ;;  %v5648_v24 = vld [vmem:[#allocation2 + $0xb8] sm:$0xff] }
 0x5e9   :  { %v3824_v58 = vpop.permute.xlu0 %3823  ;;  %4159 = vst.msk [vmem:[#allocation2 + $0xd0] sm:$0xff] %vm13702_vm14, %v4064_v46  ;;  %8216 = vmatmul.mubr.msk.f32.gmra.mrb[22].mxu0 %vm13709_vm4, %v5648_v24  ;;  %v8374_v50 = vpop.eup %8373  ;;  %vm13705_vm14 = vcmask 1046534  }
 0x5ea   :  { %3918 = vst.msk [vmem:[#allocation2 + $0xd8] sm:$0x3] %vm13927_vm7, %v3824_v58  ;;  %5035 = vrot.lane.b32.xlu1 %v12290_v29, %s8465_s24  ;;  %v8376_v35 = vpop.eup %8375  ;;  %v6157_v29 = vld [vmem:[#allocation3 + $0x10] sm:$0x1]  ;;  %vm6203_vm7 = vcmask 1043459  }
 0x5eb   :  { %4795 = vrot.lane.b32.xlu0 %v7914_v28, %s8465_s24  ;;  %6131 = vst.msk [vmem:[#allocation3 + $0x78] sm:$0xff] %vm6115_vm9, %v8374_v50  ;;  %6130 = vst.msk [vmem:[#allocation3 + $0x70] sm:$0xff] %vm6115_vm9, %v8376_v35  ;;  %v6196_v37 = vrot.slane %v6157_v29, 7  ;;  %v8034_v28 = vld [vmem:[%s13670_s0 + $0x109] sm:$0x3] }
 0x5ec   :  { %v5028_v22 = vpop.permute.xlu1 %5027 }
 0x5ed   :  { %v4788_v17 = vpop.permute.xlu0 %4787  ;;  %5125 = vst.msk [vmem:[#allocation2 + $0xc0] sm:$0xff] %vm13701_vm13, %v5028_v22  ;;  %v6198_v26 = vsel %vm6197_vm5, %v6196_v37, %v6156_v63  ;;  %vm13703_vm13 = vcmask 1045509  }
 0x5ee   :  { %4884 = vst.msk [vmem:[#allocation2 + $0xc8] sm:$0x3] %vm13700_vm12, %v4788_v17  ;;  %3108 = vrot.lane.b32.xlu1 %v2995_v19, %s8462_s22  ;;  %vm13930_vm12 = vcmask 523744   ;;  %v6201_v41 = vsel %vm13707_vm3, %v6199_v42, %v6198_v26  ;;  %v2755_v17 = vld [vmem:[%s13670_s0 + $0x129] sm:$0x3] }
 0x5ef   :  { %2384 = vrot.lane.b32.xlu0 %v12546_v4, %s8461_s18  ;;  %v6204_v47 = vsel %vm6203_vm7, %v6202_v49, %v6201_v41  ;;  %v12679_v49 = vld [vmem:[%s13670_s0 + $0x130] sm:$0xff]  ;;  %v7680_v41 = vld [vmem:[%s13670_s0 + $0x138] sm:$0x3] }
 0x5f0   :  { %v3101_v14 = vpop.permute.xlu1 %3100 }
 0x5f1   :  { %v2377_v40 = vpop.permute.xlu0 %2376  ;;  %3193 = vst.msk [vmem:[#allocation2 + $0xe8] sm:$0x3] %vm13699_vm15, %v3101_v14  ;;  %vm13929_vm15 = vcmask 616000  }
 0x5f2   :  { %2468 = vst.msk [vmem:[#allocation2 + $0xf0] sm:$0xff] %vm13928_vm10, %v2377_v40  ;;  %4073 = vrot.lane.b32.xlu1 %v7796_v48, %s8464_s30  ;;  %vm13708_vm10 = vcmask 1044484   ;;  %v6163_v54 = vld [vmem:[#allocation3 + $0x70] sm:$0x1]  ;;  %v7758_v48 = vld [vmem:[%s13670_s0 + $0x128] sm:$0x3] }
 0x5f3   :  { %3349 = vrot.lane.b32.xlu0 %v12546_v4, %s8463_s12  ;;  %v6207_v11 = vsel %vm13708_vm10, %v6205_v2, %v6204_v47  ;;  %v6214_v59 = vrot.slane %v6163_v54, 1  ;;  %v7916_v40 = vld [vmem:[%s13670_s0 + $0x118] sm:$0x3] }
 0x5f4   :  { %v4066_v8 = vpop.permute.xlu1 %4065  ;;  %v6210_v7 = vsel %vm13703_vm13, %v6208_v51, %v6207_v11  ;;  %vm13932_vm13 = vcmask 386400   ;;  %v7956_v51 = vld [vmem:[%s13670_s0 + $0x118] sm:$0x3] }
 0x5f5   :  { %v3342_v16 = vpop.permute.xlu0 %3341  ;;  %4160 = vst.msk [vmem:[#allocation2 + $0xd8] sm:$0x3] %vm13929_vm15, %v4066_v8  ;;  %vm13704_vm15 = vcmask 1047559   ;;  %v6213_v45 = vsel %vm13705_vm14, %v6211_v25, %v6210_v7  ;;  %vm13940_vm14 = vcmask 589344  }
 0x5f6   :  { %3435 = vst.msk [vmem:[#allocation2 + $0xe0] sm:$0xff] %vm13930_vm12, %v3342_v16  ;;  %5037 = vrot.lane.b32.xlu1 %v7954_v10, %s8465_s24  ;;  %vm13931_vm12 = vcmask 654944   ;;  %v6216_v20 = vsel %vm13704_vm15, %v6214_v59, %v6213_v45  ;;  %vm13936_vm15 = vcmask 419200   ;;  %v2997_v10 = vld [vmem:[%s13670_s0 + $0x129] sm:$0x3] }
 0x5f7   :  { %4313 = vrot.lane.b32.xlu0 %v12488_v52, %s8464_s30  ;;  %6239 = vst.msk [vmem:[#allocation6] sm:$0xff] %vm6115_vm9, %v6216_v20  ;;  %v7720_v45 = vld [vmem:[%s13670_s0 + $0x138] sm:$0x3] }
 0x5f8   :  { %v5030_v27 = vpop.permute.xlu1 %5029 }
 0x5f9   :  { %v4306_v57 = vpop.permute.xlu0 %4305  ;;  %5126 = vst.msk [vmem:[#allocation2 + $0xc8] sm:$0x3] %vm13711_vm11, %v5030_v27 }
 0x5fa   :  { %4401 = vst.msk [vmem:[#allocation2 + $0xd0] sm:$0xff] %vm13931_vm12, %v4306_v57  ;;  %2386 = vrot.lane.b32.xlu1 %v2271_v21, %s8461_s18  ;;  %vm13933_vm12 = vcmask 425344   ;;  %v7838_v21 = vld [vmem:[%s13670_s0 + $0x129] sm:$0x3]  ;;  %v7996_v57 = vld [vmem:[%s13670_s0 + $0x119] sm:$0x3] }
 0x5fb   :  { %5277 = vrot.lane.b32.xlu0 %v12360_v5, %s13730_s25 }
 0x5fc   :  { %v2379_v31 = vpop.permute.xlu1 %2378 }
 0x5fd   :  { %v5270_v53 = vpop.permute.xlu0 %5269  ;;  %2469 = vst.msk [vmem:[#allocation2 + $0xf8] sm:$0x3] %vm13932_vm13, %v2379_v31  ;;  %vm13934_vm13 = vcmask 780000  }
 0x5fe   :  { %5367 = vst.msk [vmem:[#allocation2 + $0xc0] sm:$0xff] %vm13710_vm0, %v5270_v53  ;;  %3351 = vrot.lane.b32.xlu1 %v7678_v38, %s8463_s12 }
 0x5ff   :  { %2626 = vrot.lane.b32.xlu0 %v12546_v4, %s8461_s18 }
 0x600   :  { %v3344_v34 = vpop.permute.xlu1 %3343 }
 0x601   :  { %v2619_v55 = vpop.permute.xlu0 %2618  ;;  %3436 = vst.msk [vmem:[#allocation2 + $0xe8] sm:$0x3] %vm13714_vm1, %v3344_v34  ;;  %v8036_v34 = vld [vmem:[%s13670_s0 + $0x119] sm:$0x3] }
 0x602   :  { %2710 = vst.msk [vmem:[#allocation2 + $0xf0] sm:$0xff] %vm13933_vm12, %v2619_v55  ;;  %4315 = vrot.lane.b32.xlu1 %v7836_v32, %s8464_s30  ;;  %vm13935_vm12 = vcmask 687744   ;;  %v7760_v32 = vld [vmem:[%s13670_s0 + $0x138] sm:$0x3] }
 0x603   :  { %3591 = vrot.lane.b32.xlu0 %v12546_v4, %s8463_s12 }
 0x604   :  { %v4308_v23 = vpop.permute.xlu1 %4307 }
 0x605   :  { %v3584_v1 = vpop.permute.xlu0 %3583  ;;  %4402 = vst.msk [vmem:[#allocation2 + $0xd8] sm:$0x3] %vm13712_vm8, %v4308_v23  ;;  %v7918_v23 = vld [vmem:[%s13670_s0 + $0x128] sm:$0x3] }
 0x606   :  { %3677 = vst.msk [vmem:[#allocation2 + $0xe0] sm:$0xff] %vm13713_vm2, %v3584_v1  ;;  %5279 = vrot.lane.b32.xlu1 %v7994_v36, %s13730_s25  ;;  %v12762_v1 = vld [vmem:[%s13670_s0 + $0x131] sm:$0xff] }
 0x607   :  { %4555 = vrot.lane.b32.xlu0 %v12418_v3, %s8465_s24 }
 0x608   :  { %v5272_v6 = vpop.permute.xlu1 %5271 }
 0x609   :  { %v4548_v33 = vpop.permute.xlu0 %4547  ;;  %5368 = vst.msk [vmem:[#allocation2 + $0xc8] sm:$0x3] %vm13934_vm13, %v5272_v6  ;;  %vm13937_vm13 = vcmask 550400  }
 0x60a   :  { %4643 = vst.msk [vmem:[#allocation2 + $0xd0] sm:$0xff] %vm13935_vm12, %v4548_v33  ;;  %2628 = vrot.lane.b32.xlu1 %v2513_v13, %s8461_s18  ;;  %vm13938_vm12 = vcmask 458144   ;;  %v7800_v33 = vld [vmem:[%s13670_s0 + $0x139] sm:$0x3] }
 0x60b   :  { %5519 = vrot.lane.b32.xlu0 %v12360_v5, %s13730_s25  ;;  %v7876_v5 = vld [vmem:[%s13670_s0 + $0x118] sm:$0x3] }
 0x60c   :  { %v2621_v44 = vpop.permute.xlu1 %2620 }
 0x60d   :  { %v5512_v18 = vpop.permute.xlu0 %5511  ;;  %2711 = vst.msk [vmem:[#allocation2 + $0xf8] sm:$0x3] %vm13936_vm15, %v2621_v44  ;;  %vm13939_vm15 = vcmask 681600  }
 0x60e   :  { %5609 = vst.msk [vmem:[#allocation2 + $0xc0] sm:$0xff] %vm13706_vm6, %v5512_v18  ;;  %3593 = vrot.lane.b32.xlu1 %v7718_v62, %s8463_s12 }
 0x60f   :  { %2868 = vrot.lane.b32.xlu0 %v12624_v9, %s8462_s22 }
 0x610   :  { %v3586_v60 = vpop.permute.xlu1 %3585 }
 0x611   :  { %v2861_v15 = vpop.permute.xlu0 %2860  ;;  %3678 = vst.msk [vmem:[#allocation2 + $0xe8] sm:$0x3] %vm13937_vm13, %v3586_v60  ;;  %vm13942_vm13 = vcmask 720544  }
 0x612   :  { %2952 = vst.msk [vmem:[#allocation2 + $0xf0] sm:$0xff] %vm13938_vm12, %v2861_v15  ;;  %4557 = vrot.lane.b32.xlu1 %v7876_v5, %s8465_s24  ;;  %vm13943_vm12 = vcmask 490944  }
 0x613   :  { %3833 = vrot.lane.b32.xlu0 %v12546_v4, %s8463_s12 }
 0x614   :  { %v4550_v46 = vpop.permute.xlu1 %4549  ;;  %v8208_v50 = vpop.f32.mrb[16].mxu0 }
 0x615   :  { %v3826_v58 = vpop.permute.xlu0 %3825  ;;  %v5649_v24 = vld [vmem:[#allocation2 + $0xc0] sm:$0xff]  ;;  %4644 = vst.msk [vmem:[#allocation2 + $0xd8] sm:$0x3] %vm13939_vm15, %v4550_v46  ;;  %v5962_v35 = vadd.f32 %v12251_v12, %v8208_v50  ;;  %v5956_v19 = vpop.f32.mrb[17].mxu0  ;;  %vm13944_vm15 = vcmask 452000  }
 0x616   :  { %3919 = vst.msk [vmem:[#allocation2 + $0xe0] sm:$0xff] %vm13940_vm14, %v3826_v58  ;;  %8218 = vmatprep.mubr.msk.f32.mxu0 %vm13709_vm4, %v5649_v24  ;;  %5521 = vrot.lane.b32.xlu1 %v8034_v28, %s13730_s25  ;;  %v5957_v22 = vadd.f32 %v12251_v12, %v5956_v19  ;;  %vm13941_vm14 = vcmask 812800   ;;  %v7958_v46 = vld [vmem:[%s13670_s0 + $0x128] sm:$0x3] }
 0x617   :  { %4797 = vrot.lane.b32.xlu0 %v12418_v3, %s8465_s24  ;;  %8377 = vtanh.f32 %v5962_v35  ;;  %v7998_v35 = vld [vmem:[%s13670_s0 + $0x129] sm:$0x3] }
 0x618   :  { %v5514_v29 = vpop.permute.xlu1 %5513  ;;  %8379 = vtanh.f32 %v5957_v22 }
 0x619   :  { %v4790_v39 = vpop.permute.xlu0 %4789  ;;  %5610 = vst.msk [vmem:[#allocation2 + $0xc8] sm:$0x3] %vm13941_vm14, %v5514_v29  ;;  %vm13945_vm14 = vcmask 622144  }
 0x61a   :  { %4885 = vst.msk [vmem:[#allocation2 + $0xd0] sm:$0xff] %vm13942_vm13, %v4790_v39  ;;  %3110 = vrot.lane.b32.xlu1 %v12624_v9, %s8462_s22  ;;  %vm13946_vm13 = vcmask 583200  }
 0x61b   :  { %2870 = vrot.lane.b32.xlu0 %v2755_v17, %s8462_s22 }
 0x61c   :  { %v3103_v0 = vpop.permute.xlu1 %3102 }
 0x61d   :  { %v2863_v14 = vpop.permute.xlu0 %2862  ;;  %3194 = vst.msk [vmem:[#allocation2 + $0xf0] sm:$0xff] %vm13943_vm12, %v3103_v0  ;;  %vm13947_vm12 = vcmask 753344  }
 0x61e   :  { %2953 = vst.msk [vmem:[#allocation2 + $0xf8] sm:$0x3] %vm13944_vm15, %v2863_v14  ;;  %4075 = vrot.lane.b32.xlu1 %v12624_v9, %s8464_s30  ;;  %vm13948_vm15 = vcmask 714400  }
 0x61f   :  { %3835 = vrot.lane.b32.xlu0 %v7758_v48, %s8463_s12  ;;  %v7880_v48 = vld [vmem:[%s13670_s0 + $0x138] sm:$0x3] }
 0x620   :  { %v4068_v30 = vpop.permute.xlu1 %4067  ;;  %v5650_v61 = vld [vmem:[#allocation2 + $0xc8] sm:$0xff] }
 0x621   :  { %v3828_v37 = vpop.permute.xlu0 %3827  ;;  %4161 = vst.msk [vmem:[#allocation2 + $0xe0] sm:$0xff] %vm13945_vm14, %v4068_v30  ;;  %8219 = vmatmul.mubr.msk.f32.gmra.mrb[24].mxu0 %vm13709_vm4, %v5650_v61  ;;  %v8378_v42 = vpop.eup %8377  ;;  %vm13949_vm14 = vcmask 484800   ;;  %v6245_v61 = vld [vmem:[#allocation3 + $0x11] sm:$0x1] }
 0x622   :  { %3920 = vst.msk [vmem:[#allocation2 + $0xe8] sm:$0x3] %vm13946_vm13, %v3828_v37  ;;  %5039 = vrot.lane.b32.xlu1 %v12418_v3, %s8465_s24  ;;  %v8380_v43 = vpop.eup %8379  ;;  %v7798_v3 = vld [vmem:[%s13670_s0 + $0x129] sm:$0x3]  ;;  %vm13950_vm13 = vcmask 392544  }
 0x623   :  { %4799 = vrot.lane.b32.xlu0 %v7916_v40, %s8465_s24  ;;  %6133 = vst.msk [vmem:[#allocation3 + $0x88] sm:$0xff] %vm6115_vm9, %v8378_v42  ;;  %6132 = vst.msk [vmem:[#allocation3 + $0x80] sm:$0xff] %vm6115_vm9, %v8380_v43  ;;  %v8038_v40 = vld [vmem:[%s13670_s0 + $0x129] sm:$0x3]  ;;  %v6335_v42 = vld [vmem:[#allocation3 + $0x12] sm:$0x1] }
 0x624   :  { %v5032_v2 = vpop.permute.xlu1 %5031  ;;  %v12820_v43 = vld [vmem:[#allocation3 + $0x13] sm:$0x1] }
 0x625   :  { %v4792_v63 = vpop.permute.xlu0 %4791  ;;  %5127 = vst.msk [vmem:[#allocation2 + $0xd0] sm:$0xff] %vm13947_vm12, %v5032_v2  ;;  %vm13951_vm12 = vcmask 616000   ;;  %v12827_v2 = vld [vmem:[#allocation3 + $0x15] sm:$0x1] }
 0x626   :  { %4886 = vst.msk [vmem:[#allocation2 + $0xd8] sm:$0x3] %vm13948_vm15, %v4792_v63  ;;  %3353 = vrot.lane.b32.xlu1 %v12679_v49, %s8463_s12  ;;  %vm13952_vm15 = vcmask 523744   ;;  %v7920_v63 = vld [vmem:[%s13670_s0 + $0x138] sm:$0x3] }
 0x627   :  { %3112 = vrot.lane.b32.xlu0 %v2997_v10, %s8462_s22  ;;  %v12822_v10 = vld [vmem:[#allocation3 + $0x14] sm:$0x1] }
 0x628   :  { %v3105_v8 = vpop.permute.xlu1 %3104 }
 0x629   :  { %v2381_v16 = vpop.permute.xlu0 %2380  ;;  %3195 = vst.msk [vmem:[#allocation2 + $0xf8] sm:$0x3] %vm13949_vm14, %v3105_v8  ;;  %vm13953_vm14 = vcmask 654944   ;;  %v12834_v8 = vld [vmem:[#allocation3 + $0x23] sm:$0x1] }
 0x62a   :  { %2470 = vst.msk [vmem:[#allocation2 + $0x100] sm:$0xff] %vm13950_vm13, %v2381_v16  ;;  %4317 = vrot.lane.b32.xlu1 %v12624_v9, %s8464_s30  ;;  %vm13954_vm13 = vcmask 386400  }
 0x62b   :  { %4077 = vrot.lane.b32.xlu0 %v7798_v3, %s8464_s30  ;;  %v12832_v3 = vld [vmem:[#allocation3 + $0x22] sm:$0x1] }
 0x62c   :  { %v4070_v26 = vpop.permute.xlu1 %4069 }
 0x62d   :  { %v3346_v25 = vpop.permute.xlu0 %3345  ;;  %4162 = vst.msk [vmem:[#allocation2 + $0xe8] sm:$0x3] %vm13951_vm12, %v4070_v26  ;;  %vm13955_vm12 = vcmask 425344   ;;  %v6284_v26 = vrot.slane %v6245_v61, 7  ;;  %v6341_v61 = vld [vmem:[#allocation3 + $0x72] sm:$0x1] }
 0x62e   :  { %3437 = vst.msk [vmem:[#allocation2 + $0xf0] sm:$0xff] %vm13952_vm15, %v3346_v25  ;;  %5281 = vrot.lane.b32.xlu1 %v12488_v52, %s13730_s25  ;;  %vm13956_vm15 = vcmask 780000   ;;  %v6374_v25 = vrot.slane %v6335_v42, 7 }
 0x62f   :  { %5041 = vrot.lane.b32.xlu0 %v7956_v51, %s8465_s24 }
 0x630   :  { %v5034_v54 = vpop.permute.xlu1 %5033 }
 0x631   :  { %v4310_v47 = vpop.permute.xlu0 %4309  ;;  %5128 = vst.msk [vmem:[#allocation2 + $0xd8] sm:$0x3] %vm13711_vm11, %v5034_v54  ;;  %v6554_v54 = vrot.slane %v12822_v10, 7 }
 0x632   :  { %4403 = vst.msk [vmem:[#allocation2 + $0xe0] sm:$0xff] %vm13953_vm14, %v4310_v47  ;;  %3595 = vrot.lane.b32.xlu1 %v12679_v49, %s8463_s12  ;;  %vm13957_vm14 = vcmask 687744   ;;  %v6247_v47 = vld [vmem:[#allocation3 + $0x31] sm:$0x1] }
 0x633   :  { %3355 = vrot.lane.b32.xlu0 %v7680_v41, %s8463_s12  ;;  %v6464_v41 = vrot.slane %v12820_v43, 7  ;;  %v6431_v43 = vld [vmem:[#allocation3 + $0x73] sm:$0x1] }
 0x634   :  { %v2383_v11 = vpop.permute.xlu1 %2382 }
 0x635   :  { %v5274_v27 = vpop.permute.xlu0 %5273  ;;  %2471 = vst.msk [vmem:[#allocation2 + $0x108] sm:$0x3] %vm13954_vm13, %v2383_v11  ;;  %vm13958_vm13 = vcmask 419200   ;;  %v12840_v11 = vld [vmem:[#allocation3 + $0x24] sm:$0x1] }
 0x636   :  { %5369 = vst.msk [vmem:[#allocation2 + $0xd0] sm:$0xff] %vm13710_vm0, %v5274_v27  ;;  %4559 = vrot.lane.b32.xlu1 %v12546_v4, %s8465_s24  ;;  %v6644_v27 = vrot.slane %v12827_v2, 7 }
 0x637   :  { %4319 = vrot.lane.b32.xlu0 %v7838_v21, %s8464_s30 }
 0x638   :  { %v3348_v59 = vpop.permute.xlu1 %3347 }
 0x639   :  { %v2623_v7 = vpop.permute.xlu0 %2622  ;;  %3438 = vst.msk [vmem:[#allocation2 + $0xf8] sm:$0x3] %vm13714_vm1, %v3348_v59  ;;  %v6376_v59 = vrot.slane %v12832_v3, 6 }
 0x63a   :  { %2712 = vst.msk [vmem:[#allocation2 + $0x100] sm:$0xff] %vm13955_vm12, %v2623_v7  ;;  %5523 = vrot.lane.b32.xlu1 %v12488_v52, %s13730_s25  ;;  %v7878_v52 = vld [vmem:[%s13670_s0 + $0x128] sm:$0x3]  ;;  %vm13959_vm12 = vcmask 550400   ;;  %v12849_v7 = vld [vmem:[#allocation3 + $0x33] sm:$0x1] }
 0x63b   :  { %5283 = vrot.lane.b32.xlu0 %v7996_v57, %s13730_s25  ;;  %v12846_v57 = vld [vmem:[#allocation3 + $0x32] sm:$0x1] }
 0x63c   :  { %v4312_v20 = vpop.permute.xlu1 %4311 }
 0x63d   :  { %v3588_v38 = vpop.permute.xlu0 %3587  ;;  %4404 = vst.msk [vmem:[#allocation2 + $0xe8] sm:$0x3] %vm13712_vm8, %v4312_v20  ;;  %v7960_v20 = vld [vmem:[%s13670_s0 + $0x138] sm:$0x3] }
 0x63e   :  { %3679 = vst.msk [vmem:[#allocation2 + $0xf0] sm:$0xff] %vm13713_vm2, %v3588_v38  ;;  %3837 = vrot.lane.b32.xlu1 %v12679_v49, %s8463_s12  ;;  %v6248_v38 = vld [vmem:[#allocation3 + $0x41] sm:$0x1] }
 0x63f   :  { %3597 = vrot.lane.b32.xlu0 %v7720_v45, %s8463_s12  ;;  %v6466_v45 = vrot.slane %v12834_v8, 6 }
 0x640   :  { %v5276_v31 = vpop.permute.xlu1 %5275 }
 0x641   :  { %v4552_v53 = vpop.permute.xlu0 %4551  ;;  %5370 = vst.msk [vmem:[#allocation2 + $0xd8] sm:$0x3] %vm13956_vm15, %v5276_v31  ;;  %vm13960_vm15 = vcmask 458144  }
 0x642   :  { %4645 = vst.msk [vmem:[#allocation2 + $0xe0] sm:$0xff] %vm13957_vm14, %v4552_v53  ;;  %4801 = vrot.lane.b32.xlu1 %v12546_v4, %s8465_s24  ;;  %vm13961_vm14 = vcmask 681600   ;;  %v6244_v53 = vld [vmem:[#allocation3 + $0x1] sm:$0x1] }
 0x643   :  { %4561 = vrot.lane.b32.xlu0 %v7878_v52, %s8465_s24 }
 0x644   :  { %v2625_v55 = vpop.permute.xlu1 %2624 }
 0x645   :  { %v5516_v36 = vpop.permute.xlu0 %5515  ;;  %2713 = vst.msk [vmem:[#allocation2 + $0x108] sm:$0x3] %vm13958_vm13, %v2625_v55  ;;  %vm13962_vm13 = vcmask 589344   ;;  %v6556_v55 = vrot.slane %v12840_v11, 6 }
 0x646   :  { %5611 = vst.msk [vmem:[#allocation2 + $0xd0] sm:$0xff] %vm13706_vm6, %v5516_v36  ;;  %3839 = vrot.lane.b32.xlu1 %v7760_v32, %s8463_s12  ;;  %v6249_v32 = vld [vmem:[#allocation3 + $0x51] sm:$0x1]  ;;  %v6250_v36 = vld [vmem:[#allocation3 + $0x61] sm:$0x1] }
 0x647   :  { %5525 = vrot.lane.b32.xlu0 %v8036_v34, %s13730_s25  ;;  %v6334_v34 = vld [vmem:[#allocation3 + $0x2] sm:$0x1] }
 0x648   :  { %v3590_v13 = vpop.permute.xlu1 %3589 }
 0x649   :  { %v2865_v6 = vpop.permute.xlu0 %2864  ;;  %3680 = vst.msk [vmem:[#allocation2 + $0xf8] sm:$0x3] %vm13959_vm12, %v3590_v13  ;;  %vm13963_vm12 = vcmask 812800   ;;  %v6424_v13 = vld [vmem:[#allocation3 + $0x3] sm:$0x1] }
 0x64a   :  { %2954 = vst.msk [vmem:[#allocation2 + $0x100] sm:$0xff] %vm13960_vm15, %v2865_v6  ;;  %4803 = vrot.lane.b32.xlu1 %v7918_v23, %s8465_s24  ;;  %vm13964_vm15 = vcmask 720544   ;;  %v12858_v23 = vld [vmem:[#allocation3 + $0x42] sm:$0x1]  ;;  %v6251_v6 = vld [vmem:[#allocation3 + $0x71] sm:$0x1] }
 0x64b   :  { %4079 = vrot.lane.b32.xlu0 %v12762_v1, %s8464_s30 }
 0x64c   :  { %v4554_v62 = vpop.permute.xlu1 %4553  ;;  %v8211_v5 = vpop.f32.mrb[18].mxu0 }
 0x64d   :  { %v3830_v44 = vpop.permute.xlu0 %3829  ;;  %v5651_v18 = vld [vmem:[#allocation2 + $0xd0] sm:$0xff]  ;;  %4646 = vst.msk [vmem:[#allocation2 + $0xe8] sm:$0x3] %vm13961_vm14, %v4554_v62  ;;  %v5972_v60 = vadd.f32 %v12251_v12, %v8211_v5  ;;  %v5966_v15 = vpop.f32.mrb[19].mxu0  ;;  %vm13965_vm14 = vcmask 490944   ;;  %v6378_v62 = vrot.slane %v12846_v57, 5 }
 0x64e   :  { %3921 = vst.msk [vmem:[#allocation2 + $0xf0] sm:$0xff] %vm13962_vm13, %v3830_v44  ;;  %8221 = vmatprep.mubr.msk.f32.mxu0 %vm13709_vm4, %v5651_v18  ;;  %4081 = vrot.lane.b32.xlu1 %v7800_v33, %s8464_s30  ;;  %v5967_v28 = vadd.f32 %v12251_v12, %v5966_v15  ;;  %v7840_v12 = vld [vmem:[%s13670_s0 + $0x139] sm:$0x3]  ;;  %vm13966_vm13 = vcmask 452000   ;;  %v6290_v33 = vrot.slane %v6248_v38, 4  ;;  %v6292_v15 = vrot.slane %v6249_v32, 3 }
 0x64f   :  { %5043 = vrot.lane.b32.xlu0 %v12546_v4, %s8465_s24  ;;  %8381 = vtanh.f32 %v5972_v60  ;;  %v6428_v44 = vld [vmem:[#allocation3 + $0x43] sm:$0x1]  ;;  %v6514_v18 = vld [vmem:[#allocation3 + $0x4] sm:$0x1]  ;;  %v8000_v5 = vld [vmem:[%s13670_s0 + $0x139] sm:$0x3]  ;;  %v6285_v60 = vsel %vm6197_vm5, %v6284_v26, %v6244_v53 }
 0x650   :  { %v5518_v58 = vpop.permute.xlu1 %5517  ;;  %8383 = vtanh.f32 %v5967_v28  ;;  %v6375_v28 = vsel %vm6197_vm5, %v6374_v25, %v6334_v34  ;;  %v6607_v38 = vld [vmem:[#allocation3 + $0x35] sm:$0x1]  ;;  %v6521_v53 = vld [vmem:[#allocation3 + $0x74] sm:$0x1] }
 0x651   :  { %v4794_v24 = vpop.permute.xlu0 %4793  ;;  %5612 = vst.msk [vmem:[#allocation2 + $0xd8] sm:$0x3] %vm13963_vm12, %v5518_v58  ;;  %vm13967_vm12 = vcmask 622144   ;;  %v12870_v58 = vld [vmem:[#allocation3 + $0x34] sm:$0x1]  ;;  %v6377_v42 = vsel %vm13707_vm3, %v6376_v59, %v6375_v28  ;;  %v6386_v59 = vrot.slane %v6341_v61, 1 }
 0x652   :  { %4887 = vst.msk [vmem:[#allocation2 + $0xe0] sm:$0xff] %vm13964_vm15, %v4794_v24  ;;  %5045 = vrot.lane.b32.xlu1 %v7958_v46, %s8465_s24  ;;  %vm13968_vm15 = vcmask 583200   ;;  %v6468_v46 = vrot.slane %v12849_v7, 5  ;;  %v6648_v28 = vrot.slane %v6607_v38, 5 }
 0x653   :  { %4321 = vrot.lane.b32.xlu0 %v12762_v1, %s8464_s30 }
 0x654   :  { %v3107_v4 = vpop.permute.xlu1 %3106 }
 0x655   :  { %v2867_v50 = vpop.permute.xlu0 %2866  ;;  %3196 = vst.msk [vmem:[#allocation2 + $0x100] sm:$0xff] %vm13965_vm14, %v3107_v4  ;;  %vm13969_vm14 = vcmask 753344  }
 0x656   :  { %2955 = vst.msk [vmem:[#allocation2 + $0x108] sm:$0x3] %vm13966_vm13, %v2867_v50  ;;  %4323 = vrot.lane.b32.xlu1 %v7840_v12, %s8464_s30  ;;  %vm13970_vm13 = vcmask 714400   ;;  %v6294_v50 = vrot.slane %v6250_v36, 2 }
 0x657   :  { %5285 = vrot.lane.b32.xlu0 %v12624_v9, %s13730_s25 }
 0x658   :  { %v4072_v19 = vpop.permute.xlu1 %4071  ;;  %v5652_v17 = vld [vmem:[#allocation2 + $0xd8] sm:$0xff] }
 0x659   :  { %v3832_v22 = vpop.permute.xlu0 %3831  ;;  %4163 = vst.msk [vmem:[#allocation2 + $0xf0] sm:$0xff] %vm13967_vm12, %v4072_v19  ;;  %8222 = vmatmul.mubr.msk.f32.gmra.mrb[26].mxu0 %vm13709_vm4, %v5652_v17  ;;  %v8382_v29 = vpop.eup %8381  ;;  %vm13971_vm12 = vcmask 484800   ;;  %v6380_v19 = vrot.slane %v12858_v23, 4  ;;  %v6465_v17 = vsel %vm6197_vm5, %v6464_v41, %v6424_v13  ;;  %v6379_v41 = vsel %vm6203_vm7, %v6378_v62, %v6377_v42  ;;  %v6694_v42 = vld [vmem:[#allocation3 + $0x6] sm:$0x1] }
 0x65a   :  { %3922 = vst.msk [vmem:[#allocation2 + $0xf8] sm:$0x3] %vm13968_vm15, %v3832_v22  ;;  %5287 = vrot.lane.b32.xlu1 %v7998_v35, %s13730_s25  ;;  %v8384_v39 = vpop.eup %8383  ;;  %vm13972_vm15 = vcmask 392544   ;;  %v6339_v35 = vld [vmem:[#allocation3 + $0x52] sm:$0x1]  ;;  %v6467_v10 = vsel %vm13707_vm3, %v6466_v45, %v6465_v17  ;;  %v6476_v45 = vrot.slane %v6431_v43, 1 }
 0x65b   :  { %4563 = vrot.lane.b32.xlu0 %v12679_v49, %s8465_s24  ;;  %6135 = vst.msk [vmem:[#allocation3 + $0x98] sm:$0xff] %vm6115_vm9, %v8382_v29  ;;  %6134 = vst.msk [vmem:[#allocation3 + $0x90] sm:$0xff] %vm6115_vm9, %v8384_v39  ;;  %v6429_v22 = vld [vmem:[#allocation3 + $0x53] sm:$0x1]  ;;  %v6296_v39 = vrot.slane %v6251_v6, 1  ;;  %v6382_v8 = vrot.slane %v6339_v35, 3  ;;  %v6469_v7 = vsel %vm6203_vm7, %v6468_v46, %v6467_v10 }
 0x65c   :  { %v5036_v0 = vpop.permute.xlu1 %5035  ;;  %v6608_v6 = vld [vmem:[#allocation3 + $0x45] sm:$0x1]  ;;  %v6695_v46 = vld [vmem:[#allocation3 + $0x16] sm:$0x1]  ;;  %v6611_v35 = vld [vmem:[#allocation3 + $0x75] sm:$0x1] }
 0x65d   :  { %v4796_v14 = vpop.permute.xlu0 %4795  ;;  %5129 = vst.msk [vmem:[#allocation2 + $0xe0] sm:$0xff] %vm13969_vm14, %v5036_v0  ;;  %vm13973_vm14 = vcmask 616000   ;;  %v6430_v0 = vld [vmem:[#allocation3 + $0x63] sm:$0x1]  ;;  %v6699_v43 = vld [vmem:[#allocation3 + $0x56] sm:$0x1] }
 0x65e   :  { %4888 = vst.msk [vmem:[#allocation2 + $0xe8] sm:$0x3] %vm13970_vm13, %v4796_v14  ;;  %4565 = vrot.lane.b32.xlu1 %v7880_v48, %s8465_s24  ;;  %vm13974_vm13 = vcmask 523744   ;;  %v6340_v48 = vld [vmem:[#allocation3 + $0x62] sm:$0x1]  ;;  %v6470_v14 = vrot.slane %v6428_v44, 4 }
 0x65f   :  { %5527 = vrot.lane.b32.xlu0 %v12624_v9, %s13730_s25  ;;  %v6246_v9 = vld [vmem:[#allocation3 + $0x21] sm:$0x1] }
 0x660   :  { %v3109_v30 = vpop.permute.xlu1 %3108  ;;  %v6286_v21 = vrot.slane %v6246_v9, 6  ;;  %v6518_v9 = vld [vmem:[#allocation3 + $0x44] sm:$0x1] }
 0x661   :  { %v2385_v37 = vpop.permute.xlu0 %2384  ;;  %3197 = vst.msk [vmem:[#allocation2 + $0x108] sm:$0x3] %vm13971_vm12, %v3109_v30  ;;  %vm13975_vm12 = vcmask 654944   ;;  %v12879_v30 = vld [vmem:[#allocation3 + $0x25] sm:$0x1]  ;;  %v6560_v32 = vrot.slane %v6518_v9, 4 }
 0x662   :  { %2472 = vst.msk [vmem:[#allocation2 + $0x110] sm:$0xff] %vm13972_vm15, %v2385_v37  ;;  %5529 = vrot.lane.b32.xlu1 %v8038_v40, %s13730_s25  ;;  %v6287_v4 = vsel %vm13707_vm3, %v6286_v21, %v6285_v60  ;;  %vm13976_vm15 = vcmask 386400   ;;  %v6555_v40 = vsel %vm6197_vm5, %v6554_v54, %v6514_v18  ;;  %v6384_v54 = vrot.slane %v6340_v48, 2  ;;  %v6519_v21 = vld [vmem:[#allocation3 + $0x54] sm:$0x1] }
 0x663   :  { %4805 = vrot.lane.b32.xlu0 %v12679_v49, %s8465_s24  ;;  %v6557_v23 = vsel %vm13707_vm3, %v6556_v55, %v6555_v40  ;;  %v6562_v13 = vrot.slane %v6519_v21, 3  ;;  %v6604_v60 = vld [vmem:[#allocation3 + $0x5] sm:$0x1]  ;;  %v6698_v48 = vld [vmem:[#allocation3 + $0x46] sm:$0x1] }
 0x664   :  { %v4074_v16 = vpop.permute.xlu1 %4073  ;;  %v6785_v9 = vld [vmem:[#allocation3 + $0x17] sm:$0x1]  ;;  %v6788_v21 = vld [vmem:[#allocation3 + $0x47] sm:$0x1] }
 0x665   :  { %v3350_v51 = vpop.permute.xlu0 %3349  ;;  %4164 = vst.msk [vmem:[#allocation2 + $0xf8] sm:$0x3] %vm13973_vm14, %v4074_v16  ;;  %vm13977_vm14 = vcmask 1045509   ;;  %v6472_v16 = vrot.slane %v6429_v22, 3  ;;  %v6697_v22 = vld [vmem:[#allocation3 + $0x36] sm:$0x1] }
 0x666   :  { %3439 = vst.msk [vmem:[#allocation2 + $0x100] sm:$0xff] %vm13974_vm13, %v3350_v51  ;;  %5047 = vrot.lane.b32.xlu1 %v12679_v49, %s8465_s24  ;;  %v6288_v49 = vrot.slane %v6247_v47, 5  ;;  %vm13978_vm13 = vcmask 1046534   ;;  %v6474_v47 = vrot.slane %v6430_v0, 2  ;;  %v6734_v0 = vrot.slane %v6695_v46, 7 }
 0x667   :  { %4807 = vrot.lane.b32.xlu0 %v7920_v63, %s8465_s24  ;;  %v8040_v63 = vld [vmem:[%s13670_s0 + $0x139] sm:$0x3] }
 0x668   :  { %v5038_v52 = vpop.permute.xlu1 %5037  ;;  %v6289_v29 = vsel %vm6203_vm7, %v6288_v49, %v6287_v4  ;;  %v6646_v49 = vrot.slane %v12879_v30, 6  ;;  %v6696_v4 = vld [vmem:[#allocation3 + $0x26] sm:$0x1] }
 0x669   :  { %v4314_v31 = vpop.permute.xlu0 %4313  ;;  %5130 = vst.msk [vmem:[#allocation2 + $0xe8] sm:$0x3] %vm13711_vm11, %v5038_v52  ;;  %v6291_v37 = vsel %vm13708_vm10, %v6290_v33, %v6289_v29  ;;  %v6381_v52 = vsel %vm13708_vm10, %v6380_v19, %v6379_v41  ;;  %v6650_v19 = vrot.slane %v6608_v6, 4  ;;  %v6645_v29 = vsel %vm6197_vm5, %v6644_v27, %v6604_v60  ;;  %v6876_v6 = vld [vmem:[#allocation3 + $0x28] sm:$0x1] }
 0x66a   :  { %4405 = vst.msk [vmem:[#allocation2 + $0xf0] sm:$0xff] %vm13975_vm12, %v4314_v31  ;;  %5289 = vrot.lane.b32.xlu1 %v12762_v1, %s13730_s25  ;;  %v6293_v3 = vsel %vm13977_vm14, %v6292_v15, %v6291_v37  ;;  %vm13979_vm12 = vcmask 425344   ;;  %v6471_v31 = vsel %vm13708_vm10, %v6470_v14, %v6469_v7  ;;  %v6383_v34 = vsel %vm13977_vm14, %v6382_v8, %v6381_v52  ;;  %v6609_v15 = vld [vmem:[#allocation3 + $0x55] sm:$0x1]  ;;  %v6784_v52 = vld [vmem:[#allocation3 + $0x7] sm:$0x1] }
 0x66b   :  { %5049 = vrot.lane.b32.xlu0 %v7960_v20, %s8465_s24  ;;  %v6295_v25 = vsel %vm13978_vm13, %v6294_v50, %v6293_v3  ;;  %v6520_v20 = vld [vmem:[#allocation3 + $0x64] sm:$0x1]  ;;  %vm13981_vm13 = vmmov %vm13977_vm14  ;;  %vm13984_vm14 = vcmask 1047559   ;;  %v6647_v37 = vsel %vm13707_vm3, %v6646_v49, %v6645_v29  ;;  %v6736_v10 = vrot.slane %v6696_v4, 6  ;;  %v6700_v3 = vld [vmem:[#allocation3 + $0x66] sm:$0x1] }
 0x66c   :  { %v2387_v24 = vpop.permute.xlu1 %2386  ;;  %v6473_v36 = vsel %vm13981_vm13, %v6472_v16, %v6471_v31  ;;  %vm13985_vm13 = vmmov %vm13984_vm14  ;;  %v6649_v27 = vsel %vm6203_vm7, %v6648_v28, %v6647_v37  ;;  %v6738_v8 = vrot.slane %v6697_v22, 5  ;;  %v6786_v16 = vld [vmem:[#allocation3 + $0x27] sm:$0x1]  ;;  %v6744_v38 = vrot.slane %v6700_v3, 2  ;;  %v6789_v31 = vld [vmem:[#allocation3 + $0x57] sm:$0x1] }
 0x66d   :  { %v5278_v12 = vpop.permute.xlu0 %5277  ;;  %2473 = vst.msk [vmem:[#allocation2 + $0x118] sm:$0x3] %vm13976_vm15, %v2387_v24  ;;  %vm13980_vm15 = vcmask 1047559   ;;  %v6566_v24 = vrot.slane %v6521_v53, 1  ;;  %v6826_v53 = vrot.slane %v6786_v16, 6 }
 0x66e   :  { %5371 = vst.msk [vmem:[#allocation2 + $0xe0] sm:$0xff] %vm13710_vm0, %v5278_v12  ;;  %5531 = vrot.lane.b32.xlu1 %v12762_v1, %s13730_s25  ;;  %v6558_v1 = vrot.slane %v12870_v58, 5  ;;  %v6297_v57 = vsel %vm13980_vm15, %v6296_v39, %v6295_v25  ;;  %v6610_v12 = vld [vmem:[#allocation3 + $0x65] sm:$0x1]  ;;  %v6652_v39 = vrot.slane %v6609_v15, 3  ;;  %v6832_v15 = vrot.slane %v6789_v31, 3 }
 0x66f   :  { %5291 = vrot.lane.b32.xlu0 %v8000_v5, %s13730_s25  ;;  %v6564_v5 = vrot.slane %v6520_v20, 2  ;;  %v6654_v61 = vrot.slane %v6610_v12, 2  ;;  %v6787_v25 = vld [vmem:[#allocation3 + $0x37] sm:$0x1]  ;;  %v6878_v28 = vld [vmem:[#allocation3 + $0x48] sm:$0x1] }
 0x670   :  { %v3352_v51 = vpop.permute.xlu1 %3351  ;;  %v6559_v58 = vsel %vm6203_vm7, %v6558_v1, %v6557_v23  ;;  %v6651_v1 = vsel %vm13708_vm10, %v6650_v19, %v6649_v27  ;;  %v6790_v23 = vld [vmem:[#allocation3 + $0x67] sm:$0x1]  ;;  %v6874_v4 = vld [vmem:[#allocation3 + $0x8] sm:$0x1]  ;;  %v6965_v19 = vld [vmem:[#allocation3 + $0x19] sm:$0x1] }
 0x671   :  { %v2627_v26 = vpop.permute.xlu0 %2626  ;;  %3440 = vst.msk [vmem:[#allocation2 + $0x108] sm:$0x3] %vm13714_vm1, %v3352_v51  ;;  %v6561_v50 = vsel %vm13708_vm10, %v6560_v32, %v6559_v58  ;;  %v6701_v51 = vld [vmem:[#allocation3 + $0x76] sm:$0x1]  ;;  %v6875_v32 = vld [vmem:[#allocation3 + $0x18] sm:$0x1] }
 0x672   :  { %2714 = vst.msk [vmem:[#allocation2 + $0x110] sm:$0xff] %vm13979_vm12, %v2627_v26  ;;  %6316 = vrot.lane.b32.xlu1 %v6297_v57, %s13728_s29  ;;  %vm13982_vm12 = vcmask 1046534   ;;  %v6740_v26 = vrot.slane %v6698_v48, 4  ;;  %v6824_v57 = vrot.slane %v6785_v9, 7  ;;  %v6914_v46 = vrot.slane %v6875_v32, 7 }
 0x673   :  { %5533 = vrot.lane.b32.xlu0 %v8040_v63, %s13730_s25  ;;  %v6385_v44 = vsel %vm13982_vm12, %v6384_v54, %v6383_v34  ;;  %vm13983_vm15 = vmmov %vm13982_vm12  ;;  %vm13986_vm12 = vcmask 1045509   ;;  %v6656_v63 = vrot.slane %v6611_v35, 1  ;;  %v6735_v54 = vsel %vm6197_vm5, %v6734_v0, %v6694_v42  ;;  %v6966_v0 = vld [vmem:[#allocation3 + $0x29] sm:$0x1]  ;;  %v6967_v37 = vld [vmem:[#allocation3 + $0x39] sm:$0x1] }
 0x674   :  { %v4316_v33 = vpop.permute.xlu1 %4315  ;;  %v6475_v18 = vsel %vm13983_vm15, %v6474_v47, %v6473_v36  ;;  %v6387_v11 = vsel %vm13984_vm14, %v6386_v59, %v6385_v44  ;;  %v6563_v17 = vsel %vm13986_vm12, %v6562_v13, %v6561_v50  ;;  %vm13987_vm14 = vcmask 780000   ;;  %v6879_v50 = vld [vmem:[#allocation3 + $0x58] sm:$0x1] }
 0x675   :  { %v3592_v62 = vpop.permute.xlu0 %3591  ;;  %4406 = vst.msk [vmem:[#allocation2 + $0xf8] sm:$0x3] %vm13712_vm8, %v4316_v33  ;;  %v6477_v55 = vsel %vm13985_vm13, %v6476_v45, %v6475_v18  ;;  %v6565_v30 = vsel %vm13983_vm15, %v6564_v5, %v6563_v17  ;;  %vm13988_vm13 = vcmask 687744   ;;  %vm13989_vm12 = vcmask 1047559   ;;  %v6877_v18 = vld [vmem:[#allocation3 + $0x38] sm:$0x1] }
 0x676   :  { %3681 = vst.msk [vmem:[#allocation2 + $0x100] sm:$0xff] %vm13713_vm2, %v3592_v62  ;;  %6496 = vrot.lane.b32.xlu1 %v6477_v55, %s13726_s10  ;;  %v6567_v2 = vsel %vm13989_vm12, %v6566_v24, %v6565_v30  ;;  %vm13990_vm15 = vcmask 1045509   ;;  %v6742_v47 = vrot.slane %v6699_v43, 3  ;;  %v6737_v20 = vsel %vm13707_vm3, %v6736_v10, %v6735_v54  ;;  %v6791_v62 = vld [vmem:[#allocation3 + $0x77] sm:$0x1] }
 0x677   :  { %6406 = vrot.lane.b32.xlu0 %v6387_v11, %s8458_s13  ;;  %v6653_v41 = vsel %vm13990_vm15, %v6652_v39, %v6651_v1  ;;  %v6739_v34 = vsel %vm6203_vm7, %v6738_v8, %v6737_v20  ;;  %v6746_v36 = vrot.slane %v6701_v51, 1  ;;  %v6828_v13 = vrot.slane %v6787_v25, 5  ;;  %v6880_v39 = vld [vmem:[#allocation3 + $0x68] sm:$0x1]  ;;  %v6968_v10 = vld [vmem:[#allocation3 + $0x49] sm:$0x1] }
 0x678   :  { %v5280_v14 = vpop.permute.xlu1 %5279  ;;  %v6741_v33 = vsel %vm13708_vm10, %v6740_v26, %v6739_v34  ;;  %v6830_v44 = vrot.slane %v6788_v21, 4  ;;  %v6825_v60 = vsel %vm6197_vm5, %v6824_v57, %v6784_v52  ;;  %v6834_v12 = vrot.slane %v6790_v23, 2  ;;  %v6969_v1 = vld [vmem:[#allocation3 + $0x59] sm:$0x1]  ;;  %v12962_v57 = vld [vmem:[%s13672_s2] ss:$0 sm:$0xff] }
 0x679   :  { %v4556_v40 = vpop.permute.xlu0 %4555  ;;  %5372 = vst.msk [vmem:[#allocation2 + $0xe8] sm:$0x3] %vm13987_vm14, %v5280_v14  ;;  %vm13991_vm14 = vcmask 1046534   ;;  %v6743_v5 = vsel %vm13990_vm15, %v6742_v47, %v6741_v33  ;;  %v6827_v24 = vsel %vm13707_vm3, %v6826_v53, %v6825_v60  ;;  %v6916_v35 = vrot.slane %v6876_v6, 6  ;;  %v6970_v47 = vld [vmem:[#allocation3 + $0x69] sm:$0x1] }
 0x67a   :  { %4647 = vst.msk [vmem:[#allocation2 + $0xf0] sm:$0xff] %vm13988_vm13, %v4556_v40  ;;  %v6655_v45 = vsel %vm13991_vm14, %v6654_v61, %v6653_v41  ;;  %vm13992_vm13 = vcmask 419200   ;;  %v6745_v58 = vsel %vm13991_vm14, %v6744_v38, %v6743_v5  ;;  %vm13995_vm15 = vcmask 1047559   ;;  %v6881_v40 = vld [vmem:[#allocation3 + $0x78] sm:$0x1] }
 0x67b   :  { %6586 = vrot.lane.b32.xlu0 %v6567_v2, %s8470_s14  ;;  %v6657_v49 = vsel %vm13989_vm12, %v6656_v63, %v6655_v45  ;;  %vm13994_vm12 = vcmask 458144   ;;  %v6747_v22 = vsel %vm13995_vm15, %v6746_v36, %v6745_v58  ;;  %v6829_v17 = vsel %vm6203_vm7, %v6828_v13, %v6827_v24  ;;  %v6964_v20 = vld [vmem:[#allocation3 + $0x9] sm:$0x1]  ;;  %v6971_v38 = vld [vmem:[#allocation3 + $0x79] sm:$0x1] }
 0x67c   :  { %v2629_v59 = vpop.permute.xlu1 %2628  ;;  %v6836_v29 = vrot.slane %v6791_v62, 1  ;;  %v6918_v48 = vrot.slane %v6877_v18, 5  ;;  %v6831_v14 = vsel %vm13708_vm10, %v6830_v44, %v6829_v17  ;;  %v6920_v30 = vrot.slane %v6878_v28, 4 }
 0x67d   :  { %v5520_v7 = vpop.permute.xlu0 %5519  ;;  %2715 = vst.msk [vmem:[#allocation2 + $0x118] sm:$0x3] %vm13992_vm13, %v2629_v59  ;;  %vm13993_vm13 = vcmask 550400   ;;  %vm13996_vm14 = vcmask 1045509   ;;  %v6915_v42 = vsel %vm6197_vm5, %v6914_v46, %v6874_v4  ;;  %v6922_v43 = vrot.slane %v6879_v50, 3 }
 0x67e   :  { %5613 = vst.msk [vmem:[#allocation2 + $0xe0] sm:$0xff] %vm13706_vm6, %v5520_v7  ;;  %v6833_v61 = vsel %vm13996_vm14, %v6832_v15, %v6831_v14  ;;  %v7004_v9 = vrot.slane %v6965_v19, 7  ;;  %v6917_v8 = vsel %vm13707_vm3, %v6916_v35, %v6915_v42  ;;  %v6924_v16 = vrot.slane %v6880_v39, 2 }
 0x67f   :  { %6676 = vrot.lane.b32.xlu0 %v6657_v49, %s8471_s15  ;;  %v7006_v51 = vrot.slane %v6966_v0, 6  ;;  %vm13999_vm15 = vcmask 589344   ;;  %vm14000_vm14 = vcmask 1047559   ;;  %v6919_v41 = vsel %vm6203_vm7, %v6918_v48, %v6917_v8 }
 0x680   :  { %v3594_v11 = vpop.permute.xlu1 %3593  ;;  %v6926_v54 = vrot.slane %v6881_v40, 1  ;;  %v7008_v21 = vrot.slane %v6967_v37, 5  ;;  %v6921_v45 = vsel %vm13708_vm10, %v6920_v30, %v6919_v41  ;;  %v7010_v52 = vrot.slane %v6968_v10, 4 }
 0x681   :  { %v2869_v55 = vpop.permute.xlu0 %2868  ;;  %3682 = vst.msk [vmem:[#allocation2 + $0x108] sm:$0x3] %vm13993_vm13, %v3594_v11  ;;  %vm13997_vm13 = vcmask 1046534   ;;  %v7005_v32 = vsel %vm6197_vm5, %v7004_v9, %v6964_v20  ;;  %v7012_v49 = vrot.slane %v6969_v1, 3  ;;  %v7014_v6 = vrot.slane %v6970_v47, 2 }
 0x682   :  { %2956 = vst.msk [vmem:[#allocation2 + $0x110] sm:$0xff] %vm13994_vm12, %v2869_v55  ;;  %v6835_v3 = vsel %vm13997_vm13, %v6834_v12, %v6833_v61  ;;  %vm13998_vm12 = vcmask 681600   ;;  %vm14001_vm13 = vcmask 1045509   ;;  %v7007_v13 = vsel %vm13707_vm3, %v7006_v51, %v7005_v32 }
 0x683   :  { %6766 = vrot.lane.b32.xlu0 %v6747_v22, %s13724_s16  ;;  %v6837_v25 = vsel %vm14000_vm14, %v6836_v29, %v6835_v3  ;;  %v6923_v53 = vsel %vm14001_vm13, %v6922_v43, %v6921_v45  ;;  %vm14004_vm14 = vcmask 720544   ;;  %vm14005_vm6 = vcmask 1047559  }
 0x684   :  { %v4558_v2 = vpop.permute.xlu1 %4557  ;;  %v8214_v26 = vpop.f32.mrb[20].mxu0  ;;  %v7009_v62 = vsel %vm6203_vm7, %v7008_v21, %v7007_v13  ;;  %v7016_v44 = vrot.slane %v6971_v38, 1  ;;  %vm14006_vm3 = vcmask 490944  }
 0x685   :  { %v3834_v27 = vpop.permute.xlu0 %3833  ;;  %v5653_v63 = vld [vmem:[#allocation2 + $0xe0] sm:$0xff]  ;;  %4648 = vst.msk [vmem:[#allocation2 + $0xf8] sm:$0x3] %vm13998_vm12, %v4558_v2  ;;  %v5982_v59 = vadd.f32 %v12962_v57, %v8214_v26  ;;  %v5976_v7 = vpop.f32.mrb[21].mxu0  ;;  %vm14002_vm12 = vcmask 1046534   ;;  %v7011_v18 = vsel %vm13708_vm10, %v7010_v52, %v7009_v62  ;;  %vm14010_vm10 = vcmask 583200  }
 0x686   :  { %3923 = vst.msk [vmem:[#allocation2 + $0x100] sm:$0xff] %vm13999_vm15, %v3834_v27  ;;  %8224 = vmatprep.mubr.msk.f32.mxu0 %vm13709_vm4, %v5653_v63  ;;  %v5977_v31 = vadd.f32 %v12962_v57, %v5976_v7  ;;  %v6925_v23 = vsel %vm14002_vm12, %v6924_v16, %v6923_v53  ;;  %vm14003_vm15 = vcmask 812800   ;;  %v7013_v5 = vsel %vm14001_vm13, %v7012_v49, %v7011_v18 }
 0x687   :  { %6856 = vrot.lane.b32.xlu0 %v6837_v25, %s8473_s20  ;;  %8385 = vtanh.f32 %v5982_v59  ;;  %v6927_v33 = vsel %vm14005_vm6, %v6926_v54, %v6925_v23  ;;  %v7015_v28 = vsel %vm14002_vm12, %v7014_v6, %v7013_v5  ;;  %vm14012_vm13 = vcmask 714400  }
 0x688   :  { %v5522_v34 = vpop.permute.xlu1 %5521  ;;  %8387 = vtanh.f32 %v5977_v31  ;;  %vm14013_vm12 = vcmask 523744  }
 0x689   :  { %v4798_v36 = vpop.permute.xlu0 %4797  ;;  %5614 = vst.msk [vmem:[#allocation2 + $0xe8] sm:$0x3] %vm14003_vm15, %v5522_v34  ;;  %vm14007_vm15 = vcmask 452000  }
 0x68a   :  { %4889 = vst.msk [vmem:[#allocation2 + $0xf0] sm:$0xff] %vm14004_vm14, %v4798_v36  ;;  %vm14008_vm14 = vmmov %vm14005_vm6  ;;  %vm14009_vm6 = vcmask 622144  }
 0x68b   :  { %6946 = vrot.lane.b32.xlu0 %v6927_v33, %s13722_s26  ;;  %v7017_v46 = vsel %vm14008_vm14, %v7016_v44, %v7015_v28  ;;  %vm14016_vm14 = vcmask 616000  }
 0x68c   :  { %v3111_v60 = vpop.permute.xlu1 %3110 }
 0x68d   :  { %v2871_v15 = vpop.permute.xlu0 %2870  ;;  %3198 = vst.msk [vmem:[#allocation2 + $0x110] sm:$0xff] %vm14006_vm3, %v3111_v60  ;;  %vm14011_vm3 = vcmask 753344  }
 0x68e   :  { %2957 = vst.msk [vmem:[#allocation2 + $0x118] sm:$0x3] %vm14007_vm15, %v2871_v15  ;;  %vm14014_vm15 = vcmask 484800  }
 0x68f   :  { %7036 = vrot.lane.b32.xlu0 %v7017_v46, %s13720_s21 }
 0x690   :  { %v4076_v11 = vpop.permute.xlu1 %4075  ;;  %v5654_v58 = vld [vmem:[#allocation2 + $0xe8] sm:$0xff] }
 0x691   :  { %v3836_v55 = vpop.permute.xlu0 %3835  ;;  %4165 = vst.msk [vmem:[#allocation2 + $0x100] sm:$0xff] %vm14009_vm6, %v4076_v11  ;;  %8225 = vmatmul.mubr.msk.f32.gmra.mrb[28].mxu0 %vm13709_vm4, %v5654_v58  ;;  %v8386_v24 = vpop.eup %8385  ;;  %vm14017_vm6 = vcmask 687744  }
 0x692   :  { %3924 = vst.msk [vmem:[#allocation2 + $0x108] sm:$0x3] %vm14010_vm10, %v3836_v55  ;;  %v8388_v12 = vpop.eup %8387  ;;  %vm14015_vm10 = vcmask 654944  }
 0x693   :  { %6137 = vst.msk [vmem:[#allocation3 + $0xa8] sm:$0xff] %vm6115_vm9, %v8386_v24  ;;  %6136 = vst.msk [vmem:[#allocation3 + $0xa0] sm:$0xff] %vm6115_vm9, %v8388_v12 }
 0x694   :  { %v5040_v4 = vpop.permute.xlu1 %5039 }
 0x695   :  { %v4800_v50 = vpop.permute.xlu0 %4799  ;;  %5131 = vst.msk [vmem:[#allocation2 + $0xf0] sm:$0xff] %vm14011_vm3, %v5040_v4  ;;  %vm14018_vm3 = vcmask 818944  }
 0x696   :  { %4890 = vst.msk [vmem:[#allocation2 + $0xf8] sm:$0x3] %vm14012_vm13, %v4800_v50  ;;  %vm14019_vm13 = vcmask 780000  }
 0x698   :  { %v3354_v35 = vpop.permute.xlu1 %3353 }
 0x699   :  { %v3113_v19 = vpop.permute.xlu0 %3112  ;;  %3441 = vst.msk [vmem:[#allocation2 + $0x110] sm:$0xff] %vm14013_vm12, %v3354_v35  ;;  %vm14020_vm12 = vcmask 589344  }
 0x69a   :  { %3199 = vst.msk [vmem:[#allocation2 + $0x118] sm:$0x3] %vm14014_vm15, %v3113_v19  ;;  %vm14021_vm15 = vcmask 550400  }
 0x69c   :  { %v4318_v22 = vpop.permute.xlu1 %4317 }
 0x69d   :  { %v4078_v17 = vpop.permute.xlu0 %4077  ;;  %4407 = vst.msk [vmem:[#allocation2 + $0x100] sm:$0xff] %vm14015_vm10, %v4318_v22  ;;  %vm14022_vm10 = vcmask 720544  }
 0x69e   :  { %4166 = vst.msk [vmem:[#allocation2 + $0x108] sm:$0x3] %vm14016_vm14, %v4078_v17  ;;  %vm14023_vm14 = vcmask 681600  }
 0x6a0   :  { %v5282_v29 = vpop.permute.xlu1 %5281 }
 0x6a1   :  { %v5042_v39 = vpop.permute.xlu0 %5041  ;;  %5373 = vst.msk [vmem:[#allocation2 + $0xf0] sm:$0xff] %vm13710_vm0, %v5282_v29 }
 0x6a2   :  { %5132 = vst.msk [vmem:[#allocation2 + $0xf8] sm:$0x3] %vm13711_vm11, %v5042_v39 }
 0x6a4   :  { %v3596_v48 = vpop.permute.xlu1 %3595 }
 0x6a5   :  { %v3356_v0 = vpop.permute.xlu0 %3355  ;;  %3683 = vst.msk [vmem:[#allocation2 + $0x110] sm:$0xff] %vm13713_vm2, %v3596_v48 }
 0x6a6   :  { %3442 = vst.msk [vmem:[#allocation2 + $0x118] sm:$0x3] %vm13714_vm1, %v3356_v0 }
 0x6a8   :  { %v4560_v14 = vpop.permute.xlu1 %4559 }
 0x6a9   :  { %v4320_v40 = vpop.permute.xlu0 %4319  ;;  %4649 = vst.msk [vmem:[#allocation2 + $0x100] sm:$0xff] %vm14017_vm6, %v4560_v14  ;;  %vm14024_vm6 = vcmask 583200  }
 0x6aa   :  { %4408 = vst.msk [vmem:[#allocation2 + $0x108] sm:$0x3] %vm13712_vm8, %v4320_v40 }
 0x6ac   :  { %v5524_v30 = vpop.permute.xlu1 %5523 }
 0x6ad   :  { %v5284_v37 = vpop.permute.xlu0 %5283  ;;  %5615 = vst.msk [vmem:[#allocation2 + $0xf0] sm:$0xff] %vm14018_vm3, %v5524_v30  ;;  %vm14025_vm3 = vcmask 812800  }
 0x6ae   :  { %5374 = vst.msk [vmem:[#allocation2 + $0xf8] sm:$0x3] %vm14019_vm13, %v5284_v37  ;;  %vm14026_vm13 = vcmask 714400  }
 0x6b0   :  { %v3838_v61 = vpop.permute.xlu1 %3837 }
 0x6b1   :  { %v3598_v42 = vpop.permute.xlu0 %3597  ;;  %3925 = vst.msk [vmem:[#allocation2 + $0x110] sm:$0xff] %vm14020_vm12, %v3838_v61  ;;  %vm14027_vm12 = vcmask 622144  }
 0x6b2   :  { %3684 = vst.msk [vmem:[#allocation2 + $0x118] sm:$0x3] %vm14021_vm15, %v3598_v42  ;;  %vm14028_vm15 = vcmask 616000  }
 0x6b4   :  { %v4802_v43 = vpop.permute.xlu1 %4801  ;;  %v5655_v9 = vld [vmem:[#allocation2 + $0xf0] sm:$0xff] }
 0x6b5   :  { %v4562_v10 = vpop.permute.xlu0 %4561  ;;  %4891 = vst.msk [vmem:[#allocation2 + $0x100] sm:$0xff] %vm14022_vm10, %v4802_v43  ;;  %8227 = vmatprep.mubr.msk.f32.mxu0 %vm13709_vm4, %v5655_v9  ;;  %vm14029_vm10 = vcmask 753344  }
 0x6b6   :  { %4650 = vst.msk [vmem:[#allocation2 + $0x108] sm:$0x3] %vm14023_vm14, %v4562_v10  ;;  %vm14030_vm14 = vcmask 654944  }
 0x6b8   :  { %v3840_v2 = vpop.permute.xlu1 %3839 }
 0x6b9   :  { %v5526_v27 = vpop.permute.xlu0 %5525  ;;  %3926 = vst.msk [vmem:[#allocation2 + $0x118] sm:$0x3] %vm14024_vm6, %v3840_v2  ;;  %vm14031_vm6 = vcmask 780000  }
 0x6ba   :  { %5616 = vst.msk [vmem:[#allocation2 + $0xf8] sm:$0x3] %vm14025_vm3, %v5526_v27  ;;  %vm14032_vm3 = vcmask 687744  }
 0x6bc   :  { %v4804_v63 = vpop.permute.xlu1 %4803  ;;  %v8217_v8 = vpop.f32.mrb[22].mxu0 }
 0x6bd   :  { %v4080_v3 = vpop.permute.xlu0 %4079  ;;  %4892 = vst.msk [vmem:[#allocation2 + $0x108] sm:$0x3] %vm14026_vm13, %v4804_v63  ;;  %v5992_v16 = vadd.f32 %v12962_v57, %v8217_v8  ;;  %v5986_v1 = vpop.f32.mrb[23].mxu0  ;;  %vm14033_vm13 = vcmask 681600  }
 0x6be   :  { %4167 = vst.msk [vmem:[#allocation2 + $0x110] sm:$0xff] %vm14027_vm12, %v4080_v3  ;;  %v5987_v51 = vadd.f32 %v12962_v57, %v5986_v1  ;;  %vm14034_vm12 = vcmask 818944  }
 0x6bf   :  { %8389 = vtanh.f32 %v5992_v16 }
 0x6c0   :  { %v4082_v26 = vpop.permute.xlu1 %4081  ;;  %8391 = vtanh.f32 %v5987_v51 }
 0x6c1   :  { %v5044_v25 = vpop.permute.xlu0 %5043  ;;  %v5656_v41 = vld [vmem:[#allocation2 + $0xf8] sm:$0xff]  ;;  %4168 = vst.msk [vmem:[#allocation2 + $0x118] sm:$0x3] %vm14028_vm15, %v4082_v26  ;;  %vm14035_vm15 = vcmask 812800  }
 0x6c2   :  { %5133 = vst.msk [vmem:[#allocation2 + $0x100] sm:$0xff] %vm14029_vm10, %v5044_v25  ;;  %8228 = vmatmul.mubr.msk.f32.gmra.mrb[30].mxu0 %vm13709_vm4, %v5656_v41  ;;  %vm14036_vm10 = vcmask 720544  }
 0x6c4   :  { %v5046_v54 = vpop.permute.xlu1 %5045 }
 0x6c5   :  { %v4322_v47 = vpop.permute.xlu0 %4321  ;;  %5134 = vst.msk [vmem:[#allocation2 + $0x108] sm:$0x3] %vm13711_vm11, %v5046_v54 }
 0x6c6   :  { %4409 = vst.msk [vmem:[#allocation2 + $0x110] sm:$0xff] %vm14030_vm14, %v4322_v47  ;;  %vm14037_vm14 = vcmask 753344  }
 0x6c8   :  { %v4324_v21 = vpop.permute.xlu1 %4323 }
 0x6c9   :  { %v5286_v59 = vpop.permute.xlu0 %5285  ;;  %4410 = vst.msk [vmem:[#allocation2 + $0x118] sm:$0x3] %vm13712_vm8, %v4324_v21  ;;  %v8390_v7 = vpop.eup %8389  ;;  %vm14041_vm8 = vcmask 1042434  }
 0x6ca   :  { %5375 = vst.msk [vmem:[#allocation2 + $0x100] sm:$0xff] %vm13710_vm0, %v5286_v59  ;;  %v8392_v45 = vpop.eup %8391  ;;  %vm14042_vm2 = vmmov %vm14041_vm8 }
 0x6cb   :  { %6139 = vst.msk [vmem:[#allocation3 + $0xb8] sm:$0xff] %vm6115_vm9, %v8390_v7  ;;  %6138 = vst.msk [vmem:[#allocation3 + $0xb0] sm:$0xff] %vm6115_vm9, %v8392_v45 }
 0x6cc   :  { %v5288_v20 = vpop.permute.xlu1 %5287  ;;  %vm14043_vm1 = vmmov %vm14042_vm2 }
 0x6cd   :  { %v4564_v38 = vpop.permute.xlu0 %4563  ;;  %5376 = vst.msk [vmem:[#allocation2 + $0x108] sm:$0x3] %vm14031_vm6, %v5288_v20  ;;  %vm14038_vm6 = vcmask 714400  }
 0x6ce   :  { %4651 = vst.msk [vmem:[#allocation2 + $0x110] sm:$0xff] %vm14032_vm3, %v4564_v38  ;;  %vm14039_vm3 = vmmov %vm14034_vm12 }
 0x6d0   :  { %v4566_v52 = vpop.permute.xlu1 %4565 }
 0x6d1   :  { %v5528_v31 = vpop.permute.xlu0 %5527  ;;  %4652 = vst.msk [vmem:[#allocation2 + $0x118] sm:$0x3] %vm14033_vm13, %v4566_v52  ;;  %vm14040_vm13 = vcmask 780000  }
 0x6d2   :  { %5617 = vst.msk [vmem:[#allocation2 + $0x100] sm:$0xff] %vm14034_vm12, %v5528_v31  ;;  %vm6328_vm12 = vcmask 97328   ;;  %v6795_v20 = vld [vmem:[#allocation3 + $0xb7] sm:$0x1]  ;;  %v6255_v38 = vld [vmem:[#allocation3 + $0xb1] sm:$0x1] }
 0x6d3   :  { %v6975_v52 = vld [vmem:[#allocation3 + $0xb9] sm:$0x1]  ;;  %v6345_v31 = vld [vmem:[#allocation3 + $0xb2] sm:$0x1] }
 0x6d4   :  { %v5530_v53 = vpop.permute.xlu1 %5529 }
 0x6d5   :  { %v4806_v32 = vpop.permute.xlu0 %4805  ;;  %5618 = vst.msk [vmem:[#allocation2 + $0x108] sm:$0x3] %vm14035_vm15, %v5530_v53  ;;  %v6435_v53 = vld [vmem:[#allocation3 + $0xb3] sm:$0x1] }
 0x6d6   :  { %4893 = vst.msk [vmem:[#allocation2 + $0x110] sm:$0xff] %vm14036_vm10, %v4806_v32  ;;  %vm6418_vm10 = vcmask 146528   ;;  %v13073_v32 = vld [vmem:[#allocation3 + $0xb4] sm:$0x1] }
 0x6d8   :  { %v5048_v49 = vpop.permute.xlu1 %5047 }
 0x6d9   :  { %v4808_v34 = vpop.permute.xlu0 %4807  ;;  %v5657_v36 = vld [vmem:[#allocation2 + $0x100] sm:$0xff]  ;;  %5135 = vst.msk [vmem:[#allocation2 + $0x110] sm:$0xff] %vm14037_vm14, %v5048_v49  ;;  %vm6508_vm14 = vcmask 195728  }
 0x6da   :  { %4894 = vst.msk [vmem:[#allocation2 + $0x118] sm:$0x3] %vm14038_vm6, %v4808_v34  ;;  %8230 = vmatprep.mubr.msk.f32.mxu0 %vm13709_vm4, %v5657_v36  ;;  %vm6598_vm6 = vcmask 244928   ;;  %v6167_v36 = vld [vmem:[#allocation3 + $0xb0] sm:$0x1] }
 0x6dc   :  { %v5290_v23 = vpop.permute.xlu1 %5289  ;;  %v5658_v6 = vld [vmem:[#allocation2 + $0x108] sm:$0xff] }
 0x6dd   :  { %v5050_v13 = vpop.permute.xlu0 %5049  ;;  %5377 = vst.msk [vmem:[#allocation2 + $0x110] sm:$0xff] %vm13710_vm0, %v5290_v23  ;;  %8231 = vmatmul.mubr.msk.f32.gmra.mrb[32].mxu0 %vm13709_vm4, %v5658_v6  ;;  %vm13715_vm0 = vcmask 490928  }
 0x6de   :  { %5136 = vst.msk [vmem:[#allocation2 + $0x118] sm:$0x3] %vm13711_vm11, %v5050_v13  ;;  %vm7061_vm11 = vcmask 237568   ;;  %v7020_v13 = vrot.slane %v6975_v52, 7 }
 0x6e0   :  { %v5532_v33 = vpop.permute.xlu1 %5531 }
 0x6e1   :  { %v5292_v62 = vpop.permute.xlu0 %5291  ;;  %5619 = vst.msk [vmem:[#allocation2 + $0x110] sm:$0xff] %vm14039_vm3, %v5532_v33  ;;  %vm13719_vm3 = vcmask 294128   ;;  %v6840_v33 = vrot.slane %v6795_v20, 7 }
 0x6e2   :  { %5378 = vst.msk [vmem:[#allocation2 + $0x118] sm:$0x3] %vm14040_vm13, %v5292_v62  ;;  %vm13718_vm13 = vcmask 343328   ;;  %v6300_v62 = vrot.slane %v6255_v38, 7 }
 0x6e4   :  { %v6317_v18 = vpop.permute.xlu1 %6316 }
 0x6e5   :  { %v5534_v44 = vpop.permute.xlu0 %5533  ;;  %6329 = vst.msk [vmem:[#allocation6] sm:$0xff] %vm6328_vm12, %v6317_v18 }
 0x6e6   :  { %5620 = vst.msk [vmem:[#allocation2 + $0x118] sm:$0x3] %vm14035_vm15, %v5534_v44  ;;  %vm13717_vm15 = vcmask 392528   ;;  %v6480_v44 = vrot.slane %v6435_v53, 7 }
 0x6e8   :  { %v6497_v60 = vpop.permute.xlu1 %6496  ;;  %v5659_v15 = vld [vmem:[#allocation2 + $0x110] sm:$0xff] }
 0x6e9   :  { %v6407_v5 = vpop.permute.xlu0 %6406  ;;  %8233 = vmatprep.mubr.msk.f32.mxu0 %vm13709_vm4, %v5659_v15  ;;  %v6219_v15 = vrot.slane %v6167_v36, 7 }
 0x6ea   :  { %6419 = vst.msk [vmem:[#allocation6] sm:$0xff] %vm6418_vm10, %v6407_v5 }
 0x6eb   :  { %6509 = vst.msk [vmem:[#allocation6] sm:$0xff] %vm6508_vm14, %v6497_v60  ;;  %v6570_v60 = vrot.slane %v13073_v32, 7 }
 0x6ed   :  { %v6587_v28 = vpop.permute.xlu0 %6586  ;;  %v5660_v46 = vld [vmem:[#allocation2 + $0x118] sm:$0xff] }
 0x6ee   :  { %6599 = vst.msk [vmem:[#allocation6] sm:$0xff] %vm6598_vm6, %v6587_v28  ;;  %8234 = vmatmul.mubr.msk.f32.gmra.mrb[34].mxu0 %vm13709_vm4, %v5660_v46  ;;  %vm13716_vm4 = vcmask 441728   ;;  %v6794_v28 = vld [vmem:[#allocation3 + $0xa7] sm:$0x1] }
 0x6f1   :  { %v6677_v11 = vpop.permute.xlu0 %6676 }
 0x6f2   :  { %6689 = vst.msk [vmem:[#allocation6] sm:$0xff] %vm13719_vm3, %v6677_v11  ;;  %v6974_v11 = vld [vmem:[#allocation3 + $0xa9] sm:$0x1] }
 0x6f4   :  { %v8220_v55 = vpop.f32.mrb[24].mxu0 }
 0x6f5   :  { %v6767_v58 = vpop.permute.xlu0 %6766  ;;  %v6002_v24 = vadd.f32 %v12962_v57, %v8220_v55  ;;  %v5996_v12 = vpop.f32.mrb[25].mxu0 }
 0x6f6   :  { %6779 = vst.msk [vmem:[#allocation6] sm:$0xff] %vm13718_vm13, %v6767_v58  ;;  %v5997_v4 = vadd.f32 %v12962_v57, %v5996_v12 }
 0x6f7   :  { %8393 = vtanh.f32 %v6002_v24 }
 0x6f8   :  { %8395 = vtanh.f32 %v5997_v4  ;;  %v6254_v4 = vld [vmem:[#allocation3 + $0xa1] sm:$0x1] }
 0x6f9   :  { %v6857_v50 = vpop.permute.xlu0 %6856 }
 0x6fa   :  { %6869 = vst.msk [vmem:[#allocation6] sm:$0xff] %vm13717_vm15, %v6857_v50 }
 0x6fd   :  { %v6947_v35 = vpop.permute.xlu0 %6946 }
 0x6fe   :  { %6959 = vst.msk [vmem:[#allocation6] sm:$0xff] %vm13716_vm4, %v6947_v35  ;;  %v6344_v35 = vld [vmem:[#allocation3 + $0xa2] sm:$0x1] }
 0x701   :  { %v7037_v19 = vpop.permute.xlu0 %7036  ;;  %v8394_v22 = vpop.eup %8393 }
 0x702   :  { %7049 = vst.msk [vmem:[#allocation6] sm:$0xff] %vm13715_vm0, %v7037_v19  ;;  %v8396_v17 = vpop.eup %8395  ;;  %vm14044_vm0 = vmmov %vm14043_vm1 }
 0x703   :  { %6141 = vst.msk [vmem:[#allocation3 + $0xc8] sm:$0xff] %vm6115_vm9, %v8394_v22  ;;  %6140 = vst.msk [vmem:[#allocation3 + $0xc0] sm:$0xff] %vm6115_vm9, %v8396_v17 }
 0x704   :  { %vm14045_vm4 = vmmov %vm14044_vm0 }
 0x705   :  { %vm14046_vm15 = vmmov %vm14044_vm0 }
 0x709   :  { %v7059_v29 = vld [vmem:[#allocation6] sm:$0x1]  ;;  %v7181_v39 = vld [vmem:[#allocation6 + $0x3] sm:$0x1] }
 0x70a   :  { %7062 = vst.msk [vmem:[#allocation4] sm:$0x1] %vm7061_vm11, %v7059_v29  ;;  %7183 = vst.msk [vmem:[#allocation4 + $0x2] sm:$0x1] %vm7061_vm11, %v7181_v39  ;;  %v6796_v49 = vld [vmem:[#allocation3 + $0xc7] sm:$0x1]  ;;  %v6841_v39 = vsel %vm6197_vm5, %v6840_v33, %v6794_v28 }
 0x70b   :  { %v6976_v34 = vld [vmem:[#allocation3 + $0xc9] sm:$0x1]  ;;  %v13075_v23 = vld [vmem:[#allocation3 + $0xc1] sm:$0x1]  ;;  %v13077_v6 = vld [vmem:[#allocation3 + $0xc2] sm:$0x1] }
 0x70c   :  { %v6842_v18 = vrot.slane %v6796_v49, 6  ;;  %v7022_v5 = vrot.slane %v6976_v34, 6  ;;  %v6302_v46 = vrot.slane %v13075_v23, 6  ;;  %v6392_v55 = vrot.slane %v13077_v6, 6  ;;  %v6436_v58 = vld [vmem:[#allocation3 + $0xc3] sm:$0x1] }
 0x70d   :  { %v13082_v24 = vld [vmem:[#allocation3 + $0xc4] sm:$0x1]  ;;  %v6168_v19 = vld [vmem:[#allocation3 + $0xc0] sm:$0x1] }
 0x72c   :  { %v8223_v48 = vpop.f32.mrb[26].mxu0 }
 0x72d   :  { %v6012_v0 = vadd.f32 %v12962_v57, %v8223_v48  ;;  %v6006_v14 = vpop.f32.mrb[27].mxu0 }
 0x72e   :  { %v6007_v40 = vadd.f32 %v12962_v57, %v6006_v14  ;;  %v6434_v14 = vld [vmem:[#allocation3 + $0xa3] sm:$0x1] }
 0x72f   :  { %8397 = vtanh.f32 %v6012_v0  ;;  %v7021_v0 = vsel %vm6197_vm5, %v7020_v13, %v6974_v11 }
 0x730   :  { %8399 = vtanh.f32 %v6007_v40  ;;  %v6482_v40 = vrot.slane %v6436_v58, 6  ;;  %v7023_v52 = vsel %vm14042_vm2, %v7022_v5, %v7021_v0 }
 0x739   :  { %v8398_v30 = vpop.eup %8397 }
 0x73a   :  { %v8400_v37 = vpop.eup %8399  ;;  %6143 = vst.msk [vmem:[#allocation3 + $0xd8] sm:$0xff] %vm6115_vm9, %v8398_v30  ;;  %v6572_v30 = vrot.slane %v13082_v24, 6 }
 0x73b   :  { %6142 = vst.msk [vmem:[#allocation3 + $0xd0] sm:$0xff] %vm6115_vm9, %v8400_v37  ;;  %v6166_v37 = vld [vmem:[#allocation3 + $0xa0] sm:$0x1] }
 0x741   :  { %v6977_v50 = vld [vmem:[#allocation3 + $0xd9] sm:$0x1] }
 0x742   :  { %v6797_v12 = vld [vmem:[#allocation3 + $0xd7] sm:$0x1]  ;;  %v6257_v22 = vld [vmem:[#allocation3 + $0xd1] sm:$0x1]  ;;  %v6347_v17 = vld [vmem:[#allocation3 + $0xd2] sm:$0x1] }
 0x743   :  { %v13084_v29 = vld [vmem:[#allocation3 + $0xd3] sm:$0x1] }
 0x764   :  { %v8226_v61 = vpop.f32.mrb[28].mxu0 }
 0x765   :  { %v6022_v42 = vadd.f32 %v12962_v57, %v8226_v61  ;;  %v6016_v43 = vpop.f32.mrb[29].mxu0  ;;  %v6169_v61 = vld [vmem:[#allocation3 + $0xd0] sm:$0x1] }
 0x766   :  { %v6017_v10 = vadd.f32 %v12962_v57, %v6016_v43 }
 0x767   :  { %8401 = vtanh.f32 %v6022_v42 }
 0x768   :  { %8403 = vtanh.f32 %v6017_v10 }
 0x771   :  { %v8402_v9 = vpop.eup %8401 }
 0x772   :  { %v8404_v2 = vpop.eup %8403  ;;  %6145 = vst.msk [vmem:[#allocation3 + $0xe8] sm:$0xff] %vm6115_vm9, %v8402_v9  ;;  %v6301_v9 = vsel %vm6197_vm5, %v6300_v62, %v6254_v4 }
 0x773   :  { %6144 = vst.msk [vmem:[#allocation3 + $0xe0] sm:$0xff] %vm6115_vm9, %v8404_v2  ;;  %v7024_v2 = vrot.slane %v6977_v50, 5  ;;  %v6303_v34 = vsel %vm14043_vm1, %v6302_v46, %v6301_v9 }
 0x779   :  { %v13087_v48 = vld [vmem:[#allocation3 + $0xe9] sm:$0x1] }
 0x77a   :  { %v6798_v43 = vld [vmem:[#allocation3 + $0xe7] sm:$0x1]  ;;  %v6258_v10 = vld [vmem:[#allocation3 + $0xe1] sm:$0x1] }
 0x77b   :  { %v6306_v38 = vrot.slane %v6258_v10, 4 }
 0x795   :  { %v8229_v27 = vpop.f32.mrb[30].mxu0 }
 0x796   :  { %v6032_v63 = vadd.f32 %v12962_v57, %v8229_v27  ;;  %v6026_v3 = vpop.f32.mrb[31].mxu0 }
 0x797   :  { %v6027_v8 = vadd.f32 %v12962_v57, %v6026_v3 }
 0x798   :  { %8405 = vtanh.f32 %v6032_v63  ;;  %v6221_v63 = vrot.slane %v6168_v19, 6 }
 0x799   :  { %8407 = vtanh.f32 %v6027_v8  ;;  %v6844_v8 = vrot.slane %v6797_v12, 5 }
 0x7a2   :  { %v8406_v16 = vpop.eup %8405 }
 0x7a3   :  { %v8408_v1 = vpop.eup %8407  ;;  %6147 = vst.msk [vmem:[#allocation3 + $0xf8] sm:$0xff] %vm6115_vm9, %v8406_v16  ;;  %v6304_v16 = vrot.slane %v6257_v22, 5 }
 0x7a4   :  { %6146 = vst.msk [vmem:[#allocation3 + $0xf0] sm:$0xff] %vm6115_vm9, %v8408_v1  ;;  %v6394_v1 = vrot.slane %v6347_v17, 5 }
 0x7aa   :  { %v6979_v36 = vld [vmem:[#allocation3 + $0xf9] sm:$0x1] }
 0x7ab   :  { %v6259_v20 = vld [vmem:[#allocation3 + $0xf1] sm:$0x1]  ;;  %v7028_v12 = vrot.slane %v6979_v36, 3 }
 0x7ac   :  { %v6308_v28 = vrot.slane %v6259_v20, 3 }
 0x7b0   :  { %v8232_v51 = vpop.f32.mrb[32].mxu0 }
 0x7b1   :  { %v6042_v26 = vadd.f32 %v12962_v57, %v8232_v51  ;;  %v6036_v25 = vpop.f32.mrb[33].mxu0  ;;  %v6484_v51 = vrot.slane %v13084_v29, 5 }
 0x7b2   :  { %v6037_v41 = vadd.f32 %v12962_v57, %v6036_v25  ;;  %v6799_v25 = vld [vmem:[#allocation3 + $0xf7] sm:$0x1] }
 0x7b3   :  { %8409 = vtanh.f32 %v6042_v26  ;;  %v13095_v26 = vld [vmem:[#allocation3 + $0xd4] sm:$0x1]  ;;  %v6848_v62 = vrot.slane %v6799_v25, 3 }
 0x7b4   :  { %8411 = vtanh.f32 %v6037_v41  ;;  %v7026_v41 = vrot.slane %v13087_v48, 4  ;;  %v6574_v11 = vrot.slane %v13095_v26, 5 }
 0x7bd   :  { %v8410_v54 = vpop.eup %8409 }
 0x7be   :  { %v8412_v47 = vpop.eup %8411  ;;  %6149 = vst.msk [vmem:[#allocation3 + $0x108] sm:$0xff] %vm6115_vm9, %v8410_v54  ;;  %v6481_v54 = vsel %vm6197_vm5, %v6480_v44, %v6434_v14  ;;  %v6349_v44 = vld [vmem:[#allocation3 + $0xf2] sm:$0x1] }
 0x7bf   :  { %6148 = vst.msk [vmem:[#allocation3 + $0x100] sm:$0xff] %vm6115_vm9, %v8412_v47  ;;  %v6170_v47 = vld [vmem:[#allocation3 + $0xe0] sm:$0x1]  ;;  %v13106_v13 = vsel %vm14045_vm4, %v6482_v40, %v6481_v54  ;;  %v6398_v17 = vrot.slane %v6349_v44, 3  ;;  %v6439_v54 = vld [vmem:[#allocation3 + $0xf3] sm:$0x1] }
 0x7c0   :  { %v6225_v5 = vrot.slane %v6170_v47, 4  ;;  %v6488_v36 = vrot.slane %v6439_v54, 3 }
 0x7c1   :  { %v8235_v21 = vpop.f32.mrb[34].mxu0 }
 0x7c2   :  { %v6052_v59 = vadd.f32 %v12962_v57, %v8235_v21  ;;  %v6046_v7 = vpop.f32.mrb[35].mxu0  ;;  %v6220_v21 = vsel %vm6197_vm5, %v6219_v15, %v6166_v37  ;;  %v6305_v15 = vsel %vm6203_vm7, %v6304_v16, %v6303_v34 }
 0x7c3   :  { %v6047_v45 = vadd.f32 %v12962_v57, %v6046_v7  ;;  %v6390_v57 = vrot.slane %v6345_v31, 7  ;;  %v6843_v7 = vsel %vm14041_vm8, %v6842_v18, %v6841_v39  ;;  %v6348_v31 = vld [vmem:[#allocation3 + $0xe2] sm:$0x1]  ;;  %v6222_v6 = vsel %vm14046_vm15, %v6221_v63, %v6220_v21  ;;  %v6171_v18 = vld [vmem:[#allocation3 + $0xf0] sm:$0x1] }
 0x7c4   :  { %8413 = vtanh.f32 %v6052_v59  ;;  %v6223_v59 = vrot.slane %v6169_v61, 5  ;;  %v6845_v33 = vsel %vm6203_vm7, %v6844_v8, %v6843_v7  ;;  %v6396_v4 = vrot.slane %v6348_v31, 4  ;;  %v6438_v39 = vld [vmem:[#allocation3 + $0xe3] sm:$0x1] }
 0x7c5   :  { %8415 = vtanh.f32 %v6047_v45  ;;  %v6391_v27 = vsel %vm6197_vm5, %v6390_v57, %v6344_v35  ;;  %v6846_v45 = vrot.slane %v6798_v43, 4  ;;  %v7025_v57 = vsel %vm6203_vm7, %v7024_v2, %v7023_v52  ;;  %v6980_v19 = vld [vmem:[#allocation3 + $0x109] sm:$0x1] }
 0x7c6   :  { %v6800_v53 = vld [vmem:[#allocation3 + $0x107] sm:$0x1]  ;;  %v6260_v49 = vld [vmem:[#allocation3 + $0x101] sm:$0x1]  ;;  %v6393_v23 = vsel %vm14044_vm0, %v6392_v55, %v6391_v27  ;;  %v6172_v50 = vld [vmem:[#allocation3 + $0x100] sm:$0x1]  ;;  %v6224_v48 = vsel %vm6203_vm7, %v6223_v59, %v6222_v6 }
 0x7c7   :  { %v6395_v46 = vsel %vm6203_vm7, %v6394_v1, %v6393_v23  ;;  %v6850_v55 = vrot.slane %v6800_v53, 2  ;;  %v6310_v58 = vrot.slane %v6260_v49, 2  ;;  %vm14047_vm8 = vcmask 1044484   ;;  %v6350_v22 = vld [vmem:[#allocation3 + $0x102] sm:$0x1] }
 0x7c8   :  { %v6847_v35 = vsel %vm14047_vm8, %v6846_v45, %v6845_v33  ;;  %v6227_v0 = vrot.slane %v6171_v18, 3  ;;  %vm14048_vm0 = vcmask 1045509   ;;  %vm14049_vm1 = vmmov %vm14047_vm8  ;;  %vm14053_vm8 = vcmask 1046534   ;;  %v6440_v7 = vld [vmem:[#allocation3 + $0x103] sm:$0x1] }
 0x7c9   :  { %v6849_v40 = vsel %vm14048_vm0, %v6848_v62, %v6847_v35  ;;  %v6307_v61 = vsel %vm14049_vm1, %v6306_v38, %v6305_v15  ;;  %vm14050_vm2 = vmmov %vm14049_vm1  ;;  %v7030_v1 = vrot.slane %v6980_v19, 2  ;;  %v6400_v25 = vrot.slane %v6350_v22, 2  ;;  %v6528_v23 = vld [vmem:[#allocation3 + $0xe4] sm:$0x1]  ;;  %v6615_v6 = vld [vmem:[#allocation3 + $0xb5] sm:$0x1] }
 0x7ca   :  { %v7027_v43 = vsel %vm14050_vm2, %v7026_v41, %v7025_v57  ;;  %vm14051_vm4 = vmmov %vm14049_vm1  ;;  %v6851_v8 = vsel %vm14053_vm8, %v6850_v55, %v6849_v40  ;;  %v6397_v20 = vsel %vm14050_vm2, %v6396_v4, %v6395_v46  ;;  %v6486_v52 = vrot.slane %v6438_v39, 4  ;;  %v6524_v18 = vld [vmem:[#allocation3 + $0xa4] sm:$0x1]  ;;  %v6616_v4 = vld [vmem:[#allocation3 + $0xc5] sm:$0x1] }
 0x7cb   :  { %v6226_v10 = vsel %vm14051_vm4, %v6225_v5, %v6224_v48  ;;  %vm14052_vm15 = vmmov %vm14048_vm0  ;;  %vm14055_vm0 = vcmask 1047559   ;;  %v6490_v44 = vrot.slane %v6440_v7, 2  ;;  %v6529_v5 = vld [vmem:[#allocation3 + $0xf4] sm:$0x1]  ;;  %vm14062_vm2 = vcmask 1047559  }
 0x7cc   :  { %v6309_v2 = vsel %vm14052_vm15, %v6308_v28, %v6307_v61  ;;  %vm14054_vm13 = vmmov %vm14053_vm8  ;;  %v6485_v55 = vsel %vm6203_vm7, %v6484_v51, %v13106_v13  ;;  %v6576_v19 = vrot.slane %v6528_v23, 4  ;;  %v6617_v22 = vld [vmem:[#allocation3 + $0xd5] sm:$0x1]  ;;  %v6571_v29 = vsel %vm6197_vm5, %v6570_v60, %v6524_v18  ;;  %v6618_v13 = vld [vmem:[#allocation3 + $0xe5] sm:$0x1] }
 0x7cd   :  { %v6311_v16 = vsel %vm14054_vm13, %v6310_v58, %v6309_v2  ;;  %vm14056_vm1 = vmmov %vm14055_vm0  ;;  %v6578_v51 = vrot.slane %v6529_v5, 3  ;;  %v6705_v48 = vld [vmem:[#allocation3 + $0xb6] sm:$0x1]  ;;  %v6614_v61 = vld [vmem:[#allocation3 + $0xa5] sm:$0x1]  ;;  %v6664_v2 = vrot.slane %v6617_v22, 5 }
 0x7ce   :  { %v8414_v42 = vpop.eup %8413  ;;  %vm14057_vm13 = vmmov %vm14052_vm15  ;;  %v6709_v7 = vld [vmem:[#allocation3 + $0xf6] sm:$0x1] }
 0x7cf   :  { %v8416_v3 = vpop.eup %8415  ;;  %6151 = vst.msk [vmem:[#allocation3 + $0x118] sm:$0xff] %vm6115_vm9, %v8414_v42  ;;  %v6228_v31 = vsel %vm14057_vm13, %v6227_v0, %v6226_v10  ;;  %vm14058_vm4 = vmmov %vm14057_vm13 }
 0x7d0   :  { %6150 = vst.msk [vmem:[#allocation3 + $0x110] sm:$0xff] %vm6115_vm9, %v8416_v3  ;;  %v6229_v3 = vrot.slane %v6172_v50, 2  ;;  %v7029_v49 = vsel %vm14058_vm4, %v7028_v12, %v7027_v43  ;;  %vm14059_vm15 = vmmov %vm14058_vm4  ;;  %v6530_v12 = vld [vmem:[#allocation3 + $0x104] sm:$0x1]  ;;  %vm14065_vm4 = vcmask 1044484   ;;  %v6662_v43 = vrot.slane %v6616_v4, 6 }
 0x7d1   :  { %v6399_v34 = vsel %vm14059_vm15, %v6398_v17, %v6397_v20  ;;  %vm14063_vm13 = vmmov %vm14062_vm2  ;;  %v6487_v50 = vsel %vm14065_vm4, %v6486_v52, %v6485_v55  ;;  %v6660_v17 = vrot.slane %v6615_v6, 7  ;;  %v6887_v6 = vld [vmem:[#allocation3 + $0xd8] sm:$0x1] }
 0x7d2   :  { %v6230_v33 = vsel %vm14053_vm8, %v6229_v3, %v6228_v31  ;;  %vm14064_vm3 = vmmov %vm14062_vm2  ;;  %v6707_v3 = vld [vmem:[#allocation3 + $0xd6] sm:$0x1]  ;;  %v6710_v31 = vld [vmem:[#allocation3 + $0x106] sm:$0x1] }
 0x7d3   :  { %v6661_v26 = vsel %vm6197_vm5, %v6660_v17, %v6614_v61  ;;  %v6884_v17 = vld [vmem:[#allocation3 + $0xa8] sm:$0x1] }
 0x7d6   :  { %v6981_v42 = vld [vmem:[#allocation3 + $0x119] sm:$0x1] }
 0x7d7   :  { %v6801_v14 = vld [vmem:[#allocation3 + $0x117] sm:$0x1]  ;;  %v6261_v37 = vld [vmem:[#allocation3 + $0x111] sm:$0x1]  ;;  %v6351_v63 = vld [vmem:[#allocation3 + $0x112] sm:$0x1] }
 0x7d8   :  { %v6852_v9 = vrot.slane %v6801_v14, 1  ;;  %v6312_v27 = vrot.slane %v6261_v37, 1  ;;  %v7032_v41 = vrot.slane %v6981_v42, 1  ;;  %v6402_v59 = vrot.slane %v6351_v63, 1  ;;  %v6173_v45 = vld [vmem:[#allocation3 + $0x110] sm:$0x1] }
 0x7d9   :  { %v6441_v38 = vld [vmem:[#allocation3 + $0x113] sm:$0x1]  ;;  %v6231_v53 = vrot.slane %v6173_v45, 1  ;;  %v6531_v35 = vld [vmem:[#allocation3 + $0x114] sm:$0x1]  ;;  %v6580_v37 = vrot.slane %v6530_v12, 2 }
 0x7da   :  { %v6853_v47 = vsel %vm14055_vm0, %v6852_v9, %v6851_v8  ;;  %v6313_v21 = vsel %vm14056_vm1, %v6312_v27, %v6311_v16  ;;  %vm14060_vm0 = vmmov %vm14053_vm8  ;;  %v6492_v58 = vrot.slane %v6441_v38, 1  ;;  %v7235_v14 = vld [vmem:[#allocation6 + $0x3] sm:$0x1]  ;;  %vm14068_vm8 = vcmask 1042434   ;;  %v6619_v42 = vld [vmem:[#allocation3 + $0xf5] sm:$0x1] }
 0x7db   :  { %6860 = vrot.lane.b32.xlu0 %v6853_v47, %s8473_s20  ;;  %6320 = vrot.lane.b32.xlu1 %v6313_v21, %s13728_s29  ;;  %v7031_v62 = vsel %vm14060_vm0, %v7030_v1, %v7029_v49  ;;  %vm14061_vm1 = vmmov %vm14060_vm0  ;;  %v6232_v15 = vsel %vm14062_vm2, %v6231_v53, %v6230_v33  ;;  %v6573_v40 = vsel %vm14068_vm8, %v6572_v30, %v6571_v29  ;;  %v6582_v60 = vrot.slane %v6531_v35, 1  ;;  %v6620_v9 = vld [vmem:[#allocation3 + $0x105] sm:$0x1]  ;;  %v6706_v27 = vld [vmem:[#allocation3 + $0xc6] sm:$0x1] }
 0x7dc   :  { %v6401_v57 = vsel %vm14061_vm1, %v6400_v25, %v6399_v34  ;;  %v7033_v28 = vsel %vm14063_vm13, %v7032_v41, %v7031_v62  ;;  %6242 = vst.msk [vmem:[#allocation6 + $0x10] sm:$0xff] %vm6115_vm9, %v6232_v15  ;;  %v6575_v32 = vsel %vm6203_vm7, %v6574_v11, %v6573_v40  ;;  %vm14070_vm1 = vmmov %vm14065_vm4  ;;  %v6621_v30 = vld [vmem:[#allocation3 + $0x115] sm:$0x1]  ;;  %v6666_v63 = vrot.slane %v6618_v13, 4  ;;  %v6708_v11 = vld [vmem:[#allocation3 + $0xe6] sm:$0x1] }
 0x7dd   :  { %v6403_v46 = vsel %vm14064_vm3, %v6402_v59, %v6401_v57  ;;  %vm14066_vm3 = vmmov %vm14059_vm15  ;;  %v6577_v24 = vsel %vm14070_vm1, %v6576_v19, %v6575_v32  ;;  %v6668_v16 = vrot.slane %v6619_v42, 3  ;;  %v6750_v1 = vrot.slane %v6705_v48, 7  ;;  %v6885_v25 = vld [vmem:[#allocation3 + $0xb8] sm:$0x1]  ;;  %v7131_v47 = vld [vmem:[#allocation6 + $0x1] sm:$0x1] }
 0x7de   :  { %v6489_v39 = vsel %vm14066_vm3, %v6488_v36, %v6487_v50  ;;  %vm14067_vm15 = vmmov %vm14060_vm0  ;;  %v6670_v41 = vrot.slane %v6620_v9, 2  ;;  %v6704_v59 = vld [vmem:[#allocation3 + $0xa6] sm:$0x1]  ;;  %v6752_v45 = vrot.slane %v6706_v27, 6  ;;  %v6672_v52 = vrot.slane %v6621_v30, 1 }
 0x7df   :  { %7040 = vrot.lane.b32.xlu0 %v7033_v28, %s13720_s21  ;;  %6410 = vrot.lane.b32.xlu1 %v6403_v46, %s8458_s13  ;;  %v6491_v0 = vsel %vm14067_vm15, %v6490_v44, %v6489_v39  ;;  %vm14069_vm0 = vmmov %vm14062_vm2  ;;  %v6754_v53 = vrot.slane %v6707_v3, 5  ;;  %v6886_v49 = vld [vmem:[#allocation3 + $0xc8] sm:$0x1]  ;;  %v6711_v36 = vld [vmem:[#allocation3 + $0x116] sm:$0x1]  ;;  %v6756_v23 = vrot.slane %v6708_v11, 4  ;;  %v6751_v62 = vsel %vm6197_vm5, %v6750_v1, %v6704_v59 }
 0x7e0   :  { %v6493_v10 = vsel %vm14069_vm0, %v6492_v58, %v6491_v0  ;;  %vm14071_vm2 = vmmov %vm14066_vm3  ;;  %v6758_v57 = vrot.slane %v6709_v7, 3  ;;  %v6888_v44 = vld [vmem:[#allocation3 + $0xe8] sm:$0x1]  ;;  %v6930_v18 = vrot.slane %v6885_v25, 7  ;;  %v6760_v28 = vrot.slane %v6710_v31, 2  ;;  %v7301_v32 = vld [vmem:[%s13673_s3] sm:$0xff] }
 0x7e1   :  { %v6579_v8 = vsel %vm14071_vm2, %v6578_v51, %v6577_v24  ;;  %vm14072_vm13 = vmmov %vm14067_vm15  ;;  %v6889_v46 = vld [vmem:[#allocation3 + $0xf8] sm:$0x1]  ;;  %v6932_v55 = vrot.slane %v6886_v49, 6  ;;  %v7247_v12 = vld [vmem:[#allocation6 + $0x4] sm:$0x1]  ;;  %v6762_v50 = vrot.slane %v6711_v36, 1 }
 0x7e2   :  { %v6581_v54 = vsel %vm14072_vm13, %v6580_v37, %v6579_v8  ;;  %vm14073_vm4 = vmmov %vm14068_vm8  ;;  %v6890_v35 = vld [vmem:[#allocation3 + $0x108] sm:$0x1]  ;;  %v6934_v19 = vrot.slane %v6887_v6, 5  ;;  %v6891_v39 = vld [vmem:[#allocation3 + $0x118] sm:$0x1]  ;;  %v6936_v29 = vrot.slane %v6888_v44, 4  ;;  %v6931_v13 = vsel %vm6197_vm5, %v6930_v18, %v6884_v17 }
 0x7e3   :  { %6500 = vrot.lane.b32.xlu1 %v6493_v10, %s13726_s10  ;;  %7239 = vrot.lane.b32.xlu0 %v7235_v14, %s8476_s1  ;;  %v6663_v21 = vsel %vm14073_vm4, %v6662_v43, %v6661_v26  ;;  %vm14074_vm3 = vmmov %vm14069_vm0  ;;  %v6938_v48 = vrot.slane %v6889_v46, 3  ;;  %v6940_v40 = vrot.slane %v6890_v35, 2  ;;  %v8477_v37 = vmov 0.0|0.0   ;;  %v7143_v42 = vld [vmem:[#allocation6 + $0x2] sm:$0x1]  ;;  %v7304_v8 = vld [vmem:[%s13673_s3 + $0x18] sm:$0xff] }
 0x7e4   :  { %v6583_v20 = vsel %vm14074_vm3, %v6582_v60, %v6581_v54  ;;  %v6665_v38 = vsel %vm6203_vm7, %v6664_v2, %v6663_v21  ;;  %vm14075_vm15 = vmmov %vm14070_vm1  ;;  %8284 = vmatprep.subr.bf16.mxu1 %v8477_v37  ;;  %v6942_v10 = vrot.slane %v6891_v39, 1  ;;  %v7302_v60 = vld [vmem:[%s13673_s3 + $0x8] sm:$0xff]  ;;  %v7303_v3 = vld [vmem:[%s13673_s3 + $0x10] sm:$0xff]  ;;  %s14113_s10 = smov 48  }
 0x7e5   :  { %v6667_v34 = vsel %vm14075_vm15, %v6666_v63, %v6665_v38  ;;  %vm14076_vm8 = vmmov %vm14071_vm2  ;;  %v8285_v2 = vpack.c.bf16 %v7302_v60, %v7301_v32  ;;  %v7259_v63 = vld [vmem:[#allocation6 + $0x5] sm:$0x1]  ;;  %v8288_v26 = vpack.c.bf16 %v7304_v8, %v7303_v3  ;;  %v7103_v11 = vld [vmem:[#allocation6 + $0x4] sm:$0x1] }
 0x7e6   :  { %v6669_v33 = vsel %vm14076_vm8, %v6668_v16, %v6667_v34  ;;  %vm14077_vm0 = vmmov %vm14072_vm13  ;;  %v7119_v16 = vld [vmem:[#allocation6] sm:$0x1]  ;;  %v7305_v1 = vld [vmem:[%s13673_s3 + $0x20] sm:$0xff] }
 0x7e7   :  { %6590 = vrot.lane.b32.xlu1 %v6583_v20, %s8470_s14  ;;  %7135 = vrot.lane.b32.xlu0 %v7131_v47, %s8458_s13  ;;  %v6671_v5 = vsel %vm14077_vm0, %v6670_v41, %v6669_v33  ;;  %vm14078_vm1 = vmmov %vm14073_vm4  ;;  %v7306_v25 = vld [vmem:[%s13673_s3 + $0x28] sm:$0xff]  ;;  %v7167_v47 = vld [vmem:[#allocation6 + $0x4] sm:$0x1] }
 0x7e8   :  { %v6753_v15 = vsel %vm14078_vm1, %v6752_v45, %v6751_v62  ;;  %vm14079_vm2 = vmmov %vm14074_vm3  ;;  %8286 = vmatpush1.bf16.msra.mxu1 %v8285_v2  ;;  %v8291_v54 = vpack.c.bf16 %v7306_v25, %v7305_v1  ;;  %v7064_v21 = vld [vmem:[#allocation6 + $0x1] sm:$0x1]  ;;  %v7308_v59 = vld [vmem:[%s13673_s3 + $0x38] sm:$0xff] }
 0x7e9   :  { %v6673_v58 = vsel %vm14079_vm2, %v6672_v52, %v6671_v5  ;;  %v6755_v4 = vsel %vm6203_vm7, %v6754_v53, %v6753_v15  ;;  %vm14080_vm13 = vmmov %vm14075_vm15  ;;  %8287 = vmatprep.subr.bf16.mxu1 %v8477_v37  ;;  %v7307_v41 = vld [vmem:[%s13673_s3 + $0x30] sm:$0xff]  ;;  %v7309_v38 = vld [vmem:[%s13673_s3 + $0x40] sm:$0xff] }
 0x7ea   :  { %v6757_v22 = vsel %vm14080_vm13, %v6756_v23, %v6755_v4  ;;  %vm14081_vm4 = vmmov %vm14076_vm8  ;;  %v8294_v7 = vpack.c.bf16 %v7308_v59, %v7307_v41  ;;  %v7221_v45 = vld [vmem:[#allocation6 + $0x7] sm:$0x1]  ;;  %v7185_v20 = vld [vmem:[#allocation6 + $0x4] sm:$0x1] }
 0x7eb   :  { %6680 = vrot.lane.b32.xlu1 %v6673_v58, %s8471_s15  ;;  %7251 = vrot.lane.b32.xlu0 %v7247_v12, %s8458_s13  ;;  %v6759_v51 = vsel %vm14081_vm4, %v6758_v57, %v6757_v22  ;;  %vm14082_vm3 = vmmov %vm14077_vm0  ;;  %v7310_v52 = vld [vmem:[%s13673_s3 + $0x48] sm:$0xff]  ;;  %v7283_v53 = vld [vmem:[#allocation6 + $0x7] sm:$0x1] }
 0x7ec   :  { %v6761_v0 = vsel %vm14082_vm3, %v6760_v28, %v6759_v51  ;;  %vm14083_vm15 = vmmov %vm14078_vm1  ;;  %8289 = vmatpush1.bf16.msra.mxu1 %v8288_v26  ;;  %v8297_v31 = vpack.c.bf16 %v7310_v52, %v7309_v38  ;;  %v7077_v49 = vld [vmem:[#allocation6 + $0x2] sm:$0x1]  ;;  %v7312_v36 = vld [vmem:[%s13673_s3 + $0x58] sm:$0xff] }
 0x7ed   :  { %v6933_v14 = vsel %vm14083_vm15, %v6932_v55, %v6931_v13  ;;  %vm14084_vm8 = vmmov %vm14079_vm2  ;;  %8290 = vmatprep.subr.bf16.mxu1 %v8477_v37  ;;  %v7311_v34 = vld [vmem:[%s13673_s3 + $0x50] sm:$0xff]  ;;  %v7313_v33 = vld [vmem:[%s13673_s3 + $0x60] sm:$0xff]  ;;  %vm14089_vm15 = vcmask 294128  }
 0x7ee   :  { %v6763_v61 = vsel %vm14084_vm8, %v6762_v50, %v6761_v0  ;;  %v6935_v43 = vsel %vm6203_vm7, %v6934_v19, %v6933_v14  ;;  %vm14085_vm0 = vmmov %vm14080_vm13  ;;  %vm7055_vm13 = vcmask 179204   ;;  %v8300_v23 = vpack.c.bf16 %v7312_v36, %v7311_v34  ;;  %v7197_v6 = vld [vmem:[#allocation6 + $0x5] sm:$0x1]  ;;  %v7314_v62 = vld [vmem:[%s13673_s3 + $0x68] sm:$0xff] }
 0x7ef   :  { %6770 = vrot.lane.b32.xlu1 %v6763_v61, %s13724_s16  ;;  %7147 = vrot.lane.b32.xlu0 %v7143_v42, %s8473_s20  ;;  %v6937_v9 = vsel %vm14085_vm0, %v6936_v29, %v6935_v43  ;;  %vm14086_vm1 = vmmov %vm14081_vm4  ;;  %7056 = vst.msk [vmem:[#allocation4 + $0x8] sm:$0xf0] %vm7055_vm13, %v8467_v56  ;;  %v8303_v57 = vpack.c.bf16 %v7314_v62, %v7313_v33  ;;  %v7090_v44 = vld [vmem:[#allocation6 + $0x3] sm:$0x1]  ;;  %v7316_v5 = vld [vmem:[%s13673_s3 + $0x78] sm:$0xff]  ;;  %vm7334_vm4 = vcmask 1045504  }
 0x7f0   :  { %v6939_v27 = vsel %vm14086_vm1, %v6938_v48, %v6937_v9  ;;  %vm14087_vm2 = vmmov %vm14082_vm3  ;;  %8292 = vmatpush1.bf16.msra.mxu1 %v8291_v54  ;;  %7058 = vst.msk [vmem:[#allocation4 + $0x18] sm:$0xf0] %vm7055_vm13, %v8467_v56  ;;  %v7315_v18 = vld [vmem:[%s13673_s3 + $0x70] sm:$0xff]  ;;  %v7317_v15 = vld [vmem:[%s13673_s3 + $0x80] sm:$0xff]  ;;  %vm7074_vm3 = vcmask 483568   ;;  %vm7115_vm0 = vcmask 172032  }
 0x7f1   :  { %v6941_v24 = vsel %vm14087_vm2, %v6940_v40, %v6939_v27  ;;  %vm14088_vm7 = vmmov %vm14084_vm8  ;;  %8293 = vmatprep.subr.bf16.mxu1 %v8477_v37  ;;  %v8306_v28 = vpack.c.bf16 %v7316_v5, %v7315_v18  ;;  %v7318_v46 = vld [vmem:[%s13673_s3 + $0x88] sm:$0xff]  ;;  %v7155_v55 = vld [vmem:[#allocation6 + $0x3] sm:$0x1]  ;;  %vm14092_vm8 = vcmask 441728   ;;  %vm7100_vm1 = vcmask 975568  }
 0x7f2   :  { %v6943_v30 = vsel %vm14088_vm7, %v6942_v10, %v6941_v24  ;;  %v8309_v58 = vpack.c.bf16 %v7318_v46, %v7317_v15  ;;  %v7209_v12 = vld [vmem:[#allocation6 + $0x6] sm:$0x1]  ;;  %v7319_v4 = vld [vmem:[%s13673_s3 + $0x90] sm:$0x3f]  ;;  %vm7327_vm2 = vcmask 179200   ;;  %vm7113_vm7 = vcmask 1041344  }
 0x7f3   :  { %6950 = vrot.lane.b32.xlu1 %v6943_v30, %s13722_s26  ;;  %7263 = vrot.lane.b32.xlu0 %v7259_v63, %s8473_s20  ;;  %s8480_s26 = smov 90   ;;  %v7271_v50 = vld [vmem:[#allocation6 + $0x6] sm:$0x1]  ;;  %vm7425_vm13 = vcmask 58368  }
 0x7f4   :  { %8295 = vmatpush1.bf16.msra.mxu1 %v8294_v7 }
 0x7f5   :  { %8296 = vmatprep.subr.bf16.mxu1 %v8477_v37 }
 0x7f7   :  { %7123 = vrot.lane.b32.xlu1 %v7119_v16, %s8476_s1  ;;  %7107 = vrot.lane.b32.xlu0 %v7103_v11, %s8478_s27 }
 0x7f8   :  { %8298 = vmatpush1.bf16.msra.mxu1 %v8297_v31 }
 0x7f9   :  { %8299 = vmatprep.subr.bf16.mxu1 %v8477_v37 }
 0x7fb   :  { %7171 = vrot.lane.b32.xlu0 %v7167_v47, %s8479_s19  ;;  %7068 = vrot.lane.b32.xlu1 %v7064_v21, %s8471_s15 }
 0x7fc   :  { %8301 = vmatpush1.bf16.msra.mxu1 %v8300_v23 }
 0x7fd   :  { %8302 = vmatprep.subr.bf16.mxu1 %v8477_v37 }
 0x7ff   :  { %7225 = vrot.lane.b32.xlu0 %v7221_v45, %s8478_s27  ;;  %7189 = vrot.lane.b32.xlu1 %v7185_v20, %s8471_s15 }
 0x800   :  { %8304 = vmatpush1.bf16.msra.mxu1 %v8303_v57 }
 0x801   :  { %8305 = vmatprep.subr.bf16.mxu1 %v8477_v37 }
 0x803   :  { %7287 = vrot.lane.b32.xlu0 %v7283_v53, %s8479_s19  ;;  %7081 = vrot.lane.b32.xlu1 %v7077_v49, %s8463_s12 }
 0x804   :  { %8307 = vmatpush1.bf16.msra.mxu1 %v8306_v28 }
 0x805   :  { %8308 = vmatprep.subr.bf16.mxu1 %v8477_v37 }
 0x807   :  { %7201 = vrot.lane.b32.xlu1 %v7197_v6, %s8463_s12 }
 0x808   :  { %8310 = vmatpush1.bf16.msra.mxu1 %v8309_v58 }
 0x809   :  { %7374 = vmatprep.subr.mxu1 %v8467_v56 }
 0x80b   :  { %7094 = vrot.lane.b32.xlu1 %v7090_v44, %s8480_s26 }
 0x80c   :  { %8088 = vmatpush1.msk.msra.mxu1 %vm7334_vm4, %v7319_v4  ;;  %vm8481_vm4 = vmmov 0  }
 0x80d   :  { %8311 = vmatprep.subr.bf16.mxu1 %v8477_v37 }
 0x80f   :  { %7159 = vrot.lane.b32.xlu1 %v7155_v55, %s8464_s30 }
 0x813   :  { %7213 = vrot.lane.b32.xlu1 %v7209_v12, %s8480_s26 }
 0x817   :  { %7275 = vrot.lane.b32.xlu1 %v7271_v50, %s8464_s30 }
 0x84d   :  { %v6861_v35 = vpop.permute.xlu0 %6860  ;;  %v6321_v19 = vpop.permute.xlu1 %6320 }
 0x84e   :  { %6332 = vst.msk [vmem:[#allocation6 + $0x10] sm:$0xff] %vm6328_vm12, %v6321_v19  ;;  %vm14090_vm12 = vcmask 343328  }
 0x851   :  { %v7041_v22 = vpop.permute.xlu0 %7040  ;;  %v6411_v17 = vpop.permute.xlu1 %6410 }
 0x852   :  { %6422 = vst.msk [vmem:[#allocation6 + $0x10] sm:$0xff] %vm6418_vm10, %v6411_v17  ;;  %vm14091_vm10 = vcmask 392528  }
 0x855   :  { %v6501_v39 = vpop.permute.xlu1 %6500  ;;  %v7240_v29 = vpop.permute.xlu0 %7239 }
 0x856   :  { %6512 = vst.msk [vmem:[#allocation6 + $0x10] sm:$0xff] %vm6508_vm14, %v6501_v39  ;;  %vm7087_vm14 = vcmask 729568  }
 0x857   :  { %7245 = vst.msk [vmem:[#allocation4 + $0x3] sm:$0x1] %vm7061_vm11, %v7240_v29 }
 0x859   :  { %v6591_v51 = vpop.permute.xlu1 %6590  ;;  %v7136_v13 = vpop.permute.xlu0 %7135 }
 0x85a   :  { %6602 = vst.msk [vmem:[#allocation6 + $0x10] sm:$0xff] %vm6598_vm6, %v6591_v51  ;;  %vm14093_vm6 = vcmask 490928  }
 0x85d   :  { %v6681_v48 = vpop.permute.xlu1 %6680  ;;  %v7252_v0 = vpop.permute.xlu0 %7251 }
 0x85e   :  { %6692 = vst.msk [vmem:[#allocation6 + $0x10] sm:$0xff] %vm14089_vm15, %v6681_v48  ;;  %vm7447_vm15 = vcmask 189568  }
 0x85f   :  { %7257 = vst.msk [vmem:[#allocation4 + $0x3] sm:$0x1] %vm7074_vm3, %v7252_v0 }
 0x861   :  { %v6771_v14 = vpop.permute.xlu1 %6770  ;;  %v7148_v40 = vpop.permute.xlu0 %7147 }
 0x862   :  { %6782 = vst.msk [vmem:[#allocation6 + $0x10] sm:$0xff] %vm14090_vm12, %v6771_v14  ;;  %vm7458_vm12 = vcmask 255168  }
 0x863   :  { %6872 = vst.msk [vmem:[#allocation6 + $0x10] sm:$0xff] %vm14091_vm10, %v6861_v35  ;;  %vm14095_vm10 = vcmask 392544  }
 0x865   :  { %v6951_v61 = vpop.permute.xlu1 %6950  ;;  %v7264_v42 = vpop.permute.xlu0 %7263 }
 0x866   :  { %6962 = vst.msk [vmem:[#allocation6 + $0x10] sm:$0xff] %vm14092_vm8, %v6951_v61  ;;  %vm14098_vm8 = vcmask 425344  }
 0x867   :  { %7269 = vst.msk [vmem:[#allocation4 + $0x3] sm:$0x1] %vm7087_vm14, %v7264_v42 }
 0x868   :  { %7052 = vst.msk [vmem:[#allocation6 + $0x10] sm:$0xff] %vm14093_vm6, %v7041_v22  ;;  %vm7472_vm6 = vcmask 261120  }
 0x869   :  { %v7124_v43 = vpop.permute.xlu1 %7123  ;;  %v7108_v10 = vpop.permute.xlu0 %7107 }
 0x86a   :  { %7129 = vst.msk [vmem:[#allocation4 + $0x1] sm:$0x1] %vm7061_vm11, %v7124_v43 }
 0x86b   :  { %7116 = vst.msk [vmem:[#allocation4 + $0x8] sm:$0x1] %vm7115_vm0, %v7108_v10 }
 0x86c   :  { %7141 = vst.msk [vmem:[#allocation4 + $0x1] sm:$0x1] %vm7074_vm3, %v7136_v13  ;;  %v8087_v13 = vld [vmem:[%s13674_s4] ss:$0 sm:$0xff] }
 0x86d   :  { %7153 = vst.msk [vmem:[#allocation4 + $0x1] sm:$0x1] %vm7087_vm14, %v7148_v40  ;;  %v7172_v32 = vpop.permute.xlu0 %7171  ;;  %v7069_v60 = vpop.permute.xlu1 %7068 }
 0x86e   :  { %7178 = vst.msk [vmem:[#allocation4 + $0x9] sm:$0x1] %vm7115_vm0, %v7172_v32 }
 0x86f   :  { %7075 = vst.msk [vmem:[#allocation4] sm:$0x1] %vm7074_vm3, %v7069_v60  ;;  %v7236_v9 = vld [vmem:[#allocation6 + $0x13] sm:$0x1]  ;;  %v7120_v2 = vld [vmem:[#allocation6 + $0x10] sm:$0x1] }
 0x870   :  { %7241 = vrot.lane.b32.xlu0 %v7236_v9, %s8476_s1  ;;  %7125 = vrot.lane.b32.xlu1 %v7120_v2, %s8476_s1  ;;  %v7132_v30 = vld [vmem:[#allocation6 + $0x11] sm:$0x1]  ;;  %v7060_v3 = vld [vmem:[#allocation6 + $0x10] sm:$0x1]  ;;  %v7182_v8 = vld [vmem:[#allocation6 + $0x13] sm:$0x1] }
 0x871   :  { %v7226_v27 = vpop.permute.xlu0 %7225  ;;  %v7190_v24 = vpop.permute.xlu1 %7189  ;;  %v7065_v63 = vld [vmem:[#allocation6 + $0x11] sm:$0x1]  ;;  %7063 = vst.msk [vmem:[#allocation4 + $0x10] sm:$0x1] %vm7061_vm11, %v7060_v3  ;;  %7184 = vst.msk [vmem:[#allocation4 + $0x12] sm:$0x1] %vm7061_vm11, %v7182_v8 }
 0x872   :  { %7232 = vst.msk [vmem:[#allocation4 + $0xa] sm:$0x1] %vm7115_vm0, %v7226_v27  ;;  %v7248_v11 = vld [vmem:[#allocation6 + $0x14] sm:$0x1]  ;;  %v7144_v54 = vld [vmem:[#allocation6 + $0x12] sm:$0x1] }
 0x873   :  { %7195 = vst.msk [vmem:[#allocation4 + $0x2] sm:$0x1] %vm7074_vm3, %v7190_v24  ;;  %v7186_v1 = vld [vmem:[#allocation6 + $0x14] sm:$0x1]  ;;  %v7078_v47 = vld [vmem:[#allocation6 + $0x12] sm:$0x1] }
 0x874   :  { %7137 = vrot.lane.b32.xlu0 %v7132_v30, %s8458_s13  ;;  %7070 = vrot.lane.b32.xlu1 %v7065_v63, %s8471_s15  ;;  %v7260_v59 = vld [vmem:[#allocation6 + $0x15] sm:$0x1]  ;;  %v7104_v20 = vld [vmem:[#allocation6 + $0x14] sm:$0x1]  ;;  %v7091_v38 = vld [vmem:[#allocation6 + $0x13] sm:$0x1] }
 0x875   :  { %v7288_v26 = vpop.permute.xlu0 %7287  ;;  %v7082_v16 = vpop.permute.xlu1 %7081  ;;  %v7198_v7 = vld [vmem:[#allocation6 + $0x15] sm:$0x1]  ;;  %v7168_v31 = vld [vmem:[#allocation6 + $0x14] sm:$0x1]  ;;  %v7156_v53 = vld [vmem:[#allocation6 + $0x13] sm:$0x1] }
 0x876   :  { %7294 = vst.msk [vmem:[#allocation4 + $0xb] sm:$0x1] %vm7115_vm0, %v7288_v26  ;;  %v7222_v34 = vld [vmem:[#allocation6 + $0x17] sm:$0x1]  ;;  %v7210_v36 = vld [vmem:[#allocation6 + $0x16] sm:$0x1] }
 0x877   :  { %7088 = vst.msk [vmem:[#allocation4] sm:$0x1] %vm7087_vm14, %v7082_v16  ;;  %v7284_v23 = vld [vmem:[#allocation6 + $0x17] sm:$0x1]  ;;  %v7272_v6 = vld [vmem:[#allocation6 + $0x16] sm:$0x1] }
 0x878   :  { %7253 = vrot.lane.b32.xlu0 %v7248_v11, %s8458_s13  ;;  %7191 = vrot.lane.b32.xlu1 %v7186_v1, %s8471_s15  ;;  %v7462_v60 = vld [vmem:[%s13675_s5 + $0x8] sm:$0xff]  ;;  %v7463_v2 = vld [vmem:[%s13675_s5 + $0x10] sm:$0xff] }
 0x879   :  { %v7202_v25 = vpop.permute.xlu1 %7201 }
 0x87a   :  { %7207 = vst.msk [vmem:[#allocation4 + $0x2] sm:$0x1] %vm7087_vm14, %v7202_v25 }
 0x87c   :  { %7149 = vrot.lane.b32.xlu0 %v7144_v54, %s8473_s20  ;;  %7083 = vrot.lane.b32.xlu1 %v7078_v47, %s8463_s12 }
 0x87d   :  { %v7095_v21 = vpop.permute.xlu1 %7094  ;;  %v7298_v41 = vld [vmem:[#allocation4 + $0x8] sm:$0xff] }
 0x87e   :  { %7101 = vst.msk [vmem:[#allocation4] sm:$0x1] %vm7100_vm1, %v7095_v21  ;;  %8089 = vmatprep.mubr.msk.f32.mxu1 %vm7327_vm2, %v7298_v41 }
 0x87f   :  { %7114 = vst.msk [vmem:[#allocation4] sm:$0x1] %vm7113_vm7, %v7108_v10 }
 0x880   :  { %7265 = vrot.lane.b32.xlu0 %v7260_v59, %s8473_s20  ;;  %7203 = vrot.lane.b32.xlu1 %v7198_v7, %s8463_s12  ;;  %v2272_v7 = vld [vmem:[%s13670_s0 + $0x130] sm:$0xff] }
 0x881   :  { %v7160_v45 = vpop.permute.xlu1 %7159 }
 0x882   :  { %7165 = vst.msk [vmem:[#allocation4 + $0x1] sm:$0x1] %vm7100_vm1, %v7160_v45 }
 0x883   :  { %7177 = vst.msk [vmem:[#allocation4 + $0x1] sm:$0x1] %vm7113_vm7, %v7172_v32  ;;  %v7461_v32 = vld [vmem:[%s13675_s5] sm:$0xff] }
 0x884   :  { %7109 = vrot.lane.b32.xlu0 %v7104_v20, %s8478_s27  ;;  %7096 = vrot.lane.b32.xlu1 %v7091_v38, %s8480_s26  ;;  %v8312_v9 = vpack.c.bf16 %v7462_v60, %v7461_v32  ;;  %v2515_v38 = vld [vmem:[%s13670_s0 + $0x138] sm:$0x3]  ;;  %v6252_v60 = vld [vmem:[#allocation3 + $0x81] sm:$0x1] }
 0x885   :  { %v7214_v52 = vpop.permute.xlu1 %7213 }
 0x886   :  { %7219 = vst.msk [vmem:[#allocation4 + $0x2] sm:$0x1] %vm7100_vm1, %v7214_v52  ;;  %v2756_v52 = vld [vmem:[%s13670_s0 + $0x131] sm:$0xff] }
 0x887   :  { %7231 = vst.msk [vmem:[#allocation4 + $0x2] sm:$0x1] %vm7113_vm7, %v7226_v27  ;;  %v7464_v27 = vld [vmem:[%s13675_s5 + $0x18] sm:$0xff]  ;;  %s14108_s5 = smov 36  }
 0x888   :  { %7173 = vrot.lane.b32.xlu0 %v7168_v31, %s8479_s19  ;;  %7161 = vrot.lane.b32.xlu1 %v7156_v53, %s8464_s30  ;;  %v8315_v3 = vpack.c.bf16 %v7464_v27, %v7463_v2  ;;  %v2757_v31 = vld [vmem:[%s13670_s0 + $0x139] sm:$0x3]  ;;  %v2033_v53 = vld [vmem:[%s13670_s0 + $0x148] sm:$0x3]  ;;  %v6433_v27 = vld [vmem:[#allocation3 + $0x93] sm:$0x1] }
 0x889   :  { %v7276_v49 = vpop.permute.xlu1 %7275 }
 0x88a   :  { %7281 = vst.msk [vmem:[#allocation4 + $0x3] sm:$0x1] %vm7100_vm1, %v7276_v49  ;;  %v2274_v49 = vld [vmem:[%s13670_s0 + $0x140] sm:$0xff] }
 0x88b   :  { %7293 = vst.msk [vmem:[#allocation4 + $0x3] sm:$0x1] %vm7113_vm7, %v7288_v26 }
 0x88c   :  { %7227 = vrot.lane.b32.xlu0 %v7222_v34, %s8478_s27  ;;  %7215 = vrot.lane.b32.xlu1 %v7210_v36, %s8480_s26  ;;  %v2999_v34 = vld [vmem:[%s13670_s0 + $0x139] sm:$0x3]  ;;  %v2275_v36 = vld [vmem:[%s13670_s0 + $0x148] sm:$0x3] }
 0x890   :  { %7289 = vrot.lane.b32.xlu0 %v7284_v23, %s8479_s19  ;;  %7277 = vrot.lane.b32.xlu1 %v7272_v6, %s8464_s30  ;;  %v7682_v23 = vld [vmem:[%s13670_s0 + $0x148] sm:$0x3] }
 0x891   :  { %v2517_v6 = vld [vmem:[%s13670_s0 + $0x148] sm:$0x3] }
 0x892   :  { %v7297_v33 = vld [vmem:[#allocation4] sm:$0xff] }
 0x893   :  { %7403 = vmatmul.mubr.f32.vlgmr.msra.gmra.mrb[0].mxu1 %v7297_v33  ;;  %v2758_v33 = vld [vmem:[%s13670_s0 + $0x141] sm:$0xff] }
 0x894   :  { %8313 = vmatpush3.bf16.msra.mxu1 %v8312_v9 }
 0x895   :  { %8314 = vmatprep.subr.bf16.mxu1 %v8477_v37 }
 0x898   :  { %8316 = vmatpush3.bf16.msra.mxu1 %v8315_v3 }
 0x899   :  { %8317 = vmatprep.subr.bf16.mxu1 %v8477_v37  ;;  %v2273_v37 = vld [vmem:[%s13670_s0 + $0x138] sm:$0x3] }
 0x8e2   :  { %v7242_v62 = vpop.permute.xlu0 %7241  ;;  %v7126_v57 = vpop.permute.xlu1 %7125 }
 0x8e3   :  { %7246 = vst.msk [vmem:[#allocation4 + $0x13] sm:$0x1] %vm7061_vm11, %v7242_v62  ;;  %7130 = vst.msk [vmem:[#allocation4 + $0x11] sm:$0x1] %vm7061_vm11, %v7126_v57  ;;  %vm7415_vm11 = vcmask 64512  }
 0x8e4   :  { %v7722_v62 = vld [vmem:[%s13670_s0 + $0x148] sm:$0x3] }
 0x8e5   :  { %v2759_v57 = vld [vmem:[%s13670_s0 + $0x149] sm:$0x3] }
 0x8e6   :  { %v7138_v44 = vpop.permute.xlu0 %7137  ;;  %v7071_v18 = vpop.permute.xlu1 %7070 }
 0x8e7   :  { %7142 = vst.msk [vmem:[#allocation4 + $0x11] sm:$0x1] %vm7074_vm3, %v7138_v44  ;;  %7076 = vst.msk [vmem:[#allocation4 + $0x10] sm:$0x1] %vm7074_vm3, %v7071_v18  ;;  %v7762_v44 = vld [vmem:[%s13670_s0 + $0x148] sm:$0x3] }
 0x8e8   :  { %v3001_v18 = vld [vmem:[%s13670_s0 + $0x149] sm:$0x3] }
 0x8ea   :  { %v7254_v5 = vpop.permute.xlu0 %7253  ;;  %v7192_v15 = vpop.permute.xlu1 %7191 }
 0x8eb   :  { %7258 = vst.msk [vmem:[#allocation4 + $0x13] sm:$0x1] %vm7074_vm3, %v7254_v5  ;;  %7196 = vst.msk [vmem:[#allocation4 + $0x12] sm:$0x1] %vm7074_vm3, %v7192_v15  ;;  %v7683_v5 = vld [vmem:[%s13670_s0 + $0x150] sm:$0xff]  ;;  %vm7436_vm3 = vcmask 123968  }
 0x8ec   :  { %v7802_v15 = vld [vmem:[%s13670_s0 + $0x149] sm:$0x3] }
 0x8ee   :  { %v7150_v28 = vpop.permute.xlu0 %7149  ;;  %v7084_v46 = vpop.permute.xlu1 %7083 }
 0x8ef   :  { %7154 = vst.msk [vmem:[#allocation4 + $0x11] sm:$0x1] %vm7087_vm14, %v7150_v28  ;;  %7089 = vst.msk [vmem:[#allocation4 + $0x10] sm:$0x1] %vm7087_vm14, %v7084_v46  ;;  %v7684_v28 = vld [vmem:[%s13670_s0 + $0x158] sm:$0x3] }
 0x8f0   :  { %v7842_v46 = vld [vmem:[%s13670_s0 + $0x149] sm:$0x3] }
 0x8f2   :  { %v7266_v55 = vpop.permute.xlu0 %7265  ;;  %v7204_v58 = vpop.permute.xlu1 %7203 }
 0x8f3   :  { %7270 = vst.msk [vmem:[#allocation4 + $0x13] sm:$0x1] %vm7087_vm14, %v7266_v55  ;;  %7208 = vst.msk [vmem:[#allocation4 + $0x12] sm:$0x1] %vm7087_vm14, %v7204_v58  ;;  %v7724_v55 = vld [vmem:[%s13670_s0 + $0x158] sm:$0x3] }
 0x8f4   :  { %v7882_v58 = vld [vmem:[%s13670_s0 + $0x148] sm:$0x3]  ;;  %vm14097_vm14 = vcmask 386400  }
 0x8f6   :  { %v7110_v12 = vpop.permute.xlu0 %7109  ;;  %v7097_v4 = vpop.permute.xlu1 %7096 }
 0x8f7   :  { %7118 = vst.msk [vmem:[#allocation4 + $0x18] sm:$0x1] %vm7115_vm0, %v7110_v12 }
 0x8f8   :  { %7102 = vst.msk [vmem:[#allocation4 + $0x10] sm:$0x1] %vm7100_vm1, %v7097_v4  ;;  %v7803_v4 = vld [vmem:[%s13670_s0 + $0x151] sm:$0xff] }
 0x8f9   :  { %7117 = vst.msk [vmem:[#allocation4 + $0x10] sm:$0x1] %vm7113_vm7, %v7110_v12  ;;  %v7764_v12 = vld [vmem:[%s13670_s0 + $0x158] sm:$0x3] }
 0x8fa   :  { %v7174_v50 = vpop.permute.xlu0 %7173  ;;  %v7162_v35 = vpop.permute.xlu1 %7161 }
 0x8fb   :  { %7180 = vst.msk [vmem:[#allocation4 + $0x19] sm:$0x1] %vm7115_vm0, %v7174_v50 }
 0x8fc   :  { %7166 = vst.msk [vmem:[#allocation4 + $0x11] sm:$0x1] %vm7100_vm1, %v7162_v35  ;;  %v7804_v35 = vld [vmem:[%s13670_s0 + $0x159] sm:$0x3] }
 0x8fd   :  { %7179 = vst.msk [vmem:[#allocation4 + $0x11] sm:$0x1] %vm7113_vm7, %v7174_v50  ;;  %v7922_v50 = vld [vmem:[%s13670_s0 + $0x148] sm:$0x3] }
 0x8fe   :  { %v7228_v19 = vpop.permute.xlu0 %7227  ;;  %v7216_v22 = vpop.permute.xlu1 %7215 }
 0x8ff   :  { %7234 = vst.msk [vmem:[#allocation4 + $0x1a] sm:$0x1] %vm7115_vm0, %v7228_v19 }
 0x900   :  { %7220 = vst.msk [vmem:[#allocation4 + $0x12] sm:$0x1] %vm7100_vm1, %v7216_v22  ;;  %v7844_v22 = vld [vmem:[%s13670_s0 + $0x159] sm:$0x3] }
 0x901   :  { %7233 = vst.msk [vmem:[#allocation4 + $0x12] sm:$0x1] %vm7113_vm7, %v7228_v19  ;;  %v7962_v19 = vld [vmem:[%s13670_s0 + $0x148] sm:$0x3] }
 0x902   :  { %v7290_v17 = vpop.permute.xlu0 %7289  ;;  %v7278_v39 = vpop.permute.xlu1 %7277 }
 0x903   :  { %7296 = vst.msk [vmem:[#allocation4 + $0x1b] sm:$0x1] %vm7115_vm0, %v7290_v17  ;;  %vm14099_vm0 = vcmask 419200  }
 0x904   :  { %7282 = vst.msk [vmem:[#allocation4 + $0x13] sm:$0x1] %vm7100_vm1, %v7278_v39  ;;  %v7884_v39 = vld [vmem:[%s13670_s0 + $0x158] sm:$0x3]  ;;  %vm14100_vm1 = vcmask 458144  }
 0x905   :  { %7295 = vst.msk [vmem:[#allocation4 + $0x13] sm:$0x1] %vm7113_vm7, %v7290_v17  ;;  %v8002_v17 = vld [vmem:[%s13670_s0 + $0x149] sm:$0x3]  ;;  %vm14103_vm7 = vcmask 490944  }
 0x90a   :  { %v7300_v29 = vld [vmem:[#allocation4 + $0x18] sm:$0xff] }
 0x90b   :  { %8090 = vmatprep.mubr.msk.f32.mxu1 %vm7327_vm2, %v7300_v29  ;;  %v8042_v29 = vld [vmem:[%s13670_s0 + $0x149] sm:$0x3]  ;;  %vm14102_vm2 = vcmask 452000  }
 0x90c   :  { %v7299_v51 = vld [vmem:[#allocation4 + $0x10] sm:$0xff] }
 0x90d   :  { %7408 = vmatmul.mubr.f32.gmra.mrb[2].mxu1 %v7299_v51  ;;  %v7924_v51 = vld [vmem:[%s13670_s0 + $0x158] sm:$0x3] }
 0x90e   :  { %8250 = vmatprep.mubr.msk.f32.mxu1 %vm8481_vm4, %v8467_v56 }
 0x966   :  { %v7404_v48 = vpop.f32.mrb[0].mxu1 }
 0x967   :  { %v7405_v0 = vadd.f32 %v8087_v13, %v7404_v48  ;;  %v7406_v14 = vpop.f32.mrb[1].mxu1  ;;  %v8004_v48 = vld [vmem:[%s13670_s0 + $0x159] sm:$0x3] }
 0x968   :  { %v8044_v14 = vld [vmem:[%s13670_s0 + $0x159] sm:$0x3] }
 0x969   :  { %8417 = vtanh.f32 %v7405_v0  ;;  %v6253_v0 = vld [vmem:[#allocation3 + $0x91] sm:$0x1] }
 0x973   :  { %v8418_v40 = vpop.eup %8417 }
 0x974   :  { %7416 = vst.msk [vmem:[#allocation5] sm:$0xff] %vm7415_vm11, %v8418_v40 }
 0x97b   :  { %v7438_v11 = vld [vmem:[#allocation5 + $0x2] sm:$0x1]  ;;  %v7427_v1 = vld [vmem:[#allocation5 + $0x1] sm:$0x1]  ;;  %v7418_v41 = vld [vmem:[#allocation5] sm:$0x1] }
 0x97c   :  { %v7449_v45 = vld [vmem:[#allocation5 + $0x3] sm:$0x1] }
 0x9e0   :  { %v7409_v61 = vpop.f32.mrb[2].mxu1 }
 0x9e1   :  { %v7410_v42 = vadd.f32 %v8087_v13, %v7409_v61  ;;  %v7411_v43 = vpop.f32.mrb[3].mxu1  ;;  %v7964_v13 = vld [vmem:[%s13670_s0 + $0x158] sm:$0x3]  ;;  %s14096_s0 = smov 6  }
 0x9e2   :  { %v6343_v43 = vld [vmem:[#allocation3 + $0x92] sm:$0x1] }
 0x9e3   :  { %8419 = vtanh.f32 %v7410_v42  ;;  %v6298_v42 = vrot.slane %v6253_v0, 7  ;;  %v6388_v2 = vrot.slane %v6343_v43, 7 }
 0x9e5   :  { %v6299_v9 = vsel %vm6197_vm5, %v6298_v42, %v6252_v60 }
 0x9ed   :  { %v8420_v10 = vpop.eup %8419 }
 0x9ee   :  { %7417 = vst.msk [vmem:[#allocation5 + $0x8] sm:$0xff] %vm7415_vm11, %v8420_v10  ;;  %vm14104_vm11 = vcmask 353600  }
 0x9f5   :  { %v7439_v24 = vld [vmem:[#allocation5 + $0xa] sm:$0x1]  ;;  %v7428_v30 = vld [vmem:[#allocation5 + $0x9] sm:$0x1]  ;;  %v7450_v63 = vld [vmem:[#allocation5 + $0xb] sm:$0x1] }
 0x9f6   :  { %v7442_v8 = vrot.slane %v7439_v24, 7  ;;  %v7431_v26 = vrot.slane %v7428_v30, 7  ;;  %v7419_v16 = vld [vmem:[#allocation5 + $0x8] sm:$0x1]  ;;  %v7453_v21 = vrot.slane %v7450_v63, 7 }
 0x9f7   :  { %v7422_v25 = vrot.slane %v7419_v16, 7  ;;  %v6342_v63 = vld [vmem:[#allocation3 + $0x82] sm:$0x1] }
 0x9f8   :  { %v7443_v54 = vsel %vm6197_vm5, %v7442_v8, %v7438_v11  ;;  %v7432_v47 = vsel %vm6197_vm5, %v7431_v26, %v7427_v1  ;;  %v7454_v20 = vsel %vm6197_vm5, %v7453_v21, %v7449_v45  ;;  %v6389_v3 = vsel %vm6197_vm5, %v6388_v2, %v6342_v63  ;;  %v6523_v26 = vld [vmem:[#allocation3 + $0x94] sm:$0x1]  ;;  %v6613_v21 = vld [vmem:[#allocation3 + $0x95] sm:$0x1] }
 0x9f9   :  { %7444 = vrot.lane.b32.xlu0 %v7443_v54, %s8461_s18  ;;  %7433 = vrot.lane.b32.xlu1 %v7432_v47, %s8459_s11  ;;  %v7423_v59 = vsel %vm6197_vm5, %v7422_v25, %v7418_v41  ;;  %v6478_v8 = vrot.slane %v6433_v27, 7  ;;  %v6432_v25 = vld [vmem:[#allocation3 + $0x83] sm:$0x1]  ;;  %v6568_v47 = vrot.slane %v6523_v26, 7 }
 0x9fa   :  { %7426 = vst.msk [vmem:[#allocation7] sm:$0x3] %vm7425_vm13, %v7423_v59 }
 0x9fb   :  { %v6479_v54 = vsel %vm6197_vm5, %v6478_v8, %v6432_v25 }
 0x9fd   :  { %7455 = vrot.lane.b32.xlu1 %v7454_v20, %s8470_s14  ;;  %2388 = vrot.lane.b32.xlu0 %v2272_v7, %s8461_s18  ;;  %v6658_v20 = vrot.slane %v6613_v21, 7  ;;  %v7547_v21 = vld [vmem:[%s13677_s7] sm:$0xff] }
 0xa01   :  { %2390 = vrot.lane.b32.xlu1 %v2273_v37, %s8461_s18  ;;  %2630 = vrot.lane.b32.xlu0 %v2272_v7, %s8461_s18  ;;  %v6522_v7 = vld [vmem:[#allocation3 + $0x84] sm:$0x1]  ;;  %v6703_v37 = vld [vmem:[#allocation3 + $0x96] sm:$0x1] }
 0xa02   :  { %v6569_v45 = vsel %vm6197_vm5, %v6568_v47, %v6522_v7 }
 0xa05   :  { %2632 = vrot.lane.b32.xlu1 %v2515_v38, %s8461_s18  ;;  %2872 = vrot.lane.b32.xlu0 %v2756_v52, %s8462_s22 }
 0xa09   :  { %2874 = vrot.lane.b32.xlu1 %v2757_v31, %s8462_s22  ;;  %3114 = vrot.lane.b32.xlu0 %v2756_v52, %s8462_s22  ;;  %v6612_v31 = vld [vmem:[#allocation3 + $0x85] sm:$0x1] }
 0xa0d   :  { %2152 = vrot.lane.b32.xlu1 %v2033_v53, %s8461_s18  ;;  %2392 = vrot.lane.b32.xlu0 %v2274_v49, %s8461_s18  ;;  %v6748_v53 = vrot.slane %v6703_v37, 7 }
 0xa11   :  { %3116 = vrot.lane.b32.xlu1 %v2999_v34, %s8462_s22  ;;  %3357 = vrot.lane.b32.xlu0 %v2274_v49, %s8463_s12 }
 0xa15   :  { %2394 = vrot.lane.b32.xlu1 %v2275_v36, %s8461_s18  ;;  %2634 = vrot.lane.b32.xlu0 %v2274_v49, %s8461_s18 }
 0xa19   :  { %3359 = vrot.lane.b32.xlu1 %v7682_v23, %s8463_s12  ;;  %3599 = vrot.lane.b32.xlu0 %v2274_v49, %s8463_s12  ;;  %v6702_v23 = vld [vmem:[#allocation3 + $0x86] sm:$0x1] }
 0xa1d   :  { %2636 = vrot.lane.b32.xlu1 %v2517_v6, %s8461_s18  ;;  %2876 = vrot.lane.b32.xlu0 %v2758_v33, %s8462_s22  ;;  %v6749_v6 = vsel %vm6197_vm5, %v6748_v53, %v6702_v23 }
 0xa21   :  { %3601 = vrot.lane.b32.xlu1 %v7722_v62, %s8463_s12  ;;  %3841 = vrot.lane.b32.xlu0 %v2274_v49, %s8463_s12  ;;  %v6883_v62 = vld [vmem:[#allocation3 + $0x98] sm:$0x1] }
 0xa25   :  { %2878 = vrot.lane.b32.xlu1 %v2759_v57, %s8462_s22  ;;  %3118 = vrot.lane.b32.xlu0 %v2758_v33, %s8462_s22 }
 0xa29   :  { %3843 = vrot.lane.b32.xlu1 %v7762_v44, %s8463_s12  ;;  %4083 = vrot.lane.b32.xlu0 %v2758_v33, %s8464_s30 }
 0xa2d   :  { %3120 = vrot.lane.b32.xlu1 %v3001_v18, %s8462_s22  ;;  %3361 = vrot.lane.b32.xlu0 %v7683_v5, %s8463_s12  ;;  %v6792_v18 = vld [vmem:[#allocation3 + $0x87] sm:$0x1] }
 0xa31   :  { %4085 = vrot.lane.b32.xlu1 %v7802_v15, %s8464_s30  ;;  %4325 = vrot.lane.b32.xlu0 %v2758_v33, %s8464_s30  ;;  %v6928_v15 = vrot.slane %v6883_v62, 7 }
 0xa35   :  { %3363 = vrot.lane.b32.xlu1 %v7684_v28, %s8463_s12  ;;  %3603 = vrot.lane.b32.xlu0 %v7683_v5, %s8463_s12  ;;  %v6973_v28 = vld [vmem:[#allocation3 + $0x99] sm:$0x1] }
 0xa39   :  { %4327 = vrot.lane.b32.xlu1 %v7842_v46, %s8464_s30  ;;  %4567 = vrot.lane.b32.xlu0 %v2274_v49, %s8465_s24 }
 0xa3d   :  { %3605 = vrot.lane.b32.xlu1 %v7724_v55, %s8463_s12  ;;  %3845 = vrot.lane.b32.xlu0 %v7683_v5, %s8463_s12 }
 0xa41   :  { %4569 = vrot.lane.b32.xlu1 %v7882_v58, %s8465_s24  ;;  %4809 = vrot.lane.b32.xlu0 %v2274_v49, %s8465_s24  ;;  %v6882_v58 = vld [vmem:[#allocation3 + $0x88] sm:$0x1] }
 0xa45   :  { %3847 = vrot.lane.b32.xlu1 %v7764_v12, %s8463_s12  ;;  %4087 = vrot.lane.b32.xlu0 %v7803_v4, %s8464_s30  ;;  %v6929_v12 = vsel %vm6197_vm5, %v6928_v15, %v6882_v58  ;;  %s14116_s12 = smov 54  }
 0xa49   :  { %4811 = vrot.lane.b32.xlu1 %v7922_v50, %s8465_s24  ;;  %5051 = vrot.lane.b32.xlu0 %v2274_v49, %s8465_s24  ;;  %v6793_v49 = vld [vmem:[#allocation3 + $0x97] sm:$0x1] }
 0xa4d   :  { %4089 = vrot.lane.b32.xlu1 %v7804_v35, %s8464_s30  ;;  %4329 = vrot.lane.b32.xlu0 %v7803_v4, %s8464_s30 }
 0xa51   :  { %5053 = vrot.lane.b32.xlu1 %v7962_v19, %s8465_s24  ;;  %5293 = vrot.lane.b32.xlu0 %v2758_v33, %s14094_s17  ;;  %v6972_v19 = vld [vmem:[#allocation3 + $0x89] sm:$0x1] }
 0xa55   :  { %4331 = vrot.lane.b32.xlu1 %v7844_v22, %s8464_s30  ;;  %4571 = vrot.lane.b32.xlu0 %v7683_v5, %s8465_s24 }
 0xa59   :  { %5295 = vrot.lane.b32.xlu1 %v8002_v17, %s14094_s17  ;;  %5535 = vrot.lane.b32.xlu0 %v2758_v33, %s14094_s17  ;;  %v6838_v33 = vrot.slane %v6793_v49, 7 }
 0xa5d   :  { %4573 = vrot.lane.b32.xlu1 %v7884_v39, %s8465_s24  ;;  %4813 = vrot.lane.b32.xlu0 %v7683_v5, %s8465_s24 }
 0xa61   :  { %5537 = vrot.lane.b32.xlu1 %v8042_v29, %s14094_s17  ;;  %4815 = vrot.lane.b32.xlu0 %v7924_v51, %s8465_s24 }
 0xa65   :  { %5055 = vrot.lane.b32.xlu1 %v7683_v5, %s8465_s24  ;;  %5057 = vrot.lane.b32.xlu0 %v7964_v13, %s8465_s24  ;;  %s14101_s24 = smov 18   ;;  %v6839_v5 = vsel %vm6197_vm5, %v6838_v33, %v6792_v18 }
 0xa69   :  { %5297 = vrot.lane.b32.xlu1 %v7803_v4, %s14094_s17  ;;  %5299 = vrot.lane.b32.xlu0 %v8004_v48, %s14094_s17 }
 0xa6b   :  { %v7445_v40 = vpop.permute.xlu0 %7444  ;;  %v7434_v61 = vpop.permute.xlu1 %7433 }
 0xa6c   :  { %7437 = vst.msk [vmem:[#allocation7] sm:$0x3] %vm7436_vm3, %v7434_v61  ;;  %vm14105_vm3 = vmmov %vm14095_vm10 }
 0xa6d   :  { %5539 = vrot.lane.b32.xlu1 %v7803_v4, %s14094_s17  ;;  %5541 = vrot.lane.b32.xlu0 %v8044_v14, %s14094_s17  ;;  %7448 = vst.msk [vmem:[#allocation7] sm:$0x3] %vm7447_vm15, %v7445_v40  ;;  %vm14107_vm15 = vcmask 523744   ;;  %v7018_v4 = vrot.slane %v6973_v28, 7 }
 0xa6f   :  { %v7456_v10 = vpop.permute.xlu1 %7455  ;;  %v2389_v32 = vpop.permute.xlu0 %2388  ;;  %v7019_v22 = vsel %vm6197_vm5, %v7018_v4, %v6972_v19  ;;  %v8433_v19 = vld [vmem:[%s13672_s2] ss:$0 sm:$0xff] }
 0xa70   :  { %7459 = vst.msk [vmem:[#allocation7] sm:$0x3] %vm7458_vm12, %v7456_v10  ;;  %vm14109_vm12 = vmmov %vm14097_vm14 }
 0xa71   :  { %2474 = vst.msk [vmem:[#allocation2 + $0x120] sm:$0xff] %vm14095_vm10, %v2389_v32  ;;  %6318 = vrot.lane.b32.xlu1 %v6299_v9, %s14096_s0  ;;  %vm14110_vm10 = vmmov %vm14098_vm8 }
 0xa73   :  { %v2391_v24 = vpop.permute.xlu1 %2390  ;;  %v2631_v30 = vpop.permute.xlu0 %2630 }
 0xa74   :  { %2475 = vst.msk [vmem:[#allocation2 + $0x128] sm:$0x3] %vm14097_vm14, %v2391_v24  ;;  %vm14111_vm14 = vcmask 517600  }
 0xa75   :  { %2716 = vst.msk [vmem:[#allocation2 + $0x120] sm:$0xff] %vm14098_vm8, %v2631_v30  ;;  %6408 = vrot.lane.b32.xlu1 %v6389_v3, %s8458_s13  ;;  %vm14112_vm8 = vcmask 556544  }
 0xa77   :  { %v2633_v16 = vpop.permute.xlu1 %2632  ;;  %v2873_v11 = vpop.permute.xlu0 %2872  ;;  %v7460_v1 = vld [vmem:[#allocation7] sm:$0x3] }
 0xa78   :  { %2717 = vst.msk [vmem:[#allocation2 + $0x128] sm:$0x3] %vm14099_vm0, %v2633_v16  ;;  %8251 = vmatmul.mubr.msk.f32.vlgmr.msra.gmra.mrb[4].mxu1 %vm7472_vm6, %v7460_v1  ;;  %vm14114_vm6 = vmmov %vm14099_vm0 }
 0xa79   :  { %2958 = vst.msk [vmem:[#allocation2 + $0x120] sm:$0xff] %vm14100_vm1, %v2873_v11  ;;  %6498 = vrot.lane.b32.xlu1 %v6479_v54, %s14101_s24  ;;  %8257 = vmatprep.mubr.msk.f32.mxu1 %vm8481_vm4, %v8467_v56  ;;  %v6659_v56 = vsel %vm6197_vm5, %v6658_v20, %v6612_v31  ;;  %vm14106_vm4 = vcmask 484800   ;;  %vm14115_vm0 = vmmov %vm14100_vm1  ;;  %vm14117_vm1 = vcmask 550400  }
 0xa7b   :  { %v2875_v41 = vpop.permute.xlu1 %2874  ;;  %v3115_v59 = vpop.permute.xlu0 %3114 }
 0xa7c   :  { %2959 = vst.msk [vmem:[#allocation2 + $0x128] sm:$0x3] %vm14102_vm2, %v2875_v41  ;;  %vm14118_vm2 = vcmask 589344   ;;  %v7548_v41 = vld [vmem:[%s13677_s7 + $0x8] sm:$0xff] }
 0xa7d   :  { %3200 = vst.msk [vmem:[#allocation2 + $0x120] sm:$0xff] %vm14103_vm7, %v3115_v59  ;;  %6588 = vrot.lane.b32.xlu1 %v6569_v45, %s8470_s14  ;;  %vm14119_vm7 = vcmask 452000   ;;  %v8318_v45 = vpack.c.bf16 %v7548_v41, %v7547_v21 }
 0xa7f   :  { %v2153_v38 = vpop.permute.xlu1 %2152  ;;  %v2393_v52 = vpop.permute.xlu0 %2392  ;;  %8319 = vmatpush3.bf16.msra.mxu1 %v8318_v45 }
 0xa80   :  { %2235 = vst.msk [vmem:[#allocation2 + $0x138] sm:$0x3] %vm14104_vm11, %v2153_v38  ;;  %vm14120_vm11 = vcmask 490944  }
 0xa81   :  { %2476 = vst.msk [vmem:[#allocation2 + $0x130] sm:$0xff] %vm14105_vm3, %v2393_v52  ;;  %6678 = vrot.lane.b32.xlu1 %v6659_v56, %s8471_s15  ;;  %vm14121_vm3 = vcmask 583200  }
 0xa83   :  { %v3117_v34 = vpop.permute.xlu1 %3116  ;;  %v3358_v36 = vpop.permute.xlu0 %3357 }
 0xa84   :  { %3201 = vst.msk [vmem:[#allocation2 + $0x128] sm:$0x3] %vm14106_vm4, %v3117_v34  ;;  %vm14122_vm4 = vcmask 622144  }
 0xa85   :  { %3443 = vst.msk [vmem:[#allocation2 + $0x120] sm:$0xff] %vm14107_vm15, %v3358_v36  ;;  %6768 = vrot.lane.b32.xlu1 %v6749_v6, %s14108_s5  ;;  %vm14123_vm15 = vcmask 484800  }
 0xa87   :  { %v2395_v57 = vpop.permute.xlu1 %2394  ;;  %v2635_v44 = vpop.permute.xlu0 %2634 }
 0xa88   :  { %2477 = vst.msk [vmem:[#allocation2 + $0x138] sm:$0x3] %vm14109_vm12, %v2395_v57  ;;  %vm14124_vm12 = vcmask 523744  }
 0xa89   :  { %2718 = vst.msk [vmem:[#allocation2 + $0x130] sm:$0xff] %vm14110_vm10, %v2635_v44  ;;  %6858 = vrot.lane.b32.xlu1 %v6839_v5, %s8473_s20  ;;  %vm14125_vm10 = vcmask 616000  }
 0xa8b   :  { %v3360_v46 = vpop.permute.xlu1 %3359  ;;  %v3600_v55 = vpop.permute.xlu0 %3599 }
 0xa8c   :  { %3444 = vst.msk [vmem:[#allocation2 + $0x128] sm:$0x3] %vm14111_vm14, %v3360_v46  ;;  %vm14126_vm14 = vcmask 654944  }
 0xa8d   :  { %3685 = vst.msk [vmem:[#allocation2 + $0x120] sm:$0xff] %vm14112_vm8, %v3600_v55  ;;  %6948 = vrot.lane.b32.xlu1 %v6929_v12, %s14113_s10  ;;  %vm14127_vm8 = vcmask 517600   ;;  %v8091_v55 = vld [vmem:[%s13676_s6] ss:$0 sm:$0xff] }
 0xa8f   :  { %v2637_v50 = vpop.permute.xlu1 %2636  ;;  %v2877_v35 = vpop.permute.xlu0 %2876 }
 0xa90   :  { %2719 = vst.msk [vmem:[#allocation2 + $0x138] sm:$0x3] %vm14114_vm6, %v2637_v50  ;;  %vm14128_vm6 = vcmask 556544  }
 0xa91   :  { %2960 = vst.msk [vmem:[#allocation2 + $0x130] sm:$0xff] %vm14115_vm0, %v2877_v35  ;;  %7038 = vrot.lane.b32.xlu1 %v7019_v22, %s14116_s12  ;;  %vm14129_vm0 = vcmask 648800  }
 0xa93   :  { %v3602_v17 = vpop.permute.xlu1 %3601  ;;  %v3842_v39 = vpop.permute.xlu0 %3841 }
 0xa94   :  { %3686 = vst.msk [vmem:[#allocation2 + $0x128] sm:$0x3] %vm14117_vm1, %v3602_v17  ;;  %vm14130_vm1 = vcmask 687744  }
 0xa95   :  { %3927 = vst.msk [vmem:[#allocation2 + $0x120] sm:$0xff] %vm14118_vm2, %v3842_v39  ;;  %vm14131_vm2 = vcmask 550400  }
 0xa97   :  { %v2879_v29 = vpop.permute.xlu1 %2878  ;;  %v3119_v51 = vpop.permute.xlu0 %3118 }
 0xa98   :  { %2961 = vst.msk [vmem:[#allocation2 + $0x138] sm:$0x3] %vm14119_vm7, %v2879_v29  ;;  %vm14132_vm7 = vcmask 589344  }
 0xa99   :  { %3202 = vst.msk [vmem:[#allocation2 + $0x130] sm:$0xff] %vm14120_vm11, %v3119_v51  ;;  %vm14133_vm11 = vcmask 681600  }
 0xa9b   :  { %v3844_v13 = vpop.permute.xlu1 %3843  ;;  %v4084_v48 = vpop.permute.xlu0 %4083 }
 0xa9c   :  { %3928 = vst.msk [vmem:[#allocation2 + $0x128] sm:$0x3] %vm14121_vm3, %v3844_v13  ;;  %vm14134_vm3 = vcmask 720544  }
 0xa9d   :  { %4169 = vst.msk [vmem:[#allocation2 + $0x120] sm:$0xff] %vm14122_vm4, %v4084_v48  ;;  %vm14135_vm4 = vcmask 583200  }
 0xa9f   :  { %v3121_v0 = vpop.permute.xlu1 %3120  ;;  %v3362_v14 = vpop.permute.xlu0 %3361 }
 0xaa0   :  { %3203 = vst.msk [vmem:[#allocation2 + $0x138] sm:$0x3] %vm14123_vm15, %v3121_v0  ;;  %vm14136_vm15 = vcmask 622144  }
 0xaa1   :  { %3445 = vst.msk [vmem:[#allocation2 + $0x130] sm:$0xff] %vm14124_vm12, %v3362_v14  ;;  %vm14137_vm12 = vcmask 714400  }
 0xaa3   :  { %v4086_v40 = vpop.permute.xlu1 %4085  ;;  %v4326_v61 = vpop.permute.xlu0 %4325 }
 0xaa4   :  { %4170 = vst.msk [vmem:[#allocation2 + $0x128] sm:$0x3] %vm14125_vm10, %v4086_v40  ;;  %vm14138_vm10 = vcmask 753344  }
 0xaa5   :  { %4411 = vst.msk [vmem:[#allocation2 + $0x120] sm:$0xff] %vm14126_vm14, %v4326_v61  ;;  %vm14139_vm14 = vcmask 616000  }
 0xaa7   :  { %v3364_v42 = vpop.permute.xlu1 %3363  ;;  %v3604_v43 = vpop.permute.xlu0 %3603 }
 0xaa8   :  { %3446 = vst.msk [vmem:[#allocation2 + $0x138] sm:$0x3] %vm14127_vm8, %v3364_v42  ;;  %vm14140_vm8 = vcmask 654944  }
 0xaa9   :  { %3687 = vst.msk [vmem:[#allocation2 + $0x130] sm:$0xff] %vm14128_vm6, %v3604_v43  ;;  %vm14141_vm6 = vcmask 747200  }
 0xaab   :  { %v4328_v10 = vpop.permute.xlu1 %4327  ;;  %v4568_v32 = vpop.permute.xlu0 %4567 }
 0xaac   :  { %4412 = vst.msk [vmem:[#allocation2 + $0x128] sm:$0x3] %vm14129_vm0, %v4328_v10  ;;  %vm14142_vm0 = vcmask 786144  }
 0xaad   :  { %4653 = vst.msk [vmem:[#allocation2 + $0x120] sm:$0xff] %vm14130_vm1, %v4568_v32  ;;  %vm14143_vm1 = vcmask 648800  }
 0xaaf   :  { %v3606_v60 = vpop.permute.xlu1 %3605  ;;  %v3846_v9 = vpop.permute.xlu0 %3845 }
 0xab0   :  { %3688 = vst.msk [vmem:[#allocation2 + $0x138] sm:$0x3] %vm14131_vm2, %v3606_v60  ;;  %vm14144_vm2 = vcmask 687744  }
 0xab1   :  { %3929 = vst.msk [vmem:[#allocation2 + $0x130] sm:$0xff] %vm14132_vm7, %v3846_v9  ;;  %vm14145_vm7 = vcmask 780000  }
 0xab3   :  { %v4570_v2 = vpop.permute.xlu1 %4569  ;;  %v4810_v27 = vpop.permute.xlu0 %4809 }
 0xab4   :  { %4654 = vst.msk [vmem:[#allocation2 + $0x128] sm:$0x3] %vm14133_vm11, %v4570_v2  ;;  %vm14146_vm11 = vcmask 818944  }
 0xab5   :  { %4895 = vst.msk [vmem:[#allocation2 + $0x120] sm:$0xff] %vm14134_vm3, %v4810_v27  ;;  %vm14147_vm3 = vcmask 681600  }
 0xab7   :  { %v3848_v24 = vpop.permute.xlu1 %3847  ;;  %v4088_v30 = vpop.permute.xlu0 %4087 }
 0xab8   :  { %3930 = vst.msk [vmem:[#allocation2 + $0x138] sm:$0x3] %vm14135_vm4, %v3848_v24  ;;  %vm14148_vm4 = vcmask 720544  }
 0xab9   :  { %4171 = vst.msk [vmem:[#allocation2 + $0x130] sm:$0xff] %vm14136_vm15, %v4088_v30  ;;  %vm14149_vm15 = vcmask 812800  }
 0xabb   :  { %v4812_v63 = vpop.permute.xlu1 %4811  ;;  %v5052_v3 = vpop.permute.xlu0 %5051 }
 0xabc   :  { %4896 = vst.msk [vmem:[#allocation2 + $0x128] sm:$0x3] %vm14137_vm12, %v4812_v63 }
 0xabd   :  { %5137 = vst.msk [vmem:[#allocation2 + $0x120] sm:$0xff] %vm14138_vm10, %v5052_v3  ;;  %vm14150_vm10 = vcmask 818176  }
 0xabf   :  { %v4090_v8 = vpop.permute.xlu1 %4089  ;;  %v4330_v26 = vpop.permute.xlu0 %4329 }
 0xac0   :  { %4172 = vst.msk [vmem:[#allocation2 + $0x138] sm:$0x3] %vm14139_vm14, %v4090_v8  ;;  %vm14151_vm14 = vcmask 753344  }
 0xac1   :  { %4413 = vst.msk [vmem:[#allocation2 + $0x130] sm:$0xff] %vm14140_vm8, %v4330_v26  ;;  %vm14152_vm8 = vmmov %vm14141_vm6 }
 0xac3   :  { %v5054_v16 = vpop.permute.xlu1 %5053  ;;  %v5294_v11 = vpop.permute.xlu0 %5293 }
 0xac4   :  { %5138 = vst.msk [vmem:[#allocation2 + $0x128] sm:$0x3] %vm14141_vm6, %v5054_v16  ;;  %vm14153_vm6 = vmmov %vm14142_vm0 }
 0xac5   :  { %5379 = vst.msk [vmem:[#allocation2 + $0x120] sm:$0xff] %vm14142_vm0, %v5294_v11  ;;  %vm14154_vm0 = vmmov %vm14145_vm7 }
 0xac7   :  { %v4332_v1 = vpop.permute.xlu1 %4331  ;;  %v4572_v25 = vpop.permute.xlu0 %4571 }
 0xac8   :  { %4414 = vst.msk [vmem:[#allocation2 + $0x138] sm:$0x3] %vm14143_vm1, %v4332_v1  ;;  %vm14155_vm1 = vmmov %vm14150_vm10 }
 0xac9   :  { %4655 = vst.msk [vmem:[#allocation2 + $0x130] sm:$0xff] %vm14144_vm2, %v4572_v25  ;;  %vm14156_vm2 = vmmov %vm14146_vm11 }
 0xacb   :  { %v5296_v54 = vpop.permute.xlu1 %5295  ;;  %v5536_v47 = vpop.permute.xlu0 %5535 }
 0xacc   :  { %5380 = vst.msk [vmem:[#allocation2 + $0x128] sm:$0x3] %vm14145_vm7, %v5296_v54  ;;  %vm14157_vm7 = vmmov %vm14149_vm15 }
 0xacd   :  { %5621 = vst.msk [vmem:[#allocation2 + $0x120] sm:$0xff] %vm14146_vm11, %v5536_v47  ;;  %vm14158_vm11 = vmmov %vm14155_vm1 }
 0xacf   :  { %v4574_v59 = vpop.permute.xlu1 %4573  ;;  %v4814_v7 = vpop.permute.xlu0 %4813 }
 0xad0   :  { %4656 = vst.msk [vmem:[#allocation2 + $0x138] sm:$0x3] %vm14147_vm3, %v4574_v59  ;;  %vm14159_vm3 = vmmov %vm14155_vm1 }
 0xad1   :  { %4897 = vst.msk [vmem:[#allocation2 + $0x130] sm:$0xff] %vm14148_vm4, %v4814_v7  ;;  %vm7556_vm4 = vcmask 130048  }
 0xad3   :  { %v5538_v20 = vpop.permute.xlu1 %5537  ;;  %v4816_v37 = vpop.permute.xlu0 %4815 }
 0xad4   :  { %v5661_v38 = vld [vmem:[#allocation2 + $0x120] sm:$0xff]  ;;  %5622 = vst.msk [vmem:[#allocation2 + $0x128] sm:$0x3] %vm14149_vm15, %v5538_v20 }
 0xad5   :  { %4898 = vst.msk [vmem:[#allocation2 + $0x138] sm:$0x3] %vm14137_vm12, %v4816_v37  ;;  %8236 = vmatprep.mubr.msk.f32.mxu0 %vm14150_vm10, %v5661_v38 }
 0xad7   :  { %v5056_v52 = vpop.permute.xlu1 %5055  ;;  %v5058_v31 = vpop.permute.xlu0 %5057 }
 0xad8   :  { %5139 = vst.msk [vmem:[#allocation2 + $0x130] sm:$0xff] %vm14151_vm14, %v5056_v52 }
 0xad9   :  { %5140 = vst.msk [vmem:[#allocation2 + $0x138] sm:$0x3] %vm14152_vm8, %v5058_v31 }
 0xadb   :  { %v5298_v56 = vpop.permute.xlu1 %5297  ;;  %v5300_v53 = vpop.permute.xlu0 %5299  ;;  %v5662_v49 = vld [vmem:[#allocation2 + $0x128] sm:$0xff] }
 0xadc   :  { %5381 = vst.msk [vmem:[#allocation2 + $0x130] sm:$0xff] %vm14153_vm6, %v5298_v56  ;;  %8237 = vmatmul.mubr.msk.f32.gmra.mrb[36].mxu0 %vm14155_vm1, %v5662_v49 }
 0xadd   :  { %5382 = vst.msk [vmem:[#allocation2 + $0x138] sm:$0x3] %vm14154_vm0, %v5300_v53 }
 0xadf   :  { %v5540_v34 = vpop.permute.xlu1 %5539  ;;  %v5542_v36 = vpop.permute.xlu0 %5541 }
 0xae0   :  { %5623 = vst.msk [vmem:[#allocation2 + $0x130] sm:$0xff] %vm14156_vm2, %v5540_v34 }
 0xae1   :  { %5624 = vst.msk [vmem:[#allocation2 + $0x138] sm:$0x3] %vm14157_vm7, %v5542_v36 }
 0xae3   :  { %v6319_v23 = vpop.permute.xlu1 %6318 }
 0xae7   :  { %v6409_v6 = vpop.permute.xlu1 %6408  ;;  %v5663_v33 = vld [vmem:[#allocation2 + $0x130] sm:$0xff] }
 0xae8   :  { %v5664_v62 = vld [vmem:[#allocation2 + $0x138] sm:$0xff]  ;;  %8239 = vmatprep.mubr.msk.f32.mxu0 %vm14158_vm11, %v5663_v33  ;;  %v8093_v6 = vld [vmem:[%s13678_s8] ss:$0 sm:$0xff] }
 0xae9   :  { %8240 = vmatmul.mubr.msk.f32.gmra.mrb[38].mxu0 %vm14159_vm3, %v5664_v62 }
 0xaeb   :  { %v6499_v57 = vpop.permute.xlu1 %6498 }
 0xaef   :  { %v6589_v44 = vpop.permute.xlu1 %6588 }
 0xaf3   :  { %v6679_v18 = vpop.permute.xlu1 %6678 }
 0xaf7   :  { %v6769_v5 = vpop.permute.xlu1 %6768 }
 0xafb   :  { %v6859_v15 = vpop.permute.xlu1 %6858 }
 0xaff   :  { %v6949_v28 = vpop.permute.xlu1 %6948 }
 0xb03   :  { %v7039_v46 = vpop.permute.xlu1 %7038 }
 0xb4b   :  { %v7542_v58 = vpop.f32.mrb[4].mxu1 }
 0xb4c   :  { %v7543_v12 = vadd.f32 %v8091_v55, %v7542_v58  ;;  %v8252_v4 = vpop.f32.mrb[5].mxu1 }
 0xb4e   :  { %8421 = vtanh.f32 %v7543_v12 }
 0xb58   :  { %v8422_v50 = vpop.eup %8421 }
 0xb59   :  { %8258 = vmatmul.mubr.msk.f32.vlgmr.msra.gmra.mrb[6].mxu1 %vm7556_vm4, %v8422_v50 }
 0xbaf   :  { %v8238_v35 = vpop.f32.mrb[36].mxu0 }
 0xbb0   :  { %v6062_v22 = vadd.f32 %v8433_v19, %v8238_v35  ;;  %v6056_v17 = vpop.f32.mrb[37].mxu0 }
 0xbb1   :  { %v6057_v39 = vadd.f32 %v8433_v19, %v6056_v17 }
 0xbb2   :  { %8423 = vtanh.f32 %v6062_v22 }
 0xbb3   :  { %8425 = vtanh.f32 %v6057_v39 }
 0xbbc   :  { %v8424_v29 = vpop.eup %8423  ;;  %v8241_v51 = vpop.f32.mrb[38].mxu0 }
 0xbbd   :  { %v8426_v13 = vpop.eup %8425  ;;  %6153 = vst.msk [vmem:[#allocation3 + $0x128] sm:$0xff] %vm6115_vm9, %v8424_v29  ;;  %v6072_v48 = vadd.f32 %v8433_v19, %v8241_v51  ;;  %v6066_v0 = vpop.f32.mrb[39].mxu0 }
 0xbbe   :  { %6152 = vst.msk [vmem:[#allocation3 + $0x120] sm:$0xff] %vm6115_vm9, %v8426_v13  ;;  %v6067_v14 = vadd.f32 %v8433_v19, %v6066_v0 }
 0xbbf   :  { %8427 = vtanh.f32 %v6072_v48 }
 0xbc0   :  { %8429 = vtanh.f32 %v6067_v14 }
 0xbc4   :  { %v6892_v53 = vld [vmem:[#allocation3 + $0x128] sm:$0x1]  ;;  %v6982_v36 = vld [vmem:[#allocation3 + $0x129] sm:$0x1] }
 0xbc5   :  { %v6262_v32 = vld [vmem:[#allocation3 + $0x121] sm:$0x1]  ;;  %v6352_v27 = vld [vmem:[#allocation3 + $0x122] sm:$0x1]  ;;  %v6442_v3 = vld [vmem:[#allocation3 + $0x123] sm:$0x1] }
 0xbc6   :  { %v6532_v11 = vld [vmem:[#allocation3 + $0x124] sm:$0x1]  ;;  %v6622_v47 = vld [vmem:[#allocation3 + $0x125] sm:$0x1]  ;;  %v6712_v7 = vld [vmem:[#allocation3 + $0x126] sm:$0x1] }
 0xbc7   :  { %v6802_v38 = vld [vmem:[#allocation3 + $0x127] sm:$0x1] }
 0xbc9   :  { %v8428_v40 = vpop.eup %8427 }
 0xbca   :  { %v8430_v61 = vpop.eup %8429  ;;  %6155 = vst.msk [vmem:[#allocation3 + $0x138] sm:$0xff] %vm6115_vm9, %v8428_v40 }
 0xbcb   :  { %6154 = vst.msk [vmem:[#allocation3 + $0x130] sm:$0xff] %vm6115_vm9, %v8430_v61 }
 0xbd1   :  { %v6893_v37 = vld [vmem:[#allocation3 + $0x138] sm:$0x1]  ;;  %v6983_v56 = vld [vmem:[#allocation3 + $0x139] sm:$0x1] }
 0xbd2   :  { %v6263_v42 = vld [vmem:[#allocation3 + $0x131] sm:$0x1]  ;;  %v6353_v43 = vld [vmem:[#allocation3 + $0x132] sm:$0x1]  ;;  %v6443_v2 = vld [vmem:[#allocation3 + $0x133] sm:$0x1] }
 0xbd3   :  { %v6314_v10 = vrot.slane %v6263_v42, 7  ;;  %v6404_v9 = vrot.slane %v6353_v43, 7  ;;  %v6494_v30 = vrot.slane %v6443_v2, 7  ;;  %v6533_v63 = vld [vmem:[#allocation3 + $0x134] sm:$0x1]  ;;  %v6944_v31 = vrot.slane %v6893_v37, 7 }
 0xbd4   :  { %v6584_v26 = vrot.slane %v6533_v63, 7  ;;  %v6623_v16 = vld [vmem:[#allocation3 + $0x135] sm:$0x1]  ;;  %v6713_v54 = vld [vmem:[#allocation3 + $0x136] sm:$0x1]  ;;  %v7034_v34 = vrot.slane %v6983_v56, 7 }
 0xbd5   :  { %v6315_v60 = vsel %vm6197_vm5, %v6314_v10, %v6262_v32  ;;  %v6405_v24 = vsel %vm6197_vm5, %v6404_v9, %v6352_v27  ;;  %v6495_v8 = vsel %vm6197_vm5, %v6494_v30, %v6442_v3  ;;  %v6674_v25 = vrot.slane %v6623_v16, 7  ;;  %v6803_v59 = vld [vmem:[#allocation3 + $0x137] sm:$0x1] }
 0xbd6   :  { %6322 = vrot.lane.b32.xlu0 %v6315_v60, %s14096_s0  ;;  %v6585_v1 = vsel %vm6197_vm5, %v6584_v26, %v6532_v11  ;;  %v6764_v41 = vrot.slane %v6713_v54, 7  ;;  %v6854_v20 = vrot.slane %v6803_v59, 7  ;;  %v6945_v49 = vsel %vm6197_vm5, %v6944_v31, %v6892_v53 }
 0xbd7   :  { %v6675_v21 = vsel %vm6197_vm5, %v6674_v25, %v6622_v47  ;;  %v7035_v23 = vsel %vm6197_vm5, %v7034_v34, %v6982_v36 }
 0xbd8   :  { %v6765_v45 = vsel %vm6197_vm5, %v6764_v41, %v6712_v7  ;;  %v6855_v52 = vsel %vm6197_vm5, %v6854_v20, %v6802_v38 }
 0xbda   :  { %6412 = vrot.lane.b32.xlu0 %v6405_v24, %s8458_s13  ;;  %s8482_s13 = smov [#allocation8]  }
 0xbde   :  { %6502 = vrot.lane.b32.xlu0 %v6495_v8, %s14101_s24 }
 0xbe2   :  { %6592 = vrot.lane.b32.xlu0 %v6585_v1, %s8470_s14  ;;  %s7637_s14 = sshll.u32 %s8482_s13, 4  ;;  %s7638_s14 = int_to_ptr.vmem [resolvable:$true] %s7637_s14 }
 0xbe3   :  { %p8439_p1 = scmp.lt.s32.totalorder %s7638_s14, %s7638_s14 }
 0xbe6   :  { %6682 = vrot.lane.b32.xlu0 %v6675_v21, %s8471_s15  ;;  %s8434_s15 = scalar_lea.vmem %s7638_s14, 32 }
 0xbe7   :  { %p8435_p0 = scmp.ne.s32.totalorder %s7638_s14, %s8434_s15  ;;  %p8440_p2 = scmp.lt.s32.totalorder %s8434_s15, %s8434_s15 }
 0xbe9   :  { %p8441_p3 = por %p8440_p2, %p8439_p1 }
 0xbea   :  { %6772 = vrot.lane.b32.xlu0 %v6765_v45, %s14108_s5 }
 0xbeb   :  { %p8442_p4 = pnand %p8441_p3, %p8435_p0 }
 0xbee   :  { %6862 = vrot.lane.b32.xlu0 %v6855_v52, %s8473_s20 }
 0xbf2   :  { %6952 = vrot.lane.b32.xlu0 %v6945_v49, %s14113_s10 }
 0xbf6   :  { %7042 = vrot.lane.b32.xlu0 %v7035_v23, %s14116_s12 }
 0xc2c   :  { %v7626_v33 = vpop.f32.mrb[6].mxu1 }
 0xc2d   :  { %v7627_v62 = vadd.f32 %v8093_v6, %v7626_v33  ;;  %v8259_v57 = vpop.f32.mrb[7].mxu1 }
 0xc2f   :  { %7630 = vst.msk [vmem:[#allocation8] sm:$0x3] %vm7425_vm13, %v7627_v62 }
 0xc30   :  { %8445 = shalt.err (!%p8442_p4)
}
 0xc31   :  { %s8446_s30 = scalar_lea.hbm %s13679_s9, 32 }
 0xc32   :  { %p8447_p5 = scmp.ne.s32.totalorder %s13679_s9, %s8446_s30  ;;  %p8450_p6 = scmp.lt.u32.totalorder %s8446_s30, %s13679_s9 }
 0xc34   :  { %p8452_p7 = pnand %p8450_p6, %p8447_p5 }
 0xc36   :  { %8455 = shalt.err (!%p8452_p7)
}
 0xc37   :  { %7640 = dma.vmem_to_hbm [thread:$0]  %s7638_s14, 32, %s13679_s9, [#allocation9]  }
 0xc48   :  { %v6323_v44 = vpop.permute.xlu0 %6322 }
 0xc4c   :  { %v6413_v18 = vpop.permute.xlu0 %6412 }
 0xc50   :  { %v6503_v5 = vpop.permute.xlu0 %6502 }
 0xc54   :  { %v6593_v15 = vpop.permute.xlu0 %6592 }
 0xc58   :  { %v6683_v28 = vpop.permute.xlu0 %6682 }
 0xc5c   :  { %v6773_v46 = vpop.permute.xlu0 %6772 }
 0xc60   :  { %v6863_v55 = vpop.permute.xlu0 %6862 }
 0xc64   :  { %v6953_v58 = vpop.permute.xlu0 %6952 }
 0xc68   :  { %v7043_v12 = vpop.permute.xlu0 %7042 }
 0xc69   :  { %8456 = dma.done.wait [#allocation9], 32  }
 0xc6a   :  { %8457 = vsyncadd [#allocation9], 4294967264 }
 0xc6b   :  { %7644 = vsyncpa [#allocation9], 1 }

</bundles_post_ra>
